<compile_context>
chip_gen: v7x
topology: tpu7x:2x2x1
jax: 0.10.0
libtpu: 0.0.40
codegen_flags: <defaults>
</compile_context>

<pallas_src>
import functools

import jax
import jax.numpy as jnp
from jax.experimental import pallas as pl
from jax.experimental.pallas import tpu as pltpu


def _round_up(x, m):
    return (x + m - 1) // m * m


# ----------------------------------------------------------------------------
# Kernel 1: tiled matmul + folded BN + optional fused residual + optional ReLU
# ----------------------------------------------------------------------------
def _matmul_bn_kernel(x_ref, w_ref, scale_ref, bias_ref, *rest, relu, has_res):
    if has_res:
        res_ref, o_ref, acc_ref = rest
    else:
        res_ref = None
        o_ref, acc_ref = rest

    @pl.when(pl.program_id(2) == 0)
    def _init():
        acc_ref[...] = jnp.zeros_like(acc_ref)

    acc_ref[...] += jnp.dot(x_ref[...], w_ref[...],
                            preferred_element_type=jnp.float32)

    @pl.when(pl.program_id(2) == pl.num_programs(2) - 1)
    def _epilogue():
        # BN + residual + ReLU done once, in f32, only on the last K step.
        y = acc_ref[...] * scale_ref[...] + bias_ref[...]
        if has_res:
            y = y + res_ref[...]
        if relu:
            y = jnp.maximum(y, 0.0)
        o_ref[...] = y.astype(o_ref.dtype)


def matmul_bn(x, w, scale, bias, residual=None, *, relu,
              tm=256, tn=256, tk=512, out_dtype=jnp.float32):
    """Fused (M,K)@(K,Cout) matmul + folded BN + optional residual + ReLU.

    Operands are zero-padded to tile multiples and cast to bf16 for the MXU;
    accumulation and the epilogue run in f32.
    """
    M, K = x.shape
    K2, Cout = w.shape
    assert K == K2

    # Tile sizes: shrink to the (aligned) problem size for small shapes.
    tm = min(tm, _round_up(M, 16))
    tn = min(tn, _round_up(Cout, 128))
    tk = min(tk, _round_up(K, 128))
    Mp = _round_up(M, tm)
    Kp = _round_up(K, tk)
    Np = _round_up(Cout, tn)

    xb = jnp.pad(x.astype(jnp.bfloat16), ((0, Mp - M), (0, Kp - K)))
    wb = jnp.pad(w.astype(jnp.bfloat16), ((0, Kp - K), (0, Np - Cout)))
    s2 = jnp.pad(scale.astype(jnp.float32).reshape(1, Cout),
                 ((0, 0), (0, Np - Cout)))
    b2 = jnp.pad(bias.astype(jnp.float32).reshape(1, Cout),
                 ((0, 0), (0, Np - Cout)))

    in_specs = [
        pl.BlockSpec((tm, tk), lambda i, j, k: (i, k)),
        pl.BlockSpec((tk, tn), lambda i, j, k: (k, j)),
        pl.BlockSpec((1, tn), lambda i, j, k: (0, j)),
        pl.BlockSpec((1, tn), lambda i, j, k: (0, j)),
    ]
    args = [xb, wb, s2, b2]
    has_res = residual is not None
    if has_res:
        resb = jnp.pad(residual.astype(jnp.float32),
                       ((0, Mp - M), (0, Np - Cout)))
        in_specs.append(pl.BlockSpec((tm, tn), lambda i, j, k: (i, j)))
        args.append(resb)

    grid = (Mp // tm, Np // tn, Kp // tk)
    out = pl.pallas_call(
        functools.partial(_matmul_bn_kernel, relu=relu, has_res=has_res),
        out_shape=jax.ShapeDtypeStruct((Mp, Np), out_dtype),
        grid=grid,
        in_specs=in_specs,
        out_specs=pl.BlockSpec((tm, tn), lambda i, j, k: (i, j)),
        scratch_shapes=[pltpu.VMEM((tm, tn), jnp.float32)],
        compiler_params=pltpu.CompilerParams(
            dimension_semantics=("parallel", "parallel", "arbitrary"),
            vmem_limit_bytes=32 * 1024 * 1024),
    )(*args)
    return out[:M, :Cout]


# ----------------------------------------------------------------------------
# Kernel 2: 3x3 conv (pad=1, stride s) + folded BN + ReLU, 9-tap accumulation
# in-kernel (no HBM im2col).  Padded image stays resident in VMEM per batch elem.
# ----------------------------------------------------------------------------
def _conv3x3_bn_kernel(x_ref, w_ref, scale_ref, bias_ref, o_ref, *,
                       stride, th, wo, relu):
    # x_ref:     (H+2, W+2, Cp)   bf16  -- full zero-padded image for batch n
    # w_ref:     (9, Cp, tn)      bf16  -- tap-major weights
    # scale/bias:(1, tn)          f32
    # o_ref:     (th, Wo, tn)
    i = pl.program_id(1)
    row0 = i * (th * stride)
    tn = w_ref.shape[-1]
    scale = scale_ref[...]          # hoisted out of the loops (no re-broadcast)
    bias = bias_ref[...]
    for oh in range(th):            # static, unrolled
        acc = jnp.zeros((wo, tn), jnp.float32)
        for kh in range(3):
            xrow = x_ref[row0 + oh * stride + kh]          # (W+2, Cp)
            for kw in range(3):
                if stride == 1:
                    xt = xrow[kw:kw + wo, :]
                else:
                    xt = xrow[kw:kw + (wo - 1) * stride + 1:stride, :]
                acc = acc + jnp.dot(xt, w_ref[kh * 3 + kw],
                                    preferred_element_type=jnp.float32)
        y = acc * scale + bias
        if relu:
            y = jnp.maximum(y, 0.0)
        o_ref[oh] = y.astype(o_ref.dtype)


def conv3x3_bn(x_nhwc, w9, scale, bias, *, stride, relu=True, tn=256):
    """3x3/pad=1/stride conv + folded BN + ReLU.  w9: (9, Cin, Cout) tap-major."""
    N, H, W, Cin = x_nhwc.shape
    Cout = w9.shape[-1]
    Ho = (H + 2 - 3) // stride + 1
    Wo = (W + 2 - 3) // stride + 1

    Cp = _round_up(Cin, 128)
    tn = min(tn, _round_up(Cout, 128))
    Np = _round_up(Cout, tn)

    # spatial pad=1 for the conv, channel pad to a lane multiple, cast to bf16.
    xp = jnp.pad(x_nhwc.astype(jnp.bfloat16),
                 ((0, 0), (1, 1), (1, 1), (0, Cp - Cin)))
    wp = jnp.pad(w9.astype(jnp.bfloat16),
                 ((0, 0), (0, Cp - Cin), (0, Np - Cout)))
    s2 = jnp.pad(scale.astype(jnp.float32).reshape(1, Cout),
                 ((0, 0), (0, Np - Cout)))
    b2 = jnp.pad(bias.astype(jnp.float32).reshape(1, Cout),
                 ((0, 0), (0, Np - Cout)))

    # Tile height over output rows: largest candidate dividing Ho.
    th = 1
    for cand in (16, 8, 4, 2):
        if Ho % cand == 0:
            th = cand
            break

    Hp2, Wp2 = H + 2, W + 2
    grid = (N, Ho // th, Np // tn)

    out = pl.pallas_call(
        functools.partial(_conv3x3_bn_kernel, stride=stride, th=th, wo=Wo,
                          relu=relu),
        out_shape=jax.ShapeDtypeStruct((N, Ho, Wo, Np), jnp.bfloat16),
        grid=grid,
        in_specs=[
            pl.BlockSpec((pl.Squeezed(), Hp2, Wp2, Cp),
                         lambda n, i, j: (n, 0, 0, 0)),
            pl.BlockSpec((9, Cp, tn), lambda n, i, j: (0, 0, j)),
            pl.BlockSpec((1, tn), lambda n, i, j: (0, j)),
            pl.BlockSpec((1, tn), lambda n, i, j: (0, j)),
        ],
        out_specs=pl.BlockSpec((pl.Squeezed(), th, Wo, tn),
                               lambda n, i, j: (n, i, 0, j)),
        compiler_params=pltpu.CompilerParams(
            dimension_semantics=("parallel", "parallel", "parallel"),
            vmem_limit_bytes=32 * 1024 * 1024),
    )(xp, wp, s2, b2)
    return out[:, :, :, :Cout]


# ----------------------------------------------------------------------------
# Parameter construction (deterministic, synthetic) — eval-mode BN folded.
# ----------------------------------------------------------------------------
def fold_bn(gamma, beta, mean, var, eps=1e-5):
    scale = gamma / jnp.sqrt(var + eps)
    bias = beta - mean * scale
    return scale, bias


def make_params(key, in_channels, out_channels, stride, expansion=4):
    c_exp = out_channels * expansion
    ks = jax.random.split(key, 8)

    def conv_w(k, cout, cin, kh, kw):
        # PyTorch layout (Cout, Cin, KH, KW), small deterministic values.
        return 0.1 * jax.random.normal(k, (cout, cin, kh, kw), jnp.float32)

    def bn_params(k, c):
        k1, k2, k3, k4 = jax.random.split(k, 4)
        gamma = 1.0 + 0.1 * jax.random.normal(k1, (c,), jnp.float32)
        beta = 0.1 * jax.random.normal(k2, (c,), jnp.float32)
        mean = 0.05 * jax.random.normal(k3, (c,), jnp.float32)
        var = 1.0 + 0.1 * jax.random.uniform(k4, (c,), jnp.float32)
        return fold_bn(gamma, beta, mean, var)

    params = {
        "w1": conv_w(ks[0], out_channels, in_channels, 1, 1),
        "bn1": bn_params(ks[1], out_channels),
        "w2": conv_w(ks[2], out_channels, out_channels, 3, 3),
        "bn2": bn_params(ks[3], out_channels),
        "w3": conv_w(ks[4], c_exp, out_channels, 1, 1),
        "bn3": bn_params(ks[5], c_exp),
    }
    if (stride != 1) or (in_channels != c_exp):
        params["ws"] = conv_w(ks[6], c_exp, in_channels, 1, 1)
        params["bns"] = bn_params(ks[7], c_exp)
    return params


# ----------------------------------------------------------------------------
# Forward pass (NCHW at the boundary, NHWC / channels-on-lanes inside)
# ----------------------------------------------------------------------------
@functools.partial(jax.jit, static_argnames=("stride",))
def bottleneck_forward(x_nchw, params, *, stride):
    N, Cin, H, W = x_nchw.shape
    x = jnp.transpose(x_nchw, (0, 2, 3, 1)).astype(jnp.float32)   # NHWC

    C = params["w1"].shape[0]
    c_exp = params["w3"].shape[0]

    # conv1 (1x1) + BN + ReLU  -- bf16 output feeds the 3x3 conv directly.
    w1 = params["w1"][:, :, 0, 0].T                                # (Cin, C)
    s1, b1 = params["bn1"]
    y1 = matmul_bn(x.reshape(N * H * W, Cin), w1, s1, b1,
                   relu=True, out_dtype=jnp.bfloat16)
    y1 = y1.reshape(N, H, W, C)

    # conv2 (3x3, stride, pad=1) + BN + ReLU -- 9-tap in-kernel accumulation.
    w2 = jnp.transpose(params["w2"], (2, 3, 1, 0)).reshape(9, C, C)  # (kh,kw)->9
    s2, b2 = params["bn2"]
    y2 = conv3x3_bn(y1, w2, s2, b2, stride=stride, relu=True)        # (N,Ho,Wo,C)
    Ho, Wo = y2.shape[1], y2.shape[2]

    # shortcut (1x1 conv + BN or identity)
    if "ws" in params:
        xs = x[:, ::stride, ::stride, :].reshape(N * Ho * Wo, Cin)
        wsc = params["ws"][:, :, 0, 0].T
        ss, bs = params["bns"]
        sc = matmul_bn(xs, wsc, ss, bs, relu=False)                  # f32
    else:
        sc = x.reshape(N * Ho * Wo, c_exp)

    # conv3 (1x1) + BN + residual add + final ReLU, fused in one epilogue.
    w3 = params["w3"][:, :, 0, 0].T                                  # (C, 4C)
    s3, b3 = params["bn3"]
    y3 = matmul_bn(y2.reshape(N * Ho * Wo, C), w3, s3, b3,
                   residual=sc, relu=True)

    out = y3.reshape(N, Ho, Wo, c_exp)
    return jnp.transpose(out, (0, 3, 1, 2))                          # NCHW


# ----------------------------------------------------------------------------
if __name__ == "__main__":
    key = jax.random.PRNGKey(0)
    k_x, k_p = jax.random.split(key)

    # Small shapes: batch=2, in_channels=16, out_channels=8 (-> 32 out), 8x8 spatial.
    N, Cin, H, W = 2, 16, 8, 8
    out_channels = 8
    stride = 1

    x = jax.random.normal(k_x, (N, Cin, H, W), jnp.float32)
    params = make_params(k_p, Cin, out_channels, stride)

    out = bottleneck_forward(x, params, stride=stride)
    out = jax.block_until_ready(out)

    expected_shape = (N, out_channels * 4, H // stride, W // stride)
    assert out.shape == expected_shape, (out.shape, expected_shape)
    assert bool(jnp.all(jnp.isfinite(out)))
    assert bool(jnp.all(out >= 0.0))  # final ReLU
    print("KERNEL_OK")
</pallas_src>

<mosaic_0001>
module attributes {stable_mosaic.version = 11 : i64} {
  func.func @_matmul_bn_kernel(%arg0: i32, %arg1: i32, %arg2: i32, %arg3: memref<128x128xbf16, #tpu.memory_space<vmem>>, %arg4: memref<128x128xbf16, #tpu.memory_space<vmem>>, %arg5: memref<1x128xf32, #tpu.memory_space<vmem>>, %arg6: memref<1x128xf32, #tpu.memory_space<vmem>>, %arg7: memref<128x128xbf16, #tpu.memory_space<vmem>>, %arg8: memref<128x128xf32, #tpu.memory_space<vmem>>) attributes {dimension_semantics = [#tpu.dimension_semantics<parallel>, #tpu.dimension_semantics<parallel>, #tpu.dimension_semantics<arbitrary>], iteration_bounds = array<i64: 1, 1, 1>, scalar_prefetch = 0 : i64, scratch_operands = 1 : i64, tpu.core_type = #tpu.core_type<tc>, window_params = [{transform_indices = @transform_0, window_bounds = array<i64: 128, 128>}, {transform_indices = @transform_1, window_bounds = array<i64: 128, 128>}, {transform_indices = @transform_2, window_bounds = array<i64: 1, 128>}, {transform_indices = @transform_3, window_bounds = array<i64: 1, 128>}, {transform_indices = @transform_4, window_bounds = array<i64: 128, 128>}]} {
    %c0_i32 = arith.constant 0 : i32
    %0 = arith.cmpi eq, %arg2, %c0_i32 : i32
    %1 = arith.extui %0 : i1 to i32
    %c0_i32_0 = arith.constant 0 : i32
    %2 = arith.cmpi ne, %1, %c0_i32_0 : i32
    scf.if %2 {
      %cst_10 = arith.constant 0.000000e+00 : f32
      %12 = vector.broadcast %cst_10 : f32 to vector<128x128xf32>
      %c0_11 = arith.constant 0 : index
      %c0_12 = arith.constant 0 : index
      %13 = vector.load %arg8[%c0_11, %c0_12] : memref<128x128xf32, #tpu.memory_space<vmem>>, vector<128x128xf32>
      tpu.vector_store %arg8[%c0_11, %c0_12], %12 {strides = array<i32>} : memref<128x128xf32, #tpu.memory_space<vmem>>, vector<128x128xf32>,
    } else {
    }
    %c0 = arith.constant 0 : index
    %c0_1 = arith.constant 0 : index
    %3 = vector.load %arg8[%c0, %c0_1] : memref<128x128xf32, #tpu.memory_space<vmem>>, vector<128x128xf32>
    %c0_2 = arith.constant 0 : index
    %c0_3 = arith.constant 0 : index
    %4 = vector.load %arg3[%c0_2, %c0_3] : memref<128x128xbf16, #tpu.memory_space<vmem>>, vector<128x128xbf16>
    %c0_4 = arith.constant 0 : index
    %c0_5 = arith.constant 0 : index
    %5 = vector.load %arg4[%c0_4, %c0_5] : memref<128x128xbf16, #tpu.memory_space<vmem>>, vector<128x128xbf16>
    %cst = arith.constant dense<0.000000e+00> : vector<128x128xf32>
    %6 = tpu.matmul %4, %5, %cst {dimension_numbers = #tpu.dot_dimension_numbers<[1], [0], [0], [1], [0, 0, 1, 1], [], []>} : vector<128x128xbf16>, vector<128x128xbf16>, vector<128x128xf32> -> vector<128x128xf32>
    %7 = arith.addf %3, %6 : vector<128x128xf32>
    %c0_6 = arith.constant 0 : index
    %c0_7 = arith.constant 0 : index
    %8 = vector.load %arg8[%c0_6, %c0_7] : memref<128x128xf32, #tpu.memory_space<vmem>>, vector<128x128xf32>
    tpu.vector_store %arg8[%c0_6, %c0_7], %7 {strides = array<i32>} : memref<128x128xf32, #tpu.memory_space<vmem>>, vector<128x128xf32>,
    %c0_i32_8 = arith.constant 0 : i32
    %9 = arith.cmpi eq, %arg2, %c0_i32_8 : i32
    %10 = arith.extui %9 : i1 to i32
    %c0_i32_9 = arith.constant 0 : i32
    %11 = arith.cmpi ne, %10, %c0_i32_9 : i32
    scf.if %11 {
      %c0_10 = arith.constant 0 : index
      %c0_11 = arith.constant 0 : index
      %12 = vector.load %arg8[%c0_10, %c0_11] : memref<128x128xf32, #tpu.memory_space<vmem>>, vector<128x128xf32>
      %c0_12 = arith.constant 0 : index
      %c0_13 = arith.constant 0 : index
      %13 = vector.load %arg5[%c0_12, %c0_13] : memref<1x128xf32, #tpu.memory_space<vmem>>, vector<1x128xf32>
      %14 = vector.broadcast %13 : vector<1x128xf32> to vector<128x128xf32>
      %15 = arith.mulf %12, %14 : vector<128x128xf32>
      %c0_14 = arith.constant 0 : index
      %c0_15 = arith.constant 0 : index
      %16 = vector.load %arg6[%c0_14, %c0_15] : memref<1x128xf32, #tpu.memory_space<vmem>>, vector<1x128xf32>
      %17 = vector.broadcast %16 : vector<1x128xf32> to vector<128x128xf32>
      %18 = arith.addf %15, %17 : vector<128x128xf32>
      %cst_16 = arith.constant 0.000000e+00 : f32
      %19 = vector.broadcast %cst_16 : f32 to vector<128x128xf32>
      %20 = arith.maximumf %18, %19 : vector<128x128xf32>
      %21 = arith.truncf %20 : vector<128x128xf32> to vector<128x128xbf16>
      %c0_17 = arith.constant 0 : index
      %c0_18 = arith.constant 0 : index
      %22 = vector.load %arg7[%c0_17, %c0_18] : memref<128x128xbf16, #tpu.memory_space<vmem>>, vector<128x128xbf16>
      tpu.vector_store %arg7[%c0_17, %c0_18], %21 {strides = array<i32>} : memref<128x128xbf16, #tpu.memory_space<vmem>>, vector<128x128xbf16>,
    } else {
    }
    return
  }
  func.func @transform_0(%arg0: i32, %arg1: i32, %arg2: i32) -> (i32, i32) {
    %c0_i32 = arith.constant 0 : i32
    return %arg0, %arg2 : i32, i32
  }
  func.func @transform_1(%arg0: i32, %arg1: i32, %arg2: i32) -> (i32, i32) {
    %c0_i32 = arith.constant 0 : i32
    return %arg2, %arg1 : i32, i32
  }
  func.func @transform_2(%arg0: i32, %arg1: i32, %arg2: i32) -> (i32, i32) {
    %c0_i32 = arith.constant 0 : i32
    %c0_i32_0 = arith.constant 0 : i32
    return %c0_i32, %arg1 : i32, i32
  }
  func.func @transform_3(%arg0: i32, %arg1: i32, %arg2: i32) -> (i32, i32) {
    %c0_i32 = arith.constant 0 : i32
    %c0_i32_0 = arith.constant 0 : i32
    return %c0_i32, %arg1 : i32, i32
  }
  func.func @transform_4(%arg0: i32, %arg1: i32, %arg2: i32) -> (i32, i32) {
    %c0_i32 = arith.constant 0 : i32
    return %arg0, %arg1 : i32, i32
  }
}

module attributes {stable_mosaic.version = 11 : i64} {
  func.func @_matmul_bn_kernel(%arg0: i32, %arg1: i32, %arg2: i32, %arg3: memref<128x128xbf16, #tpu.memory_space<vmem>>, %arg4: memref<128x128xbf16, #tpu.memory_space<vmem>>, %arg5: memref<1x128xf32, #tpu.memory_space<vmem>>, %arg6: memref<1x128xf32, #tpu.memory_space<vmem>>, %arg7: memref<128x128xf32, #tpu.memory_space<vmem>>, %arg8: memref<128x128xf32, #tpu.memory_space<vmem>>) attributes {dimension_semantics = [#tpu.dimension_semantics<parallel>, #tpu.dimension_semantics<parallel>, #tpu.dimension_semantics<arbitrary>], iteration_bounds = array<i64: 1, 1, 1>, scalar_prefetch = 0 : i64, scratch_operands = 1 : i64, tpu.core_type = #tpu.core_type<tc>, window_params = [{transform_indices = @transform_0, window_bounds = array<i64: 128, 128>}, {transform_indices = @transform_1, window_bounds = array<i64: 128, 128>}, {transform_indices = @transform_2, window_bounds = array<i64: 1, 128>}, {transform_indices = @transform_3, window_bounds = array<i64: 1, 128>}, {transform_indices = @transform_4, window_bounds = array<i64: 128, 128>}]} {
    %c0_i32 = arith.constant 0 : i32
    %0 = arith.cmpi eq, %arg2, %c0_i32 : i32
    %1 = arith.extui %0 : i1 to i32
    %c0_i32_0 = arith.constant 0 : i32
    %2 = arith.cmpi ne, %1, %c0_i32_0 : i32
    scf.if %2 {
      %cst_10 = arith.constant 0.000000e+00 : f32
      %12 = vector.broadcast %cst_10 : f32 to vector<128x128xf32>
      %c0_11 = arith.constant 0 : index
      %c0_12 = arith.constant 0 : index
      %13 = vector.load %arg8[%c0_11, %c0_12] : memref<128x128xf32, #tpu.memory_space<vmem>>, vector<128x128xf32>
      tpu.vector_store %arg8[%c0_11, %c0_12], %12 {strides = array<i32>} : memref<128x128xf32, #tpu.memory_space<vmem>>, vector<128x128xf32>,
    } else {
    }
    %c0 = arith.constant 0 : index
    %c0_1 = arith.constant 0 : index
    %3 = vector.load %arg8[%c0, %c0_1] : memref<128x128xf32, #tpu.memory_space<vmem>>, vector<128x128xf32>
    %c0_2 = arith.constant 0 : index
    %c0_3 = arith.constant 0 : index
    %4 = vector.load %arg3[%c0_2, %c0_3] : memref<128x128xbf16, #tpu.memory_space<vmem>>, vector<128x128xbf16>
    %c0_4 = arith.constant 0 : index
    %c0_5 = arith.constant 0 : index
    %5 = vector.load %arg4[%c0_4, %c0_5] : memref<128x128xbf16, #tpu.memory_space<vmem>>, vector<128x128xbf16>
    %cst = arith.constant dense<0.000000e+00> : vector<128x128xf32>
    %6 = tpu.matmul %4, %5, %cst {dimension_numbers = #tpu.dot_dimension_numbers<[1], [0], [0], [1], [0, 0, 1, 1], [], []>} : vector<128x128xbf16>, vector<128x128xbf16>, vector<128x128xf32> -> vector<128x128xf32>
    %7 = arith.addf %3, %6 : vector<128x128xf32>
    %c0_6 = arith.constant 0 : index
    %c0_7 = arith.constant 0 : index
    %8 = vector.load %arg8[%c0_6, %c0_7] : memref<128x128xf32, #tpu.memory_space<vmem>>, vector<128x128xf32>
    tpu.vector_store %arg8[%c0_6, %c0_7], %7 {strides = array<i32>} : memref<128x128xf32, #tpu.memory_space<vmem>>, vector<128x128xf32>,
    %c0_i32_8 = arith.constant 0 : i32
    %9 = arith.cmpi eq, %arg2, %c0_i32_8 : i32
    %10 = arith.extui %9 : i1 to i32
    %c0_i32_9 = arith.constant 0 : i32
    %11 = arith.cmpi ne, %10, %c0_i32_9 : i32
    scf.if %11 {
      %c0_10 = arith.constant 0 : index
      %c0_11 = arith.constant 0 : index
      %12 = vector.load %arg8[%c0_10, %c0_11] : memref<128x128xf32, #tpu.memory_space<vmem>>, vector<128x128xf32>
      %c0_12 = arith.constant 0 : index
      %c0_13 = arith.constant 0 : index
      %13 = vector.load %arg5[%c0_12, %c0_13] : memref<1x128xf32, #tpu.memory_space<vmem>>, vector<1x128xf32>
      %14 = vector.broadcast %13 : vector<1x128xf32> to vector<128x128xf32>
      %15 = arith.mulf %12, %14 : vector<128x128xf32>
      %c0_14 = arith.constant 0 : index
      %c0_15 = arith.constant 0 : index
      %16 = vector.load %arg6[%c0_14, %c0_15] : memref<1x128xf32, #tpu.memory_space<vmem>>, vector<1x128xf32>
      %17 = vector.broadcast %16 : vector<1x128xf32> to vector<128x128xf32>
      %18 = arith.addf %15, %17 : vector<128x128xf32>
      %c0_16 = arith.constant 0 : index
      %c0_17 = arith.constant 0 : index
      %19 = vector.load %arg7[%c0_16, %c0_17] : memref<128x128xf32, #tpu.memory_space<vmem>>, vector<128x128xf32>
      tpu.vector_store %arg7[%c0_16, %c0_17], %18 {strides = array<i32>} : memref<128x128xf32, #tpu.memory_space<vmem>>, vector<128x128xf32>,
    } else {
    }
    return
  }
  func.func @transform_0(%arg0: i32, %arg1: i32, %arg2: i32) -> (i32, i32) {
    %c0_i32 = arith.constant 0 : i32
    return %arg0, %arg2 : i32, i32
  }
  func.func @transform_1(%arg0: i32, %arg1: i32, %arg2: i32) -> (i32, i32) {
    %c0_i32 = arith.constant 0 : i32
    return %arg2, %arg1 : i32, i32
  }
  func.func @transform_2(%arg0: i32, %arg1: i32, %arg2: i32) -> (i32, i32) {
    %c0_i32 = arith.constant 0 : i32
    %c0_i32_0 = arith.constant 0 : i32
    return %c0_i32, %arg1 : i32, i32
  }
  func.func @transform_3(%arg0: i32, %arg1: i32, %arg2: i32) -> (i32, i32) {
    %c0_i32 = arith.constant 0 : i32
    %c0_i32_0 = arith.constant 0 : i32
    return %c0_i32, %arg1 : i32, i32
  }
  func.func @transform_4(%arg0: i32, %arg1: i32, %arg2: i32) -> (i32, i32) {
    %c0_i32 = arith.constant 0 : i32
    return %arg0, %arg1 : i32, i32
  }
}

module attributes {stable_mosaic.version = 11 : i64} {
  func.func @_conv3x3_bn_kernel(%arg0: i32, %arg1: i32, %arg2: i32, %arg3: memref<1x10x10x128xbf16, #tpu.memory_space<vmem>>, %arg4: memref<9x128x128xbf16, #tpu.memory_space<vmem>>, %arg5: memref<1x128xf32, #tpu.memory_space<vmem>>, %arg6: memref<1x128xf32, #tpu.memory_space<vmem>>, %arg7: memref<1x8x8x128xbf16, #tpu.memory_space<vmem>>) attributes {dimension_semantics = [#tpu.dimension_semantics<parallel>, #tpu.dimension_semantics<parallel>, #tpu.dimension_semantics<parallel>], iteration_bounds = array<i64: 2, 1, 1>, scalar_prefetch = 0 : i64, scratch_operands = 0 : i64, tpu.core_type = #tpu.core_type<tc>, window_params = [{transform_indices = @transform_0, window_bounds = array<i64: 1, 10, 10, 128>}, {transform_indices = @transform_1, window_bounds = array<i64: 9, 128, 128>}, {transform_indices = @transform_2, window_bounds = array<i64: 1, 128>}, {transform_indices = @transform_3, window_bounds = array<i64: 1, 128>}, {transform_indices = @transform_4, window_bounds = array<i64: 1, 8, 8, 128>}]} {
    %c8_i32 = arith.constant 8 : i32
    %0 = arith.muli %arg1, %c8_i32 : i32
    %c0 = arith.constant 0 : index
    %c0_0 = arith.constant 0 : index
    %1 = vector.load %arg5[%c0, %c0_0] : memref<1x128xf32, #tpu.memory_space<vmem>>, vector<1x128xf32>
    %c0_1 = arith.constant 0 : index
    %c0_2 = arith.constant 0 : index
    %2 = vector.load %arg6[%c0_1, %c0_2] : memref<1x128xf32, #tpu.memory_space<vmem>>, vector<1x128xf32>
    %cst = arith.constant 0.000000e+00 : f32
    %3 = vector.broadcast %cst : f32 to vector<8x128xf32>
    %c0_i32 = arith.constant 0 : i32
    %4 = arith.addi %0, %c0_i32 : i32
    %c0_i32_3 = arith.constant 0 : i32
    %5 = arith.addi %4, %c0_i32_3 : i32
    %c0_4 = arith.constant 0 : index
    %6 = arith.index_cast %5 : i32 to index
    %c0_5 = arith.constant 0 : index
    %c0_6 = arith.constant 0 : index
    %7 = vector.load %arg3[%c0_4, %6, %c0_5, %c0_6] : memref<1x10x10x128xbf16, #tpu.memory_space<vmem>>, vector<1x1x10x128xbf16>
    %8 = vector.shape_cast %7 : vector<1x1x10x128xbf16> to vector<10x128xbf16>
    %9 = vector.extract_strided_slice %8 {offsets = [0, 0], sizes = [8, 128], strides = [1, 1]} : vector<10x128xbf16> to vector<8x128xbf16>
    %c0_7 = arith.constant 0 : index
    %c0_8 = arith.constant 0 : index
    %c0_9 = arith.constant 0 : index
    %10 = vector.load %arg4[%c0_7, %c0_8, %c0_9] : memref<9x128x128xbf16, #tpu.memory_space<vmem>>, vector<1x128x128xbf16>
    %11 = vector.shape_cast %10 : vector<1x128x128xbf16> to vector<128x128xbf16>
    %cst_10 = arith.constant dense<0.000000e+00> : vector<8x128xf32>
    %12 = tpu.matmul %9, %11, %cst_10 {dimension_numbers = #tpu.dot_dimension_numbers<[1], [0], [0], [1], [0, 0, 1, 1], [], []>} : vector<8x128xbf16>, vector<128x128xbf16>, vector<8x128xf32> -> vector<8x128xf32>
    %13 = arith.addf %3, %12 : vector<8x128xf32>
    %14 = vector.extract_strided_slice %8 {offsets = [1, 0], sizes = [8, 128], strides = [1, 1]} : vector<10x128xbf16> to vector<8x128xbf16>
    %c1 = arith.constant 1 : index
    %c0_11 = arith.constant 0 : index
    %c0_12 = arith.constant 0 : index
    %15 = vector.load %arg4[%c1, %c0_11, %c0_12] : memref<9x128x128xbf16, #tpu.memory_space<vmem>>, vector<1x128x128xbf16>
    %16 = vector.shape_cast %15 : vector<1x128x128xbf16> to vector<128x128xbf16>
    %cst_13 = arith.constant dense<0.000000e+00> : vector<8x128xf32>
    %17 = tpu.matmul %14, %16, %cst_13 {dimension_numbers = #tpu.dot_dimension_numbers<[1], [0], [0], [1], [0, 0, 1, 1], [], []>} : vector<8x128xbf16>, vector<128x128xbf16>, vector<8x128xf32> -> vector<8x128xf32>
    %18 = arith.addf %13, %17 : vector<8x128xf32>
    %19 = vector.extract_strided_slice %8 {offsets = [2, 0], sizes = [8, 128], strides = [1, 1]} : vector<10x128xbf16> to vector<8x128xbf16>
    %c2 = arith.constant 2 : index
    %c0_14 = arith.constant 0 : index
    %c0_15 = arith.constant 0 : index
    %20 = vector.load %arg4[%c2, %c0_14, %c0_15] : memref<9x128x128xbf16, #tpu.memory_space<vmem>>, vector<1x128x128xbf16>
    %21 = vector.shape_cast %20 : vector<1x128x128xbf16> to vector<128x128xbf16>
    %cst_16 = arith.constant dense<0.000000e+00> : vector<8x128xf32>
    %22 = tpu.matmul %19, %21, %cst_16 {dimension_numbers = #tpu.dot_dimension_numbers<[1], [0], [0], [1], [0, 0, 1, 1], [], []>} : vector<8x128xbf16>, vector<128x128xbf16>, vector<8x128xf32> -> vector<8x128xf32>
    %23 = arith.addf %18, %22 : vector<8x128xf32>
    %c0_i32_17 = arith.constant 0 : i32
    %24 = arith.addi %0, %c0_i32_17 : i32
    %c1_i32 = arith.constant 1 : i32
    %25 = arith.addi %24, %c1_i32 : i32
    %c0_18 = arith.constant 0 : index
    %26 = arith.index_cast %25 : i32 to index
    %c0_19 = arith.constant 0 : index
    %c0_20 = arith.constant 0 : index
    %27 = vector.load %arg3[%c0_18, %26, %c0_19, %c0_20] : memref<1x10x10x128xbf16, #tpu.memory_space<vmem>>, vector<1x1x10x128xbf16>
    %28 = vector.shape_cast %27 : vector<1x1x10x128xbf16> to vector<10x128xbf16>
    %29 = vector.extract_strided_slice %28 {offsets = [0, 0], sizes = [8, 128], strides = [1, 1]} : vector<10x128xbf16> to vector<8x128xbf16>
    %c3 = arith.constant 3 : index
    %c0_21 = arith.constant 0 : index
    %c0_22 = arith.constant 0 : index
    %30 = vector.load %arg4[%c3, %c0_21, %c0_22] : memref<9x128x128xbf16, #tpu.memory_space<vmem>>, vector<1x128x128xbf16>
    %31 = vector.shape_cast %30 : vector<1x128x128xbf16> to vector<128x128xbf16>
    %cst_23 = arith.constant dense<0.000000e+00> : vector<8x128xf32>
    %32 = tpu.matmul %29, %31, %cst_23 {dimension_numbers = #tpu.dot_dimension_numbers<[1], [0], [0], [1], [0, 0, 1, 1], [], []>} : vector<8x128xbf16>, vector<128x128xbf16>, vector<8x128xf32> -> vector<8x128xf32>
    %33 = arith.addf %23, %32 : vector<8x128xf32>
    %34 = vector.extract_strided_slice %28 {offsets = [1, 0], sizes = [8, 128], strides = [1, 1]} : vector<10x128xbf16> to vector<8x128xbf16>
    %c4 = arith.constant 4 : index
    %c0_24 = arith.constant 0 : index
    %c0_25 = arith.constant 0 : index
    %35 = vector.load %arg4[%c4, %c0_24, %c0_25] : memref<9x128x128xbf16, #tpu.memory_space<vmem>>, vector<1x128x128xbf16>
    %36 = vector.shape_cast %35 : vector<1x128x128xbf16> to vector<128x128xbf16>
    %cst_26 = arith.constant dense<0.000000e+00> : vector<8x128xf32>
    %37 = tpu.matmul %34, %36, %cst_26 {dimension_numbers = #tpu.dot_dimension_numbers<[1], [0], [0], [1], [0, 0, 1, 1], [], []>} : vector<8x128xbf16>, vector<128x128xbf16>, vector<8x128xf32> -> vector<8x128xf32>
    %38 = arith.addf %33, %37 : vector<8x128xf32>
    %39 = vector.extract_strided_slice %28 {offsets = [2, 0], sizes = [8, 128], strides = [1, 1]} : vector<10x128xbf16> to vector<8x128xbf16>
    %c5 = arith.constant 5 : index
    %c0_27 = arith.constant 0 : index
    %c0_28 = arith.constant 0 : index
    %40 = vector.load %arg4[%c5, %c0_27, %c0_28] : memref<9x128x128xbf16, #tpu.memory_space<vmem>>, vector<1x128x128xbf16>
    %41 = vector.shape_cast %40 : vector<1x128x128xbf16> to vector<128x128xbf16>
    %cst_29 = arith.constant dense<0.000000e+00> : vector<8x128xf32>
    %42 = tpu.matmul %39, %41, %cst_29 {dimension_numbers = #tpu.dot_dimension_numbers<[1], [0], [0], [1], [0, 0, 1, 1], [], []>} : vector<8x128xbf16>, vector<128x128xbf16>, vector<8x128xf32> -> vector<8x128xf32>
    %43 = arith.addf %38, %42 : vector<8x128xf32>
    %c0_i32_30 = arith.constant 0 : i32
    %44 = arith.addi %0, %c0_i32_30 : i32
    %c2_i32 = arith.constant 2 : i32
    %45 = arith.addi %44, %c2_i32 : i32
    %c0_31 = arith.constant 0 : index
    %46 = arith.index_cast %45 : i32 to index
    %c0_32 = arith.constant 0 : index
    %c0_33 = arith.constant 0 : index
    %47 = vector.load %arg3[%c0_31, %46, %c0_32, %c0_33] : memref<1x10x10x128xbf16, #tpu.memory_space<vmem>>, vector<1x1x10x128xbf16>
    %48 = vector.shape_cast %47 : vector<1x1x10x128xbf16> to vector<10x128xbf16>
    %49 = vector.extract_strided_slice %48 {offsets = [0, 0], sizes = [8, 128], strides = [1, 1]} : vector<10x128xbf16> to vector<8x128xbf16>
    %c6 = arith.constant 6 : index
    %c0_34 = arith.constant 0 : index
    %c0_35 = arith.constant 0 : index
    %50 = vector.load %arg4[%c6, %c0_34, %c0_35] : memref<9x128x128xbf16, #tpu.memory_space<vmem>>, vector<1x128x128xbf16>
    %51 = vector.shape_cast %50 : vector<1x128x128xbf16> to vector<128x128xbf16>
    %cst_36 = arith.constant dense<0.000000e+00> : vector<8x128xf32>
    %52 = tpu.matmul %49, %51, %cst_36 {dimension_numbers = #tpu.dot_dimension_numbers<[1], [0], [0], [1], [0, 0, 1, 1], [], []>} : vector<8x128xbf16>, vector<128x128xbf16>, vector<8x128xf32> -> vector<8x128xf32>
    %53 = arith.addf %43, %52 : vector<8x128xf32>
    %54 = vector.extract_strided_slice %48 {offsets = [1, 0], sizes = [8, 128], strides = [1, 1]} : vector<10x128xbf16> to vector<8x128xbf16>
    %c7 = arith.constant 7 : index
    %c0_37 = arith.constant 0 : index
    %c0_38 = arith.constant 0 : index
    %55 = vector.load %arg4[%c7, %c0_37, %c0_38] : memref<9x128x128xbf16, #tpu.memory_space<vmem>>, vector<1x128x128xbf16>
    %56 = vector.shape_cast %55 : vector<1x128x128xbf16> to vector<128x128xbf16>
    %cst_39 = arith.constant dense<0.000000e+00> : vector<8x128xf32>
    %57 = tpu.matmul %54, %56, %cst_39 {dimension_numbers = #tpu.dot_dimension_numbers<[1], [0], [0], [1], [0, 0, 1, 1], [], []>} : vector<8x128xbf16>, vector<128x128xbf16>, vector<8x128xf32> -> vector<8x128xf32>
    %58 = arith.addf %53, %57 : vector<8x128xf32>
    %59 = vector.extract_strided_slice %48 {offsets = [2, 0], sizes = [8, 128], strides = [1, 1]} : vector<10x128xbf16> to vector<8x128xbf16>
    %c8 = arith.constant 8 : index
    %c0_40 = arith.constant 0 : index
    %c0_41 = arith.constant 0 : index
    %60 = vector.load %arg4[%c8, %c0_40, %c0_41] : memref<9x128x128xbf16, #tpu.memory_space<vmem>>, vector<1x128x128xbf16>
    %61 = vector.shape_cast %60 : vector<1x128x128xbf16> to vector<128x128xbf16>
    %cst_42 = arith.constant dense<0.000000e+00> : vector<8x128xf32>
    %62 = tpu.matmul %59, %61, %cst_42 {dimension_numbers = #tpu.dot_dimension_numbers<[1], [0], [0], [1], [0, 0, 1, 1], [], []>} : vector<8x128xbf16>, vector<128x128xbf16>, vector<8x128xf32> -> vector<8x128xf32>
    %63 = arith.addf %58, %62 : vector<8x128xf32>
    %64 = vector.broadcast %1 : vector<1x128xf32> to vector<8x128xf32>
    %65 = arith.mulf %63, %64 : vector<8x128xf32>
    %66 = vector.broadcast %2 : vector<1x128xf32> to vector<8x128xf32>
    %67 = arith.addf %65, %66 : vector<8x128xf32>
    %cst_43 = arith.constant 0.000000e+00 : f32
    %68 = vector.broadcast %cst_43 : f32 to vector<8x128xf32>
    %69 = arith.maximumf %67, %68 : vector<8x128xf32>
    %70 = arith.truncf %69 : vector<8x128xf32> to vector<8x128xbf16>
    %c0_44 = arith.constant 0 : index
    %c0_45 = arith.constant 0 : index
    %c0_46 = arith.constant 0 : index
    %c0_47 = arith.constant 0 : index
    %71 = vector.load %arg7[%c0_44, %c0_45, %c0_46, %c0_47] : memref<1x8x8x128xbf16, #tpu.memory_space<vmem>>, vector<1x1x8x128xbf16>
    %72 = vector.shape_cast %71 : vector<1x1x8x128xbf16> to vector<8x128xbf16>
    %73 = vector.shape_cast %70 : vector<8x128xbf16> to vector<1x1x8x128xbf16>
    tpu.vector_store %arg7[%c0_44, %c0_45, %c0_46, %c0_47], %73 {strides = array<i32>} : memref<1x8x8x128xbf16, #tpu.memory_space<vmem>>, vector<1x1x8x128xbf16>,
    %cst_48 = arith.constant 0.000000e+00 : f32
    %74 = vector.broadcast %cst_48 : f32 to vector<8x128xf32>
    %c1_i32_49 = arith.constant 1 : i32
    %75 = arith.addi %0, %c1_i32_49 : i32
    %c0_i32_50 = arith.constant 0 : i32
    %76 = arith.addi %75, %c0_i32_50 : i32
    %c0_51 = arith.constant 0 : index
    %77 = arith.index_cast %76 : i32 to index
    %c0_52 = arith.constant 0 : index
    %c0_53 = arith.constant 0 : index
    %78 = vector.load %arg3[%c0_51, %77, %c0_52, %c0_53] : memref<1x10x10x128xbf16, #tpu.memory_space<vmem>>, vector<1x1x10x128xbf16>
    %79 = vector.shape_cast %78 : vector<1x1x10x128xbf16> to vector<10x128xbf16>
    %80 = vector.extract_strided_slice %79 {offsets = [0, 0], sizes = [8, 128], strides = [1, 1]} : vector<10x128xbf16> to vector<8x128xbf16>
    %c0_54 = arith.constant 0 : index
    %c0_55 = arith.constant 0 : index
    %c0_56 = arith.constant 0 : index
    %81 = vector.load %arg4[%c0_54, %c0_55, %c0_56] : memref<9x128x128xbf16, #tpu.memory_space<vmem>>, vector<1x128x128xbf16>
    %82 = vector.shape_cast %81 : vector<1x128x128xbf16> to vector<128x128xbf16>
    %cst_57 = arith.constant dense<0.000000e+00> : vector<8x128xf32>
    %83 = tpu.matmul %80, %82, %cst_57 {dimension_numbers = #tpu.dot_dimension_numbers<[1], [0], [0], [1], [0, 0, 1, 1], [], []>} : vector<8x128xbf16>, vector<128x128xbf16>, vector<8x128xf32> -> vector<8x128xf32>
    %84 = arith.addf %74, %83 : vector<8x128xf32>
    %85 = vector.extract_strided_slice %79 {offsets = [1, 0], sizes = [8, 128], strides = [1, 1]} : vector<10x128xbf16> to vector<8x128xbf16>
    %c1_58 = arith.constant 1 : index
    %c0_59 = arith.constant 0 : index
    %c0_60 = arith.constant 0 : index
    %86 = vector.load %arg4[%c1_58, %c0_59, %c0_60] : memref<9x128x128xbf16, #tpu.memory_space<vmem>>, vector<1x128x128xbf16>
    %87 = vector.shape_cast %86 : vector<1x128x128xbf16> to vector<128x128xbf16>
    %cst_61 = arith.constant dense<0.000000e+00> : vector<8x128xf32>
    %88 = tpu.matmul %85, %87, %cst_61 {dimension_numbers = #tpu.dot_dimension_numbers<[1], [0], [0], [1], [0, 0, 1, 1], [], []>} : vector<8x128xbf16>, vector<128x128xbf16>, vector<8x128xf32> -> vector<8x128xf32>
    %89 = arith.addf %84, %88 : vector<8x128xf32>
    %90 = vector.extract_strided_slice %79 {offsets = [2, 0], sizes = [8, 128], strides = [1, 1]} : vector<10x128xbf16> to vector<8x128xbf16>
    %c2_62 = arith.constant 2 : index
    %c0_63 = arith.constant 0 : index
    %c0_64 = arith.constant 0 : index
    %91 = vector.load %arg4[%c2_62, %c0_63, %c0_64] : memref<9x128x128xbf16, #tpu.memory_space<vmem>>, vector<1x128x128xbf16>
    %92 = vector.shape_cast %91 : vector<1x128x128xbf16> to vector<128x128xbf16>
    %cst_65 = arith.constant dense<0.000000e+00> : vector<8x128xf32>
    %93 = tpu.matmul %90, %92, %cst_65 {dimension_numbers = #tpu.dot_dimension_numbers<[1], [0], [0], [1], [0, 0, 1, 1], [], []>} : vector<8x128xbf16>, vector<128x128xbf16>, vector<8x128xf32> -> vector<8x128xf32>
    %94 = arith.addf %89, %93 : vector<8x128xf32>
    %c1_i32_66 = arith.constant 1 : i32
    %95 = arith.addi %0, %c1_i32_66 : i32
    %c1_i32_67 = arith.constant 1 : i32
    %96 = arith.addi %95, %c1_i32_67 : i32
    %c0_68 = arith.constant 0 : index
    %97 = arith.index_cast %96 : i32 to index
    %c0_69 = arith.constant 0 : index
    %c0_70 = arith.constant 0 : index
    %98 = vector.load %arg3[%c0_68, %97, %c0_69, %c0_70] : memref<1x10x10x128xbf16, #tpu.memory_space<vmem>>, vector<1x1x10x128xbf16>
    %99 = vector.shape_cast %98 : vector<1x1x10x128xbf16> to vector<10x128xbf16>
    %100 = vector.extract_strided_slice %99 {offsets = [0, 0], sizes = [8, 128], strides = [1, 1]} : vector<10x128xbf16> to vector<8x128xbf16>
    %c3_71 = arith.constant 3 : index
    %c0_72 = arith.constant 0 : index
    %c0_73 = arith.constant 0 : index
    %101 = vector.load %arg4[%c3_71, %c0_72, %c0_73] : memref<9x128x128xbf16, #tpu.memory_space<vmem>>, vector<1x128x128xbf16>
    %102 = vector.shape_cast %101 : vector<1x128x128xbf16> to vector<128x128xbf16>
    %cst_74 = arith.constant dense<0.000000e+00> : vector<8x128xf32>
    %103 = tpu.matmul %100, %102, %cst_74 {dimension_numbers = #tpu.dot_dimension_numbers<[1], [0], [0], [1], [0, 0, 1, 1], [], []>} : vector<8x128xbf16>, vector<128x128xbf16>, vector<8x128xf32> -> vector<8x128xf32>
    %104 = arith.addf %94, %103 : vector<8x128xf32>
    %105 = vector.extract_strided_slice %99 {offsets = [1, 0], sizes = [8, 128], strides = [1, 1]} : vector<10x128xbf16> to vector<8x128xbf16>
    %c4_75 = arith.constant 4 : index
    %c0_76 = arith.constant 0 : index
    %c0_77 = arith.constant 0 : index
    %106 = vector.load %arg4[%c4_75, %c0_76, %c0_77] : memref<9x128x128xbf16, #tpu.memory_space<vmem>>, vector<1x128x128xbf16>
    %107 = vector.shape_cast %106 : vector<1x128x128xbf16> to vector<128x128xbf16>
    %cst_78 = arith.constant dense<0.000000e+00> : vector<8x128xf32>
    %108 = tpu.matmul %105, %107, %cst_78 {dimension_numbers = #tpu.dot_dimension_numbers<[1], [0], [0], [1], [0, 0, 1, 1], [], []>} : vector<8x128xbf16>, vector<128x128xbf16>, vector<8x128xf32> -> vector<8x128xf32>
    %109 = arith.addf %104, %108 : vector<8x128xf32>
    %110 = vector.extract_strided_slice %99 {offsets = [2, 0], sizes = [8, 128], strides = [1, 1]} : vector<10x128xbf16> to vector<8x128xbf16>
    %c5_79 = arith.constant 5 : index
    %c0_80 = arith.constant 0 : index
    %c0_81 = arith.constant 0 : index
    %111 = vector.load %arg4[%c5_79, %c0_80, %c0_81] : memref<9x128x128xbf16, #tpu.memory_space<vmem>>, vector<1x128x128xbf16>
    %112 = vector.shape_cast %111 : vector<1x128x128xbf16> to vector<128x128xbf16>
    %cst_82 = arith.constant dense<0.000000e+00> : vector<8x128xf32>
    %113 = tpu.matmul %110, %112, %cst_82 {dimension_numbers = #tpu.dot_dimension_numbers<[1], [0], [0], [1], [0, 0, 1, 1], [], []>} : vector<8x128xbf16>, vector<128x128xbf16>, vector<8x128xf32> -> vector<8x128xf32>
    %114 = arith.addf %109, %113 : vector<8x128xf32>
    %c1_i32_83 = arith.constant 1 : i32
    %115 = arith.addi %0, %c1_i32_83 : i32
    %c2_i32_84 = arith.constant 2 : i32
    %116 = arith.addi %115, %c2_i32_84 : i32
    %c0_85 = arith.constant 0 : index
    %117 = arith.index_cast %116 : i32 to index
    %c0_86 = arith.constant 0 : index
    %c0_87 = arith.constant 0 : index
    %118 = vector.load %arg3[%c0_85, %117, %c0_86, %c0_87] : memref<1x10x10x128xbf16, #tpu.memory_space<vmem>>, vector<1x1x10x128xbf16>
    %119 = vector.shape_cast %118 : vector<1x1x10x128xbf16> to vector<10x128xbf16>
    %120 = vector.extract_strided_slice %119 {offsets = [0, 0], sizes = [8, 128], strides = [1, 1]} : vector<10x128xbf16> to vector<8x128xbf16>
    %c6_88 = arith.constant 6 : index
    %c0_89 = arith.constant 0 : index
    %c0_90 = arith.constant 0 : index
    %121 = vector.load %arg4[%c6_88, %c0_89, %c0_90] : memref<9x128x128xbf16, #tpu.memory_space<vmem>>, vector<1x128x128xbf16>
    %122 = vector.shape_cast %121 : vector<1x128x128xbf16> to vector<128x128xbf16>
    %cst_91 = arith.constant dense<0.000000e+00> : vector<8x128xf32>
    %123 = tpu.matmul %120, %122, %cst_91 {dimension_numbers = #tpu.dot_dimension_numbers<[1], [0], [0], [1], [0, 0, 1, 1], [], []>} : vector<8x128xbf16>, vector<128x128xbf16>, vector<8x128xf32> -> vector<8x128xf32>
    %124 = arith.addf %114, %123 : vector<8x128xf32>
    %125 = vector.extract_strided_slice %119 {offsets = [1, 0], sizes = [8, 128], strides = [1, 1]} : vector<10x128xbf16> to vector<8x128xbf16>
    %c7_92 = arith.constant 7 : index
    %c0_93 = arith.constant 0 : index
    %c0_94 = arith.constant 0 : index
    %126 = vector.load %arg4[%c7_92, %c0_93, %c0_94] : memref<9x128x128xbf16, #tpu.memory_space<vmem>>, vector<1x128x128xbf16>
    %127 = vector.shape_cast %126 : vector<1x128x128xbf16> to vector<128x128xbf16>
    %cst_95 = arith.constant dense<0.000000e+00> : vector<8x128xf32>
    %128 = tpu.matmul %125, %127, %cst_95 {dimension_numbers = #tpu.dot_dimension_numbers<[1], [0], [0], [1], [0, 0, 1, 1], [], []>} : vector<8x128xbf16>, vector<128x128xbf16>, vector<8x128xf32> -> vector<8x128xf32>
    %129 = arith.addf %124, %128 : vector<8x128xf32>
    %130 = vector.extract_strided_slice %119 {offsets = [2, 0], sizes = [8, 128], strides = [1, 1]} : vector<10x128xbf16> to vector<8x128xbf16>
    %c8_96 = arith.constant 8 : index
    %c0_97 = arith.constant 0 : index
    %c0_98 = arith.constant 0 : index
    %131 = vector.load %arg4[%c8_96, %c0_97, %c0_98] : memref<9x128x128xbf16, #tpu.memory_space<vmem>>, vector<1x128x128xbf16>
    %132 = vector.shape_cast %131 : vector<1x128x128xbf16> to vector<128x128xbf16>
    %cst_99 = arith.constant dense<0.000000e+00> : vector<8x128xf32>
    %133 = tpu.matmul %130, %132, %cst_99 {dimension_numbers = #tpu.dot_dimension_numbers<[1], [0], [0], [1], [0, 0, 1, 1], [], []>} : vector<8x128xbf16>, vector<128x128xbf16>, vector<8x128xf32> -> vector<8x128xf32>
    %134 = arith.addf %129, %133 : vector<8x128xf32>
    %135 = vector.broadcast %1 : vector<1x128xf32> to vector<8x128xf32>
    %136 = arith.mulf %134, %135 : vector<8x128xf32>
    %137 = vector.broadcast %2 : vector<1x128xf32> to vector<8x128xf32>
    %138 = arith.addf %136, %137 : vector<8x128xf32>
    %cst_100 = arith.constant 0.000000e+00 : f32
    %139 = vector.broadcast %cst_100 : f32 to vector<8x128xf32>
    %140 = arith.maximumf %138, %139 : vector<8x128xf32>
    %141 = arith.truncf %140 : vector<8x128xf32> to vector<8x128xbf16>
    %c0_101 = arith.constant 0 : index
    %c1_102 = arith.constant 1 : index
    %c0_103 = arith.constant 0 : index
    %c0_104 = arith.constant 0 : index
    %142 = vector.load %arg7[%c0_101, %c1_102, %c0_103, %c0_104] : memref<1x8x8x128xbf16, #tpu.memory_space<vmem>>, vector<1x1x8x128xbf16>
    %143 = vector.shape_cast %142 : vector<1x1x8x128xbf16> to vector<8x128xbf16>
    %144 = vector.shape_cast %141 : vector<8x128xbf16> to vector<1x1x8x128xbf16>
    tpu.vector_store %arg7[%c0_101, %c1_102, %c0_103, %c0_104], %144 {strides = array<i32>} : memref<1x8x8x128xbf16, #tpu.memory_space<vmem>>, vector<1x1x8x128xbf16>,
    %cst_105 = arith.constant 0.000000e+00 : f32
    %145 = vector.broadcast %cst_105 : f32 to vector<8x128xf32>
    %c2_i32_106 = arith.constant 2 : i32
    %146 = arith.addi %0, %c2_i32_106 : i32
    %c0_i32_107 = arith.constant 0 : i32
    %147 = arith.addi %146, %c0_i32_107 : i32
    %c0_108 = arith.constant 0 : index
    %148 = arith.index_cast %147 : i32 to index
    %c0_109 = arith.constant 0 : index
    %c0_110 = arith.constant 0 : index
    %149 = vector.load %arg3[%c0_108, %148, %c0_109, %c0_110] : memref<1x10x10x128xbf16, #tpu.memory_space<vmem>>, vector<1x1x10x128xbf16>
    %150 = vector.shape_cast %149 : vector<1x1x10x128xbf16> to vector<10x128xbf16>
    %151 = vector.extract_strided_slice %150 {offsets = [0, 0], sizes = [8, 128], strides = [1, 1]} : vector<10x128xbf16> to vector<8x128xbf16>
    %c0_111 = arith.constant 0 : index
    %c0_112 = arith.constant 0 : index
    %c0_113 = arith.constant 0 : index
    %152 = vector.load %arg4[%c0_111, %c0_112, %c0_113] : memref<9x128x128xbf16, #tpu.memory_space<vmem>>, vector<1x128x128xbf16>
    %153 = vector.shape_cast %152 : vector<1x128x128xbf16> to vector<128x128xbf16>
    %cst_114 = arith.constant dense<0.000000e+00> : vector<8x128xf32>
    %154 = tpu.matmul %151, %153, %cst_114 {dimension_numbers = #tpu.dot_dimension_numbers<[1], [0], [0], [1], [0, 0, 1, 1], [], []>} : vector<8x128xbf16>, vector<128x128xbf16>, vector<8x128xf32> -> vector<8x128xf32>
    %155 = arith.addf %145, %154 : vector<8x128xf32>
    %156 = vector.extract_strided_slice %150 {offsets = [1, 0], sizes = [8, 128], strides = [1, 1]} : vector<10x128xbf16> to vector<8x128xbf16>
    %c1_115 = arith.constant 1 : index
    %c0_116 = arith.constant 0 : index
    %c0_117 = arith.constant 0 : index
    %157 = vector.load %arg4[%c1_115, %c0_116, %c0_117] : memref<9x128x128xbf16, #tpu.memory_space<vmem>>, vector<1x128x128xbf16>
    %158 = vector.shape_cast %157 : vector<1x128x128xbf16> to vector<128x128xbf16>
    %cst_118 = arith.constant dense<0.000000e+00> : vector<8x128xf32>
    %159 = tpu.matmul %156, %158, %cst_118 {dimension_numbers = #tpu.dot_dimension_numbers<[1], [0], [0], [1], [0, 0, 1, 1], [], []>} : vector<8x128xbf16>, vector<128x128xbf16>, vector<8x128xf32> -> vector<8x128xf32>
    %160 = arith.addf %155, %159 : vector<8x128xf32>
    %161 = vector.extract_strided_slice %150 {offsets = [2, 0], sizes = [8, 128], strides = [1, 1]} : vector<10x128xbf16> to vector<8x128xbf16>
    %c2_119 = arith.constant 2 : index
    %c0_120 = arith.constant 0 : index
    %c0_121 = arith.constant 0 : index
    %162 = vector.load %arg4[%c2_119, %c0_120, %c0_121] : memref<9x128x128xbf16, #tpu.memory_space<vmem>>, vector<1x128x128xbf16>
    %163 = vector.shape_cast %162 : vector<1x128x128xbf16> to vector<128x128xbf16>
    %cst_122 = arith.constant dense<0.000000e+00> : vector<8x128xf32>
    %164 = tpu.matmul %161, %163, %cst_122 {dimension_numbers = #tpu.dot_dimension_numbers<[1], [0], [0], [1], [0, 0, 1, 1], [], []>} : vector<8x128xbf16>, vector<128x128xbf16>, vector<8x128xf32> -> vector<8x128xf32>
    %165 = arith.addf %160, %164 : vector<8x128xf32>
    %c2_i32_123 = arith.constant 2 : i32
    %166 = arith.addi %0, %c2_i32_123 : i32
    %c1_i32_124 = arith.constant 1 : i32
    %167 = arith.addi %166, %c1_i32_124 : i32
    %c0_125 = arith.constant 0 : index
    %168 = arith.index_cast %167 : i32 to index
    %c0_126 = arith.constant 0 : index
    %c0_127 = arith.constant 0 : index
    %169 = vector.load %arg3[%c0_125, %168, %c0_126, %c0_127] : memref<1x10x10x128xbf16, #tpu.memory_space<vmem>>, vector<1x1x10x128xbf16>
    %170 = vector.shape_cast %169 : vector<1x1x10x128xbf16> to vector<10x128xbf16>
    %171 = vector.extract_strided_slice %170 {offsets = [0, 0], sizes = [8, 128], strides = [1, 1]} : vector<10x128xbf16> to vector<8x128xbf16>
    %c3_128 = arith.constant 3 : index
    %c0_129 = arith.constant 0 : index
    %c0_130 = arith.constant 0 : index
    %172 = vector.load %arg4[%c3_128, %c0_129, %c0_130] : memref<9x128x128xbf16, #tpu.memory_space<vmem>>, vector<1x128x128xbf16>
    %173 = vector.shape_cast %172 : vector<1x128x128xbf16> to vector<128x128xbf16>
    %cst_131 = arith.constant dense<0.000000e+00> : vector<8x128xf32>
    %174 = tpu.matmul %171, %173, %cst_131 {dimension_numbers = #tpu.dot_dimension_numbers<[1], [0], [0], [1], [0, 0, 1, 1], [], []>} : vector<8x128xbf16>, vector<128x128xbf16>, vector<8x128xf32> -> vector<8x128xf32>
    %175 = arith.addf %165, %174 : vector<8x128xf32>
    %176 = vector.extract_strided_slice %170 {offsets = [1, 0], sizes = [8, 128], strides = [1, 1]} : vector<10x128xbf16> to vector<8x128xbf16>
    %c4_132 = arith.constant 4 : index
    %c0_133 = arith.constant 0 : index
    %c0_134 = arith.constant 0 : index
    %177 = vector.load %arg4[%c4_132, %c0_133, %c0_134] : memref<9x128x128xbf16, #tpu.memory_space<vmem>>, vector<1x128x128xbf16>
    %178 = vector.shape_cast %177 : vector<1x128x128xbf16> to vector<128x128xbf16>
    %cst_135 = arith.constant dense<0.000000e+00> : vector<8x128xf32>
    %179 = tpu.matmul %176, %178, %cst_135 {dimension_numbers = #tpu.dot_dimension_numbers<[1], [0], [0], [1], [0, 0, 1, 1], [], []>} : vector<8x128xbf16>, vector<128x128xbf16>, vector<8x128xf32> -> vector<8x128xf32>
    %180 = arith.addf %175, %179 : vector<8x128xf32>
    %181 = vector.extract_strided_slice %170 {offsets = [2, 0], sizes = [8, 128], strides = [1, 1]} : vector<10x128xbf16> to vector<8x128xbf16>
    %c5_136 = arith.constant 5 : index
    %c0_137 = arith.constant 0 : index
    %c0_138 = arith.constant 0 : index
    %182 = vector.load %arg4[%c5_136, %c0_137, %c0_138] : memref<9x128x128xbf16, #tpu.memory_space<vmem>>, vector<1x128x128xbf16>
    %183 = vector.shape_cast %182 : vector<1x128x128xbf16> to vector<128x128xbf16>
    %cst_139 = arith.constant dense<0.000000e+00> : vector<8x128xf32>
    %184 = tpu.matmul %181, %183, %cst_139 {dimension_numbers = #tpu.dot_dimension_numbers<[1], [0], [0], [1], [0, 0, 1, 1], [], []>} : vector<8x128xbf16>, vector<128x128xbf16>, vector<8x128xf32> -> vector<8x128xf32>
    %185 = arith.addf %180, %184 : vector<8x128xf32>
    %c2_i32_140 = arith.constant 2 : i32
    %186 = arith.addi %0, %c2_i32_140 : i32
    %c2_i32_141 = arith.constant 2 : i32
    %187 = arith.addi %186, %c2_i32_141 : i32
    %c0_142 = arith.constant 0 : index
    %188 = arith.index_cast %187 : i32 to index
    %c0_143 = arith.constant 0 : index
    %c0_144 = arith.constant 0 : index
    %189 = vector.load %arg3[%c0_142, %188, %c0_143, %c0_144] : memref<1x10x10x128xbf16, #tpu.memory_space<vmem>>, vector<1x1x10x128xbf16>
    %190 = vector.shape_cast %189 : vector<1x1x10x128xbf16> to vector<10x128xbf16>
    %191 = vector.extract_strided_slice %190 {offsets = [0, 0], sizes = [8, 128], strides = [1, 1]} : vector<10x128xbf16> to vector<8x128xbf16>
    %c6_145 = arith.constant 6 : index
    %c0_146 = arith.constant 0 : index
    %c0_147 = arith.constant 0 : index
    %192 = vector.load %arg4[%c6_145, %c0_146, %c0_147] : memref<9x128x128xbf16, #tpu.memory_space<vmem>>, vector<1x128x128xbf16>
    %193 = vector.shape_cast %192 : vector<1x128x128xbf16> to vector<128x128xbf16>
    %cst_148 = arith.constant dense<0.000000e+00> : vector<8x128xf32>
    %194 = tpu.matmul %191, %193, %cst_148 {dimension_numbers = #tpu.dot_dimension_numbers<[1], [0], [0], [1], [0, 0, 1, 1], [], []>} : vector<8x128xbf16>, vector<128x128xbf16>, vector<8x128xf32> -> vector<8x128xf32>
    %195 = arith.addf %185, %194 : vector<8x128xf32>
    %196 = vector.extract_strided_slice %190 {offsets = [1, 0], sizes = [8, 128], strides = [1, 1]} : vector<10x128xbf16> to vector<8x128xbf16>
    %c7_149 = arith.constant 7 : index
    %c0_150 = arith.constant 0 : index
    %c0_151 = arith.constant 0 : index
    %197 = vector.load %arg4[%c7_149, %c0_150, %c0_151] : memref<9x128x128xbf16, #tpu.memory_space<vmem>>, vector<1x128x128xbf16>
    %198 = vector.shape_cast %197 : vector<1x128x128xbf16> to vector<128x128xbf16>
    %cst_152 = arith.constant dense<0.000000e+00> : vector<8x128xf32>
    %199 = tpu.matmul %196, %198, %cst_152 {dimension_numbers = #tpu.dot_dimension_numbers<[1], [0], [0], [1], [0, 0, 1, 1], [], []>} : vector<8x128xbf16>, vector<128x128xbf16>, vector<8x128xf32> -> vector<8x128xf32>
    %200 = arith.addf %195, %199 : vector<8x128xf32>
    %201 = vector.extract_strided_slice %190 {offsets = [2, 0], sizes = [8, 128], strides = [1, 1]} : vector<10x128xbf16> to vector<8x128xbf16>
    %c8_153 = arith.constant 8 : index
    %c0_154 = arith.constant 0 : index
    %c0_155 = arith.constant 0 : index
    %202 = vector.load %arg4[%c8_153, %c0_154, %c0_155] : memref<9x128x128xbf16, #tpu.memory_space<vmem>>, vector<1x128x128xbf16>
    %203 = vector.shape_cast %202 : vector<1x128x128xbf16> to vector<128x128xbf16>
    %cst_156 = arith.constant dense<0.000000e+00> : vector<8x128xf32>
    %204 = tpu.matmul %201, %203, %cst_156 {dimension_numbers = #tpu.dot_dimension_numbers<[1], [0], [0], [1], [0, 0, 1, 1], [], []>} : vector<8x128xbf16>, vector<128x128xbf16>, vector<8x128xf32> -> vector<8x128xf32>
    %205 = arith.addf %200, %204 : vector<8x128xf32>
    %206 = vector.broadcast %1 : vector<1x128xf32> to vector<8x128xf32>
    %207 = arith.mulf %205, %206 : vector<8x128xf32>
    %208 = vector.broadcast %2 : vector<1x128xf32> to vector<8x128xf32>
    %209 = arith.addf %207, %208 : vector<8x128xf32>
    %cst_157 = arith.constant 0.000000e+00 : f32
    %210 = vector.broadcast %cst_157 : f32 to vector<8x128xf32>
    %211 = arith.maximumf %209, %210 : vector<8x128xf32>
    %212 = arith.truncf %211 : vector<8x128xf32> to vector<8x128xbf16>
    %c0_158 = arith.constant 0 : index
    %c2_159 = arith.constant 2 : index
    %c0_160 = arith.constant 0 : index
    %c0_161 = arith.constant 0 : index
    %213 = vector.load %arg7[%c0_158, %c2_159, %c0_160, %c0_161] : memref<1x8x8x128xbf16, #tpu.memory_space<vmem>>, vector<1x1x8x128xbf16>
    %214 = vector.shape_cast %213 : vector<1x1x8x128xbf16> to vector<8x128xbf16>
    %215 = vector.shape_cast %212 : vector<8x128xbf16> to vector<1x1x8x128xbf16>
    tpu.vector_store %arg7[%c0_158, %c2_159, %c0_160, %c0_161], %215 {strides = array<i32>} : memref<1x8x8x128xbf16, #tpu.memory_space<vmem>>, vector<1x1x8x128xbf16>,
    %cst_162 = arith.constant 0.000000e+00 : f32
    %216 = vector.broadcast %cst_162 : f32 to vector<8x128xf32>
    %c3_i32 = arith.constant 3 : i32
    %217 = arith.addi %0, %c3_i32 : i32
    %c0_i32_163 = arith.constant 0 : i32
    %218 = arith.addi %217, %c0_i32_163 : i32
    %c0_164 = arith.constant 0 : index
    %219 = arith.index_cast %218 : i32 to index
    %c0_165 = arith.constant 0 : index
    %c0_166 = arith.constant 0 : index
    %220 = vector.load %arg3[%c0_164, %219, %c0_165, %c0_166] : memref<1x10x10x128xbf16, #tpu.memory_space<vmem>>, vector<1x1x10x128xbf16>
    %221 = vector.shape_cast %220 : vector<1x1x10x128xbf16> to vector<10x128xbf16>
    %222 = vector.extract_strided_slice %221 {offsets = [0, 0], sizes = [8, 128], strides = [1, 1]} : vector<10x128xbf16> to vector<8x128xbf16>
    %c0_167 = arith.constant 0 : index
    %c0_168 = arith.constant 0 : index
    %c0_169 = arith.constant 0 : index
    %223 = vector.load %arg4[%c0_167, %c0_168, %c0_169] : memref<9x128x128xbf16, #tpu.memory_space<vmem>>, vector<1x128x128xbf16>
    %224 = vector.shape_cast %223 : vector<1x128x128xbf16> to vector<128x128xbf16>
    %cst_170 = arith.constant dense<0.000000e+00> : vector<8x128xf32>
    %225 = tpu.matmul %222, %224, %cst_170 {dimension_numbers = #tpu.dot_dimension_numbers<[1], [0], [0], [1], [0, 0, 1, 1], [], []>} : vector<8x128xbf16>, vector<128x128xbf16>, vector<8x128xf32> -> vector<8x128xf32>
    %226 = arith.addf %216, %225 : vector<8x128xf32>
    %227 = vector.extract_strided_slice %221 {offsets = [1, 0], sizes = [8, 128], strides = [1, 1]} : vector<10x128xbf16> to vector<8x128xbf16>
    %c1_171 = arith.constant 1 : index
    %c0_172 = arith.constant 0 : index
    %c0_173 = arith.constant 0 : index
    %228 = vector.load %arg4[%c1_171, %c0_172, %c0_173] : memref<9x128x128xbf16, #tpu.memory_space<vmem>>, vector<1x128x128xbf16>
    %229 = vector.shape_cast %228 : vector<1x128x128xbf16> to vector<128x128xbf16>
    %cst_174 = arith.constant dense<0.000000e+00> : vector<8x128xf32>
    %230 = tpu.matmul %227, %229, %cst_174 {dimension_numbers = #tpu.dot_dimension_numbers<[1], [0], [0], [1], [0, 0, 1, 1], [], []>} : vector<8x128xbf16>, vector<128x128xbf16>, vector<8x128xf32> -> vector<8x128xf32>
    %231 = arith.addf %226, %230 : vector<8x128xf32>
    %232 = vector.extract_strided_slice %221 {offsets = [2, 0], sizes = [8, 128], strides = [1, 1]} : vector<10x128xbf16> to vector<8x128xbf16>
    %c2_175 = arith.constant 2 : index
    %c0_176 = arith.constant 0 : index
    %c0_177 = arith.constant 0 : index
    %233 = vector.load %arg4[%c2_175, %c0_176, %c0_177] : memref<9x128x128xbf16, #tpu.memory_space<vmem>>, vector<1x128x128xbf16>
    %234 = vector.shape_cast %233 : vector<1x128x128xbf16> to vector<128x128xbf16>
    %cst_178 = arith.constant dense<0.000000e+00> : vector<8x128xf32>
    %235 = tpu.matmul %232, %234, %cst_178 {dimension_numbers = #tpu.dot_dimension_numbers<[1], [0], [0], [1], [0, 0, 1, 1], [], []>} : vector<8x128xbf16>, vector<128x128xbf16>, vector<8x128xf32> -> vector<8x128xf32>
    %236 = arith.addf %231, %235 : vector<8x128xf32>
    %c3_i32_179 = arith.constant 3 : i32
    %237 = arith.addi %0, %c3_i32_179 : i32
    %c1_i32_180 = arith.constant 1 : i32
    %238 = arith.addi %237, %c1_i32_180 : i32
    %c0_181 = arith.constant 0 : index
    %239 = arith.index_cast %238 : i32 to index
    %c0_182 = arith.constant 0 : index
    %c0_183 = arith.constant 0 : index
    %240 = vector.load %arg3[%c0_181, %239, %c0_182, %c0_183] : memref<1x10x10x128xbf16, #tpu.memory_space<vmem>>, vector<1x1x10x128xbf16>
    %241 = vector.shape_cast %240 : vector<1x1x10x128xbf16> to vector<10x128xbf16>
    %242 = vector.extract_strided_slice %241 {offsets = [0, 0], sizes = [8, 128], strides = [1, 1]} : vector<10x128xbf16> to vector<8x128xbf16>
    %c3_184 = arith.constant 3 : index
    %c0_185 = arith.constant 0 : index
    %c0_186 = arith.constant 0 : index
    %243 = vector.load %arg4[%c3_184, %c0_185, %c0_186] : memref<9x128x128xbf16, #tpu.memory_space<vmem>>, vector<1x128x128xbf16>
    %244 = vector.shape_cast %243 : vector<1x128x128xbf16> to vector<128x128xbf16>
    %cst_187 = arith.constant dense<0.000000e+00> : vector<8x128xf32>
    %245 = tpu.matmul %242, %244, %cst_187 {dimension_numbers = #tpu.dot_dimension_numbers<[1], [0], [0], [1], [0, 0, 1, 1], [], []>} : vector<8x128xbf16>, vector<128x128xbf16>, vector<8x128xf32> -> vector<8x128xf32>
    %246 = arith.addf %236, %245 : vector<8x128xf32>
    %247 = vector.extract_strided_slice %241 {offsets = [1, 0], sizes = [8, 128], strides = [1, 1]} : vector<10x128xbf16> to vector<8x128xbf16>
    %c4_188 = arith.constant 4 : index
    %c0_189 = arith.constant 0 : index
    %c0_190 = arith.constant 0 : index
    %248 = vector.load %arg4[%c4_188, %c0_189, %c0_190] : memref<9x128x128xbf16, #tpu.memory_space<vmem>>, vector<1x128x128xbf16>
    %249 = vector.shape_cast %248 : vector<1x128x128xbf16> to vector<128x128xbf16>
    %cst_191 = arith.constant dense<0.000000e+00> : vector<8x128xf32>
    %250 = tpu.matmul %247, %249, %cst_191 {dimension_numbers = #tpu.dot_dimension_numbers<[1], [0], [0], [1], [0, 0, 1, 1], [], []>} : vector<8x128xbf16>, vector<128x128xbf16>, vector<8x128xf32> -> vector<8x128xf32>
    %251 = arith.addf %246, %250 : vector<8x128xf32>
    %252 = vector.extract_strided_slice %241 {offsets = [2, 0], sizes = [8, 128], strides = [1, 1]} : vector<10x128xbf16> to vector<8x128xbf16>
    %c5_192 = arith.constant 5 : index
    %c0_193 = arith.constant 0 : index
    %c0_194 = arith.constant 0 : index
    %253 = vector.load %arg4[%c5_192, %c0_193, %c0_194] : memref<9x128x128xbf16, #tpu.memory_space<vmem>>, vector<1x128x128xbf16>
    %254 = vector.shape_cast %253 : vector<1x128x128xbf16> to vector<128x128xbf16>
    %cst_195 = arith.constant dense<0.000000e+00> : vector<8x128xf32>
    %255 = tpu.matmul %252, %254, %cst_195 {dimension_numbers = #tpu.dot_dimension_numbers<[1], [0], [0], [1], [0, 0, 1, 1], [], []>} : vector<8x128xbf16>, vector<128x128xbf16>, vector<8x128xf32> -> vector<8x128xf32>
    %256 = arith.addf %251, %255 : vector<8x128xf32>
    %c3_i32_196 = arith.constant 3 : i32
    %257 = arith.addi %0, %c3_i32_196 : i32
    %c2_i32_197 = arith.constant 2 : i32
    %258 = arith.addi %257, %c2_i32_197 : i32
    %c0_198 = arith.constant 0 : index
    %259 = arith.index_cast %258 : i32 to index
    %c0_199 = arith.constant 0 : index
    %c0_200 = arith.constant 0 : index
    %260 = vector.load %arg3[%c0_198, %259, %c0_199, %c0_200] : memref<1x10x10x128xbf16, #tpu.memory_space<vmem>>, vector<1x1x10x128xbf16>
    %261 = vector.shape_cast %260 : vector<1x1x10x128xbf16> to vector<10x128xbf16>
    %262 = vector.extract_strided_slice %261 {offsets = [0, 0], sizes = [8, 128], strides = [1, 1]} : vector<10x128xbf16> to vector<8x128xbf16>
    %c6_201 = arith.constant 6 : index
    %c0_202 = arith.constant 0 : index
    %c0_203 = arith.constant 0 : index
    %263 = vector.load %arg4[%c6_201, %c0_202, %c0_203] : memref<9x128x128xbf16, #tpu.memory_space<vmem>>, vector<1x128x128xbf16>
    %264 = vector.shape_cast %263 : vector<1x128x128xbf16> to vector<128x128xbf16>
    %cst_204 = arith.constant dense<0.000000e+00> : vector<8x128xf32>
    %265 = tpu.matmul %262, %264, %cst_204 {dimension_numbers = #tpu.dot_dimension_numbers<[1], [0], [0], [1], [0, 0, 1, 1], [], []>} : vector<8x128xbf16>, vector<128x128xbf16>, vector<8x128xf32> -> vector<8x128xf32>
    %266 = arith.addf %256, %265 : vector<8x128xf32>
    %267 = vector.extract_strided_slice %261 {offsets = [1, 0], sizes = [8, 128], strides = [1, 1]} : vector<10x128xbf16> to vector<8x128xbf16>
    %c7_205 = arith.constant 7 : index
    %c0_206 = arith.constant 0 : index
    %c0_207 = arith.constant 0 : index
    %268 = vector.load %arg4[%c7_205, %c0_206, %c0_207] : memref<9x128x128xbf16, #tpu.memory_space<vmem>>, vector<1x128x128xbf16>
    %269 = vector.shape_cast %268 : vector<1x128x128xbf16> to vector<128x128xbf16>
    %cst_208 = arith.constant dense<0.000000e+00> : vector<8x128xf32>
    %270 = tpu.matmul %267, %269, %cst_208 {dimension_numbers = #tpu.dot_dimension_numbers<[1], [0], [0], [1], [0, 0, 1, 1], [], []>} : vector<8x128xbf16>, vector<128x128xbf16>, vector<8x128xf32> -> vector<8x128xf32>
    %271 = arith.addf %266, %270 : vector<8x128xf32>
    %272 = vector.extract_strided_slice %261 {offsets = [2, 0], sizes = [8, 128], strides = [1, 1]} : vector<10x128xbf16> to vector<8x128xbf16>
    %c8_209 = arith.constant 8 : index
    %c0_210 = arith.constant 0 : index
    %c0_211 = arith.constant 0 : index
    %273 = vector.load %arg4[%c8_209, %c0_210, %c0_211] : memref<9x128x128xbf16, #tpu.memory_space<vmem>>, vector<1x128x128xbf16>
    %274 = vector.shape_cast %273 : vector<1x128x128xbf16> to vector<128x128xbf16>
    %cst_212 = arith.constant dense<0.000000e+00> : vector<8x128xf32>
    %275 = tpu.matmul %272, %274, %cst_212 {dimension_numbers = #tpu.dot_dimension_numbers<[1], [0], [0], [1], [0, 0, 1, 1], [], []>} : vector<8x128xbf16>, vector<128x128xbf16>, vector<8x128xf32> -> vector<8x128xf32>
    %276 = arith.addf %271, %275 : vector<8x128xf32>
    %277 = vector.broadcast %1 : vector<1x128xf32> to vector<8x128xf32>
    %278 = arith.mulf %276, %277 : vector<8x128xf32>
    %279 = vector.broadcast %2 : vector<1x128xf32> to vector<8x128xf32>
    %280 = arith.addf %278, %279 : vector<8x128xf32>
    %cst_213 = arith.constant 0.000000e+00 : f32
    %281 = vector.broadcast %cst_213 : f32 to vector<8x128xf32>
    %282 = arith.maximumf %280, %281 : vector<8x128xf32>
    %283 = arith.truncf %282 : vector<8x128xf32> to vector<8x128xbf16>
    %c0_214 = arith.constant 0 : index
    %c3_215 = arith.constant 3 : index
    %c0_216 = arith.constant 0 : index
    %c0_217 = arith.constant 0 : index
    %284 = vector.load %arg7[%c0_214, %c3_215, %c0_216, %c0_217] : memref<1x8x8x128xbf16, #tpu.memory_space<vmem>>, vector<1x1x8x128xbf16>
    %285 = vector.shape_cast %284 : vector<1x1x8x128xbf16> to vector<8x128xbf16>
    %286 = vector.shape_cast %283 : vector<8x128xbf16> to vector<1x1x8x128xbf16>
    tpu.vector_store %arg7[%c0_214, %c3_215, %c0_216, %c0_217], %286 {strides = array<i32>} : memref<1x8x8x128xbf16, #tpu.memory_space<vmem>>, vector<1x1x8x128xbf16>,
    %cst_218 = arith.constant 0.000000e+00 : f32
    %287 = vector.broadcast %cst_218 : f32 to vector<8x128xf32>
    %c4_i32 = arith.constant 4 : i32
    %288 = arith.addi %0, %c4_i32 : i32
    %c0_i32_219 = arith.constant 0 : i32
    %289 = arith.addi %288, %c0_i32_219 : i32
    %c0_220 = arith.constant 0 : index
    %290 = arith.index_cast %289 : i32 to index
    %c0_221 = arith.constant 0 : index
    %c0_222 = arith.constant 0 : index
    %291 = vector.load %arg3[%c0_220, %290, %c0_221, %c0_222] : memref<1x10x10x128xbf16, #tpu.memory_space<vmem>>, vector<1x1x10x128xbf16>
    %292 = vector.shape_cast %291 : vector<1x1x10x128xbf16> to vector<10x128xbf16>
    %293 = vector.extract_strided_slice %292 {offsets = [0, 0], sizes = [8, 128], strides = [1, 1]} : vector<10x128xbf16> to vector<8x128xbf16>
    %c0_223 = arith.constant 0 : index
    %c0_224 = arith.constant 0 : index
    %c0_225 = arith.constant 0 : index
    %294 = vector.load %arg4[%c0_223, %c0_224, %c0_225] : memref<9x128x128xbf16, #tpu.memory_space<vmem>>, vector<1x128x128xbf16>
    %295 = vector.shape_cast %294 : vector<1x128x128xbf16> to vector<128x128xbf16>
    %cst_226 = arith.constant dense<0.000000e+00> : vector<8x128xf32>
    %296 = tpu.matmul %293, %295, %cst_226 {dimension_numbers = #tpu.dot_dimension_numbers<[1], [0], [0], [1], [0, 0, 1, 1], [], []>} : vector<8x128xbf16>, vector<128x128xbf16>, vector<8x128xf32> -> vector<8x128xf32>
    %297 = arith.addf %287, %296 : vector<8x128xf32>
    %298 = vector.extract_strided_slice %292 {offsets = [1, 0], sizes = [8, 128], strides = [1, 1]} : vector<10x128xbf16> to vector<8x128xbf16>
    %c1_227 = arith.constant 1 : index
    %c0_228 = arith.constant 0 : index
    %c0_229 = arith.constant 0 : index
    %299 = vector.load %arg4[%c1_227, %c0_228, %c0_229] : memref<9x128x128xbf16, #tpu.memory_space<vmem>>, vector<1x128x128xbf16>
    %300 = vector.shape_cast %299 : vector<1x128x128xbf16> to vector<128x128xbf16>
    %cst_230 = arith.constant dense<0.000000e+00> : vector<8x128xf32>
    %301 = tpu.matmul %298, %300, %cst_230 {dimension_numbers = #tpu.dot_dimension_numbers<[1], [0], [0], [1], [0, 0, 1, 1], [], []>} : vector<8x128xbf16>, vector<128x128xbf16>, vector<8x128xf32> -> vector<8x128xf32>
    %302 = arith.addf %297, %301 : vector<8x128xf32>
    %303 = vector.extract_strided_slice %292 {offsets = [2, 0], sizes = [8, 128], strides = [1, 1]} : vector<10x128xbf16> to vector<8x128xbf16>
    %c2_231 = arith.constant 2 : index
    %c0_232 = arith.constant 0 : index
    %c0_233 = arith.constant 0 : index
    %304 = vector.load %arg4[%c2_231, %c0_232, %c0_233] : memref<9x128x128xbf16, #tpu.memory_space<vmem>>, vector<1x128x128xbf16>
    %305 = vector.shape_cast %304 : vector<1x128x128xbf16> to vector<128x128xbf16>
    %cst_234 = arith.constant dense<0.000000e+00> : vector<8x128xf32>
    %306 = tpu.matmul %303, %305, %cst_234 {dimension_numbers = #tpu.dot_dimension_numbers<[1], [0], [0], [1], [0, 0, 1, 1], [], []>} : vector<8x128xbf16>, vector<128x128xbf16>, vector<8x128xf32> -> vector<8x128xf32>
    %307 = arith.addf %302, %306 : vector<8x128xf32>
    %c4_i32_235 = arith.constant 4 : i32
    %308 = arith.addi %0, %c4_i32_235 : i32
    %c1_i32_236 = arith.constant 1 : i32
    %309 = arith.addi %308, %c1_i32_236 : i32
    %c0_237 = arith.constant 0 : index
    %310 = arith.index_cast %309 : i32 to index
    %c0_238 = arith.constant 0 : index
    %c0_239 = arith.constant 0 : index
    %311 = vector.load %arg3[%c0_237, %310, %c0_238, %c0_239] : memref<1x10x10x128xbf16, #tpu.memory_space<vmem>>, vector<1x1x10x128xbf16>
    %312 = vector.shape_cast %311 : vector<1x1x10x128xbf16> to vector<10x128xbf16>
    %313 = vector.extract_strided_slice %312 {offsets = [0, 0], sizes = [8, 128], strides = [1, 1]} : vector<10x128xbf16> to vector<8x128xbf16>
    %c3_240 = arith.constant 3 : index
    %c0_241 = arith.constant 0 : index
    %c0_242 = arith.constant 0 : index
    %314 = vector.load %arg4[%c3_240, %c0_241, %c0_242] : memref<9x128x128xbf16, #tpu.memory_space<vmem>>, vector<1x128x128xbf16>
    %315 = vector.shape_cast %314 : vector<1x128x128xbf16> to vector<128x128xbf16>
    %cst_243 = arith.constant dense<0.000000e+00> : vector<8x128xf32>
    %316 = tpu.matmul %313, %315, %cst_243 {dimension_numbers = #tpu.dot_dimension_numbers<[1], [0], [0], [1], [0, 0, 1, 1], [], []>} : vector<8x128xbf16>, vector<128x128xbf16>, vector<8x128xf32> -> vector<8x128xf32>
    %317 = arith.addf %307, %316 : vector<8x128xf32>
    %318 = vector.extract_strided_slice %312 {offsets = [1, 0], sizes = [8, 128], strides = [1, 1]} : vector<10x128xbf16> to vector<8x128xbf16>
    %c4_244 = arith.constant 4 : index
    %c0_245 = arith.constant 0 : index
    %c0_246 = arith.constant 0 : index
    %319 = vector.load %arg4[%c4_244, %c0_245, %c0_246] : memref<9x128x128xbf16, #tpu.memory_space<vmem>>, vector<1x128x128xbf16>
    %320 = vector.shape_cast %319 : vector<1x128x128xbf16> to vector<128x128xbf16>
    %cst_247 = arith.constant dense<0.000000e+00> : vector<8x128xf32>
    %321 = tpu.matmul %318, %320, %cst_247 {dimension_numbers = #tpu.dot_dimension_numbers<[1], [0], [0], [1], [0, 0, 1, 1], [], []>} : vector<8x128xbf16>, vector<128x128xbf16>, vector<8x128xf32> -> vector<8x128xf32>
    %322 = arith.addf %317, %321 : vector<8x128xf32>
    %323 = vector.extract_strided_slice %312 {offsets = [2, 0], sizes = [8, 128], strides = [1, 1]} : vector<10x128xbf16> to vector<8x128xbf16>
    %c5_248 = arith.constant 5 : index
    %c0_249 = arith.constant 0 : index
    %c0_250 = arith.constant 0 : index
    %324 = vector.load %arg4[%c5_248, %c0_249, %c0_250] : memref<9x128x128xbf16, #tpu.memory_space<vmem>>, vector<1x128x128xbf16>
    %325 = vector.shape_cast %324 : vector<1x128x128xbf16> to vector<128x128xbf16>
    %cst_251 = arith.constant dense<0.000000e+00> : vector<8x128xf32>
    %326 = tpu.matmul %323, %325, %cst_251 {dimension_numbers = #tpu.dot_dimension_numbers<[1], [0], [0], [1], [0, 0, 1, 1], [], []>} : vector<8x128xbf16>, vector<128x128xbf16>, vector<8x128xf32> -> vector<8x128xf32>
    %327 = arith.addf %322, %326 : vector<8x128xf32>
    %c4_i32_252 = arith.constant 4 : i32
    %328 = arith.addi %0, %c4_i32_252 : i32
    %c2_i32_253 = arith.constant 2 : i32
    %329 = arith.addi %328, %c2_i32_253 : i32
    %c0_254 = arith.constant 0 : index
    %330 = arith.index_cast %329 : i32 to index
    %c0_255 = arith.constant 0 : index
    %c0_256 = arith.constant 0 : index
    %331 = vector.load %arg3[%c0_254, %330, %c0_255, %c0_256] : memref<1x10x10x128xbf16, #tpu.memory_space<vmem>>, vector<1x1x10x128xbf16>
    %332 = vector.shape_cast %331 : vector<1x1x10x128xbf16> to vector<10x128xbf16>
    %333 = vector.extract_strided_slice %332 {offsets = [0, 0], sizes = [8, 128], strides = [1, 1]} : vector<10x128xbf16> to vector<8x128xbf16>
    %c6_257 = arith.constant 6 : index
    %c0_258 = arith.constant 0 : index
    %c0_259 = arith.constant 0 : index
    %334 = vector.load %arg4[%c6_257, %c0_258, %c0_259] : memref<9x128x128xbf16, #tpu.memory_space<vmem>>, vector<1x128x128xbf16>
    %335 = vector.shape_cast %334 : vector<1x128x128xbf16> to vector<128x128xbf16>
    %cst_260 = arith.constant dense<0.000000e+00> : vector<8x128xf32>
    %336 = tpu.matmul %333, %335, %cst_260 {dimension_numbers = #tpu.dot_dimension_numbers<[1], [0], [0], [1], [0, 0, 1, 1], [], []>} : vector<8x128xbf16>, vector<128x128xbf16>, vector<8x128xf32> -> vector<8x128xf32>
    %337 = arith.addf %327, %336 : vector<8x128xf32>
    %338 = vector.extract_strided_slice %332 {offsets = [1, 0], sizes = [8, 128], strides = [1, 1]} : vector<10x128xbf16> to vector<8x128xbf16>
    %c7_261 = arith.constant 7 : index
    %c0_262 = arith.constant 0 : index
    %c0_263 = arith.constant 0 : index
    %339 = vector.load %arg4[%c7_261, %c0_262, %c0_263] : memref<9x128x128xbf16, #tpu.memory_space<vmem>>, vector<1x128x128xbf16>
    %340 = vector.shape_cast %339 : vector<1x128x128xbf16> to vector<128x128xbf16>
    %cst_264 = arith.constant dense<0.000000e+00> : vector<8x128xf32>
    %341 = tpu.matmul %338, %340, %cst_264 {dimension_numbers = #tpu.dot_dimension_numbers<[1], [0], [0], [1], [0, 0, 1, 1], [], []>} : vector<8x128xbf16>, vector<128x128xbf16>, vector<8x128xf32> -> vector<8x128xf32>
    %342 = arith.addf %337, %341 : vector<8x128xf32>
    %343 = vector.extract_strided_slice %332 {offsets = [2, 0], sizes = [8, 128], strides = [1, 1]} : vector<10x128xbf16> to vector<8x128xbf16>
    %c8_265 = arith.constant 8 : index
    %c0_266 = arith.constant 0 : index
    %c0_267 = arith.constant 0 : index
    %344 = vector.load %arg4[%c8_265, %c0_266, %c0_267] : memref<9x128x128xbf16, #tpu.memory_space<vmem>>, vector<1x128x128xbf16>
    %345 = vector.shape_cast %344 : vector<1x128x128xbf16> to vector<128x128xbf16>
    %cst_268 = arith.constant dense<0.000000e+00> : vector<8x128xf32>
    %346 = tpu.matmul %343, %345, %cst_268 {dimension_numbers = #tpu.dot_dimension_numbers<[1], [0], [0], [1], [0, 0, 1, 1], [], []>} : vector<8x128xbf16>, vector<128x128xbf16>, vector<8x128xf32> -> vector<8x128xf32>
    %347 = arith.addf %342, %346 : vector<8x128xf32>
    %348 = vector.broadcast %1 : vector<1x128xf32> to vector<8x128xf32>
    %349 = arith.mulf %347, %348 : vector<8x128xf32>
    %350 = vector.broadcast %2 : vector<1x128xf32> to vector<8x128xf32>
    %351 = arith.addf %349, %350 : vector<8x128xf32>
    %cst_269 = arith.constant 0.000000e+00 : f32
    %352 = vector.broadcast %cst_269 : f32 to vector<8x128xf32>
    %353 = arith.maximumf %351, %352 : vector<8x128xf32>
    %354 = arith.truncf %353 : vector<8x128xf32> to vector<8x128xbf16>
    %c0_270 = arith.constant 0 : index
    %c4_271 = arith.constant 4 : index
    %c0_272 = arith.constant 0 : index
    %c0_273 = arith.constant 0 : index
    %355 = vector.load %arg7[%c0_270, %c4_271, %c0_272, %c0_273] : memref<1x8x8x128xbf16, #tpu.memory_space<vmem>>, vector<1x1x8x128xbf16>
    %356 = vector.shape_cast %355 : vector<1x1x8x128xbf16> to vector<8x128xbf16>
    %357 = vector.shape_cast %354 : vector<8x128xbf16> to vector<1x1x8x128xbf16>
    tpu.vector_store %arg7[%c0_270, %c4_271, %c0_272, %c0_273], %357 {strides = array<i32>} : memref<1x8x8x128xbf16, #tpu.memory_space<vmem>>, vector<1x1x8x128xbf16>,
    %cst_274 = arith.constant 0.000000e+00 : f32
    %358 = vector.broadcast %cst_274 : f32 to vector<8x128xf32>
    %c5_i32 = arith.constant 5 : i32
    %359 = arith.addi %0, %c5_i32 : i32
    %c0_i32_275 = arith.constant 0 : i32
    %360 = arith.addi %359, %c0_i32_275 : i32
    %c0_276 = arith.constant 0 : index
    %361 = arith.index_cast %360 : i32 to index
    %c0_277 = arith.constant 0 : index
    %c0_278 = arith.constant 0 : index
    %362 = vector.load %arg3[%c0_276, %361, %c0_277, %c0_278] : memref<1x10x10x128xbf16, #tpu.memory_space<vmem>>, vector<1x1x10x128xbf16>
    %363 = vector.shape_cast %362 : vector<1x1x10x128xbf16> to vector<10x128xbf16>
    %364 = vector.extract_strided_slice %363 {offsets = [0, 0], sizes = [8, 128], strides = [1, 1]} : vector<10x128xbf16> to vector<8x128xbf16>
    %c0_279 = arith.constant 0 : index
    %c0_280 = arith.constant 0 : index
    %c0_281 = arith.constant 0 : index
    %365 = vector.load %arg4[%c0_279, %c0_280, %c0_281] : memref<9x128x128xbf16, #tpu.memory_space<vmem>>, vector<1x128x128xbf16>
    %366 = vector.shape_cast %365 : vector<1x128x128xbf16> to vector<128x128xbf16>
    %cst_282 = arith.constant dense<0.000000e+00> : vector<8x128xf32>
    %367 = tpu.matmul %364, %366, %cst_282 {dimension_numbers = #tpu.dot_dimension_numbers<[1], [0], [0], [1], [0, 0, 1, 1], [], []>} : vector<8x128xbf16>, vector<128x128xbf16>, vector<8x128xf32> -> vector<8x128xf32>
    %368 = arith.addf %358, %367 : vector<8x128xf32>
    %369 = vector.extract_strided_slice %363 {offsets = [1, 0], sizes = [8, 128], strides = [1, 1]} : vector<10x128xbf16> to vector<8x128xbf16>
    %c1_283 = arith.constant 1 : index
    %c0_284 = arith.constant 0 : index
    %c0_285 = arith.constant 0 : index
    %370 = vector.load %arg4[%c1_283, %c0_284, %c0_285] : memref<9x128x128xbf16, #tpu.memory_space<vmem>>, vector<1x128x128xbf16>
    %371 = vector.shape_cast %370 : vector<1x128x128xbf16> to vector<128x128xbf16>
    %cst_286 = arith.constant dense<0.000000e+00> : vector<8x128xf32>
    %372 = tpu.matmul %369, %371, %cst_286 {dimension_numbers = #tpu.dot_dimension_numbers<[1], [0], [0], [1], [0, 0, 1, 1], [], []>} : vector<8x128xbf16>, vector<128x128xbf16>, vector<8x128xf32> -> vector<8x128xf32>
    %373 = arith.addf %368, %372 : vector<8x128xf32>
    %374 = vector.extract_strided_slice %363 {offsets = [2, 0], sizes = [8, 128], strides = [1, 1]} : vector<10x128xbf16> to vector<8x128xbf16>
    %c2_287 = arith.constant 2 : index
    %c0_288 = arith.constant 0 : index
    %c0_289 = arith.constant 0 : index
    %375 = vector.load %arg4[%c2_287, %c0_288, %c0_289] : memref<9x128x128xbf16, #tpu.memory_space<vmem>>, vector<1x128x128xbf16>
    %376 = vector.shape_cast %375 : vector<1x128x128xbf16> to vector<128x128xbf16>
    %cst_290 = arith.constant dense<0.000000e+00> : vector<8x128xf32>
    %377 = tpu.matmul %374, %376, %cst_290 {dimension_numbers = #tpu.dot_dimension_numbers<[1], [0], [0], [1], [0, 0, 1, 1], [], []>} : vector<8x128xbf16>, vector<128x128xbf16>, vector<8x128xf32> -> vector<8x128xf32>
    %378 = arith.addf %373, %377 : vector<8x128xf32>
    %c5_i32_291 = arith.constant 5 : i32
    %379 = arith.addi %0, %c5_i32_291 : i32
    %c1_i32_292 = arith.constant 1 : i32
    %380 = arith.addi %379, %c1_i32_292 : i32
    %c0_293 = arith.constant 0 : index
    %381 = arith.index_cast %380 : i32 to index
    %c0_294 = arith.constant 0 : index
    %c0_295 = arith.constant 0 : index
    %382 = vector.load %arg3[%c0_293, %381, %c0_294, %c0_295] : memref<1x10x10x128xbf16, #tpu.memory_space<vmem>>, vector<1x1x10x128xbf16>
    %383 = vector.shape_cast %382 : vector<1x1x10x128xbf16> to vector<10x128xbf16>
    %384 = vector.extract_strided_slice %383 {offsets = [0, 0], sizes = [8, 128], strides = [1, 1]} : vector<10x128xbf16> to vector<8x128xbf16>
    %c3_296 = arith.constant 3 : index
    %c0_297 = arith.constant 0 : index
    %c0_298 = arith.constant 0 : index
    %385 = vector.load %arg4[%c3_296, %c0_297, %c0_298] : memref<9x128x128xbf16, #tpu.memory_space<vmem>>, vector<1x128x128xbf16>
    %386 = vector.shape_cast %385 : vector<1x128x128xbf16> to vector<128x128xbf16>
    %cst_299 = arith.constant dense<0.000000e+00> : vector<8x128xf32>
    %387 = tpu.matmul %384, %386, %cst_299 {dimension_numbers = #tpu.dot_dimension_numbers<[1], [0], [0], [1], [0, 0, 1, 1], [], []>} : vector<8x128xbf16>, vector<128x128xbf16>, vector<8x128xf32> -> vector<8x128xf32>
    %388 = arith.addf %378, %387 : vector<8x128xf32>
    %389 = vector.extract_strided_slice %383 {offsets = [1, 0], sizes = [8, 128], strides = [1, 1]} : vector<10x128xbf16> to vector<8x128xbf16>
    %c4_300 = arith.constant 4 : index
    %c0_301 = arith.constant 0 : index
    %c0_302 = arith.constant 0 : index
    %390 = vector.load %arg4[%c4_300, %c0_301, %c0_302] : memref<9x128x128xbf16, #tpu.memory_space<vmem>>, vector<1x128x128xbf16>
    %391 = vector.shape_cast %390 : vector<1x128x128xbf16> to vector<128x128xbf16>
    %cst_303 = arith.constant dense<0.000000e+00> : vector<8x128xf32>
    %392 = tpu.matmul %389, %391, %cst_303 {dimension_numbers = #tpu.dot_dimension_numbers<[1], [0], [0], [1], [0, 0, 1, 1], [], []>} : vector<8x128xbf16>, vector<128x128xbf16>, vector<8x128xf32> -> vector<8x128xf32>
    %393 = arith.addf %388, %392 : vector<8x128xf32>
    %394 = vector.extract_strided_slice %383 {offsets = [2, 0], sizes = [8, 128], strides = [1, 1]} : vector<10x128xbf16> to vector<8x128xbf16>
    %c5_304 = arith.constant 5 : index
    %c0_305 = arith.constant 0 : index
    %c0_306 = arith.constant 0 : index
    %395 = vector.load %arg4[%c5_304, %c0_305, %c0_306] : memref<9x128x128xbf16, #tpu.memory_space<vmem>>, vector<1x128x128xbf16>
    %396 = vector.shape_cast %395 : vector<1x128x128xbf16> to vector<128x128xbf16>
    %cst_307 = arith.constant dense<0.000000e+00> : vector<8x128xf32>
    %397 = tpu.matmul %394, %396, %cst_307 {dimension_numbers = #tpu.dot_dimension_numbers<[1], [0], [0], [1], [0, 0, 1, 1], [], []>} : vector<8x128xbf16>, vector<128x128xbf16>, vector<8x128xf32> -> vector<8x128xf32>
    %398 = arith.addf %393, %397 : vector<8x128xf32>
    %c5_i32_308 = arith.constant 5 : i32
    %399 = arith.addi %0, %c5_i32_308 : i32
    %c2_i32_309 = arith.constant 2 : i32
    %400 = arith.addi %399, %c2_i32_309 : i32
    %c0_310 = arith.constant 0 : index
    %401 = arith.index_cast %400 : i32 to index
    %c0_311 = arith.constant 0 : index
    %c0_312 = arith.constant 0 : index
    %402 = vector.load %arg3[%c0_310, %401, %c0_311, %c0_312] : memref<1x10x10x128xbf16, #tpu.memory_space<vmem>>, vector<1x1x10x128xbf16>
    %403 = vector.shape_cast %402 : vector<1x1x10x128xbf16> to vector<10x128xbf16>
    %404 = vector.extract_strided_slice %403 {offsets = [0, 0], sizes = [8, 128], strides = [1, 1]} : vector<10x128xbf16> to vector<8x128xbf16>
    %c6_313 = arith.constant 6 : index
    %c0_314 = arith.constant 0 : index
    %c0_315 = arith.constant 0 : index
    %405 = vector.load %arg4[%c6_313, %c0_314, %c0_315] : memref<9x128x128xbf16, #tpu.memory_space<vmem>>, vector<1x128x128xbf16>
    %406 = vector.shape_cast %405 : vector<1x128x128xbf16> to vector<128x128xbf16>
    %cst_316 = arith.constant dense<0.000000e+00> : vector<8x128xf32>
    %407 = tpu.matmul %404, %406, %cst_316 {dimension_numbers = #tpu.dot_dimension_numbers<[1], [0], [0], [1], [0, 0, 1, 1], [], []>} : vector<8x128xbf16>, vector<128x128xbf16>, vector<8x128xf32> -> vector<8x128xf32>
    %408 = arith.addf %398, %407 : vector<8x128xf32>
    %409 = vector.extract_strided_slice %403 {offsets = [1, 0], sizes = [8, 128], strides = [1, 1]} : vector<10x128xbf16> to vector<8x128xbf16>
    %c7_317 = arith.constant 7 : index
    %c0_318 = arith.constant 0 : index
    %c0_319 = arith.constant 0 : index
    %410 = vector.load %arg4[%c7_317, %c0_318, %c0_319] : memref<9x128x128xbf16, #tpu.memory_space<vmem>>, vector<1x128x128xbf16>
    %411 = vector.shape_cast %410 : vector<1x128x128xbf16> to vector<128x128xbf16>
    %cst_320 = arith.constant dense<0.000000e+00> : vector<8x128xf32>
    %412 = tpu.matmul %409, %411, %cst_320 {dimension_numbers = #tpu.dot_dimension_numbers<[1], [0], [0], [1], [0, 0, 1, 1], [], []>} : vector<8x128xbf16>, vector<128x128xbf16>, vector<8x128xf32> -> vector<8x128xf32>
    %413 = arith.addf %408, %412 : vector<8x128xf32>
    %414 = vector.extract_strided_slice %403 {offsets = [2, 0], sizes = [8, 128], strides = [1, 1]} : vector<10x128xbf16> to vector<8x128xbf16>
    %c8_321 = arith.constant 8 : index
    %c0_322 = arith.constant 0 : index
    %c0_323 = arith.constant 0 : index
    %415 = vector.load %arg4[%c8_321, %c0_322, %c0_323] : memref<9x128x128xbf16, #tpu.memory_space<vmem>>, vector<1x128x128xbf16>
    %416 = vector.shape_cast %415 : vector<1x128x128xbf16> to vector<128x128xbf16>
    %cst_324 = arith.constant dense<0.000000e+00> : vector<8x128xf32>
    %417 = tpu.matmul %414, %416, %cst_324 {dimension_numbers = #tpu.dot_dimension_numbers<[1], [0], [0], [1], [0, 0, 1, 1], [], []>} : vector<8x128xbf16>, vector<128x128xbf16>, vector<8x128xf32> -> vector<8x128xf32>
    %418 = arith.addf %413, %417 : vector<8x128xf32>
    %419 = vector.broadcast %1 : vector<1x128xf32> to vector<8x128xf32>
    %420 = arith.mulf %418, %419 : vector<8x128xf32>
    %421 = vector.broadcast %2 : vector<1x128xf32> to vector<8x128xf32>
    %422 = arith.addf %420, %421 : vector<8x128xf32>
    %cst_325 = arith.constant 0.000000e+00 : f32
    %423 = vector.broadcast %cst_325 : f32 to vector<8x128xf32>
    %424 = arith.maximumf %422, %423 : vector<8x128xf32>
    %425 = arith.truncf %424 : vector<8x128xf32> to vector<8x128xbf16>
    %c0_326 = arith.constant 0 : index
    %c5_327 = arith.constant 5 : index
    %c0_328 = arith.constant 0 : index
    %c0_329 = arith.constant 0 : index
    %426 = vector.load %arg7[%c0_326, %c5_327, %c0_328, %c0_329] : memref<1x8x8x128xbf16, #tpu.memory_space<vmem>>, vector<1x1x8x128xbf16>
    %427 = vector.shape_cast %426 : vector<1x1x8x128xbf16> to vector<8x128xbf16>
    %428 = vector.shape_cast %425 : vector<8x128xbf16> to vector<1x1x8x128xbf16>
    tpu.vector_store %arg7[%c0_326, %c5_327, %c0_328, %c0_329], %428 {strides = array<i32>} : memref<1x8x8x128xbf16, #tpu.memory_space<vmem>>, vector<1x1x8x128xbf16>,
    %cst_330 = arith.constant 0.000000e+00 : f32
    %429 = vector.broadcast %cst_330 : f32 to vector<8x128xf32>
    %c6_i32 = arith.constant 6 : i32
    %430 = arith.addi %0, %c6_i32 : i32
    %c0_i32_331 = arith.constant 0 : i32
    %431 = arith.addi %430, %c0_i32_331 : i32
    %c0_332 = arith.constant 0 : index
    %432 = arith.index_cast %431 : i32 to index
    %c0_333 = arith.constant 0 : index
    %c0_334 = arith.constant 0 : index
    %433 = vector.load %arg3[%c0_332, %432, %c0_333, %c0_334] : memref<1x10x10x128xbf16, #tpu.memory_space<vmem>>, vector<1x1x10x128xbf16>
    %434 = vector.shape_cast %433 : vector<1x1x10x128xbf16> to vector<10x128xbf16>
    %435 = vector.extract_strided_slice %434 {offsets = [0, 0], sizes = [8, 128], strides = [1, 1]} : vector<10x128xbf16> to vector<8x128xbf16>
    %c0_335 = arith.constant 0 : index
    %c0_336 = arith.constant 0 : index
    %c0_337 = arith.constant 0 : index
    %436 = vector.load %arg4[%c0_335, %c0_336, %c0_337] : memref<9x128x128xbf16, #tpu.memory_space<vmem>>, vector<1x128x128xbf16>
    %437 = vector.shape_cast %436 : vector<1x128x128xbf16> to vector<128x128xbf16>
    %cst_338 = arith.constant dense<0.000000e+00> : vector<8x128xf32>
    %438 = tpu.matmul %435, %437, %cst_338 {dimension_numbers = #tpu.dot_dimension_numbers<[1], [0], [0], [1], [0, 0, 1, 1], [], []>} : vector<8x128xbf16>, vector<128x128xbf16>, vector<8x128xf32> -> vector<8x128xf32>
    %439 = arith.addf %429, %438 : vector<8x128xf32>
    %440 = vector.extract_strided_slice %434 {offsets = [1, 0], sizes = [8, 128], strides = [1, 1]} : vector<10x128xbf16> to vector<8x128xbf16>
    %c1_339 = arith.constant 1 : index
    %c0_340 = arith.constant 0 : index
    %c0_341 = arith.constant 0 : index
    %441 = vector.load %arg4[%c1_339, %c0_340, %c0_341] : memref<9x128x128xbf16, #tpu.memory_space<vmem>>, vector<1x128x128xbf16>
    %442 = vector.shape_cast %441 : vector<1x128x128xbf16> to vector<128x128xbf16>
    %cst_342 = arith.constant dense<0.000000e+00> : vector<8x128xf32>
    %443 = tpu.matmul %440, %442, %cst_342 {dimension_numbers = #tpu.dot_dimension_numbers<[1], [0], [0], [1], [0, 0, 1, 1], [], []>} : vector<8x128xbf16>, vector<128x128xbf16>, vector<8x128xf32> -> vector<8x128xf32>
    %444 = arith.addf %439, %443 : vector<8x128xf32>
    %445 = vector.extract_strided_slice %434 {offsets = [2, 0], sizes = [8, 128], strides = [1, 1]} : vector<10x128xbf16> to vector<8x128xbf16>
    %c2_343 = arith.constant 2 : index
    %c0_344 = arith.constant 0 : index
    %c0_345 = arith.constant 0 : index
    %446 = vector.load %arg4[%c2_343, %c0_344, %c0_345] : memref<9x128x128xbf16, #tpu.memory_space<vmem>>, vector<1x128x128xbf16>
    %447 = vector.shape_cast %446 : vector<1x128x128xbf16> to vector<128x128xbf16>
    %cst_346 = arith.constant dense<0.000000e+00> : vector<8x128xf32>
    %448 = tpu.matmul %445, %447, %cst_346 {dimension_numbers = #tpu.dot_dimension_numbers<[1], [0], [0], [1], [0, 0, 1, 1], [], []>} : vector<8x128xbf16>, vector<128x128xbf16>, vector<8x128xf32> -> vector<8x128xf32>
    %449 = arith.addf %444, %448 : vector<8x128xf32>
    %c6_i32_347 = arith.constant 6 : i32
    %450 = arith.addi %0, %c6_i32_347 : i32
    %c1_i32_348 = arith.constant 1 : i32
    %451 = arith.addi %450, %c1_i32_348 : i32
    %c0_349 = arith.constant 0 : index
    %452 = arith.index_cast %451 : i32 to index
    %c0_350 = arith.constant 0 : index
    %c0_351 = arith.constant 0 : index
    %453 = vector.load %arg3[%c0_349, %452, %c0_350, %c0_351] : memref<1x10x10x128xbf16, #tpu.memory_space<vmem>>, vector<1x1x10x128xbf16>
    %454 = vector.shape_cast %453 : vector<1x1x10x128xbf16> to vector<10x128xbf16>
    %455 = vector.extract_strided_slice %454 {offsets = [0, 0], sizes = [8, 128], strides = [1, 1]} : vector<10x128xbf16> to vector<8x128xbf16>
    %c3_352 = arith.constant 3 : index
    %c0_353 = arith.constant 0 : index
    %c0_354 = arith.constant 0 : index
    %456 = vector.load %arg4[%c3_352, %c0_353, %c0_354] : memref<9x128x128xbf16, #tpu.memory_space<vmem>>, vector<1x128x128xbf16>
    %457 = vector.shape_cast %456 : vector<1x128x128xbf16> to vector<128x128xbf16>
    %cst_355 = arith.constant dense<0.000000e+00> : vector<8x128xf32>
    %458 = tpu.matmul %455, %457, %cst_355 {dimension_numbers = #tpu.dot_dimension_numbers<[1], [0], [0], [1], [0, 0, 1, 1], [], []>} : vector<8x128xbf16>, vector<128x128xbf16>, vector<8x128xf32> -> vector<8x128xf32>
    %459 = arith.addf %449, %458 : vector<8x128xf32>
    %460 = vector.extract_strided_slice %454 {offsets = [1, 0], sizes = [8, 128], strides = [1, 1]} : vector<10x128xbf16> to vector<8x128xbf16>
    %c4_356 = arith.constant 4 : index
    %c0_357 = arith.constant 0 : index
    %c0_358 = arith.constant 0 : index
    %461 = vector.load %arg4[%c4_356, %c0_357, %c0_358] : memref<9x128x128xbf16, #tpu.memory_space<vmem>>, vector<1x128x128xbf16>
    %462 = vector.shape_cast %461 : vector<1x128x128xbf16> to vector<128x128xbf16>
    %cst_359 = arith.constant dense<0.000000e+00> : vector<8x128xf32>
    %463 = tpu.matmul %460, %462, %cst_359 {dimension_numbers = #tpu.dot_dimension_numbers<[1], [0], [0], [1], [0, 0, 1, 1], [], []>} : vector<8x128xbf16>, vector<128x128xbf16>, vector<8x128xf32> -> vector<8x128xf32>
    %464 = arith.addf %459, %463 : vector<8x128xf32>
    %465 = vector.extract_strided_slice %454 {offsets = [2, 0], sizes = [8, 128], strides = [1, 1]} : vector<10x128xbf16> to vector<8x128xbf16>
    %c5_360 = arith.constant 5 : index
    %c0_361 = arith.constant 0 : index
    %c0_362 = arith.constant 0 : index
    %466 = vector.load %arg4[%c5_360, %c0_361, %c0_362] : memref<9x128x128xbf16, #tpu.memory_space<vmem>>, vector<1x128x128xbf16>
    %467 = vector.shape_cast %466 : vector<1x128x128xbf16> to vector<128x128xbf16>
    %cst_363 = arith.constant dense<0.000000e+00> : vector<8x128xf32>
    %468 = tpu.matmul %465, %467, %cst_363 {dimension_numbers = #tpu.dot_dimension_numbers<[1], [0], [0], [1], [0, 0, 1, 1], [], []>} : vector<8x128xbf16>, vector<128x128xbf16>, vector<8x128xf32> -> vector<8x128xf32>
    %469 = arith.addf %464, %468 : vector<8x128xf32>
    %c6_i32_364 = arith.constant 6 : i32
    %470 = arith.addi %0, %c6_i32_364 : i32
    %c2_i32_365 = arith.constant 2 : i32
    %471 = arith.addi %470, %c2_i32_365 : i32
    %c0_366 = arith.constant 0 : index
    %472 = arith.index_cast %471 : i32 to index
    %c0_367 = arith.constant 0 : index
    %c0_368 = arith.constant 0 : index
    %473 = vector.load %arg3[%c0_366, %472, %c0_367, %c0_368] : memref<1x10x10x128xbf16, #tpu.memory_space<vmem>>, vector<1x1x10x128xbf16>
    %474 = vector.shape_cast %473 : vector<1x1x10x128xbf16> to vector<10x128xbf16>
    %475 = vector.extract_strided_slice %474 {offsets = [0, 0], sizes = [8, 128], strides = [1, 1]} : vector<10x128xbf16> to vector<8x128xbf16>
    %c6_369 = arith.constant 6 : index
    %c0_370 = arith.constant 0 : index
    %c0_371 = arith.constant 0 : index
    %476 = vector.load %arg4[%c6_369, %c0_370, %c0_371] : memref<9x128x128xbf16, #tpu.memory_space<vmem>>, vector<1x128x128xbf16>
    %477 = vector.shape_cast %476 : vector<1x128x128xbf16> to vector<128x128xbf16>
    %cst_372 = arith.constant dense<0.000000e+00> : vector<8x128xf32>
    %478 = tpu.matmul %475, %477, %cst_372 {dimension_numbers = #tpu.dot_dimension_numbers<[1], [0], [0], [1], [0, 0, 1, 1], [], []>} : vector<8x128xbf16>, vector<128x128xbf16>, vector<8x128xf32> -> vector<8x128xf32>
    %479 = arith.addf %469, %478 : vector<8x128xf32>
    %480 = vector.extract_strided_slice %474 {offsets = [1, 0], sizes = [8, 128], strides = [1, 1]} : vector<10x128xbf16> to vector<8x128xbf16>
    %c7_373 = arith.constant 7 : index
    %c0_374 = arith.constant 0 : index
    %c0_375 = arith.constant 0 : index
    %481 = vector.load %arg4[%c7_373, %c0_374, %c0_375] : memref<9x128x128xbf16, #tpu.memory_space<vmem>>, vector<1x128x128xbf16>
    %482 = vector.shape_cast %481 : vector<1x128x128xbf16> to vector<128x128xbf16>
    %cst_376 = arith.constant dense<0.000000e+00> : vector<8x128xf32>
    %483 = tpu.matmul %480, %482, %cst_376 {dimension_numbers = #tpu.dot_dimension_numbers<[1], [0], [0], [1], [0, 0, 1, 1], [], []>} : vector<8x128xbf16>, vector<128x128xbf16>, vector<8x128xf32> -> vector<8x128xf32>
    %484 = arith.addf %479, %483 : vector<8x128xf32>
    %485 = vector.extract_strided_slice %474 {offsets = [2, 0], sizes = [8, 128], strides = [1, 1]} : vector<10x128xbf16> to vector<8x128xbf16>
    %c8_377 = arith.constant 8 : index
    %c0_378 = arith.constant 0 : index
    %c0_379 = arith.constant 0 : index
    %486 = vector.load %arg4[%c8_377, %c0_378, %c0_379] : memref<9x128x128xbf16, #tpu.memory_space<vmem>>, vector<1x128x128xbf16>
    %487 = vector.shape_cast %486 : vector<1x128x128xbf16> to vector<128x128xbf16>
    %cst_380 = arith.constant dense<0.000000e+00> : vector<8x128xf32>
    %488 = tpu.matmul %485, %487, %cst_380 {dimension_numbers = #tpu.dot_dimension_numbers<[1], [0], [0], [1], [0, 0, 1, 1], [], []>} : vector<8x128xbf16>, vector<128x128xbf16>, vector<8x128xf32> -> vector<8x128xf32>
    %489 = arith.addf %484, %488 : vector<8x128xf32>
    %490 = vector.broadcast %1 : vector<1x128xf32> to vector<8x128xf32>
    %491 = arith.mulf %489, %490 : vector<8x128xf32>
    %492 = vector.broadcast %2 : vector<1x128xf32> to vector<8x128xf32>
    %493 = arith.addf %491, %492 : vector<8x128xf32>
    %cst_381 = arith.constant 0.000000e+00 : f32
    %494 = vector.broadcast %cst_381 : f32 to vector<8x128xf32>
    %495 = arith.maximumf %493, %494 : vector<8x128xf32>
    %496 = arith.truncf %495 : vector<8x128xf32> to vector<8x128xbf16>
    %c0_382 = arith.constant 0 : index
    %c6_383 = arith.constant 6 : index
    %c0_384 = arith.constant 0 : index
    %c0_385 = arith.constant 0 : index
    %497 = vector.load %arg7[%c0_382, %c6_383, %c0_384, %c0_385] : memref<1x8x8x128xbf16, #tpu.memory_space<vmem>>, vector<1x1x8x128xbf16>
    %498 = vector.shape_cast %497 : vector<1x1x8x128xbf16> to vector<8x128xbf16>
    %499 = vector.shape_cast %496 : vector<8x128xbf16> to vector<1x1x8x128xbf16>
    tpu.vector_store %arg7[%c0_382, %c6_383, %c0_384, %c0_385], %499 {strides = array<i32>} : memref<1x8x8x128xbf16, #tpu.memory_space<vmem>>, vector<1x1x8x128xbf16>,
    %cst_386 = arith.constant 0.000000e+00 : f32
    %500 = vector.broadcast %cst_386 : f32 to vector<8x128xf32>
    %c7_i32 = arith.constant 7 : i32
    %501 = arith.addi %0, %c7_i32 : i32
    %c0_i32_387 = arith.constant 0 : i32
    %502 = arith.addi %501, %c0_i32_387 : i32
    %c0_388 = arith.constant 0 : index
    %503 = arith.index_cast %502 : i32 to index
    %c0_389 = arith.constant 0 : index
    %c0_390 = arith.constant 0 : index
    %504 = vector.load %arg3[%c0_388, %503, %c0_389, %c0_390] : memref<1x10x10x128xbf16, #tpu.memory_space<vmem>>, vector<1x1x10x128xbf16>
    %505 = vector.shape_cast %504 : vector<1x1x10x128xbf16> to vector<10x128xbf16>
    %506 = vector.extract_strided_slice %505 {offsets = [0, 0], sizes = [8, 128], strides = [1, 1]} : vector<10x128xbf16> to vector<8x128xbf16>
    %c0_391 = arith.constant 0 : index
    %c0_392 = arith.constant 0 : index
    %c0_393 = arith.constant 0 : index
    %507 = vector.load %arg4[%c0_391, %c0_392, %c0_393] : memref<9x128x128xbf16, #tpu.memory_space<vmem>>, vector<1x128x128xbf16>
    %508 = vector.shape_cast %507 : vector<1x128x128xbf16> to vector<128x128xbf16>
    %cst_394 = arith.constant dense<0.000000e+00> : vector<8x128xf32>
    %509 = tpu.matmul %506, %508, %cst_394 {dimension_numbers = #tpu.dot_dimension_numbers<[1], [0], [0], [1], [0, 0, 1, 1], [], []>} : vector<8x128xbf16>, vector<128x128xbf16>, vector<8x128xf32> -> vector<8x128xf32>
    %510 = arith.addf %500, %509 : vector<8x128xf32>
    %511 = vector.extract_strided_slice %505 {offsets = [1, 0], sizes = [8, 128], strides = [1, 1]} : vector<10x128xbf16> to vector<8x128xbf16>
    %c1_395 = arith.constant 1 : index
    %c0_396 = arith.constant 0 : index
    %c0_397 = arith.constant 0 : index
    %512 = vector.load %arg4[%c1_395, %c0_396, %c0_397] : memref<9x128x128xbf16, #tpu.memory_space<vmem>>, vector<1x128x128xbf16>
    %513 = vector.shape_cast %512 : vector<1x128x128xbf16> to vector<128x128xbf16>
    %cst_398 = arith.constant dense<0.000000e+00> : vector<8x128xf32>
    %514 = tpu.matmul %511, %513, %cst_398 {dimension_numbers = #tpu.dot_dimension_numbers<[1], [0], [0], [1], [0, 0, 1, 1], [], []>} : vector<8x128xbf16>, vector<128x128xbf16>, vector<8x128xf32> -> vector<8x128xf32>
    %515 = arith.addf %510, %514 : vector<8x128xf32>
    %516 = vector.extract_strided_slice %505 {offsets = [2, 0], sizes = [8, 128], strides = [1, 1]} : vector<10x128xbf16> to vector<8x128xbf16>
    %c2_399 = arith.constant 2 : index
    %c0_400 = arith.constant 0 : index
    %c0_401 = arith.constant 0 : index
    %517 = vector.load %arg4[%c2_399, %c0_400, %c0_401] : memref<9x128x128xbf16, #tpu.memory_space<vmem>>, vector<1x128x128xbf16>
    %518 = vector.shape_cast %517 : vector<1x128x128xbf16> to vector<128x128xbf16>
    %cst_402 = arith.constant dense<0.000000e+00> : vector<8x128xf32>
    %519 = tpu.matmul %516, %518, %cst_402 {dimension_numbers = #tpu.dot_dimension_numbers<[1], [0], [0], [1], [0, 0, 1, 1], [], []>} : vector<8x128xbf16>, vector<128x128xbf16>, vector<8x128xf32> -> vector<8x128xf32>
    %520 = arith.addf %515, %519 : vector<8x128xf32>
    %c7_i32_403 = arith.constant 7 : i32
    %521 = arith.addi %0, %c7_i32_403 : i32
    %c1_i32_404 = arith.constant 1 : i32
    %522 = arith.addi %521, %c1_i32_404 : i32
    %c0_405 = arith.constant 0 : index
    %523 = arith.index_cast %522 : i32 to index
    %c0_406 = arith.constant 0 : index
    %c0_407 = arith.constant 0 : index
    %524 = vector.load %arg3[%c0_405, %523, %c0_406, %c0_407] : memref<1x10x10x128xbf16, #tpu.memory_space<vmem>>, vector<1x1x10x128xbf16>
    %525 = vector.shape_cast %524 : vector<1x1x10x128xbf16> to vector<10x128xbf16>
    %526 = vector.extract_strided_slice %525 {offsets = [0, 0], sizes = [8, 128], strides = [1, 1]} : vector<10x128xbf16> to vector<8x128xbf16>
    %c3_408 = arith.constant 3 : index
    %c0_409 = arith.constant 0 : index
    %c0_410 = arith.constant 0 : index
    %527 = vector.load %arg4[%c3_408, %c0_409, %c0_410] : memref<9x128x128xbf16, #tpu.memory_space<vmem>>, vector<1x128x128xbf16>
    %528 = vector.shape_cast %527 : vector<1x128x128xbf16> to vector<128x128xbf16>
    %cst_411 = arith.constant dense<0.000000e+00> : vector<8x128xf32>
    %529 = tpu.matmul %526, %528, %cst_411 {dimension_numbers = #tpu.dot_dimension_numbers<[1], [0], [0], [1], [0, 0, 1, 1], [], []>} : vector<8x128xbf16>, vector<128x128xbf16>, vector<8x128xf32> -> vector<8x128xf32>
    %530 = arith.addf %520, %529 : vector<8x128xf32>
    %531 = vector.extract_strided_slice %525 {offsets = [1, 0], sizes = [8, 128], strides = [1, 1]} : vector<10x128xbf16> to vector<8x128xbf16>
    %c4_412 = arith.constant 4 : index
    %c0_413 = arith.constant 0 : index
    %c0_414 = arith.constant 0 : index
    %532 = vector.load %arg4[%c4_412, %c0_413, %c0_414] : memref<9x128x128xbf16, #tpu.memory_space<vmem>>, vector<1x128x128xbf16>
    %533 = vector.shape_cast %532 : vector<1x128x128xbf16> to vector<128x128xbf16>
    %cst_415 = arith.constant dense<0.000000e+00> : vector<8x128xf32>
    %534 = tpu.matmul %531, %533, %cst_415 {dimension_numbers = #tpu.dot_dimension_numbers<[1], [0], [0], [1], [0, 0, 1, 1], [], []>} : vector<8x128xbf16>, vector<128x128xbf16>, vector<8x128xf32> -> vector<8x128xf32>
    %535 = arith.addf %530, %534 : vector<8x128xf32>
    %536 = vector.extract_strided_slice %525 {offsets = [2, 0], sizes = [8, 128], strides = [1, 1]} : vector<10x128xbf16> to vector<8x128xbf16>
    %c5_416 = arith.constant 5 : index
    %c0_417 = arith.constant 0 : index
    %c0_418 = arith.constant 0 : index
    %537 = vector.load %arg4[%c5_416, %c0_417, %c0_418] : memref<9x128x128xbf16, #tpu.memory_space<vmem>>, vector<1x128x128xbf16>
    %538 = vector.shape_cast %537 : vector<1x128x128xbf16> to vector<128x128xbf16>
    %cst_419 = arith.constant dense<0.000000e+00> : vector<8x128xf32>
    %539 = tpu.matmul %536, %538, %cst_419 {dimension_numbers = #tpu.dot_dimension_numbers<[1], [0], [0], [1], [0, 0, 1, 1], [], []>} : vector<8x128xbf16>, vector<128x128xbf16>, vector<8x128xf32> -> vector<8x128xf32>
    %540 = arith.addf %535, %539 : vector<8x128xf32>
    %c7_i32_420 = arith.constant 7 : i32
    %541 = arith.addi %0, %c7_i32_420 : i32
    %c2_i32_421 = arith.constant 2 : i32
    %542 = arith.addi %541, %c2_i32_421 : i32
    %c0_422 = arith.constant 0 : index
    %543 = arith.index_cast %542 : i32 to index
    %c0_423 = arith.constant 0 : index
    %c0_424 = arith.constant 0 : index
    %544 = vector.load %arg3[%c0_422, %543, %c0_423, %c0_424] : memref<1x10x10x128xbf16, #tpu.memory_space<vmem>>, vector<1x1x10x128xbf16>
    %545 = vector.shape_cast %544 : vector<1x1x10x128xbf16> to vector<10x128xbf16>
    %546 = vector.extract_strided_slice %545 {offsets = [0, 0], sizes = [8, 128], strides = [1, 1]} : vector<10x128xbf16> to vector<8x128xbf16>
    %c6_425 = arith.constant 6 : index
    %c0_426 = arith.constant 0 : index
    %c0_427 = arith.constant 0 : index
    %547 = vector.load %arg4[%c6_425, %c0_426, %c0_427] : memref<9x128x128xbf16, #tpu.memory_space<vmem>>, vector<1x128x128xbf16>
    %548 = vector.shape_cast %547 : vector<1x128x128xbf16> to vector<128x128xbf16>
    %cst_428 = arith.constant dense<0.000000e+00> : vector<8x128xf32>
    %549 = tpu.matmul %546, %548, %cst_428 {dimension_numbers = #tpu.dot_dimension_numbers<[1], [0], [0], [1], [0, 0, 1, 1], [], []>} : vector<8x128xbf16>, vector<128x128xbf16>, vector<8x128xf32> -> vector<8x128xf32>
    %550 = arith.addf %540, %549 : vector<8x128xf32>
    %551 = vector.extract_strided_slice %545 {offsets = [1, 0], sizes = [8, 128], strides = [1, 1]} : vector<10x128xbf16> to vector<8x128xbf16>
    %c7_429 = arith.constant 7 : index
    %c0_430 = arith.constant 0 : index
    %c0_431 = arith.constant 0 : index
    %552 = vector.load %arg4[%c7_429, %c0_430, %c0_431] : memref<9x128x128xbf16, #tpu.memory_space<vmem>>, vector<1x128x128xbf16>
    %553 = vector.shape_cast %552 : vector<1x128x128xbf16> to vector<128x128xbf16>
    %cst_432 = arith.constant dense<0.000000e+00> : vector<8x128xf32>
    %554 = tpu.matmul %551, %553, %cst_432 {dimension_numbers = #tpu.dot_dimension_numbers<[1], [0], [0], [1], [0, 0, 1, 1], [], []>} : vector<8x128xbf16>, vector<128x128xbf16>, vector<8x128xf32> -> vector<8x128xf32>
    %555 = arith.addf %550, %554 : vector<8x128xf32>
    %556 = vector.extract_strided_slice %545 {offsets = [2, 0], sizes = [8, 128], strides = [1, 1]} : vector<10x128xbf16> to vector<8x128xbf16>
    %c8_433 = arith.constant 8 : index
    %c0_434 = arith.constant 0 : index
    %c0_435 = arith.constant 0 : index
    %557 = vector.load %arg4[%c8_433, %c0_434, %c0_435] : memref<9x128x128xbf16, #tpu.memory_space<vmem>>, vector<1x128x128xbf16>
    %558 = vector.shape_cast %557 : vector<1x128x128xbf16> to vector<128x128xbf16>
    %cst_436 = arith.constant dense<0.000000e+00> : vector<8x128xf32>
    %559 = tpu.matmul %556, %558, %cst_436 {dimension_numbers = #tpu.dot_dimension_numbers<[1], [0], [0], [1], [0, 0, 1, 1], [], []>} : vector<8x128xbf16>, vector<128x128xbf16>, vector<8x128xf32> -> vector<8x128xf32>
    %560 = arith.addf %555, %559 : vector<8x128xf32>
    %561 = vector.broadcast %1 : vector<1x128xf32> to vector<8x128xf32>
    %562 = arith.mulf %560, %561 : vector<8x128xf32>
    %563 = vector.broadcast %2 : vector<1x128xf32> to vector<8x128xf32>
    %564 = arith.addf %562, %563 : vector<8x128xf32>
    %cst_437 = arith.constant 0.000000e+00 : f32
    %565 = vector.broadcast %cst_437 : f32 to vector<8x128xf32>
    %566 = arith.maximumf %564, %565 : vector<8x128xf32>
    %567 = arith.truncf %566 : vector<8x128xf32> to vector<8x128xbf16>
    %c0_438 = arith.constant 0 : index
    %c7_439 = arith.constant 7 : index
    %c0_440 = arith.constant 0 : index
    %c0_441 = arith.constant 0 : index
    %568 = vector.load %arg7[%c0_438, %c7_439, %c0_440, %c0_441] : memref<1x8x8x128xbf16, #tpu.memory_space<vmem>>, vector<1x1x8x128xbf16>
    %569 = vector.shape_cast %568 : vector<1x1x8x128xbf16> to vector<8x128xbf16>
    %570 = vector.shape_cast %567 : vector<8x128xbf16> to vector<1x1x8x128xbf16>
    tpu.vector_store %arg7[%c0_438, %c7_439, %c0_440, %c0_441], %570 {strides = array<i32>} : memref<1x8x8x128xbf16, #tpu.memory_space<vmem>>, vector<1x1x8x128xbf16>,
    return
  }
  func.func @transform_0(%arg0: i32, %arg1: i32, %arg2: i32) -> (i32, i32, i32, i32) {
    %c0_i32 = arith.constant 0 : i32
    %c0_i32_0 = arith.constant 0 : i32
    %c0_i32_1 = arith.constant 0 : i32
    %c0_i32_2 = arith.constant 0 : i32
    return %arg0, %c0_i32, %c0_i32_0, %c0_i32_1 : i32, i32, i32, i32
  }
  func.func @transform_1(%arg0: i32, %arg1: i32, %arg2: i32) -> (i32, i32, i32) {
    %c0_i32 = arith.constant 0 : i32
    %c0_i32_0 = arith.constant 0 : i32
    %c0_i32_1 = arith.constant 0 : i32
    return %c0_i32, %c0_i32_0, %arg2 : i32, i32, i32
  }
  func.func @transform_2(%arg0: i32, %arg1: i32, %arg2: i32) -> (i32, i32) {
    %c0_i32 = arith.constant 0 : i32
    %c0_i32_0 = arith.constant 0 : i32
    return %c0_i32, %arg2 : i32, i32
  }
  func.func @transform_3(%arg0: i32, %arg1: i32, %arg2: i32) -> (i32, i32) {
    %c0_i32 = arith.constant 0 : i32
    %c0_i32_0 = arith.constant 0 : i32
    return %c0_i32, %arg2 : i32, i32
  }
  func.func @transform_4(%arg0: i32, %arg1: i32, %arg2: i32) -> (i32, i32, i32, i32) {
    %c0_i32 = arith.constant 0 : i32
    %c0_i32_0 = arith.constant 0 : i32
    return %arg0, %arg1, %c0_i32, %arg2 : i32, i32, i32, i32
  }
}

module attributes {stable_mosaic.version = 11 : i64} {
  func.func @_matmul_bn_kernel(%arg0: i32, %arg1: i32, %arg2: i32, %arg3: memref<128x128xbf16, #tpu.memory_space<vmem>>, %arg4: memref<128x128xbf16, #tpu.memory_space<vmem>>, %arg5: memref<1x128xf32, #tpu.memory_space<vmem>>, %arg6: memref<1x128xf32, #tpu.memory_space<vmem>>, %arg7: memref<128x128xf32, #tpu.memory_space<vmem>>, %arg8: memref<128x128xf32, #tpu.memory_space<vmem>>, %arg9: memref<128x128xf32, #tpu.memory_space<vmem>>) attributes {dimension_semantics = [#tpu.dimension_semantics<parallel>, #tpu.dimension_semantics<parallel>, #tpu.dimension_semantics<arbitrary>], iteration_bounds = array<i64: 1, 1, 1>, scalar_prefetch = 0 : i64, scratch_operands = 1 : i64, tpu.core_type = #tpu.core_type<tc>, window_params = [{transform_indices = @transform_0, window_bounds = array<i64: 128, 128>}, {transform_indices = @transform_1, window_bounds = array<i64: 128, 128>}, {transform_indices = @transform_2, window_bounds = array<i64: 1, 128>}, {transform_indices = @transform_3, window_bounds = array<i64: 1, 128>}, {transform_indices = @transform_4, window_bounds = array<i64: 128, 128>}, {transform_indices = @transform_5, window_bounds = array<i64: 128, 128>}]} {
    %c0_i32 = arith.constant 0 : i32
    %0 = arith.cmpi eq, %arg2, %c0_i32 : i32
    %1 = arith.extui %0 : i1 to i32
    %c0_i32_0 = arith.constant 0 : i32
    %2 = arith.cmpi ne, %1, %c0_i32_0 : i32
    scf.if %2 {
      %cst_10 = arith.constant 0.000000e+00 : f32
      %12 = vector.broadcast %cst_10 : f32 to vector<128x128xf32>
      %c0_11 = arith.constant 0 : index
      %c0_12 = arith.constant 0 : index
      %13 = vector.load %arg9[%c0_11, %c0_12] : memref<128x128xf32, #tpu.memory_space<vmem>>, vector<128x128xf32>
      tpu.vector_store %arg9[%c0_11, %c0_12], %12 {strides = array<i32>} : memref<128x128xf32, #tpu.memory_space<vmem>>, vector<128x128xf32>,
    } else {
    }
    %c0 = arith.constant 0 : index
    %c0_1 = arith.constant 0 : index
    %3 = vector.load %arg9[%c0, %c0_1] : memref<128x128xf32, #tpu.memory_space<vmem>>, vector<128x128xf32>
    %c0_2 = arith.constant 0 : index
    %c0_3 = arith.constant 0 : index
    %4 = vector.load %arg3[%c0_2, %c0_3] : memref<128x128xbf16, #tpu.memory_space<vmem>>, vector<128x128xbf16>
    %c0_4 = arith.constant 0 : index
    %c0_5 = arith.constant 0 : index
    %5 = vector.load %arg4[%c0_4, %c0_5] : memref<128x128xbf16, #tpu.memory_space<vmem>>, vector<128x128xbf16>
    %cst = arith.constant dense<0.000000e+00> : vector<128x128xf32>
    %6 = tpu.matmul %4, %5, %cst {dimension_numbers = #tpu.dot_dimension_numbers<[1], [0], [0], [1], [0, 0, 1, 1], [], []>} : vector<128x128xbf16>, vector<128x128xbf16>, vector<128x128xf32> -> vector<128x128xf32>
    %7 = arith.addf %3, %6 : vector<128x128xf32>
    %c0_6 = arith.constant 0 : index
    %c0_7 = arith.constant 0 : index
    %8 = vector.load %arg9[%c0_6, %c0_7] : memref<128x128xf32, #tpu.memory_space<vmem>>, vector<128x128xf32>
    tpu.vector_store %arg9[%c0_6, %c0_7], %7 {strides = array<i32>} : memref<128x128xf32, #tpu.memory_space<vmem>>, vector<128x128xf32>,
    %c0_i32_8 = arith.constant 0 : i32
    %9 = arith.cmpi eq, %arg2, %c0_i32_8 : i32
    %10 = arith.extui %9 : i1 to i32
    %c0_i32_9 = arith.constant 0 : i32
    %11 = arith.cmpi ne, %10, %c0_i32_9 : i32
    scf.if %11 {
      %c0_10 = arith.constant 0 : index
      %c0_11 = arith.constant 0 : index
      %12 = vector.load %arg9[%c0_10, %c0_11] : memref<128x128xf32, #tpu.memory_space<vmem>>, vector<128x128xf32>
      %c0_12 = arith.constant 0 : index
      %c0_13 = arith.constant 0 : index
      %13 = vector.load %arg5[%c0_12, %c0_13] : memref<1x128xf32, #tpu.memory_space<vmem>>, vector<1x128xf32>
      %14 = vector.broadcast %13 : vector<1x128xf32> to vector<128x128xf32>
      %15 = arith.mulf %12, %14 : vector<128x128xf32>
      %c0_14 = arith.constant 0 : index
      %c0_15 = arith.constant 0 : index
      %16 = vector.load %arg6[%c0_14, %c0_15] : memref<1x128xf32, #tpu.memory_space<vmem>>, vector<1x128xf32>
      %17 = vector.broadcast %16 : vector<1x128xf32> to vector<128x128xf32>
      %18 = arith.addf %15, %17 : vector<128x128xf32>
      %c0_16 = arith.constant 0 : index
      %c0_17 = arith.constant 0 : index
      %19 = vector.load %arg7[%c0_16, %c0_17] : memref<128x128xf32, #tpu.memory_space<vmem>>, vector<128x128xf32>
      %20 = arith.addf %18, %19 : vector<128x128xf32>
      %cst_18 = arith.constant 0.000000e+00 : f32
      %21 = vector.broadcast %cst_18 : f32 to vector<128x128xf32>
      %22 = arith.maximumf %20, %21 : vector<128x128xf32>
      %c0_19 = arith.constant 0 : index
      %c0_20 = arith.constant 0 : index
      %23 = vector.load %arg8[%c0_19, %c0_20] : memref<128x128xf32, #tpu.memory_space<vmem>>, vector<128x128xf32>
      tpu.vector_store %arg8[%c0_19, %c0_20], %22 {strides = array<i32>} : memref<128x128xf32, #tpu.memory_space<vmem>>, vector<128x128xf32>,
    } else {
    }
    return
  }
  func.func @transform_0(%arg0: i32, %arg1: i32, %arg2: i32) -> (i32, i32) {
    %c0_i32 = arith.constant 0 : i32
    return %arg0, %arg2 : i32, i32
  }
  func.func @transform_1(%arg0: i32, %arg1: i32, %arg2: i32) -> (i32, i32) {
    %c0_i32 = arith.constant 0 : i32
    return %arg2, %arg1 : i32, i32
  }
  func.func @transform_2(%arg0: i32, %arg1: i32, %arg2: i32) -> (i32, i32) {
    %c0_i32 = arith.constant 0 : i32
    %c0_i32_0 = arith.constant 0 : i32
    return %c0_i32, %arg1 : i32, i32
  }
  func.func @transform_3(%arg0: i32, %arg1: i32, %arg2: i32) -> (i32, i32) {
    %c0_i32 = arith.constant 0 : i32
    %c0_i32_0 = arith.constant 0 : i32
    return %c0_i32, %arg1 : i32, i32
  }
  func.func @transform_4(%arg0: i32, %arg1: i32, %arg2: i32) -> (i32, i32) {
    %c0_i32 = arith.constant 0 : i32
    return %arg0, %arg1 : i32, i32
  }
  func.func @transform_5(%arg0: i32, %arg1: i32, %arg2: i32) -> (i32, i32) {
    %c0_i32 = arith.constant 0 : i32
    return %arg0, %arg1 : i32, i32
  }
}

</mosaic_0001>

<bundles_post_ra>
// kernel: bottleneck_forward.7
= control target key start
LH: loop header
LB: loop body
LE: loop exit
PB: predicated region body
PF: predicated region fallthrough
CT: control target
= control target key end

     0   :  { %s768_s0 = inlined_call_operand.vmem [shape: bf16[128,128], index: 0, kind: input, shape index: {}]   ;;  %s769_s1 = inlined_call_operand.vmem [shape: bf16[128,128], index: 1, kind: input, shape index: {}]   ;;  %s770_s2 = inlined_call_operand.vmem [shape: f32[1,128], index: 2, kind: input, shape index: {}]   ;;  %s771_s3 = inlined_call_operand.vmem [shape: f32[1,128], index: 3, kind: input, shape index: {}]   ;;  %s772_s4 = inlined_call_operand.vmem [shape: f32[128,128], index: 4, kind: input, shape index: {}]   ;;  %s773_s5 = inlined_call_operand.hbm [shape: f32[128,128], index: 5, kind: output, shape index: {}]  }
   0x1   :  { %v545_v0 = vld [vmem:[%s769_s1] sm:$0xff]   ;;  %v546_v1 = vld [vmem:[%s769_s1 + $0x8] sm:$0xff]   ;;  %v547_v2 = vld [vmem:[%s769_s1 + $0x10] sm:$0xff]  }
   0x2   :  { %494 = vmatprep.subr.bf16.mxu0 %v545_v0  ;;  %526 = vmatprep.subr.bf16.mxu1 %v545_v0  ;;  %v548_v3 = vld [vmem:[%s769_s1 + $0x18] sm:$0xff]   ;;  %v553_v4 = vld [vmem:[%s768_s0] sm:$0xff]   ;;  %v550_v7 = vld [vmem:[%s769_s1 + $0x28] sm:$0xff]  }
   0x3   :  { %495 = vmatpush3.bf16.msra.mxu0 %v545_v0  ;;  %534 = vmatpush3.bf16.msra.mxu1 %v545_v0  ;;  %v554_v5 = vld [vmem:[%s768_s0 + $0x20] sm:$0xff]  }
   0x4   :  { %496 = vmatprep.subr.bf16.mxu0 %v546_v1  ;;  %527 = vmatprep.subr.bf16.mxu1 %v546_v1  ;;  %v549_v6 = vld [vmem:[%s769_s1 + $0x20] sm:$0xff]  }
   0x5   :  { %510 = vmatprep.mubr.bf16.mxu0 %v553_v4  ;;  %518 = vmatprep.mubr.bf16.mxu1 %v554_v5 }
   0x7   :  { %497 = vmatpush3.bf16.msra.mxu0 %v546_v1  ;;  %535 = vmatpush3.bf16.msra.mxu1 %v546_v1 }
   0x8   :  { %498 = vmatprep.subr.bf16.mxu0 %v547_v2  ;;  %528 = vmatprep.subr.bf16.mxu1 %v547_v2 }
   0xb   :  { %499 = vmatpush3.bf16.msra.mxu0 %v547_v2  ;;  %536 = vmatpush3.bf16.msra.mxu1 %v547_v2 }
   0xc   :  { %500 = vmatprep.subr.bf16.mxu0 %v548_v3  ;;  %529 = vmatprep.subr.bf16.mxu1 %v548_v3 }
   0xf   :  { %501 = vmatpush3.bf16.msra.mxu0 %v548_v3  ;;  %537 = vmatpush3.bf16.msra.mxu1 %v548_v3 }
  0x10   :  { %502 = vmatprep.subr.bf16.mxu0 %v549_v6  ;;  %530 = vmatprep.subr.bf16.mxu1 %v549_v6 }
  0x11   :  { %10 = vsyncpa [#allocation4], 0  ;;  %v551_v8 = vld [vmem:[%s769_s1 + $0x30] sm:$0xff]   ;;  %v552_v9 = vld [vmem:[%s769_s1 + $0x38] sm:$0xff]  }
  0x12   :  { %v555_v10 = vld [vmem:[%s768_s0 + $0x8] sm:$0xff]   ;;  %v557_v12 = vld [vmem:[%s768_s0 + $0x10] sm:$0xff]   ;;  %v559_v14 = vld [vmem:[%s768_s0 + $0x18] sm:$0xff]  }
  0x13   :  { %503 = vmatpush3.bf16.msra.mxu0 %v549_v6  ;;  %538 = vmatpush3.bf16.msra.mxu1 %v549_v6  ;;  %v556_v11 = vld [vmem:[%s768_s0 + $0x28] sm:$0xff]   ;;  %v558_v13 = vld [vmem:[%s768_s0 + $0x30] sm:$0xff]   ;;  %v560_v15 = vld [vmem:[%s768_s0 + $0x38] sm:$0xff]  }
  0x14   :  { %504 = vmatprep.subr.bf16.mxu0 %v550_v7  ;;  %531 = vmatprep.subr.bf16.mxu1 %v550_v7  ;;  %v669_v16 = vld [vmem:[%s770_s2] ss:$0 sm:$0xff]  ;;  %v382_v24 = vld [vmem:[%s772_s4 + $0x10] sm:$0xff]  ;;  %v383_v40 = vld [vmem:[%s772_s4 + $0x18] sm:$0xff]  ;;  %s585_s2 = smov [#allocation3]  }
  0x15   :  { %v674_v18 = vld [vmem:[%s771_s3] ss:$0 sm:$0xff]  ;;  %v390_v25 = vld [vmem:[%s772_s4 + $0x50] sm:$0xff]  ;;  %v391_v41 = vld [vmem:[%s772_s4 + $0x58] sm:$0xff]  ;;  %s449_s3 = sshll.u32 %s585_s2, 4  ;;  %s450_s3 = int_to_ptr.vmem [resolvable:$true] %s449_s3 }
  0x16   :  { %v380_v32 = vld [vmem:[%s772_s4] sm:$0xff]  ;;  %v381_v48 = vld [vmem:[%s772_s4 + $0x8] sm:$0xff]  ;;  %p566_p1 = scmp.lt.s32.totalorder %s450_s3, %s450_s3 }
  0x17   :  { %505 = vmatpush3.bf16.msra.mxu0 %v550_v7  ;;  %539 = vmatpush3.bf16.msra.mxu1 %v550_v7  ;;  %v388_v33 = vld [vmem:[%s772_s4 + $0x40] sm:$0xff]  ;;  %v389_v49 = vld [vmem:[%s772_s4 + $0x48] sm:$0xff] }
  0x18   :  { %506 = vmatprep.subr.bf16.mxu0 %v551_v8  ;;  %532 = vmatprep.subr.bf16.mxu1 %v551_v8 }
  0x1b   :  { %507 = vmatpush3.bf16.msra.mxu0 %v551_v8  ;;  %540 = vmatpush3.bf16.msra.mxu1 %v551_v8  ;;  %v386_v8 = vld [vmem:[%s772_s4 + $0x30] sm:$0xff] }
  0x1c   :  { %508 = vmatprep.subr.bf16.mxu0 %v552_v9  ;;  %533 = vmatprep.subr.bf16.mxu1 %v552_v9 }
  0x1f   :  { %509 = vmatpush3.bf16.msra.mxu0 %v552_v9  ;;  %541 = vmatpush3.bf16.msra.mxu1 %v552_v9  ;;  %v394_v9 = vld [vmem:[%s772_s4 + $0x70] sm:$0xff] }
  0x22   :  { %511 = vmatmul.mubr.bf16.vlgmr.msra.gmra.mrb[0].mxu0 %v555_v10  ;;  %519 = vmatmul.mubr.bf16.vlgmr.msra.gmra.mrb[0].mxu1 %v556_v11 }
  0x23   :  { %514 = vmatprep.mubr.bf16.mxu0 %v557_v12  ;;  %522 = vmatprep.mubr.bf16.mxu1 %v558_v13 }
  0x2a   :  { %515 = vmatmul.mubr.bf16.gmra.mrb[4].mxu0 %v559_v14  ;;  %523 = vmatmul.mubr.bf16.gmra.mrb[4].mxu1 %v560_v15 }
  0xf5   :  { %v512_v17 = vpop.f32.mrb[0].mxu0  ;;  %v520_v19 = vpop.f32.mrb[0].mxu1 }
  0xf6   :  { %v343_v20 = vmul.f32 %v512_v17, %v669_v16  ;;  %v351_v21 = vmul.f32 %v520_v19, %v669_v16  ;;  %v220_v22 = vpop.f32.mrb[1].mxu0  ;;  %v252_v23 = vpop.f32.mrb[1].mxu1  ;;  %v384_v17 = vld [vmem:[%s772_s4 + $0x20] sm:$0xff] }
  0xf7   :  { %v341_v26 = vmul.f32 %v669_v16, %v220_v22  ;;  %v349_v27 = vmul.f32 %v669_v16, %v252_v23  ;;  %v513_v28 = vpop.f32.mrb[2].mxu0  ;;  %v521_v29 = vpop.f32.mrb[2].mxu1  ;;  %v392_v19 = vld [vmem:[%s772_s4 + $0x60] sm:$0xff] }
  0xf8   :  { %v366_v30 = vadd.f32 %v674_v18, %v343_v20  ;;  %v374_v31 = vadd.f32 %v674_v18, %v351_v21  ;;  %v344_v34 = vmul.f32 %v513_v28, %v669_v16  ;;  %v352_v35 = vmul.f32 %v521_v29, %v669_v16  ;;  %v223_v36 = vpop.f32.mrb[3].mxu0  ;;  %v255_v37 = vpop.f32.mrb[3].mxu1 }
  0xf9   :  { %v364_v38 = vadd.f32 %v674_v18, %v341_v26  ;;  %v372_v39 = vadd.f32 %v674_v18, %v349_v27  ;;  %v342_v42 = vmul.f32 %v669_v16, %v223_v36  ;;  %v350_v43 = vmul.f32 %v669_v16, %v255_v37  ;;  %v387_v26 = vld [vmem:[%s772_s4 + $0x38] sm:$0xff] }
  0xfa   :  { %v398_v44 = vadd.f32 %v382_v24, %v366_v30  ;;  %v406_v45 = vadd.f32 %v390_v25, %v374_v31  ;;  %v367_v46 = vadd.f32 %v674_v18, %v344_v34  ;;  %v375_v47 = vadd.f32 %v674_v18, %v352_v35  ;;  %v395_v27 = vld [vmem:[%s772_s4 + $0x78] sm:$0xff]  ;;  %v385_v34 = vld [vmem:[%s772_s4 + $0x28] sm:$0xff] }
  0xfb   :  { %v396_v50 = vadd.f32 %v380_v32, %v364_v38  ;;  %v404_v51 = vadd.f32 %v388_v33, %v372_v39  ;;  %v365_v52 = vadd.f32 %v674_v18, %v342_v42  ;;  %v373_v53 = vadd.f32 %v674_v18, %v350_v43  ;;  %v393_v35 = vld [vmem:[%s772_s4 + $0x68] sm:$0xff]  ;;  %s561_s4 = scalar_lea.vmem %s450_s3, 2048 }
  0xfc   :  { %v414_v54 = vmax.f32 %v398_v44, 0.0  ;;  %v422_v55 = vmax.f32 %v406_v45, 0.0  ;;  %v399_v56 = vadd.f32 %v383_v40, %v367_v46  ;;  %v407_v57 = vadd.f32 %v391_v41, %v375_v47  ;;  %p562_p0 = scmp.ne.s32.totalorder %s450_s3, %s561_s4  ;;  %p567_p2 = scmp.lt.s32.totalorder %s561_s4, %s561_s4 }
  0xfd   :  { %v412_v58 = vmax.f32 %v396_v50, 0.0  ;;  %v420_v59 = vmax.f32 %v404_v51, 0.0  ;;  %v397_v60 = vadd.f32 %v381_v48, %v365_v52  ;;  %v405_v61 = vadd.f32 %v389_v49, %v373_v53  ;;  %v516_v62 = vpop.f32.mrb[4].mxu0  ;;  %v524_v63 = vpop.f32.mrb[4].mxu1 }
  0xfe   :  { %430 = vst [vmem:[#allocation3 + $0x10] sm:$0xff] %v414_v54  ;;  %438 = vst [vmem:[#allocation3 + $0x50] sm:$0xff] %v422_v55  ;;  %v415_v0 = vmax.f32 %v399_v56, 0.0  ;;  %v423_v1 = vmax.f32 %v407_v57, 0.0  ;;  %v347_v2 = vmul.f32 %v516_v62, %v669_v16  ;;  %v355_v3 = vmul.f32 %v524_v63, %v669_v16  ;;  %v236_v4 = vpop.f32.mrb[5].mxu0  ;;  %v268_v5 = vpop.f32.mrb[5].mxu1  ;;  %p568_p3 = por %p567_p2, %p566_p1 }
  0xff   :  { %428 = vst [vmem:[#allocation3] sm:$0xff] %v412_v58  ;;  %436 = vst [vmem:[#allocation3 + $0x40] sm:$0xff] %v420_v59  ;;  %v413_v6 = vmax.f32 %v397_v60, 0.0  ;;  %v421_v7 = vmax.f32 %v405_v61, 0.0  ;;  %v345_v10 = vmul.f32 %v669_v16, %v236_v4  ;;  %v353_v11 = vmul.f32 %v669_v16, %v268_v5  ;;  %v517_v12 = vpop.f32.mrb[6].mxu0  ;;  %v525_v13 = vpop.f32.mrb[6].mxu1 }
 0x100   :  { %431 = vst [vmem:[#allocation3 + $0x18] sm:$0xff] %v415_v0  ;;  %439 = vst [vmem:[#allocation3 + $0x58] sm:$0xff] %v423_v1  ;;  %v370_v14 = vadd.f32 %v674_v18, %v347_v2  ;;  %v378_v15 = vadd.f32 %v674_v18, %v355_v3  ;;  %v348_v20 = vmul.f32 %v517_v12, %v669_v16  ;;  %v239_v22 = vpop.f32.mrb[7].mxu0  ;;  %v271_v23 = vpop.f32.mrb[7].mxu1  ;;  %p569_p4 = pnand %p568_p3, %p562_p0 }
 0x101   :  { %v356_v21 = vmul.f32 %v525_v13, %v669_v16  ;;  %429 = vst [vmem:[#allocation3 + $0x8] sm:$0xff] %v413_v6  ;;  %437 = vst [vmem:[#allocation3 + $0x48] sm:$0xff] %v421_v7  ;;  %v368_v24 = vadd.f32 %v674_v18, %v345_v10  ;;  %v376_v25 = vadd.f32 %v674_v18, %v353_v11 }
 0x102   :  { %v346_v28 = vmul.f32 %v669_v16, %v239_v22  ;;  %v354_v29 = vmul.f32 %v669_v16, %v271_v23  ;;  %v402_v30 = vadd.f32 %v386_v8, %v370_v14  ;;  %v410_v31 = vadd.f32 %v394_v9, %v378_v15 }
 0x103   :  { %v371_v32 = vadd.f32 %v674_v18, %v348_v20  ;;  %v379_v33 = vadd.f32 %v674_v18, %v356_v21  ;;  %v400_v36 = vadd.f32 %v384_v17, %v368_v24  ;;  %v408_v37 = vadd.f32 %v392_v19, %v376_v25 }
 0x104   :  { %v369_v38 = vadd.f32 %v674_v18, %v346_v28  ;;  %v377_v16 = vadd.f32 %v674_v18, %v354_v29  ;;  %v418_v39 = vmax.f32 %v402_v30, 0.0  ;;  %v426_v40 = vmax.f32 %v410_v31, 0.0 }
 0x105   :  { %v403_v41 = vadd.f32 %v387_v26, %v371_v32  ;;  %v411_v42 = vadd.f32 %v395_v27, %v379_v33  ;;  %v416_v43 = vmax.f32 %v400_v36, 0.0  ;;  %v424_v44 = vmax.f32 %v408_v37, 0.0 }
 0x106   :  { %v401_v45 = vadd.f32 %v385_v34, %v369_v38  ;;  %v409_v46 = vadd.f32 %v393_v35, %v377_v16  ;;  %434 = vst [vmem:[#allocation3 + $0x30] sm:$0xff] %v418_v39  ;;  %442 = vst [vmem:[#allocation3 + $0x70] sm:$0xff] %v426_v40 }
 0x107   :  { %v419_v47 = vmax.f32 %v403_v41, 0.0  ;;  %v427_v48 = vmax.f32 %v411_v42, 0.0  ;;  %432 = vst [vmem:[#allocation3 + $0x20] sm:$0xff] %v416_v43  ;;  %440 = vst [vmem:[#allocation3 + $0x60] sm:$0xff] %v424_v44 }
 0x108   :  { %v417_v49 = vmax.f32 %v401_v45, 0.0  ;;  %v425_v50 = vmax.f32 %v409_v46, 0.0 }
 0x109   :  { %435 = vst [vmem:[#allocation3 + $0x38] sm:$0xff] %v419_v47  ;;  %443 = vst [vmem:[#allocation3 + $0x78] sm:$0xff] %v427_v48 }
 0x10a   :  { %433 = vst [vmem:[#allocation3 + $0x28] sm:$0xff] %v417_v49  ;;  %441 = vst [vmem:[#allocation3 + $0x68] sm:$0xff] %v425_v50 }
 0x10b   :  { %572 = shalt.err (!%p569_p4)
}
 0x10c   :  { %s573_s7 = scalar_lea.hbm %s773_s5, 2048 }
 0x10d   :  { %p574_p5 = scmp.ne.s32.totalorder %s773_s5, %s573_s7  ;;  %p577_p6 = scmp.lt.u32.totalorder %s573_s7, %s773_s5 }
 0x10f   :  { %p579_p7 = pnand %p577_p6, %p574_p5 }
 0x111   :  { %582 = shalt.err (!%p579_p7)
}
 0x112   :  { %s586_s12 = smov 128   ;;  %s587_s13 = smov 8  }
 0x113   :  { %455 = dma.vmem_to_hbm [thread:$0]  %s450_s3, 2048, %s773_s5, [#allocation4], %s586_s12, %s586_s12, %s587_s13  }
 0x114   :  { %583 = dma.done.wait [#allocation4], 2048  }
 0x115   :  { %584 = vsyncadd [#allocation4], 4294965248 }
 0x116   :  { %459 = vsyncpa [#allocation4], 1 }

// kernel: bottleneck_forward.4
= control target key start
LH: loop header
LB: loop body
LE: loop exit
PB: predicated region body
PF: predicated region fallthrough
CT: control target
= control target key end

     0   :  { %s774_s1 = inlined_call_operand.vmem [shape: bf16[128,128], index: 1, kind: input, shape index: {}]   ;;  %s775_s0 = inlined_call_operand.vmem [shape: bf16[128,128], index: 0, kind: input, shape index: {}]   ;;  %s776_s2 = inlined_call_operand.vmem [shape: f32[1,128], index: 2, kind: input, shape index: {}]   ;;  %s777_s3 = inlined_call_operand.vmem [shape: f32[1,128], index: 3, kind: input, shape index: {}]   ;;  %s778_s4 = inlined_call_operand.vmem [shape: bf16[128,128], index: 4, kind: output, shape index: {}]  }
   0x1   :  { %v637_v0 = vld [vmem:[%s774_s1] sm:$0xff]   ;;  %v638_v1 = vld [vmem:[%s774_s1 + $0x8] sm:$0xff]   ;;  %v639_v2 = vld [vmem:[%s774_s1 + $0x10] sm:$0xff]  }
   0x2   :  { %589 = vmatprep.subr.bf16.mxu0 %v637_v0  ;;  %621 = vmatprep.subr.bf16.mxu1 %v637_v0  ;;  %v640_v3 = vld [vmem:[%s774_s1 + $0x18] sm:$0xff]   ;;  %v645_v4 = vld [vmem:[%s775_s0] sm:$0xff]   ;;  %v642_v7 = vld [vmem:[%s774_s1 + $0x28] sm:$0xff]  }
   0x3   :  { %590 = vmatpush3.bf16.msra.mxu0 %v637_v0  ;;  %629 = vmatpush3.bf16.msra.mxu1 %v637_v0  ;;  %v646_v5 = vld [vmem:[%s775_s0 + $0x20] sm:$0xff]   ;;  %v643_v8 = vld [vmem:[%s774_s1 + $0x30] sm:$0xff]   ;;  %v644_v9 = vld [vmem:[%s774_s1 + $0x38] sm:$0xff]  }
   0x4   :  { %591 = vmatprep.subr.bf16.mxu0 %v638_v1  ;;  %622 = vmatprep.subr.bf16.mxu1 %v638_v1  ;;  %v641_v6 = vld [vmem:[%s774_s1 + $0x20] sm:$0xff]   ;;  %v647_v10 = vld [vmem:[%s775_s0 + $0x8] sm:$0xff]   ;;  %v649_v12 = vld [vmem:[%s775_s0 + $0x10] sm:$0xff]  }
   0x5   :  { %605 = vmatprep.mubr.bf16.mxu0 %v645_v4  ;;  %613 = vmatprep.mubr.bf16.mxu1 %v646_v5  ;;  %v648_v11 = vld [vmem:[%s775_s0 + $0x28] sm:$0xff]   ;;  %v650_v13 = vld [vmem:[%s775_s0 + $0x30] sm:$0xff]   ;;  %v651_v14 = vld [vmem:[%s775_s0 + $0x18] sm:$0xff]  }
   0x6   :  { %v652_v15 = vld [vmem:[%s775_s0 + $0x38] sm:$0xff]   ;;  %v492_v16 = vld [vmem:[%s776_s2] ss:$0 sm:$0xff] }
   0x7   :  { %592 = vmatpush3.bf16.msra.mxu0 %v638_v1  ;;  %630 = vmatpush3.bf16.msra.mxu1 %v638_v1  ;;  %v732_v18 = vld [vmem:[%s777_s3] ss:$0 sm:$0xff] }
   0x8   :  { %593 = vmatprep.subr.bf16.mxu0 %v639_v2  ;;  %623 = vmatprep.subr.bf16.mxu1 %v639_v2 }
   0xb   :  { %594 = vmatpush3.bf16.msra.mxu0 %v639_v2  ;;  %631 = vmatpush3.bf16.msra.mxu1 %v639_v2 }
   0xc   :  { %595 = vmatprep.subr.bf16.mxu0 %v640_v3  ;;  %624 = vmatprep.subr.bf16.mxu1 %v640_v3 }
   0xf   :  { %596 = vmatpush3.bf16.msra.mxu0 %v640_v3  ;;  %632 = vmatpush3.bf16.msra.mxu1 %v640_v3 }
  0x10   :  { %597 = vmatprep.subr.bf16.mxu0 %v641_v6  ;;  %625 = vmatprep.subr.bf16.mxu1 %v641_v6 }
  0x13   :  { %598 = vmatpush3.bf16.msra.mxu0 %v641_v6  ;;  %633 = vmatpush3.bf16.msra.mxu1 %v641_v6 }
  0x14   :  { %599 = vmatprep.subr.bf16.mxu0 %v642_v7  ;;  %626 = vmatprep.subr.bf16.mxu1 %v642_v7 }
  0x17   :  { %600 = vmatpush3.bf16.msra.mxu0 %v642_v7  ;;  %634 = vmatpush3.bf16.msra.mxu1 %v642_v7 }
  0x18   :  { %601 = vmatprep.subr.bf16.mxu0 %v643_v8  ;;  %627 = vmatprep.subr.bf16.mxu1 %v643_v8 }
  0x1b   :  { %602 = vmatpush3.bf16.msra.mxu0 %v643_v8  ;;  %635 = vmatpush3.bf16.msra.mxu1 %v643_v8 }
  0x1c   :  { %603 = vmatprep.subr.bf16.mxu0 %v644_v9  ;;  %628 = vmatprep.subr.bf16.mxu1 %v644_v9 }
  0x1f   :  { %604 = vmatpush3.bf16.msra.mxu0 %v644_v9  ;;  %636 = vmatpush3.bf16.msra.mxu1 %v644_v9 }
  0x22   :  { %606 = vmatmul.mubr.bf16.vlgmr.msra.gmra.mrb[0].mxu0 %v647_v10  ;;  %614 = vmatmul.mubr.bf16.vlgmr.msra.gmra.mrb[0].mxu1 %v648_v11 }
  0x23   :  { %609 = vmatprep.mubr.bf16.mxu0 %v649_v12  ;;  %617 = vmatprep.mubr.bf16.mxu1 %v650_v13 }
  0x2a   :  { %610 = vmatmul.mubr.bf16.gmra.mrb[4].mxu0 %v651_v14  ;;  %618 = vmatmul.mubr.bf16.gmra.mrb[4].mxu1 %v652_v15 }
  0xf5   :  { %v607_v17 = vpop.f32.mrb[0].mxu0  ;;  %v615_v19 = vpop.f32.mrb[0].mxu1 }
  0xf6   :  { %v339_v20 = vmul.f32 %v607_v17, %v492_v16  ;;  %v347_v21 = vmul.f32 %v615_v19, %v492_v16  ;;  %v216_v22 = vpop.f32.mrb[1].mxu0  ;;  %v248_v23 = vpop.f32.mrb[1].mxu1 }
  0xf7   :  { %v337_v24 = vmul.f32 %v492_v16, %v216_v22  ;;  %v345_v25 = vmul.f32 %v492_v16, %v248_v23  ;;  %v608_v26 = vpop.f32.mrb[2].mxu0  ;;  %v616_v27 = vpop.f32.mrb[2].mxu1 }
  0xf8   :  { %v362_v28 = vadd.f32 %v732_v18, %v339_v20  ;;  %v370_v29 = vadd.f32 %v732_v18, %v347_v21  ;;  %v340_v30 = vmul.f32 %v608_v26, %v492_v16  ;;  %v348_v31 = vmul.f32 %v616_v27, %v492_v16  ;;  %v219_v32 = vpop.f32.mrb[3].mxu0  ;;  %v251_v33 = vpop.f32.mrb[3].mxu1 }
  0xf9   :  { %v360_v34 = vadd.f32 %v732_v18, %v337_v24  ;;  %v368_v35 = vadd.f32 %v732_v18, %v345_v25  ;;  %v338_v36 = vmul.f32 %v492_v16, %v219_v32  ;;  %v346_v37 = vmul.f32 %v492_v16, %v251_v33 }
  0xfa   :  { %v363_v38 = vadd.f32 %v732_v18, %v340_v30  ;;  %v371_v39 = vadd.f32 %v732_v18, %v348_v31  ;;  %v378_v42 = vmax.f32 %v362_v28, 0.0  ;;  %v386_v43 = vmax.f32 %v370_v29, 0.0 }
  0xfb   :  { %v361_v40 = vadd.f32 %v732_v18, %v338_v36  ;;  %v369_v41 = vadd.f32 %v732_v18, %v346_v37  ;;  %v376_v46 = vmax.f32 %v360_v34, 0.0  ;;  %v384_v47 = vmax.f32 %v368_v35, 0.0 }
  0xfc   :  { %v379_v44 = vmax.f32 %v363_v38, 0.0  ;;  %v387_v45 = vmax.f32 %v371_v39, 0.0 }
  0xfd   :  { %v377_v48 = vmax.f32 %v361_v40, 0.0  ;;  %v385_v49 = vmax.f32 %v369_v41, 0.0  ;;  %v611_v50 = vpop.f32.mrb[4].mxu0  ;;  %v619_v51 = vpop.f32.mrb[4].mxu1 }
  0xfe   :  { %v534_v52 = vpack.c.bf16 %v379_v44, %v378_v42  ;;  %v554_v53 = vpack.c.bf16 %v387_v45, %v386_v43  ;;  %v343_v54 = vmul.f32 %v611_v50, %v492_v16  ;;  %v351_v55 = vmul.f32 %v619_v51, %v492_v16  ;;  %v232_v56 = vpop.f32.mrb[5].mxu0  ;;  %v264_v57 = vpop.f32.mrb[5].mxu1 }
  0xff   :  { %v529_v58 = vpack.c.bf16 %v377_v48, %v376_v46  ;;  %v549_v59 = vpack.c.bf16 %v385_v49, %v384_v47  ;;  %v341_v60 = vmul.f32 %v492_v16, %v232_v56  ;;  %v349_v61 = vmul.f32 %v492_v16, %v264_v57  ;;  %v612_v62 = vpop.f32.mrb[6].mxu0  ;;  %v620_v63 = vpop.f32.mrb[6].mxu1 }
 0x100   :  { %566 = vst [vmem:[%s778_s4 + $0x8] sm:$0xff] %v534_v52   ;;  %570 = vst [vmem:[%s778_s4 + $0x28] sm:$0xff] %v554_v53   ;;  %v366_v0 = vadd.f32 %v732_v18, %v343_v54  ;;  %v374_v1 = vadd.f32 %v732_v18, %v351_v55  ;;  %v344_v2 = vmul.f32 %v612_v62, %v492_v16  ;;  %v235_v4 = vpop.f32.mrb[7].mxu0  ;;  %v267_v5 = vpop.f32.mrb[7].mxu1 }
 0x101   :  { %v352_v3 = vmul.f32 %v620_v63, %v492_v16  ;;  %530 = vst [vmem:[%s778_s4] sm:$0xff] %v529_v58   ;;  %569 = vst [vmem:[%s778_s4 + $0x20] sm:$0xff] %v549_v59   ;;  %v364_v6 = vadd.f32 %v732_v18, %v341_v60  ;;  %v372_v7 = vadd.f32 %v732_v18, %v349_v61 }
 0x102   :  { %v342_v8 = vmul.f32 %v492_v16, %v235_v4  ;;  %v350_v9 = vmul.f32 %v492_v16, %v267_v5  ;;  %v367_v10 = vadd.f32 %v732_v18, %v344_v2  ;;  %v382_v14 = vmax.f32 %v366_v0, 0.0 }
 0x103   :  { %v375_v11 = vadd.f32 %v732_v18, %v352_v3  ;;  %v390_v15 = vmax.f32 %v374_v1, 0.0  ;;  %v380_v20 = vmax.f32 %v364_v6, 0.0  ;;  %v388_v21 = vmax.f32 %v372_v7, 0.0 }
 0x104   :  { %v365_v12 = vadd.f32 %v732_v18, %v342_v8  ;;  %v373_v13 = vadd.f32 %v732_v18, %v350_v9  ;;  %v383_v17 = vmax.f32 %v367_v10, 0.0 }
 0x105   :  { %v391_v19 = vmax.f32 %v375_v11, 0.0 }
 0x106   :  { %v381_v22 = vmax.f32 %v365_v12, 0.0  ;;  %v389_v23 = vmax.f32 %v373_v13, 0.0  ;;  %v544_v24 = vpack.c.bf16 %v383_v17, %v382_v14 }
 0x107   :  { %v564_v25 = vpack.c.bf16 %v391_v19, %v390_v15 }
 0x108   :  { %v539_v26 = vpack.c.bf16 %v381_v22, %v380_v20  ;;  %v559_v16 = vpack.c.bf16 %v389_v23, %v388_v21  ;;  %568 = vst [vmem:[%s778_s4 + $0x18] sm:$0xff] %v544_v24  }
 0x109   :  { %572 = vst [vmem:[%s778_s4 + $0x38] sm:$0xff] %v564_v25  }
 0x10a   :  { %567 = vst [vmem:[%s778_s4 + $0x10] sm:$0xff] %v539_v26   ;;  %571 = vst [vmem:[%s778_s4 + $0x30] sm:$0xff] %v559_v16  }

// kernel: bottleneck_forward.6
= control target key start
LH: loop header
LB: loop body
LE: loop exit
PB: predicated region body
PF: predicated region fallthrough
CT: control target
= control target key end

     0   :  { %s621_s1 = inlined_call_operand.vmem [shape: bf16[128,128], index: 1, kind: input, shape index: {}]   ;;  %s622_s0 = inlined_call_operand.vmem [shape: bf16[128,128], index: 0, kind: input, shape index: {}]   ;;  %s623_s2 = inlined_call_operand.vmem [shape: f32[1,128], index: 2, kind: input, shape index: {}]   ;;  %s624_s3 = inlined_call_operand.vmem [shape: f32[1,128], index: 3, kind: input, shape index: {}]   ;;  %s625_s4 = inlined_call_operand.vmem [shape: f32[128,128], index: 4, kind: output, shape index: {}]  }
   0x1   :  { %v478_v0 = vld [vmem:[%s621_s1] sm:$0xff]   ;;  %v479_v1 = vld [vmem:[%s621_s1 + $0x8] sm:$0xff]   ;;  %v480_v2 = vld [vmem:[%s621_s1 + $0x10] sm:$0xff]  }
   0x2   :  { %430 = vmatprep.subr.bf16.mxu0 %v478_v0  ;;  %462 = vmatprep.subr.bf16.mxu1 %v478_v0  ;;  %v481_v3 = vld [vmem:[%s621_s1 + $0x18] sm:$0xff]   ;;  %v486_v4 = vld [vmem:[%s622_s0] sm:$0xff]   ;;  %v483_v7 = vld [vmem:[%s621_s1 + $0x28] sm:$0xff]  }
   0x3   :  { %431 = vmatpush3.bf16.msra.mxu0 %v478_v0  ;;  %470 = vmatpush3.bf16.msra.mxu1 %v478_v0  ;;  %v487_v5 = vld [vmem:[%s622_s0 + $0x20] sm:$0xff]   ;;  %v484_v8 = vld [vmem:[%s621_s1 + $0x30] sm:$0xff]   ;;  %v485_v9 = vld [vmem:[%s621_s1 + $0x38] sm:$0xff]  }
   0x4   :  { %432 = vmatprep.subr.bf16.mxu0 %v479_v1  ;;  %463 = vmatprep.subr.bf16.mxu1 %v479_v1  ;;  %v482_v6 = vld [vmem:[%s621_s1 + $0x20] sm:$0xff]   ;;  %v488_v10 = vld [vmem:[%s622_s0 + $0x8] sm:$0xff]   ;;  %v490_v12 = vld [vmem:[%s622_s0 + $0x10] sm:$0xff]  }
   0x5   :  { %446 = vmatprep.mubr.bf16.mxu0 %v486_v4  ;;  %454 = vmatprep.mubr.bf16.mxu1 %v487_v5  ;;  %v489_v11 = vld [vmem:[%s622_s0 + $0x28] sm:$0xff]   ;;  %v491_v13 = vld [vmem:[%s622_s0 + $0x30] sm:$0xff]   ;;  %v492_v14 = vld [vmem:[%s622_s0 + $0x18] sm:$0xff]  }
   0x6   :  { %v493_v15 = vld [vmem:[%s622_s0 + $0x38] sm:$0xff]   ;;  %v412_v16 = vld [vmem:[%s623_s2] ss:$0 sm:$0xff] }
   0x7   :  { %433 = vmatpush3.bf16.msra.mxu0 %v479_v1  ;;  %471 = vmatpush3.bf16.msra.mxu1 %v479_v1  ;;  %v413_v18 = vld [vmem:[%s624_s3] ss:$0 sm:$0xff] }
   0x8   :  { %434 = vmatprep.subr.bf16.mxu0 %v480_v2  ;;  %464 = vmatprep.subr.bf16.mxu1 %v480_v2 }
   0xb   :  { %435 = vmatpush3.bf16.msra.mxu0 %v480_v2  ;;  %472 = vmatpush3.bf16.msra.mxu1 %v480_v2 }
   0xc   :  { %436 = vmatprep.subr.bf16.mxu0 %v481_v3  ;;  %465 = vmatprep.subr.bf16.mxu1 %v481_v3 }
   0xf   :  { %437 = vmatpush3.bf16.msra.mxu0 %v481_v3  ;;  %473 = vmatpush3.bf16.msra.mxu1 %v481_v3 }
  0x10   :  { %438 = vmatprep.subr.bf16.mxu0 %v482_v6  ;;  %466 = vmatprep.subr.bf16.mxu1 %v482_v6 }
  0x13   :  { %439 = vmatpush3.bf16.msra.mxu0 %v482_v6  ;;  %474 = vmatpush3.bf16.msra.mxu1 %v482_v6 }
  0x14   :  { %440 = vmatprep.subr.bf16.mxu0 %v483_v7  ;;  %467 = vmatprep.subr.bf16.mxu1 %v483_v7 }
  0x17   :  { %441 = vmatpush3.bf16.msra.mxu0 %v483_v7  ;;  %475 = vmatpush3.bf16.msra.mxu1 %v483_v7 }
  0x18   :  { %442 = vmatprep.subr.bf16.mxu0 %v484_v8  ;;  %468 = vmatprep.subr.bf16.mxu1 %v484_v8 }
  0x1b   :  { %443 = vmatpush3.bf16.msra.mxu0 %v484_v8  ;;  %476 = vmatpush3.bf16.msra.mxu1 %v484_v8 }
  0x1c   :  { %444 = vmatprep.subr.bf16.mxu0 %v485_v9  ;;  %469 = vmatprep.subr.bf16.mxu1 %v485_v9 }
  0x1f   :  { %445 = vmatpush3.bf16.msra.mxu0 %v485_v9  ;;  %477 = vmatpush3.bf16.msra.mxu1 %v485_v9 }
  0x22   :  { %447 = vmatmul.mubr.bf16.vlgmr.msra.gmra.mrb[0].mxu0 %v488_v10  ;;  %455 = vmatmul.mubr.bf16.vlgmr.msra.gmra.mrb[0].mxu1 %v489_v11 }
  0x23   :  { %450 = vmatprep.mubr.bf16.mxu0 %v490_v12  ;;  %458 = vmatprep.mubr.bf16.mxu1 %v491_v13 }
  0x2a   :  { %451 = vmatmul.mubr.bf16.gmra.mrb[4].mxu0 %v492_v14  ;;  %459 = vmatmul.mubr.bf16.gmra.mrb[4].mxu1 %v493_v15 }
  0xf5   :  { %v448_v17 = vpop.f32.mrb[0].mxu0  ;;  %v456_v19 = vpop.f32.mrb[0].mxu1 }
  0xf6   :  { %v339_v20 = vmul.f32 %v448_v17, %v412_v16  ;;  %v347_v21 = vmul.f32 %v456_v19, %v412_v16  ;;  %v216_v22 = vpop.f32.mrb[1].mxu0  ;;  %v248_v23 = vpop.f32.mrb[1].mxu1 }
  0xf7   :  { %v337_v24 = vmul.f32 %v412_v16, %v216_v22  ;;  %v345_v25 = vmul.f32 %v412_v16, %v248_v23  ;;  %v449_v26 = vpop.f32.mrb[2].mxu0  ;;  %v457_v27 = vpop.f32.mrb[2].mxu1 }
  0xf8   :  { %v362_v28 = vadd.f32 %v413_v18, %v339_v20  ;;  %v370_v29 = vadd.f32 %v413_v18, %v347_v21  ;;  %v340_v30 = vmul.f32 %v449_v26, %v412_v16  ;;  %v348_v31 = vmul.f32 %v457_v27, %v412_v16  ;;  %v219_v32 = vpop.f32.mrb[3].mxu0  ;;  %v251_v33 = vpop.f32.mrb[3].mxu1 }
  0xf9   :  { %v360_v34 = vadd.f32 %v413_v18, %v337_v24  ;;  %v368_v35 = vadd.f32 %v413_v18, %v345_v25  ;;  %v338_v36 = vmul.f32 %v412_v16, %v219_v32  ;;  %v346_v37 = vmul.f32 %v412_v16, %v251_v33 }
  0xfa   :  { %378 = vst [vmem:[%s625_s4 + $0x10] sm:$0xff] %v362_v28  ;;  %386 = vst [vmem:[%s625_s4 + $0x50] sm:$0xff] %v370_v29  ;;  %v363_v38 = vadd.f32 %v413_v18, %v340_v30  ;;  %v371_v39 = vadd.f32 %v413_v18, %v348_v31 }
  0xfb   :  { %376 = vst [vmem:[%s625_s4] sm:$0xff] %v360_v34  ;;  %384 = vst [vmem:[%s625_s4 + $0x40] sm:$0xff] %v368_v35  ;;  %v361_v40 = vadd.f32 %v413_v18, %v338_v36  ;;  %v369_v41 = vadd.f32 %v413_v18, %v346_v37 }
  0xfc   :  { %379 = vst [vmem:[%s625_s4 + $0x18] sm:$0xff] %v363_v38  ;;  %387 = vst [vmem:[%s625_s4 + $0x58] sm:$0xff] %v371_v39 }
  0xfd   :  { %377 = vst [vmem:[%s625_s4 + $0x8] sm:$0xff] %v361_v40  ;;  %385 = vst [vmem:[%s625_s4 + $0x48] sm:$0xff] %v369_v41  ;;  %v452_v42 = vpop.f32.mrb[4].mxu0  ;;  %v460_v43 = vpop.f32.mrb[4].mxu1 }
  0xfe   :  { %v343_v44 = vmul.f32 %v452_v42, %v412_v16  ;;  %v351_v45 = vmul.f32 %v460_v43, %v412_v16  ;;  %v232_v46 = vpop.f32.mrb[5].mxu0  ;;  %v264_v47 = vpop.f32.mrb[5].mxu1 }
  0xff   :  { %v341_v48 = vmul.f32 %v412_v16, %v232_v46  ;;  %v349_v49 = vmul.f32 %v412_v16, %v264_v47  ;;  %v453_v50 = vpop.f32.mrb[6].mxu0  ;;  %v461_v51 = vpop.f32.mrb[6].mxu1 }
 0x100   :  { %v366_v52 = vadd.f32 %v413_v18, %v343_v44  ;;  %v374_v53 = vadd.f32 %v413_v18, %v351_v45  ;;  %v344_v54 = vmul.f32 %v453_v50, %v412_v16  ;;  %v352_v55 = vmul.f32 %v461_v51, %v412_v16  ;;  %v235_v56 = vpop.f32.mrb[7].mxu0  ;;  %v267_v57 = vpop.f32.mrb[7].mxu1 }
 0x101   :  { %v364_v58 = vadd.f32 %v413_v18, %v341_v48  ;;  %v372_v59 = vadd.f32 %v413_v18, %v349_v49  ;;  %v342_v60 = vmul.f32 %v412_v16, %v235_v56  ;;  %v350_v61 = vmul.f32 %v412_v16, %v267_v57 }
 0x102   :  { %382 = vst [vmem:[%s625_s4 + $0x30] sm:$0xff] %v366_v52  ;;  %390 = vst [vmem:[%s625_s4 + $0x70] sm:$0xff] %v374_v53  ;;  %v367_v62 = vadd.f32 %v413_v18, %v344_v54  ;;  %v375_v63 = vadd.f32 %v413_v18, %v352_v55 }
 0x103   :  { %380 = vst [vmem:[%s625_s4 + $0x20] sm:$0xff] %v364_v58  ;;  %388 = vst [vmem:[%s625_s4 + $0x60] sm:$0xff] %v372_v59  ;;  %v365_v0 = vadd.f32 %v413_v18, %v342_v60  ;;  %v373_v1 = vadd.f32 %v413_v18, %v350_v61 }
 0x104   :  { %383 = vst [vmem:[%s625_s4 + $0x38] sm:$0xff] %v367_v62  ;;  %391 = vst [vmem:[%s625_s4 + $0x78] sm:$0xff] %v375_v63 }
 0x105   :  { %381 = vst [vmem:[%s625_s4 + $0x28] sm:$0xff] %v365_v0  ;;  %389 = vst [vmem:[%s625_s4 + $0x68] sm:$0xff] %v373_v1 }

// kernel: bottleneck_forward.5
= control target key start
LH: loop header
LB: loop body
LE: loop exit
PB: predicated region body
PF: predicated region fallthrough
CT: control target
= control target key end

     0   :  { %s13233_s15 = smov 0   ;;  %s13235_s16 = smov 0   ;;  %s15960_s0 = inlined_call_operand.vmem [shape: bf16[2,10,10,128], index: 0, kind: input, shape index: {}]   ;;  %s15961_s1 = inlined_call_operand.vmem [shape: bf16[9,128,128], index: 1, kind: input, shape index: {}]   ;;  %s15962_s2 = inlined_call_operand.vmem [shape: f32[1,128], index: 2, kind: input, shape index: {}]   ;;  %s15963_s3 = inlined_call_operand.vmem [shape: f32[1,128], index: 3, kind: input, shape index: {}]   ;;  %s15964_s4 = inlined_call_operand.vmem [shape: bf16[2,8,8,128], index: 4, kind: output, shape index: {}]  }
   0x1   :  { %s13237_s17 = smov 0  }
   0x2 LB: > { %s33_s18 = sadd.s32 1, %s13200_s16  ;;  %p8521_p0 = scmp.ge.s32.totalorder %s13204_s17, 1  ;;  %s13204_s17 = sphi %s13237_s17, %s14_s17   ;;  %s13200_s16 = sphi %s13235_s16, %s15966_s16   ;;  %s13196_s15 = sphi %s13233_s15, %s15965_s15  }
   0x3   : > { %p35_p1 = scmp.ge.s32.totalorder %s33_s18, 2  ;;  %p210_p2 = scmp.lt.s32.totalorder %s13204_s17, 3 }
   0x5   : > { %s15968_s18 = smov (%p35_p1, %s33_s18), 0  ;;  %p211_p3 = pnand %p8521_p0, %p210_p2 }
   0x6   : > { %v12578_v0 = vld [vmem:[%s15961_s1 + $0x40] sm:$0xff] (!%p211_p3)   ;;  %v13206_v1 = vmov (!%p211_p3), 0.0   ;;  %v12580_v3 = vld [vmem:[%s15961_s1 + $0x48] sm:$0xff] (!%p211_p3)   ;;  %vm13207_vm0 = vmmov (!%p211_p3), 0   ;;  %p253_p4 = scmp.lt.s32.totalorder (!%p211_p3), %s13196_s15, 1  ;;  %v12582_v5 = vld [vmem:[%s15961_s1 + $0x50] sm:$0xff] (!%p211_p3)  }
   0x7   : > { %214 = sbr.rel (%p211_p3) target bundleno = 1381 (0x565), region = 36  ;;  %10855 = vmatprep.subr.bf16.mxu0 (!%p211_p3), %v13206_v1  ;;  %11035 = vmatprep.subr.bf16.mxu1 (!%p211_p3), %v13206_v1  ;;  %v12579_v2 = vld [vmem:[%s15961_s1 + $0x40] sm:$0xff] (!%p211_p3)   ;;  %v12581_v4 = vld [vmem:[%s15961_s1 + $0x48] sm:$0xff] (!%p211_p3)   ;;  %v12583_v6 = vld [vmem:[%s15961_s1 + $0x50] sm:$0xff] (!%p211_p3)  }
   0x8   : > { %10856 = vmatpush3.bf16.msra.mxu0 (!%p211_p3), %v12578_v0  ;;  %10871 = vmatprep.mubr.msk.bf16.mxu0 (!%p211_p3), %vm13207_vm0, %v13206_v1  ;;  %v12584_v7 = vld [vmem:[%s15961_s1 + $0x58] sm:$0xff] (!%p211_p3)   ;;  %v12586_v9 = vld [vmem:[%s15961_s1 + $0x60] sm:$0xff] (!%p211_p3)   ;;  %v12588_v13 = vld [vmem:[%s15961_s1 + $0x68] sm:$0xff] (!%p211_p3)  }
   0x9   : > { %11036 = vmatpush3.bf16.msra.mxu1 (!%p211_p3), %v12579_v2  ;;  %10857 = vmatprep.subr.bf16.mxu0 (!%p211_p3), %v13206_v1  ;;  %v12585_v8 = vld [vmem:[%s15961_s1 + $0x58] sm:$0xff] (!%p211_p3)   ;;  %v12587_v10 = vld [vmem:[%s15961_s1 + $0x60] sm:$0xff] (!%p211_p3)   ;;  %v12589_v17 = vld [vmem:[%s15961_s1 + $0x68] sm:$0xff] (!%p211_p3)  }
   0xa   : > { %11037 = vmatprep.subr.bf16.mxu1 (!%p211_p3), %v13206_v1  ;;  %11051 = vmatprep.mubr.msk.bf16.mxu1 (!%p211_p3), %vm13207_vm0, %v13206_v1  ;;  %v12590_v20 = vld [vmem:[%s15961_s1 + $0x70] sm:$0xff] (!%p211_p3)   ;;  %v12592_v23 = vld [vmem:[%s15961_s1 + $0x78] sm:$0xff] (!%p211_p3)   ;;  %v12595_v30 = vld [vmem:[%s15961_s1] sm:$0xff] (!%p211_p3)  }
   0xb   : > { %v12591_v22 = vld [vmem:[%s15961_s1 + $0x70] sm:$0xff] (!%p211_p3)   ;;  %v12593_v28 = vld [vmem:[%s15961_s1 + $0x78] sm:$0xff] (!%p211_p3)   ;;  %v12597_v32 = vld [vmem:[%s15961_s1] sm:$0xff] (!%p211_p3)  }
   0xc   : > { %10858 = vmatpush3.bf16.msra.mxu0 (!%p211_p3), %v12580_v3  ;;  %v12598_v33 = vld [vmem:[%s15961_s1 + $0x8] sm:$0xff] (!%p211_p3)   ;;  %v12600_v35 = vld [vmem:[%s15961_s1 + $0x10] sm:$0xff] (!%p211_p3)   ;;  %v12602_v37 = vld [vmem:[%s15961_s1 + $0x18] sm:$0xff] (!%p211_p3)  }
   0xd   : > { %11038 = vmatpush3.bf16.msra.mxu1 (!%p211_p3), %v12581_v4  ;;  %10859 = vmatprep.subr.bf16.mxu0 (!%p211_p3), %v13206_v1  ;;  %v12599_v34 = vld [vmem:[%s15961_s1 + $0x8] sm:$0xff] (!%p211_p3)   ;;  %v12601_v36 = vld [vmem:[%s15961_s1 + $0x10] sm:$0xff] (!%p211_p3)   ;;  %v12603_v38 = vld [vmem:[%s15961_s1 + $0x18] sm:$0xff] (!%p211_p3)  }
   0xe   : > { %s15970_s15 = smov (!%p253_p4, %s13196_s15), 1  ;;  %11039 = vmatprep.subr.bf16.mxu1 %v13206_v1  ;;  %v12604_v39 = vld [vmem:[%s15961_s1 + $0x20] sm:$0xff]   ;;  %v12606_v41 = vld [vmem:[%s15961_s1 + $0x28] sm:$0xff]   ;;  %v12608_v43 = vld [vmem:[%s15961_s1 + $0x30] sm:$0xff]  }
   0xf   : > { %s12551_s5 = smul.u32 80, %s15970_s15  ;;  %v12605_v40 = vld [vmem:[%s15961_s1 + $0x20] sm:$0xff]   ;;  %v12607_v42 = vld [vmem:[%s15961_s1 + $0x28] sm:$0xff]   ;;  %v12609_v44 = vld [vmem:[%s15961_s1 + $0x30] sm:$0xff]   ;;  %s10206_s26 = sshll.u32 %s15970_s15, 5 }
  0x10   : > { %10860 = vmatpush3.bf16.msra.mxu0 %v12582_v5  ;;  %v12610_v45 = vld [vmem:[%s15961_s1 + $0x38] sm:$0xff]   ;;  %v12612_v47 = vld [vmem:[%s15961_s1 + $0x80] sm:$0xff]   ;;  %v12614_v49 = vld [vmem:[%s15961_s1 + $0x88] sm:$0xff]   ;;  %s14438_s8 = scalar_lea.vmem %s15964_s4, %s10206_s26 }
  0x11   : > { %11040 = vmatpush3.bf16.msra.mxu1 %v12583_v6  ;;  %10861 = vmatprep.subr.bf16.mxu0 %v13206_v1  ;;  %s13293_s12 = scalar_lea.vmem %s15960_s0, %s12551_s5  ;;  %v12611_v46 = vld [vmem:[%s15961_s1 + $0x38] sm:$0xff]   ;;  %v12613_v48 = vld [vmem:[%s15961_s1 + $0x80] sm:$0xff]   ;;  %v12615_v50 = vld [vmem:[%s15961_s1 + $0x88] sm:$0xff]  }
  0x12   : > { %11041 = vmatprep.subr.bf16.mxu1 %v13206_v1  ;;  %v13304_v11 = vld [vmem:[%s13293_s12] sm:$0xf]  ;;  %v289_v12 = vld [vmem:[%s13293_s12 + $0x4] sm:$0x1]  ;;  %v13314_v15 = vld [vmem:[%s13293_s12 + $0x8] sm:$0xf] }
  0x13   : > { %v13311_v14 = vcombine.low %v13304_v11, %v289_v12  ;;  %v8735_v16 = vld [vmem:[%s13293_s12 + $0xc] sm:$0x1]  ;;  %v12616_v51 = vld [vmem:[%s15961_s1 + $0x90] sm:$0xff]   ;;  %v12618_v53 = vld [vmem:[%s15961_s1 + $0x98] sm:$0xff]  }
  0x14   : > { %10862 = vmatpush3.bf16.msra.mxu0 %v12584_v7  ;;  %v13322_v18 = vcombine.low %v13314_v15, %v8735_v16  ;;  %v12617_v52 = vld [vmem:[%s15961_s1 + $0x90] sm:$0xff]   ;;  %v12619_v54 = vld [vmem:[%s15961_s1 + $0x98] sm:$0xff]   ;;  %v12620_v55 = vld [vmem:[%s15961_s1 + $0xa0] sm:$0xff]  }
  0x15   : > { %11042 = vmatpush3.bf16.msra.mxu1 %v12585_v8  ;;  %10863 = vmatprep.subr.bf16.mxu0 %v13206_v1  ;;  %v331_v19 = vshll.u32 %v13311_v14, 16  ;;  %v329_v24 = vshrl.u32 %v13311_v14, 16  ;;  %v12621_v56 = vld [vmem:[%s15961_s1 + $0xa0] sm:$0xff]   ;;  %v12622_v57 = vld [vmem:[%s15961_s1 + $0xa8] sm:$0xff]   ;;  %v12624_v59 = vld [vmem:[%s15961_s1 + $0xb0] sm:$0xff]   ;;  %v529_v63 = vrot.slane %v13311_v14, 1 }
  0x16   : > { %11043 = vmatprep.subr.bf16.mxu1 %v13206_v1  ;;  %v1357_v21 = vshll.u32 %v13322_v18, 16  ;;  %v1355_v26 = vshrl.u32 %v13322_v18, 16  ;;  %v12623_v58 = vld [vmem:[%s15961_s1 + $0xa8] sm:$0xff]   ;;  %v12625_v60 = vld [vmem:[%s15961_s1 + $0xb0] sm:$0xff]   ;;  %v12626_v61 = vld [vmem:[%s15961_s1 + $0xb8] sm:$0xff]   ;;  %v1554_v2 = vrot.slane %v13322_v18, 1 }
  0x17   : > { %v333_v25 = vrot.slane %v331_v19, 1  ;;  %v12627_v62 = vld [vmem:[%s15961_s1 + $0xb8] sm:$0xff]   ;;  %v12628_v0 = vld [vmem:[%s15961_s1 + $0xc0] sm:$0xff]   ;;  %v12630_v4 = vld [vmem:[%s15961_s1 + $0xc8] sm:$0xff]  }
  0x18   : > { %10864 = vmatpush3.bf16.msra.mxu0 %v12586_v9  ;;  %v1359_v27 = vrot.slane %v1357_v21, 1  ;;  %v12629_v3 = vld [vmem:[%s15961_s1 + $0xc0] sm:$0xff]   ;;  %v12631_v5 = vld [vmem:[%s15961_s1 + $0xc8] sm:$0xff]   ;;  %v12632_v6 = vld [vmem:[%s15961_s1 + $0xd0] sm:$0xff]  }
  0x19   : > { %11044 = vmatpush3.bf16.msra.mxu1 %v12587_v10  ;;  %10865 = vmatprep.subr.bf16.mxu0 %v13206_v1  ;;  %v334_v29 = vor.u32 %v333_v25, %v329_v24  ;;  %v12633_v7 = vld [vmem:[%s15961_s1 + $0xd0] sm:$0xff]   ;;  %v12634_v8 = vld [vmem:[%s15961_s1 + $0xd8] sm:$0xff]   ;;  %v12636_v10 = vld [vmem:[%s15961_s1 + $0xe0] sm:$0xff]  }
  0x1a   : > { %11045 = vmatprep.subr.bf16.mxu1 %v13206_v1  ;;  %v1360_v31 = vor.u32 %v1359_v27, %v1355_v26  ;;  %v12635_v9 = vld [vmem:[%s15961_s1 + $0xd8] sm:$0xff]   ;;  %v12638_v12 = vld [vmem:[%s15961_s1 + $0xe8] sm:$0xff]   ;;  %v12640_v14 = vld [vmem:[%s15961_s1 + $0xf0] sm:$0xff]  }
  0x1b   : > { %v12642_v16 = vld [vmem:[%s15961_s1 + $0xf8] sm:$0xff]   ;;  %v8582_v18 = vld [vmem:[%s13293_s12 + $0x8] sm:$0xf]  ;;  %v12645_v19 = vld [vmem:[%s15961_s1 + $0x100] sm:$0xff]  }
  0x1c   : > { %10866 = vmatpush3.bf16.msra.mxu0 %v12588_v13  ;;  %v12639_v13 = vld [vmem:[%s15961_s1 + $0xe8] sm:$0xff]   ;;  %v12647_v21 = vld [vmem:[%s15961_s1 + $0x100] sm:$0xff]   ;;  %v12650_v24 = vld [vmem:[%s15961_s1 + $0x110] sm:$0xff]  }
  0x1d   : > { %11046 = vmatpush3.bf16.msra.mxu1 %v12589_v17  ;;  %10867 = vmatprep.subr.bf16.mxu0 %v13206_v1  ;;  %v12643_v17 = vld [vmem:[%s15961_s1 + $0xf8] sm:$0xff]   ;;  %v12651_v25 = vld [vmem:[%s15961_s1 + $0x110] sm:$0xff]   ;;  %v8583_v26 = vld [vmem:[%s13293_s12 + $0xc] sm:$0x1] }
  0x1e   : > { %11047 = vmatprep.subr.bf16.mxu1 %v13206_v1  ;;  %v12652_v27 = vld [vmem:[%s15961_s1 + $0x118] sm:$0xff]  }
  0x20   : > { %10868 = vmatpush3.bf16.msra.mxu0 %v12590_v20  ;;  %v8793_v20 = vld [vmem:[%s13293_s12 + $0x10] sm:$0xf] }
  0x21   : > { %11048 = vmatpush3.bf16.msra.mxu1 %v12591_v22  ;;  %10869 = vmatprep.subr.bf16.mxu0 %v13206_v1  ;;  %v12648_v22 = vld [vmem:[%s15961_s1 + $0x108] sm:$0xff]  }
  0x22   : > { %11049 = vmatprep.subr.bf16.mxu1 %v13206_v1 }
  0x24   : > { %10870 = vmatpush3.bf16.msra.mxu0 %v12592_v23  ;;  %v12649_v23 = vld [vmem:[%s15961_s1 + $0x108] sm:$0xff]  }
  0x25   : > { %11050 = vmatpush3.bf16.msra.mxu1 %v12593_v28  ;;  %10875 = vmatprep.subr.bf16.mxu0 %v13206_v1  ;;  %v12653_v28 = vld [vmem:[%s15961_s1 + $0x118] sm:$0xff]  }
  0x26   : > { %11055 = vmatprep.subr.bf16.mxu1 %v13206_v1 }
  0x27   : > { %10872 = vmatmul.mubr.bf16.vlgmr.msra.gmra.mrb[0].mxu0 %v334_v29  ;;  %v8794_v29 = vld [vmem:[%s13293_s12 + $0x14] sm:$0x1] }
  0x28   : > { %10876 = vmatpush3.bf16.msra.mxu0 %v12595_v30  ;;  %11052 = vmatmul.mubr.bf16.vlgmr.msra.gmra.mrb[0].mxu1 %v1360_v31  ;;  %v12654_v30 = vld [vmem:[%s15961_s1 + $0x120] sm:$0xff]   ;;  %v13596_v31 = vcombine.low %v8582_v18, %v8583_v26  ;;  %v12701_v26 = vld [vmem:[%s15961_s1 + $0x1d0] sm:$0xff]  }
  0x29   : > { %11056 = vmatpush3.bf16.msra.mxu1 %v12597_v32  ;;  %10877 = vmatprep.subr.bf16.mxu0 %v13206_v1  ;;  %v12655_v32 = vld [vmem:[%s15961_s1 + $0x120] sm:$0xff]  }
  0x2a   : > { %11057 = vmatprep.subr.bf16.mxu1 %v13206_v1  ;;  %10891 = vmatprep.mubr.msk.bf16.mxu0 %vm13207_vm0, %v13206_v1 }
  0x2b   : > { %11071 = vmatprep.mubr.msk.bf16.mxu1 %vm13207_vm0, %v13206_v1 }
  0x2c   : > { %10878 = vmatpush3.bf16.msra.mxu0 %v12598_v33  ;;  %v755_v33 = vshrl.u32 %v13596_v31, 16 }
  0x2d   : > { %11058 = vmatpush3.bf16.msra.mxu1 %v12599_v34  ;;  %10879 = vmatprep.subr.bf16.mxu0 %v13206_v1  ;;  %v12656_v34 = vld [vmem:[%s15961_s1 + $0x128] sm:$0xff]  }
  0x2e   : > { %11059 = vmatprep.subr.bf16.mxu1 %v13206_v1 }
  0x30   : > { %10880 = vmatpush3.bf16.msra.mxu0 %v12600_v35  ;;  %v757_v35 = vshll.u32 %v13596_v31, 16 }
  0x31   : > { %11060 = vmatpush3.bf16.msra.mxu1 %v12601_v36  ;;  %10881 = vmatprep.subr.bf16.mxu0 %v13206_v1  ;;  %v13608_v36 = vcombine.low %v8793_v20, %v8794_v29  ;;  %v12703_v29 = vld [vmem:[%s15961_s1 + $0x1d8] sm:$0xff]  }
  0x32   : > { %11061 = vmatprep.subr.bf16.mxu1 %v13206_v1 }
  0x34   : > { %10882 = vmatpush3.bf16.msra.mxu0 %v12602_v37  ;;  %v12657_v37 = vld [vmem:[%s15961_s1 + $0x128] sm:$0xff]  }
  0x35   : > { %11062 = vmatpush3.bf16.msra.mxu1 %v12603_v38  ;;  %10883 = vmatprep.subr.bf16.mxu0 %v13206_v1  ;;  %v1774_v38 = vshrl.u32 %v13608_v36, 16 }
  0x36   : > { %11063 = vmatprep.subr.bf16.mxu1 %v13206_v1 }
  0x38   : > { %10884 = vmatpush3.bf16.msra.mxu0 %v12604_v39  ;;  %v12658_v39 = vld [vmem:[%s15961_s1 + $0x130] sm:$0xff]  }
  0x39   : > { %11064 = vmatpush3.bf16.msra.mxu1 %v12605_v40  ;;  %10885 = vmatprep.subr.bf16.mxu0 %v13206_v1  ;;  %v1776_v40 = vshll.u32 %v13608_v36, 16 }
  0x3a   : > { %11065 = vmatprep.subr.bf16.mxu1 %v13206_v1 }
  0x3c   : > { %10886 = vmatpush3.bf16.msra.mxu0 %v12606_v41  ;;  %v12659_v41 = vld [vmem:[%s15961_s1 + $0x130] sm:$0xff]  }
  0x3d   : > { %11066 = vmatpush3.bf16.msra.mxu1 %v12607_v42  ;;  %10887 = vmatprep.subr.bf16.mxu0 %v13206_v1  ;;  %v12660_v42 = vld [vmem:[%s15961_s1 + $0x138] sm:$0xff]  }
  0x3e   : > { %11067 = vmatprep.subr.bf16.mxu1 %v13206_v1 }
  0x40   : > { %10888 = vmatpush3.bf16.msra.mxu0 %v12608_v43  ;;  %v759_v43 = vrot.slane %v757_v35, 1  ;;  %v12706_v35 = vld [vmem:[%s15961_s1 + $0x1e8] sm:$0xff]  }
  0x41   : > { %11068 = vmatpush3.bf16.msra.mxu1 %v12609_v44  ;;  %10889 = vmatprep.subr.bf16.mxu0 %v13206_v1  ;;  %v12661_v44 = vld [vmem:[%s15961_s1 + $0x138] sm:$0xff]  }
  0x42   : > { %11069 = vmatprep.subr.bf16.mxu1 %v13206_v1 }
  0x44   : > { %10890 = vmatpush3.bf16.msra.mxu0 %v12610_v45  ;;  %v1778_v45 = vrot.slane %v1776_v40, 1  ;;  %v12708_v40 = vld [vmem:[%s15961_s1 + $0x1f0] sm:$0xff]  }
  0x45   : > { %11070 = vmatpush3.bf16.msra.mxu1 %v12611_v46  ;;  %10895 = vmatprep.subr.bf16.mxu0 %v13206_v1  ;;  %v760_v46 = vor.u32 %v759_v43, %v755_v33  ;;  %v12705_v33 = vld [vmem:[%s15961_s1 + $0x1e0] sm:$0xff]   ;;  %v12710_v43 = vld [vmem:[%s15961_s1 + $0x1f8] sm:$0xff]  }
  0x46   : > { %11075 = vmatprep.subr.bf16.mxu1 %v13206_v1 }
  0x47   : > { %10892 = vmatmul.mubr.bf16.vlgmr.msra.gmra.mrb[0].mxu0 %v13304_v11  ;;  %v12637_v11 = vld [vmem:[%s15961_s1 + $0xe0] sm:$0xff]  }
  0x48   : > { %10896 = vmatpush3.bf16.msra.mxu0 %v12612_v47  ;;  %11072 = vmatmul.mubr.bf16.vlgmr.msra.gmra.mrb[0].mxu1 %v13314_v15  ;;  %v12641_v15 = vld [vmem:[%s15961_s1 + $0xf0] sm:$0xff]   ;;  %v12662_v47 = vld [vmem:[%s15961_s1 + $0x140] sm:$0xff]  }
  0x49   : > { %11076 = vmatpush3.bf16.msra.mxu1 %v12613_v48  ;;  %10897 = vmatprep.subr.bf16.mxu0 %v13206_v1  ;;  %v1779_v48 = vor.u32 %v1778_v45, %v1774_v38  ;;  %v12707_v38 = vld [vmem:[%s15961_s1 + $0x1e8] sm:$0xff]   ;;  %v12711_v45 = vld [vmem:[%s15961_s1 + $0x1f8] sm:$0xff]  }
  0x4a   : > { %11077 = vmatprep.subr.bf16.mxu1 %v13206_v1  ;;  %10911 = vmatprep.mubr.msk.bf16.mxu0 %vm13207_vm0, %v13206_v1 }
  0x4b   : > { %11091 = vmatprep.mubr.msk.bf16.mxu1 %vm13207_vm0, %v13206_v1 }
  0x4c   : > { %10898 = vmatpush3.bf16.msra.mxu0 %v12614_v49  ;;  %v12663_v49 = vld [vmem:[%s15961_s1 + $0x140] sm:$0xff]  }
  0x4d   : > { %11078 = vmatpush3.bf16.msra.mxu1 %v12615_v50  ;;  %10899 = vmatprep.subr.bf16.mxu0 %v13206_v1  ;;  %v12664_v50 = vld [vmem:[%s15961_s1 + $0x148] sm:$0xff]  }
  0x4e   : > { %11079 = vmatprep.subr.bf16.mxu1 %v13206_v1 }
  0x50   : > { %10900 = vmatpush3.bf16.msra.mxu0 %v12616_v51  ;;  %v12665_v51 = vld [vmem:[%s15961_s1 + $0x148] sm:$0xff]  }
  0x51   : > { %11080 = vmatpush3.bf16.msra.mxu1 %v12617_v52  ;;  %10901 = vmatprep.subr.bf16.mxu0 %v13206_v1  ;;  %v12666_v52 = vld [vmem:[%s15961_s1 + $0x150] sm:$0xff]  }
  0x52   : > { %11081 = vmatprep.subr.bf16.mxu1 %v13206_v1 }
  0x54   : > { %10902 = vmatpush3.bf16.msra.mxu0 %v12618_v53  ;;  %v12667_v53 = vld [vmem:[%s15961_s1 + $0x150] sm:$0xff]  }
  0x55   : > { %11082 = vmatpush3.bf16.msra.mxu1 %v12619_v54  ;;  %10903 = vmatprep.subr.bf16.mxu0 %v13206_v1  ;;  %v12668_v54 = vld [vmem:[%s15961_s1 + $0x158] sm:$0xff]  }
  0x56   : > { %11083 = vmatprep.subr.bf16.mxu1 %v13206_v1 }
  0x58   : > { %10904 = vmatpush3.bf16.msra.mxu0 %v12620_v55  ;;  %v12669_v55 = vld [vmem:[%s15961_s1 + $0x158] sm:$0xff]  }
  0x59   : > { %11084 = vmatpush3.bf16.msra.mxu1 %v12621_v56  ;;  %10905 = vmatprep.subr.bf16.mxu0 %v13206_v1  ;;  %v12670_v56 = vld [vmem:[%s15961_s1 + $0x160] sm:$0xff]  }
  0x5a   : > { %11085 = vmatprep.subr.bf16.mxu1 %v13206_v1 }
  0x5c   : > { %10906 = vmatpush3.bf16.msra.mxu0 %v12622_v57  ;;  %v12671_v57 = vld [vmem:[%s15961_s1 + $0x160] sm:$0xff]  }
  0x5d   : > { %11086 = vmatpush3.bf16.msra.mxu1 %v12623_v58  ;;  %10907 = vmatprep.subr.bf16.mxu0 %v13206_v1  ;;  %v12672_v58 = vld [vmem:[%s15961_s1 + $0x168] sm:$0xff]  }
  0x5e   : > { %11087 = vmatprep.subr.bf16.mxu1 %v13206_v1 }
  0x60   : > { %10908 = vmatpush3.bf16.msra.mxu0 %v12624_v59  ;;  %v12673_v59 = vld [vmem:[%s15961_s1 + $0x168] sm:$0xff]  }
  0x61   : > { %11088 = vmatpush3.bf16.msra.mxu1 %v12625_v60  ;;  %10909 = vmatprep.subr.bf16.mxu0 %v13206_v1  ;;  %v12674_v60 = vld [vmem:[%s15961_s1 + $0x170] sm:$0xff]  }
  0x62   : > { %11089 = vmatprep.subr.bf16.mxu1 %v13206_v1 }
  0x64   : > { %10910 = vmatpush3.bf16.msra.mxu0 %v12626_v61  ;;  %v12675_v61 = vld [vmem:[%s15961_s1 + $0x170] sm:$0xff]  }
  0x65   : > { %11090 = vmatpush3.bf16.msra.mxu1 %v12627_v62  ;;  %10915 = vmatprep.subr.bf16.mxu0 %v13206_v1  ;;  %v12676_v62 = vld [vmem:[%s15961_s1 + $0x178] sm:$0xff]  }
  0x66   : > { %11095 = vmatprep.subr.bf16.mxu1 %v13206_v1 }
  0x67   : > { %10912 = vmatmul.mubr.bf16.vlgmr.msra.gmra.mrb[0].mxu0 %v529_v63  ;;  %v12677_v63 = vld [vmem:[%s15961_s1 + $0x178] sm:$0xff]  }
  0x68   : > { %10916 = vmatpush3.bf16.msra.mxu0 %v12628_v0  ;;  %11092 = vmatmul.mubr.bf16.vlgmr.msra.gmra.mrb[0].mxu1 %v1554_v2  ;;  %v868_v0 = vrot.slane %v13596_v31, 1  ;;  %v12678_v2 = vld [vmem:[%s15961_s1 + $0x180] sm:$0xff]  }
  0x69   : > { %11096 = vmatpush3.bf16.msra.mxu1 %v12629_v3  ;;  %10917 = vmatprep.subr.bf16.mxu0 %v13206_v1  ;;  %v1886_v3 = vrot.slane %v13608_v36, 1  ;;  %v12704_v31 = vld [vmem:[%s15961_s1 + $0x1e0] sm:$0xff]  }
  0x6a   : > { %11097 = vmatprep.subr.bf16.mxu1 %v13206_v1  ;;  %10931 = vmatprep.mubr.msk.bf16.mxu0 %vm13207_vm0, %v13206_v1 }
  0x6b   : > { %11111 = vmatprep.mubr.msk.bf16.mxu1 %vm13207_vm0, %v13206_v1 }
  0x6c   : > { %10918 = vmatpush3.bf16.msra.mxu0 %v12630_v4  ;;  %v12679_v4 = vld [vmem:[%s15961_s1 + $0x180] sm:$0xff]  }
  0x6d   : > { %11098 = vmatpush3.bf16.msra.mxu1 %v12631_v5  ;;  %10919 = vmatprep.subr.bf16.mxu0 %v13206_v1  ;;  %v12680_v5 = vld [vmem:[%s15961_s1 + $0x188] sm:$0xff]  }
  0x6e   : > { %11099 = vmatprep.subr.bf16.mxu1 %v13206_v1 }
  0x70   : > { %10920 = vmatpush3.bf16.msra.mxu0 %v12632_v6  ;;  %v12681_v6 = vld [vmem:[%s15961_s1 + $0x188] sm:$0xff]  }
  0x71   : > { %11100 = vmatpush3.bf16.msra.mxu1 %v12633_v7  ;;  %10921 = vmatprep.subr.bf16.mxu0 %v13206_v1  ;;  %v12682_v7 = vld [vmem:[%s15961_s1 + $0x190] sm:$0xff]  }
  0x72   : > { %11101 = vmatprep.subr.bf16.mxu1 %v13206_v1 }
  0x74   : > { %10922 = vmatpush3.bf16.msra.mxu0 %v12634_v8  ;;  %v12683_v8 = vld [vmem:[%s15961_s1 + $0x190] sm:$0xff]  }
  0x75   : > { %11102 = vmatpush3.bf16.msra.mxu1 %v12635_v9  ;;  %10923 = vmatprep.subr.bf16.mxu0 %v13206_v1  ;;  %v12684_v9 = vld [vmem:[%s15961_s1 + $0x198] sm:$0xff]  }
  0x76   : > { %11103 = vmatprep.subr.bf16.mxu1 %v13206_v1 }
  0x78   : > { %10924 = vmatpush3.bf16.msra.mxu0 %v12636_v10  ;;  %v12685_v10 = vld [vmem:[%s15961_s1 + $0x198] sm:$0xff]  }
  0x79   : > { %11104 = vmatpush3.bf16.msra.mxu1 %v12637_v11  ;;  %10925 = vmatprep.subr.bf16.mxu0 %v13206_v1  ;;  %v12686_v11 = vld [vmem:[%s15961_s1 + $0x1a0] sm:$0xff]  }
  0x7a   : > { %11105 = vmatprep.subr.bf16.mxu1 %v13206_v1 }
  0x7c   : > { %10926 = vmatpush3.bf16.msra.mxu0 %v12638_v12  ;;  %v12687_v12 = vld [vmem:[%s15961_s1 + $0x1a0] sm:$0xff]  }
  0x7d   : > { %11106 = vmatpush3.bf16.msra.mxu1 %v12639_v13  ;;  %10927 = vmatprep.subr.bf16.mxu0 %v13206_v1  ;;  %v12688_v13 = vld [vmem:[%s15961_s1 + $0x1a8] sm:$0xff]  }
  0x7e   : > { %11107 = vmatprep.subr.bf16.mxu1 %v13206_v1 }
  0x80   : > { %10928 = vmatpush3.bf16.msra.mxu0 %v12640_v14  ;;  %v12689_v14 = vld [vmem:[%s15961_s1 + $0x1a8] sm:$0xff]  }
  0x81   : > { %11108 = vmatpush3.bf16.msra.mxu1 %v12641_v15  ;;  %10929 = vmatprep.subr.bf16.mxu0 %v13206_v1  ;;  %v12690_v15 = vld [vmem:[%s15961_s1 + $0x1b0] sm:$0xff]  }
  0x82   : > { %11109 = vmatprep.subr.bf16.mxu1 %v13206_v1 }
  0x84   : > { %10930 = vmatpush3.bf16.msra.mxu0 %v12642_v16  ;;  %v12691_v16 = vld [vmem:[%s15961_s1 + $0x1b0] sm:$0xff]  }
  0x85   : > { %11110 = vmatpush3.bf16.msra.mxu1 %v12643_v17  ;;  %10935 = vmatprep.subr.bf16.mxu0 %v13206_v1  ;;  %v12692_v17 = vld [vmem:[%s15961_s1 + $0x1b8] sm:$0xff]  }
  0x86   : > { %11115 = vmatprep.subr.bf16.mxu1 %v13206_v1 }
  0x87   : > { %10932 = vmatmul.mubr.bf16.vlgmr.msra.gmra.mrb[0].mxu0 %v8582_v18  ;;  %v12693_v18 = vld [vmem:[%s15961_s1 + $0x1b8] sm:$0xff]  }
  0x88   : > { %10936 = vmatpush3.bf16.msra.mxu0 %v12645_v19  ;;  %11112 = vmatmul.mubr.bf16.vlgmr.msra.gmra.mrb[0].mxu1 %v8793_v20  ;;  %v8657_v19 = vld [vmem:[%s13293_s12 + $0x10] sm:$0xf]  ;;  %v12695_v20 = vld [vmem:[%s15961_s1 + $0x1c0] sm:$0xff]  }
  0x89   : > { %11116 = vmatpush3.bf16.msra.mxu1 %v12647_v21  ;;  %10937 = vmatprep.subr.bf16.mxu0 %v13206_v1  ;;  %v8868_v21 = vld [vmem:[%s13293_s12 + $0x18] sm:$0xf] }
  0x8a   : > { %11117 = vmatprep.subr.bf16.mxu1 %v13206_v1  ;;  %10951 = vmatprep.mubr.msk.bf16.mxu0 %vm13207_vm0, %v13206_v1 }
  0x8b   : > { %11131 = vmatprep.mubr.msk.bf16.mxu1 %vm13207_vm0, %v13206_v1 }
  0x8c   : > { %10938 = vmatpush3.bf16.msra.mxu0 %v12648_v22  ;;  %v12697_v22 = vld [vmem:[%s15961_s1 + $0x1c0] sm:$0xff]  }
  0x8d   : > { %11118 = vmatpush3.bf16.msra.mxu1 %v12649_v23  ;;  %10939 = vmatprep.subr.bf16.mxu0 %v13206_v1  ;;  %v12698_v23 = vld [vmem:[%s15961_s1 + $0x1c8] sm:$0xff]  }
  0x8e   : > { %11119 = vmatprep.subr.bf16.mxu1 %v13206_v1 }
  0x90   : > { %10940 = vmatpush3.bf16.msra.mxu0 %v12650_v24  ;;  %v12699_v24 = vld [vmem:[%s15961_s1 + $0x1c8] sm:$0xff]  }
  0x91   : > { %11120 = vmatpush3.bf16.msra.mxu1 %v12651_v25  ;;  %10941 = vmatprep.subr.bf16.mxu0 %v13206_v1  ;;  %v12700_v25 = vld [vmem:[%s15961_s1 + $0x1d0] sm:$0xff]  }
  0x92   : > { %11121 = vmatprep.subr.bf16.mxu1 %v13206_v1 }
  0x94   : > { %10942 = vmatpush3.bf16.msra.mxu0 %v12652_v27  ;;  %v8658_v27 = vld [vmem:[%s13293_s12 + $0x14] sm:$0x1] }
  0x95   : > { %11122 = vmatpush3.bf16.msra.mxu1 %v12653_v28  ;;  %10943 = vmatprep.subr.bf16.mxu0 %v13206_v1  ;;  %v12702_v28 = vld [vmem:[%s15961_s1 + $0x1d8] sm:$0xff]  }
  0x96   : > { %11123 = vmatprep.subr.bf16.mxu1 %v13206_v1 }
  0x98   : > { %10944 = vmatpush3.bf16.msra.mxu0 %v12654_v30  ;;  %v8869_v30 = vld [vmem:[%s13293_s12 + $0x1c] sm:$0x1] }
  0x99   : > { %11124 = vmatpush3.bf16.msra.mxu1 %v12655_v32  ;;  %10945 = vmatprep.subr.bf16.mxu0 %v13206_v1  ;;  %v13814_v32 = vcombine.low %v8657_v19, %v8658_v27 }
  0x9a   : > { %11125 = vmatprep.subr.bf16.mxu1 %v13206_v1 }
  0x9b   : > { %v1096_v36 = vshll.u32 %v13814_v32, 16 }
  0x9c   : > { %10946 = vmatpush3.bf16.msra.mxu0 %v12656_v34  ;;  %v1094_v34 = vshrl.u32 %v13814_v32, 16 }
  0x9d   : > { %11126 = vmatpush3.bf16.msra.mxu1 %v12657_v37  ;;  %10947 = vmatprep.subr.bf16.mxu0 %v13206_v1  ;;  %v13826_v37 = vcombine.low %v8868_v21, %v8869_v30 }
  0x9e   : > { %11127 = vmatprep.subr.bf16.mxu1 %v13206_v1 }
  0xa0   : > { %10948 = vmatpush3.bf16.msra.mxu0 %v12658_v39  ;;  %v2110_v39 = vshrl.u32 %v13826_v37, 16 }
  0xa1   : > { %11128 = vmatpush3.bf16.msra.mxu1 %v12659_v41  ;;  %10949 = vmatprep.subr.bf16.mxu0 %v13206_v1  ;;  %v2112_v41 = vshll.u32 %v13826_v37, 16 }
  0xa2   : > { %11129 = vmatprep.subr.bf16.mxu1 %v13206_v1 }
  0xa4   : > { %10950 = vmatpush3.bf16.msra.mxu0 %v12660_v42  ;;  %v12709_v42 = vld [vmem:[%s15961_s1 + $0x1f0] sm:$0xff]  }
  0xa5   : > { %11130 = vmatpush3.bf16.msra.mxu1 %v12661_v44  ;;  %10955 = vmatprep.subr.bf16.mxu0 %v13206_v1  ;;  %v1098_v44 = vrot.slane %v1096_v36, 1  ;;  %v12748_v36 = vld [vmem:[%s15961_s1 + $0x8] sm:$0xff]  }
  0xa6   : > { %11135 = vmatprep.subr.bf16.mxu1 %v13206_v1 }
  0xa7   : > { %10952 = vmatmul.mubr.bf16.vlgmr.msra.gmra.mrb[0].mxu0 %v760_v46  ;;  %v2114_v46 = vrot.slane %v2112_v41, 1  ;;  %v12753_v41 = vld [vmem:[%s15961_s1 + $0x18] sm:$0xff]  }
  0xa8   : > { %10956 = vmatpush3.bf16.msra.mxu0 %v12662_v47  ;;  %11132 = vmatmul.mubr.bf16.vlgmr.msra.gmra.mrb[0].mxu1 %v1779_v48  ;;  %v12712_v47 = vld [vmem:[%s15961_s1 + $0x200] sm:$0xff]   ;;  %v1099_v48 = vor.u32 %v1098_v44, %v1094_v34  ;;  %v12756_v44 = vld [vmem:[%s15961_s1 + $0x28] sm:$0xff]  }
  0xa9   : > { %11136 = vmatpush3.bf16.msra.mxu1 %v12663_v49  ;;  %10957 = vmatprep.subr.bf16.mxu0 %v13206_v1  ;;  %v12713_v49 = vld [vmem:[%s15961_s1 + $0x200] sm:$0xff]  }
  0xaa   : > { %11137 = vmatprep.subr.bf16.mxu1 %v13206_v1  ;;  %10971 = vmatprep.mubr.msk.bf16.mxu0 %vm13207_vm0, %v13206_v1 }
  0xab   : > { %11151 = vmatprep.mubr.msk.bf16.mxu1 %vm13207_vm0, %v13206_v1 }
  0xac   : > { %10958 = vmatpush3.bf16.msra.mxu0 %v12664_v50  ;;  %v2115_v50 = vor.u32 %v2114_v46, %v2110_v39  ;;  %v12751_v39 = vld [vmem:[%s15961_s1 + $0x10] sm:$0xff]  }
  0xad   : > { %11138 = vmatpush3.bf16.msra.mxu1 %v12665_v51  ;;  %10959 = vmatprep.subr.bf16.mxu0 %v13206_v1  ;;  %v12714_v51 = vld [vmem:[%s15961_s1 + $0x208] sm:$0xff]   ;;  %v12758_v46 = vld [vmem:[%s15961_s1 + $0x30] sm:$0xff]  }
  0xae   : > { %11139 = vmatprep.subr.bf16.mxu1 %v13206_v1 }
  0xb0   : > { %10960 = vmatpush3.bf16.msra.mxu0 %v12666_v52  ;;  %v12715_v52 = vld [vmem:[%s15961_s1 + $0x208] sm:$0xff]  }
  0xb1   : > { %11140 = vmatpush3.bf16.msra.mxu1 %v12667_v53  ;;  %10961 = vmatprep.subr.bf16.mxu0 %v13206_v1  ;;  %v12716_v53 = vld [vmem:[%s15961_s1 + $0x210] sm:$0xff]  }
  0xb2   : > { %11141 = vmatprep.subr.bf16.mxu1 %v13206_v1 }
  0xb4   : > { %10962 = vmatpush3.bf16.msra.mxu0 %v12668_v54  ;;  %v12717_v54 = vld [vmem:[%s15961_s1 + $0x210] sm:$0xff]  }
  0xb5   : > { %11142 = vmatpush3.bf16.msra.mxu1 %v12669_v55  ;;  %10963 = vmatprep.subr.bf16.mxu0 %v13206_v1  ;;  %v12718_v55 = vld [vmem:[%s15961_s1 + $0x218] sm:$0xff]  }
  0xb6   : > { %11143 = vmatprep.subr.bf16.mxu1 %v13206_v1 }
  0xb8   : > { %10964 = vmatpush3.bf16.msra.mxu0 %v12670_v56  ;;  %v12719_v56 = vld [vmem:[%s15961_s1 + $0x218] sm:$0xff]  }
  0xb9   : > { %11144 = vmatpush3.bf16.msra.mxu1 %v12671_v57  ;;  %10965 = vmatprep.subr.bf16.mxu0 %v13206_v1  ;;  %v12720_v57 = vld [vmem:[%s15961_s1 + $0x220] sm:$0xff]  }
  0xba   : > { %11145 = vmatprep.subr.bf16.mxu1 %v13206_v1 }
  0xbc   : > { %10966 = vmatpush3.bf16.msra.mxu0 %v12672_v58  ;;  %v12721_v58 = vld [vmem:[%s15961_s1 + $0x220] sm:$0xff]  }
  0xbd   : > { %11146 = vmatpush3.bf16.msra.mxu1 %v12673_v59  ;;  %10967 = vmatprep.subr.bf16.mxu0 %v13206_v1  ;;  %v12722_v59 = vld [vmem:[%s15961_s1 + $0x228] sm:$0xff]  }
  0xbe   : > { %11147 = vmatprep.subr.bf16.mxu1 %v13206_v1 }
  0xc0   : > { %10968 = vmatpush3.bf16.msra.mxu0 %v12674_v60  ;;  %v12723_v60 = vld [vmem:[%s15961_s1 + $0x228] sm:$0xff]  }
  0xc1   : > { %11148 = vmatpush3.bf16.msra.mxu1 %v12675_v61  ;;  %10969 = vmatprep.subr.bf16.mxu0 %v13206_v1  ;;  %v12724_v61 = vld [vmem:[%s15961_s1 + $0x230] sm:$0xff]  }
  0xc2   : > { %11149 = vmatprep.subr.bf16.mxu1 %v13206_v1 }
  0xc4   : > { %10970 = vmatpush3.bf16.msra.mxu0 %v12676_v62  ;;  %v12725_v62 = vld [vmem:[%s15961_s1 + $0x230] sm:$0xff]  }
  0xc5   : > { %11150 = vmatpush3.bf16.msra.mxu1 %v12677_v63  ;;  %10975 = vmatprep.subr.bf16.mxu0 %v13206_v1  ;;  %v12726_v63 = vld [vmem:[%s15961_s1 + $0x238] sm:$0xff]  }
  0xc6   : > { %11155 = vmatprep.subr.bf16.mxu1 %v13206_v1 }
  0xc7   : > { %10972 = vmatmul.mubr.bf16.vlgmr.msra.gmra.mrb[0].mxu0 %v868_v0  ;;  %v12727_v0 = vld [vmem:[%s15961_s1 + $0x238] sm:$0xff]  }
  0xc8   : > { %10976 = vmatpush3.bf16.msra.mxu0 %v12678_v2  ;;  %11152 = vmatmul.mubr.bf16.vlgmr.msra.gmra.mrb[0].mxu1 %v1886_v3  ;;  %v1207_v2 = vrot.slane %v13814_v32, 1  ;;  %v12728_v3 = vld [vmem:[%s15961_s1 + $0x40] sm:$0xff]  }
  0xc9   : > { %11156 = vmatpush3.bf16.msra.mxu1 %v12679_v4  ;;  %10977 = vmatprep.subr.bf16.mxu0 %v13206_v1  ;;  %v2222_v4 = vrot.slane %v13826_v37, 1  ;;  %v12749_v37 = vld [vmem:[%s15961_s1 + $0x8] sm:$0xff]  }
  0xca   : > { %11157 = vmatprep.subr.bf16.mxu1 %v13206_v1  ;;  %10991 = vmatprep.mubr.msk.bf16.mxu0 %vm13207_vm0, %v13206_v1 }
  0xcb   : > { %11171 = vmatprep.mubr.msk.bf16.mxu1 %vm13207_vm0, %v13206_v1 }
  0xcc   : > { %10978 = vmatpush3.bf16.msra.mxu0 %v12680_v5  ;;  %v12729_v5 = vld [vmem:[%s15961_s1 + $0x40] sm:$0xff]  }
  0xcd   : > { %11158 = vmatpush3.bf16.msra.mxu1 %v12681_v6  ;;  %10979 = vmatprep.subr.bf16.mxu0 %v13206_v1  ;;  %v12730_v6 = vld [vmem:[%s15961_s1 + $0x48] sm:$0xff]  }
  0xce   : > { %11159 = vmatprep.subr.bf16.mxu1 %v13206_v1 }
  0xd0   : > { %10980 = vmatpush3.bf16.msra.mxu0 %v12682_v7  ;;  %v12731_v7 = vld [vmem:[%s15961_s1 + $0x48] sm:$0xff]  }
  0xd1   : > { %11160 = vmatpush3.bf16.msra.mxu1 %v12683_v8  ;;  %10981 = vmatprep.subr.bf16.mxu0 %v13206_v1  ;;  %v12732_v8 = vld [vmem:[%s15961_s1 + $0x50] sm:$0xff]  }
  0xd2   : > { %11161 = vmatprep.subr.bf16.mxu1 %v13206_v1 }
  0xd4   : > { %10982 = vmatpush3.bf16.msra.mxu0 %v12684_v9  ;;  %v12733_v9 = vld [vmem:[%s15961_s1 + $0x50] sm:$0xff]  }
  0xd5   : > { %11162 = vmatpush3.bf16.msra.mxu1 %v12685_v10  ;;  %10983 = vmatprep.subr.bf16.mxu0 %v13206_v1  ;;  %v12734_v10 = vld [vmem:[%s15961_s1 + $0x58] sm:$0xff]  }
  0xd6   : > { %11163 = vmatprep.subr.bf16.mxu1 %v13206_v1 }
  0xd8   : > { %10984 = vmatpush3.bf16.msra.mxu0 %v12686_v11  ;;  %v12735_v11 = vld [vmem:[%s15961_s1 + $0x58] sm:$0xff]  }
  0xd9   : > { %11164 = vmatpush3.bf16.msra.mxu1 %v12687_v12  ;;  %10985 = vmatprep.subr.bf16.mxu0 %v13206_v1  ;;  %v13957_v12 = vld [vmem:[%s13293_s12 + $0x10] sm:$0xf] }
  0xda   : > { %11165 = vmatprep.subr.bf16.mxu1 %v13206_v1 }
  0xdc   : > { %10986 = vmatpush3.bf16.msra.mxu0 %v12688_v13  ;;  %v8945_v13 = vld [vmem:[%s13293_s12 + $0x14] sm:$0x1] }
  0xdd   : > { %11166 = vmatpush3.bf16.msra.mxu1 %v12689_v14  ;;  %10987 = vmatprep.subr.bf16.mxu0 %v13206_v1  ;;  %v12736_v14 = vld [vmem:[%s15961_s1 + $0x60] sm:$0xff]  }
  0xde   : > { %11167 = vmatprep.subr.bf16.mxu1 %v13206_v1 }
  0xe0   : > { %10988 = vmatpush3.bf16.msra.mxu0 %v12690_v15  ;;  %v13965_v15 = vld [vmem:[%s13293_s12 + $0x18] sm:$0xf] }
  0xe1   : > { %11168 = vmatpush3.bf16.msra.mxu1 %v12691_v16  ;;  %10989 = vmatprep.subr.bf16.mxu0 %v13206_v1  ;;  %v12737_v16 = vld [vmem:[%s15961_s1 + $0x60] sm:$0xff]  }
  0xe2   : > { %11169 = vmatprep.subr.bf16.mxu1 %v13206_v1 }
  0xe4   : > { %10990 = vmatpush3.bf16.msra.mxu0 %v12692_v17  ;;  %v9155_v17 = vld [vmem:[%s13293_s12 + $0x1c] sm:$0x1] }
  0xe5   : > { %11170 = vmatpush3.bf16.msra.mxu1 %v12693_v18  ;;  %10995 = vmatprep.subr.bf16.mxu0 %v13206_v1  ;;  %v12738_v18 = vld [vmem:[%s15961_s1 + $0x68] sm:$0xff]  }
  0xe6   : > { %11175 = vmatprep.subr.bf16.mxu1 %v13206_v1 }
  0xe7   : > { %10992 = vmatmul.mubr.bf16.vlgmr.msra.gmra.mrb[0].mxu0 %v8657_v19  ;;  %v13977_v19 = vcombine.low %v13957_v12, %v8945_v13  ;;  %v12786_v13 = vld [vmem:[%s15961_s1 + $0xe0] sm:$0xff]  }
  0xe8   : > { %10996 = vmatpush3.bf16.msra.mxu0 %v12695_v20  ;;  %11172 = vmatmul.mubr.bf16.vlgmr.msra.gmra.mrb[0].mxu1 %v8868_v21  ;;  %v12739_v20 = vld [vmem:[%s15961_s1 + $0x68] sm:$0xff]   ;;  %v13983_v21 = vcombine.low %v13965_v15, %v9155_v17  ;;  %v12790_v17 = vld [vmem:[%s15961_s1 + $0xf0] sm:$0xff]  }
  0xe9   : > { %11176 = vmatpush3.bf16.msra.mxu1 %v12697_v22  ;;  %10997 = vmatprep.subr.bf16.mxu0 %v13206_v1  ;;  %v12740_v22 = vld [vmem:[%s15961_s1 + $0x70] sm:$0xff]   ;;  %v2359_v27 = vshrl.u32 %v13977_v19, 16 }
  0xea   : > { %11177 = vmatprep.subr.bf16.mxu1 %v13206_v1  ;;  %11011 = vmatprep.mubr.msk.bf16.mxu0 %vm13207_vm0, %v13206_v1  ;;  %v3363_v30 = vshrl.u32 %v13983_v21, 16 }
  0xeb   : > { %11191 = vmatprep.mubr.msk.bf16.mxu1 %vm13207_vm0, %v13206_v1 }
  0xec   : > { %10998 = vmatpush3.bf16.msra.mxu0 %v12698_v23  ;;  %v2361_v23 = vshll.u32 %v13977_v19, 16 }
  0xed   : > { %11178 = vmatpush3.bf16.msra.mxu1 %v12699_v24  ;;  %10999 = vmatprep.subr.bf16.mxu0 %v13206_v1  ;;  %v12741_v24 = vld [vmem:[%s15961_s1 + $0x70] sm:$0xff]  }
  0xee   : > { %11179 = vmatprep.subr.bf16.mxu1 %v13206_v1 }
  0xf0   : > { %11000 = vmatpush3.bf16.msra.mxu0 %v12700_v25  ;;  %v3365_v25 = vshll.u32 %v13983_v21, 16 }
  0xf1   : > { %11180 = vmatpush3.bf16.msra.mxu1 %v12701_v26  ;;  %11001 = vmatprep.subr.bf16.mxu0 %v13206_v1  ;;  %v12742_v26 = vld [vmem:[%s15961_s1 + $0x78] sm:$0xff]  }
  0xf2   : > { %11181 = vmatprep.subr.bf16.mxu1 %v13206_v1 }
  0xf4   : > { %11002 = vmatpush3.bf16.msra.mxu0 %v12702_v28  ;;  %v2363_v28 = vrot.slane %v2361_v23, 1  ;;  %v12797_v23 = vld [vmem:[%s15961_s1 + $0x100] sm:$0xff]  }
  0xf5   : > { %11182 = vmatpush3.bf16.msra.mxu1 %v12703_v29  ;;  %11003 = vmatprep.subr.bf16.mxu0 %v13206_v1  ;;  %v12743_v29 = vld [vmem:[%s15961_s1 + $0x78] sm:$0xff]  }
  0xf6   : > { %11183 = vmatprep.subr.bf16.mxu1 %v13206_v1  ;;  %v2364_v32 = vor.u32 %v2363_v28, %v2359_v27  ;;  %v12800_v27 = vld [vmem:[%s15961_s1 + $0x110] sm:$0xff]  }
  0xf7   : > { %v12801_v28 = vld [vmem:[%s15961_s1 + $0x110] sm:$0xff]  }
  0xf8   : > { %11004 = vmatpush3.bf16.msra.mxu0 %v12704_v31  ;;  %v3367_v31 = vrot.slane %v3365_v25, 1  ;;  %v12798_v25 = vld [vmem:[%s15961_s1 + $0x108] sm:$0xff]  }
  0xf9   : > { %11184 = vmatpush3.bf16.msra.mxu1 %v12705_v33  ;;  %11005 = vmatprep.subr.bf16.mxu0 %v13206_v1  ;;  %v12745_v33 = vld [vmem:[%s15961_s1] sm:$0xff]  }
  0xfa   : > { %11185 = vmatprep.subr.bf16.mxu1 %v13206_v1  ;;  %v3368_v34 = vor.u32 %v3367_v31, %v3363_v30  ;;  %v12803_v30 = vld [vmem:[%s15961_s1 + $0x118] sm:$0xff]  }
  0xfb   : > { %v9004_v31 = vld [vmem:[%s13293_s12 + $0x1c] sm:$0x1] }
  0xfc   : > { %11006 = vmatpush3.bf16.msra.mxu0 %v12706_v35  ;;  %v12747_v35 = vld [vmem:[%s15961_s1] sm:$0xff]  }
  0xfd   : > { %11186 = vmatpush3.bf16.msra.mxu1 %v12707_v38  ;;  %11007 = vmatprep.subr.bf16.mxu0 %v13206_v1  ;;  %v12750_v38 = vld [vmem:[%s15961_s1 + $0x10] sm:$0xff]  }
  0xfe   : > { %11187 = vmatprep.subr.bf16.mxu1 %v13206_v1 }
 0x100   : > { %11008 = vmatpush3.bf16.msra.mxu0 %v12708_v40  ;;  %v12752_v40 = vld [vmem:[%s15961_s1 + $0x18] sm:$0xff]  }
 0x101   : > { %11188 = vmatpush3.bf16.msra.mxu1 %v12709_v42  ;;  %11009 = vmatprep.subr.bf16.mxu0 %v13206_v1  ;;  %v12754_v42 = vld [vmem:[%s15961_s1 + $0x20] sm:$0xff]  }
 0x102   : > { %11189 = vmatprep.subr.bf16.mxu1 %v13206_v1 }
 0x104   : > { %11010 = vmatpush3.bf16.msra.mxu0 %v12710_v43  ;;  %v12755_v43 = vld [vmem:[%s15961_s1 + $0x20] sm:$0xff]  }
 0x105   : > { %11190 = vmatpush3.bf16.msra.mxu1 %v12711_v45  ;;  %11015 = vmatprep.subr.bf16.mxu0 %v13206_v1  ;;  %v12757_v45 = vld [vmem:[%s15961_s1 + $0x28] sm:$0xff]  }
 0x106   : > { %11195 = vmatprep.subr.bf16.mxu1 %v13206_v1 }
 0x107   : > { %11012 = vmatmul.mubr.bf16.vlgmr.msra.gmra.mrb[0].mxu0 %v1099_v48  ;;  %v12760_v48 = vld [vmem:[%s15961_s1 + $0x38] sm:$0xff]  }
 0x108   : > { %11016 = vmatpush3.bf16.msra.mxu0 %v12712_v47  ;;  %11192 = vmatmul.mubr.bf16.vlgmr.msra.gmra.mrb[0].mxu1 %v2115_v50  ;;  %v12759_v47 = vld [vmem:[%s15961_s1 + $0x30] sm:$0xff]   ;;  %v12762_v50 = vld [vmem:[%s15961_s1 + $0x80] sm:$0xff]  }
 0x109   : > { %11196 = vmatpush3.bf16.msra.mxu1 %v12713_v49  ;;  %11017 = vmatprep.subr.bf16.mxu0 %v13206_v1  ;;  %v12761_v49 = vld [vmem:[%s15961_s1 + $0x38] sm:$0xff]  }
 0x10a   : > { %11197 = vmatprep.subr.bf16.mxu1 %v13206_v1  ;;  %11031 = vmatprep.mubr.msk.bf16.mxu0 %vm13207_vm0, %v13206_v1 }
 0x10b   : > { %11211 = vmatprep.mubr.msk.bf16.mxu1 %vm13207_vm0, %v13206_v1 }
 0x10c   : > { %11018 = vmatpush3.bf16.msra.mxu0 %v12714_v51  ;;  %v12763_v51 = vld [vmem:[%s15961_s1 + $0x80] sm:$0xff]  }
 0x10d   : > { %11198 = vmatpush3.bf16.msra.mxu1 %v12715_v52  ;;  %11019 = vmatprep.subr.bf16.mxu0 %v13206_v1  ;;  %v12764_v52 = vld [vmem:[%s15961_s1 + $0x88] sm:$0xff]  }
 0x10e   : > { %11199 = vmatprep.subr.bf16.mxu1 %v13206_v1 }
 0x110   : > { %11020 = vmatpush3.bf16.msra.mxu0 %v12716_v53  ;;  %v12765_v53 = vld [vmem:[%s15961_s1 + $0x88] sm:$0xff]  }
 0x111   : > { %11200 = vmatpush3.bf16.msra.mxu1 %v12717_v54  ;;  %11021 = vmatprep.subr.bf16.mxu0 %v13206_v1  ;;  %v12766_v54 = vld [vmem:[%s15961_s1 + $0x90] sm:$0xff]  }
 0x112   : > { %11201 = vmatprep.subr.bf16.mxu1 %v13206_v1 }
 0x114   : > { %11022 = vmatpush3.bf16.msra.mxu0 %v12718_v55  ;;  %v12767_v55 = vld [vmem:[%s15961_s1 + $0x90] sm:$0xff]  }
 0x115   : > { %11202 = vmatpush3.bf16.msra.mxu1 %v12719_v56  ;;  %11023 = vmatprep.subr.bf16.mxu0 %v13206_v1  ;;  %v12768_v56 = vld [vmem:[%s15961_s1 + $0x98] sm:$0xff]  }
 0x116   : > { %11203 = vmatprep.subr.bf16.mxu1 %v13206_v1 }
 0x118   : > { %11024 = vmatpush3.bf16.msra.mxu0 %v12720_v57  ;;  %v12769_v57 = vld [vmem:[%s15961_s1 + $0x98] sm:$0xff]  }
 0x119   : > { %11204 = vmatpush3.bf16.msra.mxu1 %v12721_v58  ;;  %11025 = vmatprep.subr.bf16.mxu0 %v13206_v1  ;;  %v12770_v58 = vld [vmem:[%s15961_s1 + $0xa0] sm:$0xff]  }
 0x11a   : > { %11205 = vmatprep.subr.bf16.mxu1 %v13206_v1 }
 0x11c   : > { %11026 = vmatpush3.bf16.msra.mxu0 %v12722_v59  ;;  %v12771_v59 = vld [vmem:[%s15961_s1 + $0xa0] sm:$0xff]  }
 0x11d   : > { %11206 = vmatpush3.bf16.msra.mxu1 %v12723_v60  ;;  %11027 = vmatprep.subr.bf16.mxu0 %v13206_v1  ;;  %v12772_v60 = vld [vmem:[%s15961_s1 + $0xa8] sm:$0xff]  }
 0x11e   : > { %11207 = vmatprep.subr.bf16.mxu1 %v13206_v1 }
 0x120   : > { %11028 = vmatpush3.bf16.msra.mxu0 %v12724_v61  ;;  %v12773_v61 = vld [vmem:[%s15961_s1 + $0xa8] sm:$0xff]  }
 0x121   : > { %11208 = vmatpush3.bf16.msra.mxu1 %v12725_v62  ;;  %11029 = vmatprep.subr.bf16.mxu0 %v13206_v1  ;;  %v12774_v62 = vld [vmem:[%s15961_s1 + $0xb0] sm:$0xff]  }
 0x122   : > { %11209 = vmatprep.subr.bf16.mxu1 %v13206_v1 }
 0x124   : > { %11030 = vmatpush3.bf16.msra.mxu0 %v12726_v63  ;;  %v12775_v63 = vld [vmem:[%s15961_s1 + $0xb0] sm:$0xff]  }
 0x125   : > { %11210 = vmatpush3.bf16.msra.mxu1 %v12727_v0  ;;  %11215 = vmatprep.subr.bf16.mxu0 %v13206_v1  ;;  %v12776_v0 = vld [vmem:[%s15961_s1 + $0xb8] sm:$0xff]  }
 0x126   : > { %11395 = vmatprep.subr.bf16.mxu1 %v13206_v1 }
 0x127   : > { %11032 = vmatmul.mubr.bf16.vlgmr.msra.gmra.mrb[0].mxu0 %v1207_v2  ;;  %v12777_v2 = vld [vmem:[%s15961_s1 + $0xb8] sm:$0xff]  }
 0x128   : > { %11212 = vmatmul.mubr.bf16.vlgmr.msra.gmra.mrb[0].mxu1 %v2222_v4  ;;  %11216 = vmatpush3.bf16.msra.mxu0 %v12728_v3  ;;  %v2558_v3 = vrot.slane %v13977_v19, 1  ;;  %v12778_v4 = vld [vmem:[%s15961_s1 + $0xc0] sm:$0xff]   ;;  %v12792_v19 = vld [vmem:[%s15961_s1 + $0xf8] sm:$0xff]  }
 0x129   : > { %11396 = vmatpush3.bf16.msra.mxu1 %v12729_v5  ;;  %11217 = vmatprep.subr.bf16.mxu0 %v13206_v1  ;;  %v3562_v5 = vrot.slane %v13983_v21, 1  ;;  %v9003_v21 = vld [vmem:[%s13293_s12 + $0x18] sm:$0xf] }
 0x12a   : > { %11397 = vmatprep.subr.bf16.mxu1 %v13206_v1  ;;  %11231 = vmatprep.mubr.msk.bf16.mxu0 %vm13207_vm0, %v13206_v1 }
 0x12b   : > { %11411 = vmatprep.mubr.msk.bf16.mxu1 %vm13207_vm0, %v13206_v1 }
 0x12c   : > { %11218 = vmatpush3.bf16.msra.mxu0 %v12730_v6  ;;  %v12779_v6 = vld [vmem:[%s15961_s1 + $0xc0] sm:$0xff]  }
 0x12d   : > { %11398 = vmatpush3.bf16.msra.mxu1 %v12731_v7  ;;  %11219 = vmatprep.subr.bf16.mxu0 %v13206_v1  ;;  %v12780_v7 = vld [vmem:[%s15961_s1 + $0xc8] sm:$0xff]  }
 0x12e   : > { %11399 = vmatprep.subr.bf16.mxu1 %v13206_v1 }
 0x130   : > { %11220 = vmatpush3.bf16.msra.mxu0 %v12732_v8  ;;  %v12781_v8 = vld [vmem:[%s15961_s1 + $0xc8] sm:$0xff]  }
 0x131   : > { %11400 = vmatpush3.bf16.msra.mxu1 %v12733_v9  ;;  %11221 = vmatprep.subr.bf16.mxu0 %v13206_v1  ;;  %v12782_v9 = vld [vmem:[%s15961_s1 + $0xd0] sm:$0xff]  }
 0x132   : > { %11401 = vmatprep.subr.bf16.mxu1 %v13206_v1 }
 0x134   : > { %11222 = vmatpush3.bf16.msra.mxu0 %v12734_v10  ;;  %v12783_v10 = vld [vmem:[%s15961_s1 + $0xd0] sm:$0xff]  }
 0x135   : > { %11402 = vmatpush3.bf16.msra.mxu1 %v12735_v11  ;;  %11223 = vmatprep.subr.bf16.mxu0 %v13206_v1  ;;  %v12784_v11 = vld [vmem:[%s15961_s1 + $0xd8] sm:$0xff]  }
 0x136   : > { %11403 = vmatprep.subr.bf16.mxu1 %v13206_v1 }
 0x138   : > { %11224 = vmatpush3.bf16.msra.mxu0 %v12736_v14  ;;  %v12787_v14 = vld [vmem:[%s15961_s1 + $0xe0] sm:$0xff]  }
 0x139   : > { %11404 = vmatpush3.bf16.msra.mxu1 %v12737_v16  ;;  %11225 = vmatprep.subr.bf16.mxu0 %v13206_v1  ;;  %v12789_v16 = vld [vmem:[%s15961_s1 + $0xe8] sm:$0xff]  }
 0x13a   : > { %11405 = vmatprep.subr.bf16.mxu1 %v13206_v1 }
 0x13c   : > { %11226 = vmatpush3.bf16.msra.mxu0 %v12738_v18  ;;  %v12791_v18 = vld [vmem:[%s15961_s1 + $0xf0] sm:$0xff]  }
 0x13d   : > { %11406 = vmatpush3.bf16.msra.mxu1 %v12739_v20  ;;  %11227 = vmatprep.subr.bf16.mxu0 %v13206_v1  ;;  %v12793_v20 = vld [vmem:[%s15961_s1 + $0xf8] sm:$0xff]  }
 0x13e   : > { %11407 = vmatprep.subr.bf16.mxu1 %v13206_v1 }
 0x140   : > { %11228 = vmatpush3.bf16.msra.mxu0 %v12740_v22  ;;  %v12795_v22 = vld [vmem:[%s15961_s1 + $0x100] sm:$0xff]  }
 0x141   : > { %11408 = vmatpush3.bf16.msra.mxu1 %v12741_v24  ;;  %11229 = vmatprep.subr.bf16.mxu0 %v13206_v1  ;;  %v9213_v24 = vld [vmem:[%s13293_s12 + $0x20] sm:$0xf] }
 0x142   : > { %11409 = vmatprep.subr.bf16.mxu1 %v13206_v1 }
 0x144   : > { %11230 = vmatpush3.bf16.msra.mxu0 %v12742_v26  ;;  %v12799_v26 = vld [vmem:[%s15961_s1 + $0x108] sm:$0xff]  }
 0x145   : > { %11410 = vmatpush3.bf16.msra.mxu1 %v12743_v29  ;;  %11235 = vmatprep.subr.bf16.mxu0 %v13206_v1  ;;  %v12802_v29 = vld [vmem:[%s15961_s1 + $0x118] sm:$0xff]  }
 0x146   : > { %11415 = vmatprep.subr.bf16.mxu1 %v13206_v1 }
 0x147   : > { %11232 = vmatmul.mubr.bf16.vlgmr.msra.gmra.mrb[4].mxu0 %v2364_v32  ;;  %v9214_v32 = vld [vmem:[%s13293_s12 + $0x24] sm:$0x1] }
 0x148   : > { %11236 = vmatpush3.bf16.msra.mxu0 %v12745_v33  ;;  %11412 = vmatmul.mubr.bf16.vlgmr.msra.gmra.mrb[4].mxu1 %v3368_v34  ;;  %v12804_v33 = vld [vmem:[%s15961_s1 + $0x120] sm:$0xff]  }
 0x149   : > { %11416 = vmatpush3.bf16.msra.mxu1 %v12747_v35  ;;  %11237 = vmatprep.subr.bf16.mxu0 %v13206_v1  ;;  %v12805_v34 = vld [vmem:[%s15961_s1 + $0x120] sm:$0xff]   ;;  %v14261_v35 = vcombine.low %v9003_v21, %v9004_v31 }
 0x14a   : > { %11417 = vmatprep.subr.bf16.mxu1 %v13206_v1  ;;  %11251 = vmatprep.mubr.msk.bf16.mxu0 %vm13207_vm0, %v13206_v1 }
 0x14b   : > { %11431 = vmatprep.mubr.msk.bf16.mxu1 %vm13207_vm0, %v13206_v1 }
 0x14c   : > { %11238 = vmatpush3.bf16.msra.mxu0 %v12748_v36  ;;  %v12806_v36 = vld [vmem:[%s15961_s1 + $0x128] sm:$0xff]  }
 0x14d   : > { %11418 = vmatpush3.bf16.msra.mxu1 %v12749_v37  ;;  %11239 = vmatprep.subr.bf16.mxu0 %v13206_v1  ;;  %v2778_v37 = vshrl.u32 %v14261_v35, 16 }
 0x14e   : > { %11419 = vmatprep.subr.bf16.mxu1 %v13206_v1 }
 0x150   : > { %11240 = vmatpush3.bf16.msra.mxu0 %v12750_v38  ;;  %v14269_v38 = vcombine.low %v9213_v24, %v9214_v32 }
 0x151   : > { %11420 = vmatpush3.bf16.msra.mxu1 %v12751_v39  ;;  %11241 = vmatprep.subr.bf16.mxu0 %v13206_v1  ;;  %v12807_v39 = vld [vmem:[%s15961_s1 + $0x128] sm:$0xff]  }
 0x152   : > { %11421 = vmatprep.subr.bf16.mxu1 %v13206_v1 }
 0x154   : > { %11242 = vmatpush3.bf16.msra.mxu0 %v12752_v40  ;;  %v2780_v40 = vshll.u32 %v14261_v35, 16 }
 0x155   : > { %11422 = vmatpush3.bf16.msra.mxu1 %v12753_v41  ;;  %11243 = vmatprep.subr.bf16.mxu0 %v13206_v1  ;;  %v12808_v41 = vld [vmem:[%s15961_s1 + $0x130] sm:$0xff]  }
 0x156   : > { %11423 = vmatprep.subr.bf16.mxu1 %v13206_v1 }
 0x158   : > { %11244 = vmatpush3.bf16.msra.mxu0 %v12754_v42  ;;  %v3784_v42 = vshll.u32 %v14269_v38, 16 }
 0x159   : > { %11424 = vmatpush3.bf16.msra.mxu1 %v12755_v43  ;;  %11245 = vmatprep.subr.bf16.mxu0 %v13206_v1  ;;  %v12809_v43 = vld [vmem:[%s15961_s1 + $0x130] sm:$0xff]  }
 0x15a   : > { %11425 = vmatprep.subr.bf16.mxu1 %v13206_v1 }
 0x15c   : > { %11246 = vmatpush3.bf16.msra.mxu0 %v12756_v44  ;;  %v3782_v44 = vshrl.u32 %v14269_v38, 16 }
 0x15d   : > { %11426 = vmatpush3.bf16.msra.mxu1 %v12757_v45  ;;  %11247 = vmatprep.subr.bf16.mxu0 %v13206_v1  ;;  %v12810_v45 = vld [vmem:[%s15961_s1 + $0x138] sm:$0xff]  }
 0x15e   : > { %11427 = vmatprep.subr.bf16.mxu1 %v13206_v1 }
 0x160   : > { %11248 = vmatpush3.bf16.msra.mxu0 %v12758_v46  ;;  %v12811_v46 = vld [vmem:[%s15961_s1 + $0x138] sm:$0xff]  }
 0x161   : > { %11428 = vmatpush3.bf16.msra.mxu1 %v12759_v47  ;;  %11249 = vmatprep.subr.bf16.mxu0 %v13206_v1  ;;  %v2782_v47 = vrot.slane %v2780_v40, 1  ;;  %v9078_v40 = vld [vmem:[%s13293_s12 + $0x20] sm:$0xf] }
 0x162   : > { %11429 = vmatprep.subr.bf16.mxu1 %v13206_v1 }
 0x164   : > { %11250 = vmatpush3.bf16.msra.mxu0 %v12760_v48  ;;  %v3786_v48 = vrot.slane %v3784_v42, 1  ;;  %v9288_v42 = vld [vmem:[%s13293_s12 + $0x28] sm:$0xf] }
 0x165   : > { %11430 = vmatpush3.bf16.msra.mxu1 %v12761_v49  ;;  %11255 = vmatprep.subr.bf16.mxu0 %v13206_v1  ;;  %v2783_v49 = vor.u32 %v2782_v47, %v2778_v37  ;;  %v12843_v37 = vld [vmem:[%s15961_s1 + $0x1b8] sm:$0xff]   ;;  %v12851_v47 = vld [vmem:[%s15961_s1 + $0x1d0] sm:$0xff]  }
 0x166   : > { %11435 = vmatprep.subr.bf16.mxu1 %v13206_v1 }
 0x167   : > { %11252 = vmatmul.mubr.bf16.vlgmr.msra.gmra.mrb[4].mxu0 %v13957_v12  ;;  %v12785_v12 = vld [vmem:[%s15961_s1 + $0xd8] sm:$0xff]  }
 0x168   : > { %11256 = vmatpush3.bf16.msra.mxu0 %v12762_v50  ;;  %11432 = vmatmul.mubr.bf16.vlgmr.msra.gmra.mrb[4].mxu1 %v13965_v15  ;;  %v12788_v15 = vld [vmem:[%s15961_s1 + $0xe8] sm:$0xff]   ;;  %v12812_v50 = vld [vmem:[%s15961_s1 + $0x140] sm:$0xff]  }
 0x169   : > { %11436 = vmatpush3.bf16.msra.mxu1 %v12763_v51  ;;  %11257 = vmatprep.subr.bf16.mxu0 %v13206_v1  ;;  %v3787_v51 = vor.u32 %v3786_v48, %v3782_v44  ;;  %v12848_v44 = vld [vmem:[%s15961_s1 + $0x1c8] sm:$0xff]   ;;  %v12852_v48 = vld [vmem:[%s15961_s1 + $0x1d8] sm:$0xff]  }
 0x16a   : > { %11437 = vmatprep.subr.bf16.mxu1 %v13206_v1  ;;  %11271 = vmatprep.mubr.msk.bf16.mxu0 %vm13207_vm0, %v13206_v1 }
 0x16b   : > { %11451 = vmatprep.mubr.msk.bf16.mxu1 %vm13207_vm0, %v13206_v1 }
 0x16c   : > { %11258 = vmatpush3.bf16.msra.mxu0 %v12764_v52  ;;  %v12813_v52 = vld [vmem:[%s15961_s1 + $0x140] sm:$0xff]  }
 0x16d   : > { %11438 = vmatpush3.bf16.msra.mxu1 %v12765_v53  ;;  %11259 = vmatprep.subr.bf16.mxu0 %v13206_v1  ;;  %v12814_v53 = vld [vmem:[%s15961_s1 + $0x148] sm:$0xff]  }
 0x16e   : > { %11439 = vmatprep.subr.bf16.mxu1 %v13206_v1 }
 0x170   : > { %11260 = vmatpush3.bf16.msra.mxu0 %v12766_v54  ;;  %v12815_v54 = vld [vmem:[%s15961_s1 + $0x148] sm:$0xff]  }
 0x171   : > { %11440 = vmatpush3.bf16.msra.mxu1 %v12767_v55  ;;  %11261 = vmatprep.subr.bf16.mxu0 %v13206_v1  ;;  %v12816_v55 = vld [vmem:[%s15961_s1 + $0x150] sm:$0xff]  }
 0x172   : > { %11441 = vmatprep.subr.bf16.mxu1 %v13206_v1 }
 0x174   : > { %11262 = vmatpush3.bf16.msra.mxu0 %v12768_v56  ;;  %v12817_v56 = vld [vmem:[%s15961_s1 + $0x150] sm:$0xff]  }
 0x175   : > { %11442 = vmatpush3.bf16.msra.mxu1 %v12769_v57  ;;  %11263 = vmatprep.subr.bf16.mxu0 %v13206_v1  ;;  %v12818_v57 = vld [vmem:[%s15961_s1 + $0x158] sm:$0xff]  }
 0x176   : > { %11443 = vmatprep.subr.bf16.mxu1 %v13206_v1 }
 0x178   : > { %11264 = vmatpush3.bf16.msra.mxu0 %v12770_v58  ;;  %v12819_v58 = vld [vmem:[%s15961_s1 + $0x158] sm:$0xff]  }
 0x179   : > { %11444 = vmatpush3.bf16.msra.mxu1 %v12771_v59  ;;  %11265 = vmatprep.subr.bf16.mxu0 %v13206_v1  ;;  %v12820_v59 = vld [vmem:[%s15961_s1 + $0x160] sm:$0xff]  }
 0x17a   : > { %11445 = vmatprep.subr.bf16.mxu1 %v13206_v1 }
 0x17c   : > { %11266 = vmatpush3.bf16.msra.mxu0 %v12772_v60  ;;  %v12821_v60 = vld [vmem:[%s15961_s1 + $0x160] sm:$0xff]  }
 0x17d   : > { %11446 = vmatpush3.bf16.msra.mxu1 %v12773_v61  ;;  %11267 = vmatprep.subr.bf16.mxu0 %v13206_v1  ;;  %v12822_v61 = vld [vmem:[%s15961_s1 + $0x168] sm:$0xff]  }
 0x17e   : > { %11447 = vmatprep.subr.bf16.mxu1 %v13206_v1 }
 0x180   : > { %11268 = vmatpush3.bf16.msra.mxu0 %v12774_v62  ;;  %v12823_v62 = vld [vmem:[%s15961_s1 + $0x168] sm:$0xff]  }
 0x181   : > { %11448 = vmatpush3.bf16.msra.mxu1 %v12775_v63  ;;  %11269 = vmatprep.subr.bf16.mxu0 %v13206_v1  ;;  %v12824_v63 = vld [vmem:[%s15961_s1 + $0x170] sm:$0xff]  }
 0x182   : > { %11449 = vmatprep.subr.bf16.mxu1 %v13206_v1 }
 0x184   : > { %11270 = vmatpush3.bf16.msra.mxu0 %v12776_v0  ;;  %v12825_v0 = vld [vmem:[%s15961_s1 + $0x170] sm:$0xff]  }
 0x185   : > { %11450 = vmatpush3.bf16.msra.mxu1 %v12777_v2  ;;  %11275 = vmatprep.subr.bf16.mxu0 %v13206_v1  ;;  %v12826_v2 = vld [vmem:[%s15961_s1 + $0x178] sm:$0xff]  }
 0x186   : > { %11455 = vmatprep.subr.bf16.mxu1 %v13206_v1 }
 0x187   : > { %11272 = vmatmul.mubr.bf16.vlgmr.msra.gmra.mrb[4].mxu0 %v2558_v3  ;;  %v12827_v3 = vld [vmem:[%s15961_s1 + $0x178] sm:$0xff]  }
 0x188   : > { %11276 = vmatpush3.bf16.msra.mxu0 %v12778_v4  ;;  %11452 = vmatmul.mubr.bf16.vlgmr.msra.gmra.mrb[4].mxu1 %v3562_v5  ;;  %v2890_v4 = vrot.slane %v14261_v35, 1  ;;  %v12828_v5 = vld [vmem:[%s15961_s1 + $0x180] sm:$0xff]   ;;  %v12842_v35 = vld [vmem:[%s15961_s1 + $0x1b8] sm:$0xff]  }
 0x189   : > { %11456 = vmatpush3.bf16.msra.mxu1 %v12779_v6  ;;  %11277 = vmatprep.subr.bf16.mxu0 %v13206_v1  ;;  %v3894_v6 = vrot.slane %v14269_v38, 1 }
 0x18a   : > { %11457 = vmatprep.subr.bf16.mxu1 %v13206_v1  ;;  %11291 = vmatprep.mubr.msk.bf16.mxu0 %vm13207_vm0, %v13206_v1 }
 0x18b   : > { %11471 = vmatprep.mubr.msk.bf16.mxu1 %vm13207_vm0, %v13206_v1 }
 0x18c   : > { %11278 = vmatpush3.bf16.msra.mxu0 %v12780_v7  ;;  %v12829_v7 = vld [vmem:[%s15961_s1 + $0x180] sm:$0xff]  }
 0x18d   : > { %11458 = vmatpush3.bf16.msra.mxu1 %v12781_v8  ;;  %11279 = vmatprep.subr.bf16.mxu0 %v13206_v1  ;;  %v12830_v8 = vld [vmem:[%s15961_s1 + $0x188] sm:$0xff]  }
 0x18e   : > { %11459 = vmatprep.subr.bf16.mxu1 %v13206_v1 }
 0x190   : > { %11280 = vmatpush3.bf16.msra.mxu0 %v12782_v9  ;;  %v12831_v9 = vld [vmem:[%s15961_s1 + $0x188] sm:$0xff]  }
 0x191   : > { %11460 = vmatpush3.bf16.msra.mxu1 %v12783_v10  ;;  %11281 = vmatprep.subr.bf16.mxu0 %v13206_v1  ;;  %v12832_v10 = vld [vmem:[%s15961_s1 + $0x190] sm:$0xff]  }
 0x192   : > { %11461 = vmatprep.subr.bf16.mxu1 %v13206_v1 }
 0x194   : > { %11282 = vmatpush3.bf16.msra.mxu0 %v12784_v11  ;;  %v12833_v11 = vld [vmem:[%s15961_s1 + $0x190] sm:$0xff]  }
 0x195   : > { %11462 = vmatpush3.bf16.msra.mxu1 %v12785_v12  ;;  %11283 = vmatprep.subr.bf16.mxu0 %v13206_v1  ;;  %v12834_v12 = vld [vmem:[%s15961_s1 + $0x198] sm:$0xff]  }
 0x196   : > { %11463 = vmatprep.subr.bf16.mxu1 %v13206_v1 }
 0x198   : > { %11284 = vmatpush3.bf16.msra.mxu0 %v12786_v13  ;;  %v12835_v13 = vld [vmem:[%s15961_s1 + $0x198] sm:$0xff]  }
 0x199   : > { %11464 = vmatpush3.bf16.msra.mxu1 %v12787_v14  ;;  %11285 = vmatprep.subr.bf16.mxu0 %v13206_v1  ;;  %v12836_v14 = vld [vmem:[%s15961_s1 + $0x1a0] sm:$0xff]  }
 0x19a   : > { %11465 = vmatprep.subr.bf16.mxu1 %v13206_v1 }
 0x19c   : > { %11286 = vmatpush3.bf16.msra.mxu0 %v12788_v15  ;;  %v12837_v15 = vld [vmem:[%s15961_s1 + $0x1a0] sm:$0xff]  }
 0x19d   : > { %11466 = vmatpush3.bf16.msra.mxu1 %v12789_v16  ;;  %11287 = vmatprep.subr.bf16.mxu0 %v13206_v1  ;;  %v8732_v16 = vld [vmem:[%s15962_s2] ss:$0 sm:$0xff] }
 0x19e   : > { %11467 = vmatprep.subr.bf16.mxu1 %v13206_v1 }
 0x1a0   : > { %11288 = vmatpush3.bf16.msra.mxu0 %v12790_v17  ;;  %v12838_v17 = vld [vmem:[%s15961_s1 + $0x1a8] sm:$0xff]  }
 0x1a1   : > { %11468 = vmatpush3.bf16.msra.mxu1 %v12791_v18  ;;  %11289 = vmatprep.subr.bf16.mxu0 %v13206_v1  ;;  %v12839_v18 = vld [vmem:[%s15961_s1 + $0x1a8] sm:$0xff]  }
 0x1a2   : > { %11469 = vmatprep.subr.bf16.mxu1 %v13206_v1 }
 0x1a4   : > { %11290 = vmatpush3.bf16.msra.mxu0 %v12792_v19  ;;  %v8733_v19 = vld [vmem:[%s15963_s3] ss:$0 sm:$0xff] }
 0x1a5   : > { %11470 = vmatpush3.bf16.msra.mxu1 %v12793_v20  ;;  %11295 = vmatprep.subr.bf16.mxu0 %v13206_v1 }
 0x1a6   : > { %11475 = vmatprep.subr.bf16.mxu1 %v13206_v1 }
 0x1a7   : > { %11292 = vmatmul.mubr.bf16.vlgmr.msra.gmra.mrb[4].mxu0 %v9003_v21 }
 0x1a8   : > { %11296 = vmatpush3.bf16.msra.mxu0 %v12795_v22  ;;  %11472 = vmatmul.mubr.bf16.vlgmr.msra.gmra.mrb[4].mxu1 %v9213_v24  ;;  %v12840_v24 = vld [vmem:[%s15961_s1 + $0x1b0] sm:$0xff]  }
 0x1a9   : > { %11476 = vmatpush3.bf16.msra.mxu1 %v12797_v23  ;;  %11297 = vmatprep.subr.bf16.mxu0 %v13206_v1 }
 0x1aa   : > { %11477 = vmatprep.subr.bf16.mxu1 %v13206_v1  ;;  %11311 = vmatprep.mubr.msk.bf16.mxu0 %vm13207_vm0, %v13206_v1 }
 0x1ab   : > { %11491 = vmatprep.mubr.msk.bf16.mxu1 %vm13207_vm0, %v13206_v1 }
 0x1ac   : > { %11298 = vmatpush3.bf16.msra.mxu0 %v12798_v25  ;;  %v12841_v25 = vld [vmem:[%s15961_s1 + $0x1b0] sm:$0xff]  }
 0x1ad   : > { %11478 = vmatpush3.bf16.msra.mxu1 %v12799_v26  ;;  %11299 = vmatprep.subr.bf16.mxu0 %v13206_v1 }
 0x1ae   : > { %11479 = vmatprep.subr.bf16.mxu1 %v13206_v1 }
 0x1b0   : > { %11300 = vmatpush3.bf16.msra.mxu0 %v12800_v27 }
 0x1b1   : > { %11480 = vmatpush3.bf16.msra.mxu1 %v12801_v28  ;;  %11301 = vmatprep.subr.bf16.mxu0 %v13206_v1 }
 0x1b2   : > { %11481 = vmatprep.subr.bf16.mxu1 %v13206_v1 }
 0x1b4   : > { %11302 = vmatpush3.bf16.msra.mxu0 %v12802_v29 }
 0x1b5   : > { %11482 = vmatpush3.bf16.msra.mxu1 %v12803_v30  ;;  %11303 = vmatprep.subr.bf16.mxu0 %v13206_v1 }
 0x1b6   : > { %11483 = vmatprep.subr.bf16.mxu1 %v13206_v1 }
 0x1b8   : > { %11304 = vmatpush3.bf16.msra.mxu0 %v12804_v33 }
 0x1b9   : > { %11484 = vmatpush3.bf16.msra.mxu1 %v12805_v34  ;;  %11305 = vmatprep.subr.bf16.mxu0 %v13206_v1 }
 0x1ba   : > { %11485 = vmatprep.subr.bf16.mxu1 %v13206_v1 }
 0x1bc   : > { %11306 = vmatpush3.bf16.msra.mxu0 %v12806_v36 }
 0x1bd   : > { %11486 = vmatpush3.bf16.msra.mxu1 %v12807_v39  ;;  %11307 = vmatprep.subr.bf16.mxu0 %v13206_v1 }
 0x1be   : > { %11487 = vmatprep.subr.bf16.mxu1 %v13206_v1 }
 0x1c0   : > { %11308 = vmatpush3.bf16.msra.mxu0 %v12808_v41  ;;  %v12845_v41 = vld [vmem:[%s15961_s1 + $0x1c0] sm:$0xff]  }
 0x1c1   : > { %11488 = vmatpush3.bf16.msra.mxu1 %v12809_v43  ;;  %11309 = vmatprep.subr.bf16.mxu0 %v13206_v1  ;;  %v12847_v43 = vld [vmem:[%s15961_s1 + $0x1c0] sm:$0xff]  }
 0x1c2   : > { %11489 = vmatprep.subr.bf16.mxu1 %v13206_v1 }
 0x1c4   : > { %11310 = vmatpush3.bf16.msra.mxu0 %v12810_v45  ;;  %v12849_v45 = vld [vmem:[%s15961_s1 + $0x1c8] sm:$0xff]  }
 0x1c5   : > { %11490 = vmatpush3.bf16.msra.mxu1 %v12811_v46  ;;  %11315 = vmatprep.subr.bf16.mxu0 %v13206_v1  ;;  %v12850_v46 = vld [vmem:[%s15961_s1 + $0x1d0] sm:$0xff]  }
 0x1c6   : > { %11495 = vmatprep.subr.bf16.mxu1 %v13206_v1 }
 0x1c7   : > { %11312 = vmatmul.mubr.bf16.vlgmr.msra.gmra.mrb[4].mxu0 %v2783_v49  ;;  %v12853_v49 = vld [vmem:[%s15961_s1 + $0x1d8] sm:$0xff]  }
 0x1c8   : > { %11316 = vmatpush3.bf16.msra.mxu0 %v12812_v50  ;;  %11492 = vmatmul.mubr.bf16.vlgmr.msra.gmra.mrb[4].mxu1 %v3787_v51  ;;  %v9079_v50 = vld [vmem:[%s13293_s12 + $0x24] sm:$0x1] }
 0x1c9   : > { %11496 = vmatpush3.bf16.msra.mxu1 %v12813_v52  ;;  %11317 = vmatprep.subr.bf16.mxu0 %v13206_v1  ;;  %v12854_v51 = vld [vmem:[%s15961_s1 + $0x1e0] sm:$0xff]   ;;  %v9289_v52 = vld [vmem:[%s13293_s12 + $0x2c] sm:$0x1] }
 0x1ca   : > { %11497 = vmatprep.subr.bf16.mxu1 %v13206_v1  ;;  %11331 = vmatprep.mubr.msk.bf16.mxu0 %vm13207_vm0, %v13206_v1 }
 0x1cb   : > { %11511 = vmatprep.mubr.msk.bf16.mxu1 %vm13207_vm0, %v13206_v1 }
 0x1cc   : > { %11318 = vmatpush3.bf16.msra.mxu0 %v12814_v53  ;;  %v12855_v53 = vld [vmem:[%s15961_s1 + $0x1e0] sm:$0xff]  }
 0x1cd   : > { %11498 = vmatpush3.bf16.msra.mxu1 %v12815_v54  ;;  %11319 = vmatprep.subr.bf16.mxu0 %v13206_v1  ;;  %v14495_v54 = vcombine.low %v9078_v40, %v9079_v50 }
 0x1ce   : > { %11499 = vmatprep.subr.bf16.mxu1 %v13206_v1 }
 0x1d0   : > { %11320 = vmatpush3.bf16.msra.mxu0 %v12816_v55  ;;  %v14497_v55 = vcombine.low %v9288_v42, %v9289_v52  ;;  %v12893_v52 = vld [vmem:[%s15961_s1 + $0x78] sm:$0xff]  }
 0x1d1   : > { %11500 = vmatpush3.bf16.msra.mxu1 %v12817_v56  ;;  %11321 = vmatprep.subr.bf16.mxu0 %v13206_v1  ;;  %v12856_v56 = vld [vmem:[%s15961_s1 + $0x1e8] sm:$0xff]  }
 0x1d2   : > { %11501 = vmatprep.subr.bf16.mxu1 %v13206_v1 }
 0x1d4   : > { %11322 = vmatpush3.bf16.msra.mxu0 %v12818_v57  ;;  %v12857_v57 = vld [vmem:[%s15961_s1 + $0x1e8] sm:$0xff]  }
 0x1d5   : > { %11502 = vmatpush3.bf16.msra.mxu1 %v12819_v58  ;;  %11323 = vmatprep.subr.bf16.mxu0 %v13206_v1  ;;  %v3116_v58 = vshll.u32 %v14495_v54, 16 }
 0x1d6   : > { %11503 = vmatprep.subr.bf16.mxu1 %v13206_v1 }
 0x1d8   : > { %11324 = vmatpush3.bf16.msra.mxu0 %v12820_v59  ;;  %v4120_v59 = vshll.u32 %v14497_v55, 16 }
 0x1d9   : > { %11504 = vmatpush3.bf16.msra.mxu1 %v12821_v60  ;;  %11325 = vmatprep.subr.bf16.mxu0 %v13206_v1  ;;  %v12858_v60 = vld [vmem:[%s15961_s1 + $0x1f0] sm:$0xff]  }
 0x1da   : > { %11505 = vmatprep.subr.bf16.mxu1 %v13206_v1 }
 0x1dc   : > { %11326 = vmatpush3.bf16.msra.mxu0 %v12822_v61  ;;  %v12859_v61 = vld [vmem:[%s15961_s1 + $0x1f0] sm:$0xff]  }
 0x1dd   : > { %11506 = vmatpush3.bf16.msra.mxu1 %v12823_v62  ;;  %11327 = vmatprep.subr.bf16.mxu0 %v13206_v1  ;;  %v3114_v62 = vshrl.u32 %v14495_v54, 16 }
 0x1de   : > { %11507 = vmatprep.subr.bf16.mxu1 %v13206_v1 }
 0x1e0   : > { %11328 = vmatpush3.bf16.msra.mxu0 %v12824_v63  ;;  %v3118_v63 = vrot.slane %v3116_v58, 1  ;;  %v12899_v58 = vld [vmem:[%s15961_s1 + $0x8] sm:$0xff]  }
 0x1e1   : > { %11508 = vmatpush3.bf16.msra.mxu1 %v12825_v0  ;;  %11329 = vmatprep.subr.bf16.mxu0 %v13206_v1  ;;  %v4118_v0 = vshrl.u32 %v14497_v55, 16 }
 0x1e2   : > { %11509 = vmatprep.subr.bf16.mxu1 %v13206_v1 }
 0x1e4   : > { %11330 = vmatpush3.bf16.msra.mxu0 %v12826_v2  ;;  %v12860_v2 = vld [vmem:[%s15961_s1 + $0x1f8] sm:$0xff]  }
 0x1e5   : > { %11510 = vmatpush3.bf16.msra.mxu1 %v12827_v3  ;;  %11335 = vmatprep.subr.bf16.mxu0 %v13206_v1  ;;  %v4122_v3 = vrot.slane %v4120_v59, 1  ;;  %v12900_v59 = vld [vmem:[%s15961_s1 + $0x10] sm:$0xff]  }
 0x1e6   : > { %11515 = vmatprep.subr.bf16.mxu1 %v13206_v1 }
 0x1e7   : > { %11332 = vmatmul.mubr.bf16.vlgmr.msra.gmra.mrb[4].mxu0 %v2890_v4  ;;  %v12861_v4 = vld [vmem:[%s15961_s1 + $0x1f8] sm:$0xff]  }
 0x1e8   : > { %11336 = vmatpush3.bf16.msra.mxu0 %v12828_v5  ;;  %11512 = vmatmul.mubr.bf16.vlgmr.msra.gmra.mrb[4].mxu1 %v3894_v6  ;;  %v3119_v5 = vor.u32 %v3118_v63, %v3114_v62  ;;  %v12862_v6 = vld [vmem:[%s15961_s1 + $0x200] sm:$0xff]   ;;  %v12903_v62 = vld [vmem:[%s15961_s1 + $0x18] sm:$0xff]  }
 0x1e9   : > { %11516 = vmatpush3.bf16.msra.mxu1 %v12829_v7  ;;  %11337 = vmatprep.subr.bf16.mxu0 %v13206_v1  ;;  %v4123_v7 = vor.u32 %v4122_v3, %v4118_v0  ;;  %v12904_v63 = vld [vmem:[%s15961_s1 + $0x20] sm:$0xff]   ;;  %v12907_v3 = vld [vmem:[%s15961_s1 + $0x28] sm:$0xff]  }
 0x1ea   : > { %11517 = vmatprep.subr.bf16.mxu1 %v13206_v1  ;;  %11351 = vmatprep.mubr.msk.bf16.mxu0 %vm13207_vm0, %v13206_v1  ;;  %v12905_v0 = vld [vmem:[%s15961_s1 + $0x20] sm:$0xff]  }
 0x1eb   : > { %11531 = vmatprep.mubr.msk.bf16.mxu1 %vm13207_vm0, %v13206_v1 }
 0x1ec   : > { %11338 = vmatpush3.bf16.msra.mxu0 %v12830_v8  ;;  %v12863_v8 = vld [vmem:[%s15961_s1 + $0x200] sm:$0xff]  }
 0x1ed   : > { %11518 = vmatpush3.bf16.msra.mxu1 %v12831_v9  ;;  %11339 = vmatprep.subr.bf16.mxu0 %v13206_v1  ;;  %v12864_v9 = vld [vmem:[%s15961_s1 + $0x208] sm:$0xff]  }
 0x1ee   : > { %11519 = vmatprep.subr.bf16.mxu1 %v13206_v1 }
 0x1f0   : > { %11340 = vmatpush3.bf16.msra.mxu0 %v12832_v10  ;;  %v12865_v10 = vld [vmem:[%s15961_s1 + $0x208] sm:$0xff]  }
 0x1f1   : > { %11520 = vmatpush3.bf16.msra.mxu1 %v12833_v11  ;;  %11341 = vmatprep.subr.bf16.mxu0 %v13206_v1  ;;  %v12866_v11 = vld [vmem:[%s15961_s1 + $0x210] sm:$0xff]  }
 0x1f2   : > { %11521 = vmatprep.subr.bf16.mxu1 %v13206_v1 }
 0x1f4   : > { %11342 = vmatpush3.bf16.msra.mxu0 %v12834_v12  ;;  %v12867_v12 = vld [vmem:[%s15961_s1 + $0x210] sm:$0xff]  }
 0x1f5   : > { %11522 = vmatpush3.bf16.msra.mxu1 %v12835_v13  ;;  %11343 = vmatprep.subr.bf16.mxu0 %v13206_v1  ;;  %v12868_v13 = vld [vmem:[%s15961_s1 + $0x218] sm:$0xff]  }
 0x1f6   : > { %11523 = vmatprep.subr.bf16.mxu1 %v13206_v1 }
 0x1f8   : > { %11344 = vmatpush3.bf16.msra.mxu0 %v12836_v14  ;;  %v12869_v14 = vld [vmem:[%s15961_s1 + $0x218] sm:$0xff]  }
 0x1f9   : > { %11524 = vmatpush3.bf16.msra.mxu1 %v12837_v15  ;;  %11345 = vmatprep.subr.bf16.mxu0 %v13206_v1  ;;  %v12870_v15 = vld [vmem:[%s15961_s1 + $0x220] sm:$0xff]  }
 0x1fa   : > { %v1291_v20 = vpop.f32.mrb[0].mxu0  ;;  %11525 = vmatprep.subr.bf16.mxu1 %v13206_v1 }
 0x1fb   : > { %v1304_v21 = vmul.f32 %v8732_v16, %v1291_v20  ;;  %v2306_v22 = vpop.f32.mrb[0].mxu1  ;;  %v11033_v23 = vpop.f32.mrb[1].mxu0  ;;  %v12875_v20 = vld [vmem:[%s15961_s1 + $0x230] sm:$0xff]  }
 0x1fc   : > { %v2313_v26 = vmul.f32 %v8732_v16, %v2306_v22  ;;  %v11213_v27 = vpop.f32.mrb[1].mxu1  ;;  %v1294_v28 = vpop.f32.mrb[2].mxu0  ;;  %11346 = vmatpush3.bf16.msra.mxu0 %v12838_v17  ;;  %v12871_v16 = vld [vmem:[%s15961_s1 + $0x220] sm:$0xff]   ;;  %v12872_v17 = vld [vmem:[%s15961_s1 + $0x228] sm:$0xff]   ;;  %v12877_v22 = vld [vmem:[%s15961_s1 + $0x238] sm:$0xff]   ;;  %v3226_v23 = vrot.slane %v14495_v54, 1 }
 0x1fd   : > { %v1311_v29 = vadd.f32 %v8733_v19, %v1304_v21  ;;  %v2309_v30 = vpop.f32.mrb[2].mxu1  ;;  %11526 = vmatpush3.bf16.msra.mxu1 %v12839_v18  ;;  %v11034_v31 = vpop.f32.mrb[3].mxu0  ;;  %11347 = vmatprep.subr.bf16.mxu0 %v13206_v1  ;;  %v12873_v18 = vld [vmem:[%s15961_s1 + $0x228] sm:$0xff]   ;;  %v12876_v21 = vld [vmem:[%s15961_s1 + $0x238] sm:$0xff]   ;;  %v12895_v54 = vld [vmem:[%s15961_s1] sm:$0xff]  }
 0x1fe   : > { %v2314_v32 = vadd.f32 %v8733_v19, %v2313_v26  ;;  %v11214_v33 = vpop.f32.mrb[3].mxu1  ;;  %11527 = vmatprep.subr.bf16.mxu1 %v13206_v1  ;;  %v12874_v19 = vld [vmem:[%s15961_s1 + $0x230] sm:$0xff]   ;;  %v12879_v26 = vld [vmem:[%s15961_s1 + $0x40] sm:$0xff]   ;;  %v12880_v27 = vld [vmem:[%s15961_s1 + $0x48] sm:$0xff]  }
 0x1ff   : > { %v1312_v34 = vmax.f32 %v1311_v29, 0.0  ;;  %v12881_v28 = vld [vmem:[%s15961_s1 + $0x48] sm:$0xff]   ;;  %v12882_v29 = vld [vmem:[%s15961_s1 + $0x50] sm:$0xff]   ;;  %v12884_v31 = vld [vmem:[%s15961_s1 + $0x58] sm:$0xff]  }
 0x200   : > { %v2315_v36 = vmax.f32 %v2314_v32, 0.0  ;;  %11348 = vmatpush3.bf16.msra.mxu0 %v12840_v24  ;;  %v4230_v24 = vrot.slane %v14497_v55, 1  ;;  %v12883_v30 = vld [vmem:[%s15961_s1 + $0x50] sm:$0xff]   ;;  %v12885_v32 = vld [vmem:[%s15961_s1 + $0x58] sm:$0xff]   ;;  %v12886_v33 = vld [vmem:[%s15961_s1 + $0x60] sm:$0xff]  }
 0x201   : > { %v1313_v38 = vpack.c.bf16 %v1312_v34, %v1312_v34  ;;  %11528 = vmatpush3.bf16.msra.mxu1 %v12841_v25  ;;  %11349 = vmatprep.subr.bf16.mxu0 %v13206_v1  ;;  %v12878_v25 = vld [vmem:[%s15961_s1 + $0x40] sm:$0xff]  }
 0x202   : > { %v2316_v39 = vpack.c.bf16 %v2315_v36, %v2315_v36  ;;  %11529 = vmatprep.subr.bf16.mxu1 %v13206_v1  ;;  %v14637_v34 = vld [vmem:[%s13293_s12 + $0x20] sm:$0xf] }
 0x203   : > { %1314 = vst [vmem:[%s14438_s8] sm:$0xf] %v1313_v38  ;;  %v12887_v36 = vld [vmem:[%s15961_s1 + $0x60] sm:$0xff]   ;;  %v9575_v38 = vld [vmem:[%s13293_s12 + $0x2c] sm:$0x1] }
 0x204   : > { %8943 = vst [vmem:[%s14438_s8 + $0x4] sm:$0xf] %v2316_v39  ;;  %11350 = vmatpush3.bf16.msra.mxu0 %v12842_v35  ;;  %v9365_v35 = vld [vmem:[%s13293_s12 + $0x24] sm:$0x1] }
 0x205   : > { %11530 = vmatpush3.bf16.msra.mxu1 %v12843_v37  ;;  %11355 = vmatprep.subr.bf16.mxu0 %v13206_v1  ;;  %v14645_v37 = vld [vmem:[%s13293_s12 + $0x28] sm:$0xf]  ;;  %v14650_v39 = vcombine.low %v14637_v34, %v9365_v35  ;;  %v12937_v35 = vld [vmem:[%s15961_s1 + $0xe0] sm:$0xff]  }
 0x206   : > { %11535 = vmatprep.subr.bf16.mxu1 %v13206_v1 }
 0x207   : > { %11352 = vmatmul.mubr.bf16.vlgmr.msra.gmra.mrb[4].mxu0 %v9078_v40  ;;  %v12888_v40 = vld [vmem:[%s15961_s1 + $0x68] sm:$0xff]  }
 0x208   : > { %11356 = vmatpush3.bf16.msra.mxu0 %v12845_v41  ;;  %11532 = vmatmul.mubr.bf16.vlgmr.msra.gmra.mrb[4].mxu1 %v9288_v42  ;;  %v14656_v41 = vcombine.low %v14645_v37, %v9575_v38  ;;  %v12889_v42 = vld [vmem:[%s15961_s1 + $0x68] sm:$0xff]   ;;  %v12940_v38 = vld [vmem:[%s15961_s1 + $0xf0] sm:$0xff]  }
 0x209   : > { %11536 = vmatpush3.bf16.msra.mxu1 %v12847_v43  ;;  %11357 = vmatprep.subr.bf16.mxu0 %v13206_v1  ;;  %v4369_v43 = vshll.u32 %v14650_v39, 16 }
 0x20a   : > { %11537 = vmatprep.subr.bf16.mxu1 %v13206_v1  ;;  %11371 = vmatprep.mubr.msk.bf16.mxu0 %vm13207_vm0, %v13206_v1  ;;  %v5371_v50 = vshrl.u32 %v14656_v41, 16 }
 0x20b   : > { %11551 = vmatprep.mubr.msk.bf16.mxu1 %vm13207_vm0, %v13206_v1 }
 0x20c   : > { %11358 = vmatpush3.bf16.msra.mxu0 %v12848_v44  ;;  %v12890_v44 = vld [vmem:[%s15961_s1 + $0x70] sm:$0xff]  }
 0x20d   : > { %11538 = vmatpush3.bf16.msra.mxu1 %v12849_v45  ;;  %11359 = vmatprep.subr.bf16.mxu0 %v13206_v1  ;;  %v5373_v45 = vshll.u32 %v14656_v41, 16 }
 0x20e   : > { %11539 = vmatprep.subr.bf16.mxu1 %v13206_v1 }
 0x210   : > { %11360 = vmatpush3.bf16.msra.mxu0 %v12850_v46  ;;  %v12891_v46 = vld [vmem:[%s15961_s1 + $0x70] sm:$0xff]  }
 0x211   : > { %11540 = vmatpush3.bf16.msra.mxu1 %v12851_v47  ;;  %11361 = vmatprep.subr.bf16.mxu0 %v13206_v1  ;;  %v4367_v47 = vshrl.u32 %v14650_v39, 16 }
 0x212   : > { %11541 = vmatprep.subr.bf16.mxu1 %v13206_v1 }
 0x214   : > { %11362 = vmatpush3.bf16.msra.mxu0 %v12852_v48  ;;  %v4371_v48 = vrot.slane %v4369_v43, 1  ;;  %v12945_v43 = vld [vmem:[%s15961_s1 + $0x100] sm:$0xff]  }
 0x215   : > { %11542 = vmatpush3.bf16.msra.mxu1 %v12853_v49  ;;  %11363 = vmatprep.subr.bf16.mxu0 %v13206_v1  ;;  %v12892_v49 = vld [vmem:[%s15961_s1 + $0x78] sm:$0xff]  }
 0x216   : > { %11543 = vmatprep.subr.bf16.mxu1 %v13206_v1 }
 0x218   : > { %11364 = vmatpush3.bf16.msra.mxu0 %v12854_v51  ;;  %v5375_v51 = vrot.slane %v5373_v45, 1  ;;  %v12947_v45 = vld [vmem:[%s15961_s1 + $0x100] sm:$0xff]  }
 0x219   : > { %11544 = vmatpush3.bf16.msra.mxu1 %v12855_v53  ;;  %11365 = vmatprep.subr.bf16.mxu0 %v13206_v1  ;;  %v4372_v53 = vor.u32 %v4371_v48, %v4367_v47  ;;  %v12949_v47 = vld [vmem:[%s15961_s1 + $0x108] sm:$0xff]   ;;  %v12950_v48 = vld [vmem:[%s15961_s1 + $0x110] sm:$0xff]  }
 0x21a   : > { %11545 = vmatprep.subr.bf16.mxu1 %v13206_v1  ;;  %v5376_v55 = vor.u32 %v5375_v51, %v5371_v50  ;;  %v12952_v50 = vld [vmem:[%s15961_s1 + $0x118] sm:$0xff]  }
 0x21b   : > { %v12953_v51 = vld [vmem:[%s15961_s1 + $0x118] sm:$0xff]  }
 0x21c   : > { %11366 = vmatpush3.bf16.msra.mxu0 %v12856_v56  ;;  %v12897_v56 = vld [vmem:[%s15961_s1] sm:$0xff]  }
 0x21d   : > { %11546 = vmatpush3.bf16.msra.mxu1 %v12857_v57  ;;  %11367 = vmatprep.subr.bf16.mxu0 %v13206_v1  ;;  %v12898_v57 = vld [vmem:[%s15961_s1 + $0x8] sm:$0xff]  }
 0x21e   : > { %11547 = vmatprep.subr.bf16.mxu1 %v13206_v1 }
 0x220   : > { %11368 = vmatpush3.bf16.msra.mxu0 %v12858_v60  ;;  %v12901_v60 = vld [vmem:[%s15961_s1 + $0x10] sm:$0xff]  }
 0x221   : > { %11548 = vmatpush3.bf16.msra.mxu1 %v12859_v61  ;;  %11369 = vmatprep.subr.bf16.mxu0 %v13206_v1  ;;  %v12902_v61 = vld [vmem:[%s15961_s1 + $0x18] sm:$0xff]  }
 0x222   : > { %11549 = vmatprep.subr.bf16.mxu1 %v13206_v1 }
 0x224   : > { %11370 = vmatpush3.bf16.msra.mxu0 %v12860_v2  ;;  %v12906_v2 = vld [vmem:[%s15961_s1 + $0x28] sm:$0xff]  }
 0x225   : > { %11550 = vmatpush3.bf16.msra.mxu1 %v12861_v4  ;;  %11375 = vmatprep.subr.bf16.mxu0 %v13206_v1  ;;  %v12908_v4 = vld [vmem:[%s15961_s1 + $0x30] sm:$0xff]  }
 0x226   : > { %11555 = vmatprep.subr.bf16.mxu1 %v13206_v1 }
 0x227   : > { %11372 = vmatmul.mubr.bf16.vlgmr.msra.gmra.mrb[4].mxu0 %v3119_v5  ;;  %v12909_v5 = vld [vmem:[%s15961_s1 + $0x30] sm:$0xff]  }
 0x228   : > { %11376 = vmatpush3.bf16.msra.mxu0 %v12862_v6  ;;  %11552 = vmatmul.mubr.bf16.vlgmr.msra.gmra.mrb[4].mxu1 %v4123_v7  ;;  %v12910_v6 = vld [vmem:[%s15961_s1 + $0x38] sm:$0xff]  }
 0x229   : > { %11556 = vmatpush3.bf16.msra.mxu1 %v12863_v8  ;;  %11377 = vmatprep.subr.bf16.mxu0 %v13206_v1  ;;  %v12911_v7 = vld [vmem:[%s15961_s1 + $0x38] sm:$0xff]   ;;  %v12912_v8 = vld [vmem:[%s15961_s1 + $0x80] sm:$0xff]  }
 0x22a   : > { %11557 = vmatprep.subr.bf16.mxu1 %v13206_v1  ;;  %11391 = vmatprep.mubr.msk.bf16.mxu0 %vm13207_vm0, %v13206_v1 }
 0x22b   : > { %11571 = vmatprep.mubr.msk.bf16.mxu1 %vm13207_vm0, %v13206_v1 }
 0x22c   : > { %11378 = vmatpush3.bf16.msra.mxu0 %v12864_v9  ;;  %v12913_v9 = vld [vmem:[%s15961_s1 + $0x80] sm:$0xff]  }
 0x22d   : > { %11558 = vmatpush3.bf16.msra.mxu1 %v12865_v10  ;;  %11379 = vmatprep.subr.bf16.mxu0 %v13206_v1  ;;  %v12914_v10 = vld [vmem:[%s15961_s1 + $0x88] sm:$0xff]  }
 0x22e   : > { %11559 = vmatprep.subr.bf16.mxu1 %v13206_v1 }
 0x230   : > { %11380 = vmatpush3.bf16.msra.mxu0 %v12866_v11  ;;  %v12915_v11 = vld [vmem:[%s15961_s1 + $0x88] sm:$0xff]  }
 0x231   : > { %11560 = vmatpush3.bf16.msra.mxu1 %v12867_v12  ;;  %11381 = vmatprep.subr.bf16.mxu0 %v13206_v1  ;;  %v12916_v12 = vld [vmem:[%s15961_s1 + $0x90] sm:$0xff]  }
 0x232   : > { %11561 = vmatprep.subr.bf16.mxu1 %v13206_v1 }
 0x234   : > { %11382 = vmatpush3.bf16.msra.mxu0 %v12868_v13  ;;  %v12917_v13 = vld [vmem:[%s15961_s1 + $0x90] sm:$0xff]  }
 0x235   : > { %11562 = vmatpush3.bf16.msra.mxu1 %v12869_v14  ;;  %11383 = vmatprep.subr.bf16.mxu0 %v13206_v1  ;;  %v12918_v14 = vld [vmem:[%s15961_s1 + $0x98] sm:$0xff]  }
 0x236   : > { %11563 = vmatprep.subr.bf16.mxu1 %v13206_v1 }
 0x238   : > { %11384 = vmatpush3.bf16.msra.mxu0 %v12870_v15  ;;  %v12919_v15 = vld [vmem:[%s15961_s1 + $0x98] sm:$0xff]  }
 0x239   : > { %11564 = vmatpush3.bf16.msra.mxu1 %v12871_v16  ;;  %11385 = vmatprep.subr.bf16.mxu0 %v13206_v1  ;;  %v12920_v16 = vld [vmem:[%s15961_s1 + $0xa0] sm:$0xff]  }
 0x23a   : > { %11565 = vmatprep.subr.bf16.mxu1 %v13206_v1 }
 0x23c   : > { %11386 = vmatpush3.bf16.msra.mxu0 %v12872_v17  ;;  %v12921_v17 = vld [vmem:[%s15961_s1 + $0xa0] sm:$0xff]  }
 0x23d   : > { %11566 = vmatpush3.bf16.msra.mxu1 %v12873_v18  ;;  %11387 = vmatprep.subr.bf16.mxu0 %v13206_v1  ;;  %v12922_v18 = vld [vmem:[%s15961_s1 + $0xa8] sm:$0xff]  }
 0x23e   : > { %11567 = vmatprep.subr.bf16.mxu1 %v13206_v1 }
 0x240   : > { %11388 = vmatpush3.bf16.msra.mxu0 %v12874_v19  ;;  %v12923_v19 = vld [vmem:[%s15961_s1 + $0xa8] sm:$0xff]  }
 0x241   : > { %11568 = vmatpush3.bf16.msra.mxu1 %v12875_v20  ;;  %11389 = vmatprep.subr.bf16.mxu0 %v13206_v1  ;;  %v12924_v20 = vld [vmem:[%s15961_s1 + $0xb0] sm:$0xff]  }
 0x242   : > { %11569 = vmatprep.subr.bf16.mxu1 %v13206_v1 }
 0x244   : > { %11390 = vmatpush3.bf16.msra.mxu0 %v12876_v21  ;;  %v12925_v21 = vld [vmem:[%s15961_s1 + $0xb0] sm:$0xff]  }
 0x245   : > { %11570 = vmatpush3.bf16.msra.mxu1 %v12877_v22  ;;  %11575 = vmatprep.subr.bf16.mxu0 %v13206_v1  ;;  %v12926_v22 = vld [vmem:[%s15961_s1 + $0xb8] sm:$0xff]  }
 0x246   : > { %11755 = vmatprep.subr.bf16.mxu1 %v13206_v1 }
 0x247   : > { %11392 = vmatmul.mubr.bf16.vlgmr.msra.gmra.mrb[4].mxu0 %v3226_v23  ;;  %v12927_v23 = vld [vmem:[%s15961_s1 + $0xb8] sm:$0xff]  }
 0x248   : > { %11572 = vmatmul.mubr.bf16.vlgmr.msra.gmra.mrb[4].mxu1 %v4230_v24  ;;  %11576 = vmatpush3.bf16.msra.mxu0 %v12878_v25  ;;  %v4566_v24 = vrot.slane %v14650_v39, 1  ;;  %v12928_v25 = vld [vmem:[%s15961_s1 + $0xc0] sm:$0xff]   ;;  %v12941_v39 = vld [vmem:[%s15961_s1 + $0xf0] sm:$0xff]  }
 0x249   : > { %11756 = vmatpush3.bf16.msra.mxu1 %v12879_v26  ;;  %11577 = vmatprep.subr.bf16.mxu0 %v13206_v1  ;;  %v5570_v26 = vrot.slane %v14656_v41, 1  ;;  %v12943_v41 = vld [vmem:[%s15961_s1 + $0xf8] sm:$0xff]  }
 0x24a   : > { %11757 = vmatprep.subr.bf16.mxu1 %v13206_v1  ;;  %11591 = vmatprep.mubr.msk.bf16.mxu0 %vm13207_vm0, %v13206_v1 }
 0x24b   : > { %11771 = vmatprep.mubr.msk.bf16.mxu1 %vm13207_vm0, %v13206_v1 }
 0x24c   : > { %11578 = vmatpush3.bf16.msra.mxu0 %v12880_v27  ;;  %v12929_v27 = vld [vmem:[%s15961_s1 + $0xc0] sm:$0xff]  }
 0x24d   : > { %11758 = vmatpush3.bf16.msra.mxu1 %v12881_v28  ;;  %11579 = vmatprep.subr.bf16.mxu0 %v13206_v1  ;;  %v12930_v28 = vld [vmem:[%s15961_s1 + $0xc8] sm:$0xff]  }
 0x24e   : > { %11759 = vmatprep.subr.bf16.mxu1 %v13206_v1 }
 0x250   : > { %11580 = vmatpush3.bf16.msra.mxu0 %v12882_v29  ;;  %v12931_v29 = vld [vmem:[%s15961_s1 + $0xc8] sm:$0xff]  }
 0x251   : > { %11760 = vmatpush3.bf16.msra.mxu1 %v12883_v30  ;;  %11581 = vmatprep.subr.bf16.mxu0 %v13206_v1  ;;  %v12932_v30 = vld [vmem:[%s15961_s1 + $0xd0] sm:$0xff]  }
 0x252   : > { %11761 = vmatprep.subr.bf16.mxu1 %v13206_v1 }
 0x254   : > { %11582 = vmatpush3.bf16.msra.mxu0 %v12884_v31  ;;  %v12933_v31 = vld [vmem:[%s15961_s1 + $0xd0] sm:$0xff]  }
 0x255   : > { %11762 = vmatpush3.bf16.msra.mxu1 %v12885_v32  ;;  %11583 = vmatprep.subr.bf16.mxu0 %v13206_v1  ;;  %v12934_v32 = vld [vmem:[%s15961_s1 + $0xd8] sm:$0xff]  }
 0x256   : > { %11763 = vmatprep.subr.bf16.mxu1 %v13206_v1 }
 0x258   : > { %11584 = vmatpush3.bf16.msra.mxu0 %v12886_v33  ;;  %v12935_v33 = vld [vmem:[%s15961_s1 + $0xd8] sm:$0xff]  }
 0x259   : > { %11764 = vmatpush3.bf16.msra.mxu1 %v12887_v36  ;;  %11585 = vmatprep.subr.bf16.mxu0 %v13206_v1  ;;  %v12938_v36 = vld [vmem:[%s15961_s1 + $0xe8] sm:$0xff]  }
 0x25a   : > { %11765 = vmatprep.subr.bf16.mxu1 %v13206_v1 }
 0x25c   : > { %11586 = vmatpush3.bf16.msra.mxu0 %v12888_v40  ;;  %v12942_v40 = vld [vmem:[%s15961_s1 + $0xf8] sm:$0xff]  }
 0x25d   : > { %11766 = vmatpush3.bf16.msra.mxu1 %v12889_v42  ;;  %11587 = vmatprep.subr.bf16.mxu0 %v13206_v1  ;;  %v9423_v42 = vld [vmem:[%s13293_s12 + $0x28] sm:$0xf] }
 0x25e   : > { %11767 = vmatprep.subr.bf16.mxu1 %v13206_v1 }
 0x260   : > { %11588 = vmatpush3.bf16.msra.mxu0 %v12890_v44  ;;  %v9633_v44 = vld [vmem:[%s13293_s12 + $0x30] sm:$0xf] }
 0x261   : > { %11768 = vmatpush3.bf16.msra.mxu1 %v12891_v46  ;;  %11589 = vmatprep.subr.bf16.mxu0 %v13206_v1  ;;  %v12948_v46 = vld [vmem:[%s15961_s1 + $0x108] sm:$0xff]  }
 0x262   : > { %11769 = vmatprep.subr.bf16.mxu1 %v13206_v1 }
 0x264   : > { %11590 = vmatpush3.bf16.msra.mxu0 %v12892_v49  ;;  %v12951_v49 = vld [vmem:[%s15961_s1 + $0x110] sm:$0xff]  }
 0x265   : > { %11770 = vmatpush3.bf16.msra.mxu1 %v12893_v52  ;;  %11595 = vmatprep.subr.bf16.mxu0 %v13206_v1  ;;  %v9424_v52 = vld [vmem:[%s13293_s12 + $0x2c] sm:$0x1] }
 0x266   : > { %11775 = vmatprep.subr.bf16.mxu1 %v13206_v1 }
 0x267   : > { %11592 = vmatmul.mubr.bf16.vlgmr.msra.gmra.mrb[8].mxu0 %v4372_v53  ;;  %v12954_v53 = vld [vmem:[%s15961_s1 + $0x120] sm:$0xff]  }
 0x268   : > { %11596 = vmatpush3.bf16.msra.mxu0 %v12895_v54  ;;  %11772 = vmatmul.mubr.bf16.vlgmr.msra.gmra.mrb[8].mxu1 %v5376_v55  ;;  %v9634_v54 = vld [vmem:[%s13293_s12 + $0x34] sm:$0x1]  ;;  %v12955_v55 = vld [vmem:[%s15961_s1 + $0x120] sm:$0xff]  }
 0x269   : > { %11776 = vmatpush3.bf16.msra.mxu1 %v12897_v56  ;;  %11597 = vmatprep.subr.bf16.mxu0 %v13206_v1  ;;  %v14939_v56 = vcombine.low %v9423_v42, %v9424_v52  ;;  %v12991_v52 = vld [vmem:[%s15961_s1 + $0x1b0] sm:$0xff]  }
 0x26a   : > { %11777 = vmatprep.subr.bf16.mxu1 %v13206_v1  ;;  %11611 = vmatprep.mubr.msk.bf16.mxu0 %vm13207_vm0, %v13206_v1 }
 0x26b   : > { %11791 = vmatprep.mubr.msk.bf16.mxu1 %vm13207_vm0, %v13206_v1 }
 0x26c   : > { %11598 = vmatpush3.bf16.msra.mxu0 %v12898_v57  ;;  %v14941_v57 = vcombine.low %v9633_v44, %v9634_v54 }
 0x26d   : > { %11778 = vmatpush3.bf16.msra.mxu1 %v12899_v58  ;;  %11599 = vmatprep.subr.bf16.mxu0 %v13206_v1  ;;  %v12956_v58 = vld [vmem:[%s15961_s1 + $0x128] sm:$0xff]  }
 0x26e   : > { %11779 = vmatprep.subr.bf16.mxu1 %v13206_v1 }
 0x270   : > { %11600 = vmatpush3.bf16.msra.mxu0 %v12900_v59  ;;  %v12957_v59 = vld [vmem:[%s15961_s1 + $0x128] sm:$0xff]  }
 0x271   : > { %11780 = vmatpush3.bf16.msra.mxu1 %v12901_v60  ;;  %11601 = vmatprep.subr.bf16.mxu0 %v13206_v1  ;;  %v4788_v60 = vshll.u32 %v14939_v56, 16 }
 0x272   : > { %11781 = vmatprep.subr.bf16.mxu1 %v13206_v1 }
 0x274   : > { %11602 = vmatpush3.bf16.msra.mxu0 %v12902_v61  ;;  %v5792_v61 = vshll.u32 %v14941_v57, 16 }
 0x275   : > { %11782 = vmatpush3.bf16.msra.mxu1 %v12903_v62  ;;  %11603 = vmatprep.subr.bf16.mxu0 %v13206_v1  ;;  %v12958_v62 = vld [vmem:[%s15961_s1 + $0x130] sm:$0xff]  }
 0x276   : > { %11783 = vmatprep.subr.bf16.mxu1 %v13206_v1 }
 0x278   : > { %11604 = vmatpush3.bf16.msra.mxu0 %v12904_v63  ;;  %v12959_v63 = vld [vmem:[%s15961_s1 + $0x130] sm:$0xff]  }
 0x279   : > { %11784 = vmatpush3.bf16.msra.mxu1 %v12905_v0  ;;  %11605 = vmatprep.subr.bf16.mxu0 %v13206_v1  ;;  %v4786_v0 = vshrl.u32 %v14939_v56, 16 }
 0x27a   : > { %11785 = vmatprep.subr.bf16.mxu1 %v13206_v1 }
 0x27c   : > { %11606 = vmatpush3.bf16.msra.mxu0 %v12906_v2  ;;  %v4790_v2 = vrot.slane %v4788_v60, 1 }
 0x27d   : > { %11786 = vmatpush3.bf16.msra.mxu1 %v12907_v3  ;;  %11607 = vmatprep.subr.bf16.mxu0 %v13206_v1  ;;  %v5790_v3 = vshrl.u32 %v14941_v57, 16 }
 0x27e   : > { %11787 = vmatprep.subr.bf16.mxu1 %v13206_v1 }
 0x280   : > { %11608 = vmatpush3.bf16.msra.mxu0 %v12908_v4  ;;  %v12960_v4 = vld [vmem:[%s15961_s1 + $0x138] sm:$0xff]  }
 0x281   : > { %11788 = vmatpush3.bf16.msra.mxu1 %v12909_v5  ;;  %11609 = vmatprep.subr.bf16.mxu0 %v13206_v1  ;;  %v5794_v5 = vrot.slane %v5792_v61, 1  ;;  %v9498_v61 = vld [vmem:[%s13293_s12 + $0x30] sm:$0xf] }
 0x282   : > { %11789 = vmatprep.subr.bf16.mxu1 %v13206_v1 }
 0x284   : > { %11610 = vmatpush3.bf16.msra.mxu0 %v12910_v6  ;;  %v12961_v6 = vld [vmem:[%s15961_s1 + $0x138] sm:$0xff]  }
 0x285   : > { %11790 = vmatpush3.bf16.msra.mxu1 %v12911_v7  ;;  %11615 = vmatprep.subr.bf16.mxu0 %v13206_v1  ;;  %v4791_v7 = vor.u32 %v4790_v2, %v4786_v0  ;;  %v12997_v0 = vld [vmem:[%s15961_s1 + $0x1c0] sm:$0xff]   ;;  %v12998_v2 = vld [vmem:[%s15961_s1 + $0x1c8] sm:$0xff]  }
 0x286   : > { %11795 = vmatprep.subr.bf16.mxu1 %v13206_v1 }
 0x287   : > { %11612 = vmatmul.mubr.bf16.vlgmr.msra.gmra.mrb[8].mxu0 %v14637_v34  ;;  %v12936_v34 = vld [vmem:[%s15961_s1 + $0xe0] sm:$0xff]  }
 0x288   : > { %11616 = vmatpush3.bf16.msra.mxu0 %v12912_v8  ;;  %11792 = vmatmul.mubr.bf16.vlgmr.msra.gmra.mrb[8].mxu1 %v14645_v37  ;;  %v12939_v37 = vld [vmem:[%s15961_s1 + $0xe8] sm:$0xff]   ;;  %v12962_v8 = vld [vmem:[%s15961_s1 + $0x140] sm:$0xff]  }
 0x289   : > { %11796 = vmatpush3.bf16.msra.mxu1 %v12913_v9  ;;  %11617 = vmatprep.subr.bf16.mxu0 %v13206_v1  ;;  %v5795_v9 = vor.u32 %v5794_v5, %v5790_v3  ;;  %v12999_v3 = vld [vmem:[%s15961_s1 + $0x1c8] sm:$0xff]   ;;  %v13001_v5 = vld [vmem:[%s15961_s1 + $0x1d0] sm:$0xff]  }
 0x28a   : > { %11797 = vmatprep.subr.bf16.mxu1 %v13206_v1  ;;  %11631 = vmatprep.mubr.msk.bf16.mxu0 %vm13207_vm0, %v13206_v1 }
 0x28b   : > { %11811 = vmatprep.mubr.msk.bf16.mxu1 %vm13207_vm0, %v13206_v1 }
 0x28c   : > { %11618 = vmatpush3.bf16.msra.mxu0 %v12914_v10  ;;  %v12963_v10 = vld [vmem:[%s15961_s1 + $0x140] sm:$0xff]  }
 0x28d   : > { %11798 = vmatpush3.bf16.msra.mxu1 %v12915_v11  ;;  %11619 = vmatprep.subr.bf16.mxu0 %v13206_v1  ;;  %v12964_v11 = vld [vmem:[%s15961_s1 + $0x148] sm:$0xff]  }
 0x28e   : > { %11799 = vmatprep.subr.bf16.mxu1 %v13206_v1 }
 0x290   : > { %11620 = vmatpush3.bf16.msra.mxu0 %v12916_v12  ;;  %v12965_v12 = vld [vmem:[%s15961_s1 + $0x148] sm:$0xff]  }
 0x291   : > { %11800 = vmatpush3.bf16.msra.mxu1 %v12917_v13  ;;  %11621 = vmatprep.subr.bf16.mxu0 %v13206_v1  ;;  %v12966_v13 = vld [vmem:[%s15961_s1 + $0x150] sm:$0xff]  }
 0x292   : > { %11801 = vmatprep.subr.bf16.mxu1 %v13206_v1 }
 0x294   : > { %11622 = vmatpush3.bf16.msra.mxu0 %v12918_v14  ;;  %v12967_v14 = vld [vmem:[%s15961_s1 + $0x150] sm:$0xff]  }
 0x295   : > { %11802 = vmatpush3.bf16.msra.mxu1 %v12919_v15  ;;  %11623 = vmatprep.subr.bf16.mxu0 %v13206_v1  ;;  %v12968_v15 = vld [vmem:[%s15961_s1 + $0x158] sm:$0xff]  }
 0x296   : > { %11803 = vmatprep.subr.bf16.mxu1 %v13206_v1 }
 0x298   : > { %11624 = vmatpush3.bf16.msra.mxu0 %v12920_v16  ;;  %v12969_v16 = vld [vmem:[%s15961_s1 + $0x158] sm:$0xff]  }
 0x299   : > { %11804 = vmatpush3.bf16.msra.mxu1 %v12921_v17  ;;  %11625 = vmatprep.subr.bf16.mxu0 %v13206_v1  ;;  %v12970_v17 = vld [vmem:[%s15961_s1 + $0x160] sm:$0xff]  }
 0x29a   : > { %11805 = vmatprep.subr.bf16.mxu1 %v13206_v1 }
 0x29c   : > { %11626 = vmatpush3.bf16.msra.mxu0 %v12922_v18  ;;  %v12971_v18 = vld [vmem:[%s15961_s1 + $0x160] sm:$0xff]  }
 0x29d   : > { %11806 = vmatpush3.bf16.msra.mxu1 %v12923_v19  ;;  %11627 = vmatprep.subr.bf16.mxu0 %v13206_v1  ;;  %v12972_v19 = vld [vmem:[%s15961_s1 + $0x168] sm:$0xff]  }
 0x29e   : > { %11807 = vmatprep.subr.bf16.mxu1 %v13206_v1 }
 0x2a0   : > { %11628 = vmatpush3.bf16.msra.mxu0 %v12924_v20  ;;  %v12973_v20 = vld [vmem:[%s15961_s1 + $0x168] sm:$0xff]  }
 0x2a1   : > { %11808 = vmatpush3.bf16.msra.mxu1 %v12925_v21  ;;  %11629 = vmatprep.subr.bf16.mxu0 %v13206_v1  ;;  %v12974_v21 = vld [vmem:[%s15961_s1 + $0x170] sm:$0xff]  }
 0x2a2   : > { %11809 = vmatprep.subr.bf16.mxu1 %v13206_v1 }
 0x2a4   : > { %11630 = vmatpush3.bf16.msra.mxu0 %v12926_v22  ;;  %v12975_v22 = vld [vmem:[%s15961_s1 + $0x170] sm:$0xff]  }
 0x2a5   : > { %11810 = vmatpush3.bf16.msra.mxu1 %v12927_v23  ;;  %11635 = vmatprep.subr.bf16.mxu0 %v13206_v1  ;;  %v12976_v23 = vld [vmem:[%s15961_s1 + $0x178] sm:$0xff]  }
 0x2a6   : > { %11815 = vmatprep.subr.bf16.mxu1 %v13206_v1 }
 0x2a7   : > { %11632 = vmatmul.mubr.bf16.vlgmr.msra.gmra.mrb[8].mxu0 %v4566_v24  ;;  %v12977_v24 = vld [vmem:[%s15961_s1 + $0x178] sm:$0xff]  }
 0x2a8   : > { %11636 = vmatpush3.bf16.msra.mxu0 %v12928_v25  ;;  %11812 = vmatmul.mubr.bf16.vlgmr.msra.gmra.mrb[8].mxu1 %v5570_v26  ;;  %v4898_v25 = vrot.slane %v14939_v56, 1  ;;  %v12978_v26 = vld [vmem:[%s15961_s1 + $0x180] sm:$0xff]  }
 0x2a9   : > { %11816 = vmatpush3.bf16.msra.mxu1 %v12929_v27  ;;  %11637 = vmatprep.subr.bf16.mxu0 %v13206_v1  ;;  %v5902_v27 = vrot.slane %v14941_v57, 1  ;;  %v12992_v57 = vld [vmem:[%s15961_s1 + $0x1b8] sm:$0xff]  }
 0x2aa   : > { %11817 = vmatprep.subr.bf16.mxu1 %v13206_v1  ;;  %11651 = vmatprep.mubr.msk.bf16.mxu0 %vm13207_vm0, %v13206_v1 }
 0x2ab   : > { %11831 = vmatprep.mubr.msk.bf16.mxu1 %vm13207_vm0, %v13206_v1 }
 0x2ac   : > { %11638 = vmatpush3.bf16.msra.mxu0 %v12930_v28  ;;  %v12979_v28 = vld [vmem:[%s15961_s1 + $0x180] sm:$0xff]  }
 0x2ad   : > { %11818 = vmatpush3.bf16.msra.mxu1 %v12931_v29  ;;  %11639 = vmatprep.subr.bf16.mxu0 %v13206_v1  ;;  %v12980_v29 = vld [vmem:[%s15961_s1 + $0x188] sm:$0xff]  }
 0x2ae   : > { %11819 = vmatprep.subr.bf16.mxu1 %v13206_v1 }
 0x2b0   : > { %11640 = vmatpush3.bf16.msra.mxu0 %v12932_v30  ;;  %v12981_v30 = vld [vmem:[%s15961_s1 + $0x188] sm:$0xff]  }
 0x2b1   : > { %11820 = vmatpush3.bf16.msra.mxu1 %v12933_v31  ;;  %11641 = vmatprep.subr.bf16.mxu0 %v13206_v1  ;;  %v12982_v31 = vld [vmem:[%s15961_s1 + $0x190] sm:$0xff]  }
 0x2b2   : > { %11821 = vmatprep.subr.bf16.mxu1 %v13206_v1 }
 0x2b4   : > { %11642 = vmatpush3.bf16.msra.mxu0 %v12934_v32  ;;  %v12983_v32 = vld [vmem:[%s15961_s1 + $0x190] sm:$0xff]  }
 0x2b5   : > { %11822 = vmatpush3.bf16.msra.mxu1 %v12935_v33  ;;  %11643 = vmatprep.subr.bf16.mxu0 %v13206_v1  ;;  %v12984_v33 = vld [vmem:[%s15961_s1 + $0x198] sm:$0xff]  }
 0x2b6   : > { %11823 = vmatprep.subr.bf16.mxu1 %v13206_v1 }
 0x2b8   : > { %11644 = vmatpush3.bf16.msra.mxu0 %v12936_v34  ;;  %v12985_v34 = vld [vmem:[%s15961_s1 + $0x198] sm:$0xff]  }
 0x2b9   : > { %11824 = vmatpush3.bf16.msra.mxu1 %v12937_v35  ;;  %11645 = vmatprep.subr.bf16.mxu0 %v13206_v1  ;;  %v12986_v35 = vld [vmem:[%s15961_s1 + $0x1a0] sm:$0xff]  }
 0x2ba   : > { %11825 = vmatprep.subr.bf16.mxu1 %v13206_v1 }
 0x2bc   : > { %11646 = vmatpush3.bf16.msra.mxu0 %v12938_v36  ;;  %v12987_v36 = vld [vmem:[%s15961_s1 + $0x1a0] sm:$0xff]  }
 0x2bd   : > { %11826 = vmatpush3.bf16.msra.mxu1 %v12939_v37  ;;  %11647 = vmatprep.subr.bf16.mxu0 %v13206_v1  ;;  %v12988_v37 = vld [vmem:[%s15961_s1 + $0x1a8] sm:$0xff]  }
 0x2be   : > { %11827 = vmatprep.subr.bf16.mxu1 %v13206_v1 }
 0x2c0   : > { %11648 = vmatpush3.bf16.msra.mxu0 %v12940_v38  ;;  %v12989_v38 = vld [vmem:[%s15961_s1 + $0x1a8] sm:$0xff]  }
 0x2c1   : > { %11828 = vmatpush3.bf16.msra.mxu1 %v12941_v39  ;;  %11649 = vmatprep.subr.bf16.mxu0 %v13206_v1 }
 0x2c2   : > { %11829 = vmatprep.subr.bf16.mxu1 %v13206_v1 }
 0x2c4   : > { %11650 = vmatpush3.bf16.msra.mxu0 %v12942_v40  ;;  %v13178_v40 = vld [vmem:[%s15962_s2] ss:$0 sm:$0xff] }
 0x2c5   : > { %11830 = vmatpush3.bf16.msra.mxu1 %v12943_v41  ;;  %11655 = vmatprep.subr.bf16.mxu0 %v13206_v1 }
 0x2c6   : > { %11835 = vmatprep.subr.bf16.mxu1 %v13206_v1 }
 0x2c7   : > { %11652 = vmatmul.mubr.bf16.vlgmr.msra.gmra.mrb[8].mxu0 %v9423_v42 }
 0x2c8   : > { %11656 = vmatpush3.bf16.msra.mxu0 %v12945_v43  ;;  %11832 = vmatmul.mubr.bf16.vlgmr.msra.gmra.mrb[8].mxu1 %v9633_v44 }
 0x2c9   : > { %11836 = vmatpush3.bf16.msra.mxu1 %v12947_v45  ;;  %11657 = vmatprep.subr.bf16.mxu0 %v13206_v1 }
 0x2ca   : > { %11837 = vmatprep.subr.bf16.mxu1 %v13206_v1  ;;  %11671 = vmatprep.mubr.msk.bf16.mxu0 %vm13207_vm0, %v13206_v1 }
 0x2cb   : > { %11851 = vmatprep.mubr.msk.bf16.mxu1 %vm13207_vm0, %v13206_v1 }
 0x2cc   : > { %11658 = vmatpush3.bf16.msra.mxu0 %v12948_v46 }
 0x2cd   : > { %11838 = vmatpush3.bf16.msra.mxu1 %v12949_v47  ;;  %11659 = vmatprep.subr.bf16.mxu0 %v13206_v1  ;;  %v12990_v47 = vld [vmem:[%s15961_s1 + $0x1b0] sm:$0xff]  }
 0x2ce   : > { %11839 = vmatprep.subr.bf16.mxu1 %v13206_v1 }
 0x2d0   : > { %11660 = vmatpush3.bf16.msra.mxu0 %v12950_v48  ;;  %v13179_v48 = vld [vmem:[%s15963_s3] ss:$0 sm:$0xff] }
 0x2d1   : > { %11840 = vmatpush3.bf16.msra.mxu1 %v12951_v49  ;;  %11661 = vmatprep.subr.bf16.mxu0 %v13206_v1 }
 0x2d2   : > { %11841 = vmatprep.subr.bf16.mxu1 %v13206_v1 }
 0x2d4   : > { %11662 = vmatpush3.bf16.msra.mxu0 %v12952_v50 }
 0x2d5   : > { %11842 = vmatpush3.bf16.msra.mxu1 %v12953_v51  ;;  %11663 = vmatprep.subr.bf16.mxu0 %v13206_v1 }
 0x2d6   : > { %11843 = vmatprep.subr.bf16.mxu1 %v13206_v1 }
 0x2d8   : > { %11664 = vmatpush3.bf16.msra.mxu0 %v12954_v53 }
 0x2d9   : > { %11844 = vmatpush3.bf16.msra.mxu1 %v12955_v55  ;;  %11665 = vmatprep.subr.bf16.mxu0 %v13206_v1 }
 0x2da   : > { %11845 = vmatprep.subr.bf16.mxu1 %v13206_v1 }
 0x2dc   : > { %11666 = vmatpush3.bf16.msra.mxu0 %v12956_v58 }
 0x2dd   : > { %11846 = vmatpush3.bf16.msra.mxu1 %v12957_v59  ;;  %11667 = vmatprep.subr.bf16.mxu0 %v13206_v1  ;;  %v12993_v59 = vld [vmem:[%s15961_s1 + $0x1b8] sm:$0xff]  }
 0x2de   : > { %11847 = vmatprep.subr.bf16.mxu1 %v13206_v1 }
 0x2e0   : > { %11668 = vmatpush3.bf16.msra.mxu0 %v12958_v62  ;;  %v12995_v62 = vld [vmem:[%s15961_s1 + $0x1c0] sm:$0xff]  }
 0x2e1   : > { %11848 = vmatpush3.bf16.msra.mxu1 %v12959_v63  ;;  %11669 = vmatprep.subr.bf16.mxu0 %v13206_v1  ;;  %v9708_v63 = vld [vmem:[%s13293_s12 + $0x38] sm:$0xf] }
 0x2e2   : > { %11849 = vmatprep.subr.bf16.mxu1 %v13206_v1 }
 0x2e4   : > { %11670 = vmatpush3.bf16.msra.mxu0 %v12960_v4  ;;  %v13000_v4 = vld [vmem:[%s15961_s1 + $0x1d0] sm:$0xff]  }
 0x2e5   : > { %11850 = vmatpush3.bf16.msra.mxu1 %v12961_v6  ;;  %11675 = vmatprep.subr.bf16.mxu0 %v13206_v1  ;;  %v13002_v6 = vld [vmem:[%s15961_s1 + $0x1d8] sm:$0xff]  }
 0x2e6   : > { %11855 = vmatprep.subr.bf16.mxu1 %v13206_v1 }
 0x2e7   : > { %11672 = vmatmul.mubr.bf16.vlgmr.msra.gmra.mrb[8].mxu0 %v4791_v7  ;;  %v13003_v7 = vld [vmem:[%s15961_s1 + $0x1d8] sm:$0xff]  }
 0x2e8   : > { %11676 = vmatpush3.bf16.msra.mxu0 %v12962_v8  ;;  %11852 = vmatmul.mubr.bf16.vlgmr.msra.gmra.mrb[8].mxu1 %v5795_v9  ;;  %v9499_v8 = vld [vmem:[%s13293_s12 + $0x34] sm:$0x1]  ;;  %v13004_v9 = vld [vmem:[%s15961_s1 + $0x1e0] sm:$0xff]  }
 0x2e9   : > { %11856 = vmatpush3.bf16.msra.mxu1 %v12963_v10  ;;  %11677 = vmatprep.subr.bf16.mxu0 %v13206_v1  ;;  %v9709_v10 = vld [vmem:[%s13293_s12 + $0x3c] sm:$0x1] }
 0x2ea   : > { %11857 = vmatprep.subr.bf16.mxu1 %v13206_v1  ;;  %11691 = vmatprep.mubr.msk.bf16.mxu0 %vm13207_vm0, %v13206_v1 }
 0x2eb   : > { %11871 = vmatprep.mubr.msk.bf16.mxu1 %vm13207_vm0, %v13206_v1 }
 0x2ec   : > { %11678 = vmatpush3.bf16.msra.mxu0 %v12964_v11  ;;  %v13005_v11 = vld [vmem:[%s15961_s1 + $0x1e0] sm:$0xff]  }
 0x2ed   : > { %11858 = vmatpush3.bf16.msra.mxu1 %v12965_v12  ;;  %11679 = vmatprep.subr.bf16.mxu0 %v13206_v1  ;;  %v15165_v12 = vcombine.low %v9498_v61, %v9499_v8 }
 0x2ee   : > { %11859 = vmatprep.subr.bf16.mxu1 %v13206_v1 }
 0x2f0   : > { %11680 = vmatpush3.bf16.msra.mxu0 %v12966_v13  ;;  %v15167_v13 = vcombine.low %v9708_v63, %v9709_v10  ;;  %v13043_v10 = vld [vmem:[%s15961_s1 + $0x78] sm:$0xff]  }
 0x2f1   : > { %11860 = vmatpush3.bf16.msra.mxu1 %v12967_v14  ;;  %11681 = vmatprep.subr.bf16.mxu0 %v13206_v1  ;;  %v13006_v14 = vld [vmem:[%s15961_s1 + $0x1e8] sm:$0xff]  }
 0x2f2   : > { %11861 = vmatprep.subr.bf16.mxu1 %v13206_v1 }
 0x2f4   : > { %11682 = vmatpush3.bf16.msra.mxu0 %v12968_v15  ;;  %v13007_v15 = vld [vmem:[%s15961_s1 + $0x1e8] sm:$0xff]  }
 0x2f5   : > { %11862 = vmatpush3.bf16.msra.mxu1 %v12969_v16  ;;  %11683 = vmatprep.subr.bf16.mxu0 %v13206_v1  ;;  %v5124_v16 = vshll.u32 %v15165_v12, 16 }
 0x2f6   : > { %11863 = vmatprep.subr.bf16.mxu1 %v13206_v1 }
 0x2f8   : > { %11684 = vmatpush3.bf16.msra.mxu0 %v12970_v17  ;;  %v6128_v17 = vshll.u32 %v15167_v13, 16 }
 0x2f9   : > { %11864 = vmatpush3.bf16.msra.mxu1 %v12971_v18  ;;  %11685 = vmatprep.subr.bf16.mxu0 %v13206_v1  ;;  %v13008_v18 = vld [vmem:[%s15961_s1 + $0x1f0] sm:$0xff]  }
 0x2fa   : > { %11865 = vmatprep.subr.bf16.mxu1 %v13206_v1 }
 0x2fc   : > { %11686 = vmatpush3.bf16.msra.mxu0 %v12972_v19  ;;  %v13009_v19 = vld [vmem:[%s15961_s1 + $0x1f0] sm:$0xff]  }
 0x2fd   : > { %11866 = vmatpush3.bf16.msra.mxu1 %v12973_v20  ;;  %11687 = vmatprep.subr.bf16.mxu0 %v13206_v1  ;;  %v5122_v20 = vshrl.u32 %v15165_v12, 16 }
 0x2fe   : > { %11867 = vmatprep.subr.bf16.mxu1 %v13206_v1 }
 0x300   : > { %11688 = vmatpush3.bf16.msra.mxu0 %v12974_v21  ;;  %v5126_v21 = vrot.slane %v5124_v16, 1  ;;  %v13049_v16 = vld [vmem:[%s15961_s1 + $0x8] sm:$0xff]  }
 0x301   : > { %11868 = vmatpush3.bf16.msra.mxu1 %v12975_v22  ;;  %11689 = vmatprep.subr.bf16.mxu0 %v13206_v1  ;;  %v6126_v22 = vshrl.u32 %v15167_v13, 16 }
 0x302   : > { %11869 = vmatprep.subr.bf16.mxu1 %v13206_v1 }
 0x304   : > { %11690 = vmatpush3.bf16.msra.mxu0 %v12976_v23  ;;  %v13010_v23 = vld [vmem:[%s15961_s1 + $0x1f8] sm:$0xff]  }
 0x305   : > { %11870 = vmatpush3.bf16.msra.mxu1 %v12977_v24  ;;  %11695 = vmatprep.subr.bf16.mxu0 %v13206_v1  ;;  %v6130_v24 = vrot.slane %v6128_v17, 1  ;;  %v13050_v17 = vld [vmem:[%s15961_s1 + $0x10] sm:$0xff]  }
 0x306   : > { %11875 = vmatprep.subr.bf16.mxu1 %v13206_v1 }
 0x307   : > { %11692 = vmatmul.mubr.bf16.vlgmr.msra.gmra.mrb[8].mxu0 %v4898_v25  ;;  %v13011_v25 = vld [vmem:[%s15961_s1 + $0x1f8] sm:$0xff]  }
 0x308   : > { %11696 = vmatpush3.bf16.msra.mxu0 %v12978_v26  ;;  %11872 = vmatmul.mubr.bf16.vlgmr.msra.gmra.mrb[8].mxu1 %v5902_v27  ;;  %v5127_v26 = vor.u32 %v5126_v21, %v5122_v20  ;;  %v13012_v27 = vld [vmem:[%s15961_s1 + $0x200] sm:$0xff]   ;;  %v13053_v20 = vld [vmem:[%s15961_s1 + $0x18] sm:$0xff]  }
 0x309   : > { %11876 = vmatpush3.bf16.msra.mxu1 %v12979_v28  ;;  %11697 = vmatprep.subr.bf16.mxu0 %v13206_v1  ;;  %v6131_v28 = vor.u32 %v6130_v24, %v6126_v22  ;;  %v13054_v21 = vld [vmem:[%s15961_s1 + $0x20] sm:$0xff]   ;;  %v13057_v24 = vld [vmem:[%s15961_s1 + $0x28] sm:$0xff]  }
 0x30a   : > { %11877 = vmatprep.subr.bf16.mxu1 %v13206_v1  ;;  %11711 = vmatprep.mubr.msk.bf16.mxu0 %vm13207_vm0, %v13206_v1  ;;  %v13055_v22 = vld [vmem:[%s15961_s1 + $0x20] sm:$0xff]  }
 0x30b   : > { %11891 = vmatprep.mubr.msk.bf16.mxu1 %vm13207_vm0, %v13206_v1 }
 0x30c   : > { %11698 = vmatpush3.bf16.msra.mxu0 %v12980_v29  ;;  %v13013_v29 = vld [vmem:[%s15961_s1 + $0x200] sm:$0xff]  }
 0x30d   : > { %11878 = vmatpush3.bf16.msra.mxu1 %v12981_v30  ;;  %11699 = vmatprep.subr.bf16.mxu0 %v13206_v1  ;;  %v13014_v30 = vld [vmem:[%s15961_s1 + $0x208] sm:$0xff]  }
 0x30e   : > { %11879 = vmatprep.subr.bf16.mxu1 %v13206_v1 }
 0x310   : > { %11700 = vmatpush3.bf16.msra.mxu0 %v12982_v31  ;;  %v13015_v31 = vld [vmem:[%s15961_s1 + $0x208] sm:$0xff]  }
 0x311   : > { %11880 = vmatpush3.bf16.msra.mxu1 %v12983_v32  ;;  %11701 = vmatprep.subr.bf16.mxu0 %v13206_v1  ;;  %v13016_v32 = vld [vmem:[%s15961_s1 + $0x210] sm:$0xff]  }
 0x312   : > { %11881 = vmatprep.subr.bf16.mxu1 %v13206_v1 }
 0x314   : > { %11702 = vmatpush3.bf16.msra.mxu0 %v12984_v33  ;;  %v13017_v33 = vld [vmem:[%s15961_s1 + $0x210] sm:$0xff]  }
 0x315   : > { %11882 = vmatpush3.bf16.msra.mxu1 %v12985_v34  ;;  %11703 = vmatprep.subr.bf16.mxu0 %v13206_v1  ;;  %v13018_v34 = vld [vmem:[%s15961_s1 + $0x218] sm:$0xff]  }
 0x316   : > { %11883 = vmatprep.subr.bf16.mxu1 %v13206_v1 }
 0x318   : > { %11704 = vmatpush3.bf16.msra.mxu0 %v12986_v35  ;;  %v13019_v35 = vld [vmem:[%s15961_s1 + $0x218] sm:$0xff]  }
 0x319   : > { %11884 = vmatpush3.bf16.msra.mxu1 %v12987_v36  ;;  %11705 = vmatprep.subr.bf16.mxu0 %v13206_v1  ;;  %v13020_v36 = vld [vmem:[%s15961_s1 + $0x220] sm:$0xff]  }
 0x31a   : > { %v3310_v39 = vpop.f32.mrb[4].mxu0  ;;  %11885 = vmatprep.subr.bf16.mxu1 %v13206_v1 }
 0x31b   : > { %v3317_v41 = vmul.f32 %v13178_v40, %v3310_v39  ;;  %v4314_v42 = vpop.f32.mrb[4].mxu1  ;;  %v11393_v43 = vpop.f32.mrb[5].mxu0  ;;  %v13023_v39 = vld [vmem:[%s15961_s1 + $0x228] sm:$0xff]  }
 0x31c   : > { %v4321_v44 = vmul.f32 %v13178_v40, %v4314_v42  ;;  %v11573_v45 = vpop.f32.mrb[5].mxu1  ;;  %v3313_v46 = vpop.f32.mrb[6].mxu0  ;;  %11706 = vmatpush3.bf16.msra.mxu0 %v12988_v37  ;;  %v13021_v37 = vld [vmem:[%s15961_s1 + $0x220] sm:$0xff]   ;;  %v13024_v40 = vld [vmem:[%s15961_s1 + $0x230] sm:$0xff]   ;;  %v13026_v42 = vld [vmem:[%s15961_s1 + $0x238] sm:$0xff]  }
 0x31d   : > { %v3318_v49 = vadd.f32 %v13179_v48, %v3317_v41  ;;  %v4317_v50 = vpop.f32.mrb[6].mxu1  ;;  %11886 = vmatpush3.bf16.msra.mxu1 %v12989_v38  ;;  %v11394_v51 = vpop.f32.mrb[7].mxu0  ;;  %11707 = vmatprep.subr.bf16.mxu0 %v13206_v1  ;;  %v13022_v38 = vld [vmem:[%s15961_s1 + $0x228] sm:$0xff]   ;;  %v13025_v41 = vld [vmem:[%s15961_s1 + $0x230] sm:$0xff]   ;;  %v13027_v43 = vld [vmem:[%s15961_s1 + $0x238] sm:$0xff]   ;;  %v6238_v45 = vrot.slane %v15167_v13, 1 }
 0x31e   : > { %v4322_v53 = vadd.f32 %v13179_v48, %v4321_v44  ;;  %v11574_v54 = vpop.f32.mrb[7].mxu1  ;;  %11887 = vmatprep.subr.bf16.mxu1 %v13206_v1  ;;  %v5234_v44 = vrot.slane %v15165_v12, 1  ;;  %v13028_v46 = vld [vmem:[%s15961_s1 + $0x40] sm:$0xff]   ;;  %v13030_v48 = vld [vmem:[%s15961_s1 + $0x48] sm:$0xff]   ;;  %v13032_v50 = vld [vmem:[%s15961_s1 + $0x50] sm:$0xff]  }
 0x31f   : > { %v3319_v55 = vmax.f32 %v3318_v49, 0.0  ;;  %v13031_v49 = vld [vmem:[%s15961_s1 + $0x48] sm:$0xff]   ;;  %v13033_v51 = vld [vmem:[%s15961_s1 + $0x50] sm:$0xff]   ;;  %v13036_v54 = vld [vmem:[%s15961_s1 + $0x60] sm:$0xff]  }
 0x320   : > { %v4323_v56 = vmax.f32 %v4322_v53, 0.0  ;;  %11708 = vmatpush3.bf16.msra.mxu0 %v12990_v47  ;;  %v13029_v47 = vld [vmem:[%s15961_s1 + $0x40] sm:$0xff]   ;;  %v13035_v53 = vld [vmem:[%s15961_s1 + $0x58] sm:$0xff]  }
 0x321   : > { %v3320_v58 = vpack.c.bf16 %v3319_v55, %v3319_v55  ;;  %11888 = vmatpush3.bf16.msra.mxu1 %v12991_v52  ;;  %11709 = vmatprep.subr.bf16.mxu0 %v13206_v1  ;;  %v13034_v52 = vld [vmem:[%s15961_s1 + $0x58] sm:$0xff]   ;;  %v15307_v55 = vld [vmem:[%s13293_s12 + $0x30] sm:$0xf]  ;;  %v13045_v12 = vld [vmem:[%s15961_s1] sm:$0xff]  }
 0x322   : > { %v4324_v60 = vpack.c.bf16 %v4323_v56, %v4323_v56  ;;  %11889 = vmatprep.subr.bf16.mxu1 %v13206_v1  ;;  %v9785_v56 = vld [vmem:[%s13293_s12 + $0x34] sm:$0x1] }
 0x323   : > { %9153 = vst [vmem:[%s14438_s8 + $0x8] sm:$0xf] %v3320_v58  ;;  %v15315_v58 = vld [vmem:[%s13293_s12 + $0x38] sm:$0xf] }
 0x324   : > { %9363 = vst [vmem:[%s14438_s8 + $0xc] sm:$0xf] %v4324_v60  ;;  %11710 = vmatpush3.bf16.msra.mxu0 %v12992_v57  ;;  %v13037_v57 = vld [vmem:[%s15961_s1 + $0x60] sm:$0xff]   ;;  %v15320_v60 = vcombine.low %v15307_v55, %v9785_v56 }
 0x325   : > { %11890 = vmatpush3.bf16.msra.mxu1 %v12993_v59  ;;  %11715 = vmatprep.subr.bf16.mxu0 %v13206_v1  ;;  %v9995_v59 = vld [vmem:[%s13293_s12 + $0x3c] sm:$0x1]  ;;  %v13087_v56 = vld [vmem:[%s15961_s1 + $0xe0] sm:$0xff]  }
 0x326   : > { %11895 = vmatprep.subr.bf16.mxu1 %v13206_v1 }
 0x327   : > { %11712 = vmatmul.mubr.bf16.vlgmr.msra.gmra.mrb[8].mxu0 %v9498_v61  ;;  %v13038_v61 = vld [vmem:[%s15961_s1 + $0x68] sm:$0xff]  }
 0x328   : > { %11716 = vmatpush3.bf16.msra.mxu0 %v12995_v62  ;;  %11892 = vmatmul.mubr.bf16.vlgmr.msra.gmra.mrb[8].mxu1 %v9708_v63  ;;  %v15326_v62 = vcombine.low %v15315_v58, %v9995_v59  ;;  %v13039_v63 = vld [vmem:[%s15961_s1 + $0x68] sm:$0xff]   ;;  %v13090_v59 = vld [vmem:[%s15961_s1 + $0xf0] sm:$0xff]  }
 0x329   : > { %11896 = vmatpush3.bf16.msra.mxu1 %v12997_v0  ;;  %11717 = vmatprep.subr.bf16.mxu0 %v13206_v1  ;;  %v6377_v0 = vshll.u32 %v15320_v60, 16 }
 0x32a   : > { %11897 = vmatprep.subr.bf16.mxu1 %v13206_v1  ;;  %11731 = vmatprep.mubr.msk.bf16.mxu0 %vm13207_vm0, %v13206_v1  ;;  %v7379_v8 = vshrl.u32 %v15326_v62, 16 }
 0x32b   : > { %11911 = vmatprep.mubr.msk.bf16.mxu1 %vm13207_vm0, %v13206_v1 }
 0x32c   : > { %11718 = vmatpush3.bf16.msra.mxu0 %v12998_v2  ;;  %v13040_v2 = vld [vmem:[%s15961_s1 + $0x70] sm:$0xff]  }
 0x32d   : > { %11898 = vmatpush3.bf16.msra.mxu1 %v12999_v3  ;;  %11719 = vmatprep.subr.bf16.mxu0 %v13206_v1  ;;  %v7381_v3 = vshll.u32 %v15326_v62, 16 }
 0x32e   : > { %11899 = vmatprep.subr.bf16.mxu1 %v13206_v1 }
 0x330   : > { %11720 = vmatpush3.bf16.msra.mxu0 %v13000_v4  ;;  %v13041_v4 = vld [vmem:[%s15961_s1 + $0x70] sm:$0xff]  }
 0x331   : > { %11900 = vmatpush3.bf16.msra.mxu1 %v13001_v5  ;;  %11721 = vmatprep.subr.bf16.mxu0 %v13206_v1  ;;  %v6375_v5 = vshrl.u32 %v15320_v60, 16 }
 0x332   : > { %11901 = vmatprep.subr.bf16.mxu1 %v13206_v1 }
 0x334   : > { %11722 = vmatpush3.bf16.msra.mxu0 %v13002_v6  ;;  %v6379_v6 = vrot.slane %v6377_v0, 1  ;;  %v13095_v0 = vld [vmem:[%s15961_s1 + $0x100] sm:$0xff]  }
 0x335   : > { %11902 = vmatpush3.bf16.msra.mxu1 %v13003_v7  ;;  %11723 = vmatprep.subr.bf16.mxu0 %v13206_v1  ;;  %v13042_v7 = vld [vmem:[%s15961_s1 + $0x78] sm:$0xff]  }
 0x336   : > { %11903 = vmatprep.subr.bf16.mxu1 %v13206_v1 }
 0x338   : > { %11724 = vmatpush3.bf16.msra.mxu0 %v13004_v9  ;;  %v7383_v9 = vrot.slane %v7381_v3, 1  ;;  %v13097_v3 = vld [vmem:[%s15961_s1 + $0x100] sm:$0xff]  }
 0x339   : > { %11904 = vmatpush3.bf16.msra.mxu1 %v13005_v11  ;;  %11725 = vmatprep.subr.bf16.mxu0 %v13206_v1  ;;  %v6380_v11 = vor.u32 %v6379_v6, %v6375_v5  ;;  %v13099_v5 = vld [vmem:[%s15961_s1 + $0x108] sm:$0xff]   ;;  %v13100_v6 = vld [vmem:[%s15961_s1 + $0x110] sm:$0xff]  }
 0x33a   : > { %11905 = vmatprep.subr.bf16.mxu1 %v13206_v1  ;;  %v7384_v13 = vor.u32 %v7383_v9, %v7379_v8  ;;  %v13102_v8 = vld [vmem:[%s15961_s1 + $0x118] sm:$0xff]  }
 0x33b   : > { %v13103_v9 = vld [vmem:[%s15961_s1 + $0x118] sm:$0xff]  }
 0x33c   : > { %11726 = vmatpush3.bf16.msra.mxu0 %v13006_v14  ;;  %v13047_v14 = vld [vmem:[%s15961_s1] sm:$0xff]  }
 0x33d   : > { %11906 = vmatpush3.bf16.msra.mxu1 %v13007_v15  ;;  %11727 = vmatprep.subr.bf16.mxu0 %v13206_v1  ;;  %v13048_v15 = vld [vmem:[%s15961_s1 + $0x8] sm:$0xff]  }
 0x33e   : > { %11907 = vmatprep.subr.bf16.mxu1 %v13206_v1 }
 0x340   : > { %11728 = vmatpush3.bf16.msra.mxu0 %v13008_v18  ;;  %v13051_v18 = vld [vmem:[%s15961_s1 + $0x10] sm:$0xff]  }
 0x341   : > { %11908 = vmatpush3.bf16.msra.mxu1 %v13009_v19  ;;  %11729 = vmatprep.subr.bf16.mxu0 %v13206_v1  ;;  %v13052_v19 = vld [vmem:[%s15961_s1 + $0x18] sm:$0xff]  }
 0x342   : > { %11909 = vmatprep.subr.bf16.mxu1 %v13206_v1 }
 0x344   : > { %11730 = vmatpush3.bf16.msra.mxu0 %v13010_v23  ;;  %v13056_v23 = vld [vmem:[%s15961_s1 + $0x28] sm:$0xff]  }
 0x345   : > { %11910 = vmatpush3.bf16.msra.mxu1 %v13011_v25  ;;  %11735 = vmatprep.subr.bf16.mxu0 %v13206_v1  ;;  %v13058_v25 = vld [vmem:[%s15961_s1 + $0x30] sm:$0xff]  }
 0x346   : > { %11915 = vmatprep.subr.bf16.mxu1 %v13206_v1 }
 0x347   : > { %11732 = vmatmul.mubr.bf16.vlgmr.msra.gmra.mrb[8].mxu0 %v5127_v26  ;;  %v13059_v26 = vld [vmem:[%s15961_s1 + $0x30] sm:$0xff]  }
 0x348   : > { %11736 = vmatpush3.bf16.msra.mxu0 %v13012_v27  ;;  %11912 = vmatmul.mubr.bf16.vlgmr.msra.gmra.mrb[8].mxu1 %v6131_v28  ;;  %v13060_v27 = vld [vmem:[%s15961_s1 + $0x38] sm:$0xff]  }
 0x349   : > { %11916 = vmatpush3.bf16.msra.mxu1 %v13013_v29  ;;  %11737 = vmatprep.subr.bf16.mxu0 %v13206_v1  ;;  %v13061_v28 = vld [vmem:[%s15961_s1 + $0x38] sm:$0xff]   ;;  %v13062_v29 = vld [vmem:[%s15961_s1 + $0x80] sm:$0xff]  }
 0x34a   : > { %11917 = vmatprep.subr.bf16.mxu1 %v13206_v1  ;;  %11751 = vmatprep.mubr.msk.bf16.mxu0 %vm13207_vm0, %v13206_v1 }
 0x34b   : > { %11931 = vmatprep.mubr.msk.bf16.mxu1 %vm13207_vm0, %v13206_v1 }
 0x34c   : > { %11738 = vmatpush3.bf16.msra.mxu0 %v13014_v30  ;;  %v13063_v30 = vld [vmem:[%s15961_s1 + $0x80] sm:$0xff]  }
 0x34d   : > { %11918 = vmatpush3.bf16.msra.mxu1 %v13015_v31  ;;  %11739 = vmatprep.subr.bf16.mxu0 %v13206_v1  ;;  %v13064_v31 = vld [vmem:[%s15961_s1 + $0x88] sm:$0xff]  }
 0x34e   : > { %11919 = vmatprep.subr.bf16.mxu1 %v13206_v1 }
 0x350   : > { %11740 = vmatpush3.bf16.msra.mxu0 %v13016_v32  ;;  %v13065_v32 = vld [vmem:[%s15961_s1 + $0x88] sm:$0xff]  }
 0x351   : > { %11920 = vmatpush3.bf16.msra.mxu1 %v13017_v33  ;;  %11741 = vmatprep.subr.bf16.mxu0 %v13206_v1  ;;  %v13066_v33 = vld [vmem:[%s15961_s1 + $0x90] sm:$0xff]  }
 0x352   : > { %11921 = vmatprep.subr.bf16.mxu1 %v13206_v1 }
 0x354   : > { %11742 = vmatpush3.bf16.msra.mxu0 %v13018_v34  ;;  %v13067_v34 = vld [vmem:[%s15961_s1 + $0x90] sm:$0xff]  }
 0x355   : > { %11922 = vmatpush3.bf16.msra.mxu1 %v13019_v35  ;;  %11743 = vmatprep.subr.bf16.mxu0 %v13206_v1  ;;  %v13068_v35 = vld [vmem:[%s15961_s1 + $0x98] sm:$0xff]  }
 0x356   : > { %11923 = vmatprep.subr.bf16.mxu1 %v13206_v1 }
 0x358   : > { %11744 = vmatpush3.bf16.msra.mxu0 %v13020_v36  ;;  %v13069_v36 = vld [vmem:[%s15961_s1 + $0x98] sm:$0xff]  }
 0x359   : > { %11924 = vmatpush3.bf16.msra.mxu1 %v13021_v37  ;;  %11745 = vmatprep.subr.bf16.mxu0 %v13206_v1  ;;  %v13070_v37 = vld [vmem:[%s15961_s1 + $0xa0] sm:$0xff]  }
 0x35a   : > { %11925 = vmatprep.subr.bf16.mxu1 %v13206_v1 }
 0x35c   : > { %11746 = vmatpush3.bf16.msra.mxu0 %v13022_v38  ;;  %v13071_v38 = vld [vmem:[%s15961_s1 + $0xa0] sm:$0xff]  }
 0x35d   : > { %11926 = vmatpush3.bf16.msra.mxu1 %v13023_v39  ;;  %11747 = vmatprep.subr.bf16.mxu0 %v13206_v1  ;;  %v13072_v39 = vld [vmem:[%s15961_s1 + $0xa8] sm:$0xff]  }
 0x35e   : > { %11927 = vmatprep.subr.bf16.mxu1 %v13206_v1 }
 0x360   : > { %11748 = vmatpush3.bf16.msra.mxu0 %v13024_v40  ;;  %v13073_v40 = vld [vmem:[%s15961_s1 + $0xa8] sm:$0xff]  }
 0x361   : > { %11928 = vmatpush3.bf16.msra.mxu1 %v13025_v41  ;;  %11749 = vmatprep.subr.bf16.mxu0 %v13206_v1  ;;  %v13074_v41 = vld [vmem:[%s15961_s1 + $0xb0] sm:$0xff]  }
 0x362   : > { %11929 = vmatprep.subr.bf16.mxu1 %v13206_v1 }
 0x364   : > { %11750 = vmatpush3.bf16.msra.mxu0 %v13026_v42  ;;  %v13075_v42 = vld [vmem:[%s15961_s1 + $0xb0] sm:$0xff]  }
 0x365   : > { %11930 = vmatpush3.bf16.msra.mxu1 %v13027_v43  ;;  %11935 = vmatprep.subr.bf16.mxu0 %v13206_v1  ;;  %v13076_v43 = vld [vmem:[%s15961_s1 + $0xb8] sm:$0xff]  }
 0x366   : > { %12115 = vmatprep.subr.bf16.mxu1 %v13206_v1 }
 0x367   : > { %11752 = vmatmul.mubr.bf16.vlgmr.msra.gmra.mrb[8].mxu0 %v5234_v44  ;;  %v13077_v44 = vld [vmem:[%s15961_s1 + $0xb8] sm:$0xff]  }
 0x368   : > { %11932 = vmatmul.mubr.bf16.vlgmr.msra.gmra.mrb[8].mxu1 %v6238_v45  ;;  %11936 = vmatpush3.bf16.msra.mxu0 %v13028_v46  ;;  %v6574_v45 = vrot.slane %v15320_v60, 1  ;;  %v13078_v46 = vld [vmem:[%s15961_s1 + $0xc0] sm:$0xff]   ;;  %v13091_v60 = vld [vmem:[%s15961_s1 + $0xf0] sm:$0xff]  }
 0x369   : > { %12116 = vmatpush3.bf16.msra.mxu1 %v13029_v47  ;;  %11937 = vmatprep.subr.bf16.mxu0 %v13206_v1  ;;  %v7578_v47 = vrot.slane %v15326_v62, 1  ;;  %v13093_v62 = vld [vmem:[%s15961_s1 + $0xf8] sm:$0xff]  }
 0x36a   : > { %12117 = vmatprep.subr.bf16.mxu1 %v13206_v1  ;;  %11951 = vmatprep.mubr.msk.bf16.mxu0 %vm13207_vm0, %v13206_v1 }
 0x36b   : > { %12131 = vmatprep.mubr.msk.bf16.mxu1 %vm13207_vm0, %v13206_v1 }
 0x36c   : > { %11938 = vmatpush3.bf16.msra.mxu0 %v13030_v48  ;;  %v13079_v48 = vld [vmem:[%s15961_s1 + $0xc0] sm:$0xff]  }
 0x36d   : > { %12118 = vmatpush3.bf16.msra.mxu1 %v13031_v49  ;;  %11939 = vmatprep.subr.bf16.mxu0 %v13206_v1  ;;  %v13080_v49 = vld [vmem:[%s15961_s1 + $0xc8] sm:$0xff]  }
 0x36e   : > { %12119 = vmatprep.subr.bf16.mxu1 %v13206_v1 }
 0x370   : > { %11940 = vmatpush3.bf16.msra.mxu0 %v13032_v50  ;;  %v13081_v50 = vld [vmem:[%s15961_s1 + $0xc8] sm:$0xff]  }
 0x371   : > { %12120 = vmatpush3.bf16.msra.mxu1 %v13033_v51  ;;  %11941 = vmatprep.subr.bf16.mxu0 %v13206_v1  ;;  %v13082_v51 = vld [vmem:[%s15961_s1 + $0xd0] sm:$0xff]  }
 0x372   : > { %12121 = vmatprep.subr.bf16.mxu1 %v13206_v1 }
 0x374   : > { %11942 = vmatpush3.bf16.msra.mxu0 %v13034_v52  ;;  %v13083_v52 = vld [vmem:[%s15961_s1 + $0xd0] sm:$0xff]  }
 0x375   : > { %12122 = vmatpush3.bf16.msra.mxu1 %v13035_v53  ;;  %11943 = vmatprep.subr.bf16.mxu0 %v13206_v1  ;;  %v13084_v53 = vld [vmem:[%s15961_s1 + $0xd8] sm:$0xff]  }
 0x376   : > { %12123 = vmatprep.subr.bf16.mxu1 %v13206_v1 }
 0x378   : > { %11944 = vmatpush3.bf16.msra.mxu0 %v13036_v54  ;;  %v13085_v54 = vld [vmem:[%s15961_s1 + $0xd8] sm:$0xff]  }
 0x379   : > { %12124 = vmatpush3.bf16.msra.mxu1 %v13037_v57  ;;  %11945 = vmatprep.subr.bf16.mxu0 %v13206_v1  ;;  %v13088_v57 = vld [vmem:[%s15961_s1 + $0xe8] sm:$0xff]  }
 0x37a   : > { %12125 = vmatprep.subr.bf16.mxu1 %v13206_v1 }
 0x37c   : > { %11946 = vmatpush3.bf16.msra.mxu0 %v13038_v61  ;;  %v13092_v61 = vld [vmem:[%s15961_s1 + $0xf8] sm:$0xff]  }
 0x37d   : > { %12126 = vmatpush3.bf16.msra.mxu1 %v13039_v63  ;;  %11947 = vmatprep.subr.bf16.mxu0 %v13206_v1  ;;  %v9843_v63 = vld [vmem:[%s13293_s12 + $0x38] sm:$0xf] }
 0x37e   : > { %12127 = vmatprep.subr.bf16.mxu1 %v13206_v1 }
 0x380   : > { %11948 = vmatpush3.bf16.msra.mxu0 %v13040_v2  ;;  %v10053_v2 = vld [vmem:[%s13293_s12 + $0x40] sm:$0xf] }
 0x381   : > { %12128 = vmatpush3.bf16.msra.mxu1 %v13041_v4  ;;  %11949 = vmatprep.subr.bf16.mxu0 %v13206_v1  ;;  %v13098_v4 = vld [vmem:[%s15961_s1 + $0x108] sm:$0xff]  }
 0x382   : > { %12129 = vmatprep.subr.bf16.mxu1 %v13206_v1 }
 0x384   : > { %11950 = vmatpush3.bf16.msra.mxu0 %v13042_v7  ;;  %v13101_v7 = vld [vmem:[%s15961_s1 + $0x110] sm:$0xff]  }
 0x385   : > { %12130 = vmatpush3.bf16.msra.mxu1 %v13043_v10  ;;  %11955 = vmatprep.subr.bf16.mxu0 %v13206_v1  ;;  %v9844_v10 = vld [vmem:[%s13293_s12 + $0x3c] sm:$0x1] }
 0x386   : > { %12135 = vmatprep.subr.bf16.mxu1 %v13206_v1 }
 0x387   : > { %11952 = vmatmul.mubr.bf16.vlgmr.msra.gmra.mrb[12].mxu0 %v6380_v11  ;;  %v13104_v11 = vld [vmem:[%s15961_s1 + $0x120] sm:$0xff]  }
 0x388   : > { %11956 = vmatpush3.bf16.msra.mxu0 %v13045_v12  ;;  %12132 = vmatmul.mubr.bf16.vlgmr.msra.gmra.mrb[12].mxu1 %v7384_v13  ;;  %v10054_v12 = vld [vmem:[%s13293_s12 + $0x44] sm:$0x1] }
 0x389   : > { %12136 = vmatpush3.bf16.msra.mxu1 %v13047_v14  ;;  %11957 = vmatprep.subr.bf16.mxu0 %v13206_v1  ;;  %v13105_v13 = vld [vmem:[%s15961_s1 + $0x120] sm:$0xff]   ;;  %v15609_v14 = vcombine.low %v9843_v63, %v9844_v10  ;;  %v13141_v10 = vld [vmem:[%s15961_s1 + $0x1b0] sm:$0xff]  }
 0x38a   : > { %12137 = vmatprep.subr.bf16.mxu1 %v13206_v1  ;;  %11971 = vmatprep.mubr.msk.bf16.mxu0 %vm13207_vm0, %v13206_v1 }
 0x38b   : > { %12151 = vmatprep.mubr.msk.bf16.mxu1 %vm13207_vm0, %v13206_v1 }
 0x38c   : > { %11958 = vmatpush3.bf16.msra.mxu0 %v13048_v15  ;;  %v15611_v15 = vcombine.low %v10053_v2, %v10054_v12 }
 0x38d   : > { %12138 = vmatpush3.bf16.msra.mxu1 %v13049_v16  ;;  %11959 = vmatprep.subr.bf16.mxu0 %v13206_v1  ;;  %v13106_v16 = vld [vmem:[%s15961_s1 + $0x128] sm:$0xff]  }
 0x38e   : > { %12139 = vmatprep.subr.bf16.mxu1 %v13206_v1 }
 0x390   : > { %11960 = vmatpush3.bf16.msra.mxu0 %v13050_v17  ;;  %v13107_v17 = vld [vmem:[%s15961_s1 + $0x128] sm:$0xff]  }
 0x391   : > { %12140 = vmatpush3.bf16.msra.mxu1 %v13051_v18  ;;  %11961 = vmatprep.subr.bf16.mxu0 %v13206_v1  ;;  %v6796_v18 = vshll.u32 %v15609_v14, 16 }
 0x392   : > { %12141 = vmatprep.subr.bf16.mxu1 %v13206_v1 }
 0x394   : > { %11962 = vmatpush3.bf16.msra.mxu0 %v13052_v19  ;;  %v7800_v19 = vshll.u32 %v15611_v15, 16 }
 0x395   : > { %12142 = vmatpush3.bf16.msra.mxu1 %v13053_v20  ;;  %11963 = vmatprep.subr.bf16.mxu0 %v13206_v1  ;;  %v13108_v20 = vld [vmem:[%s15961_s1 + $0x130] sm:$0xff]  }
 0x396   : > { %12143 = vmatprep.subr.bf16.mxu1 %v13206_v1 }
 0x398   : > { %11964 = vmatpush3.bf16.msra.mxu0 %v13054_v21  ;;  %v13109_v21 = vld [vmem:[%s15961_s1 + $0x130] sm:$0xff]  }
 0x399   : > { %12144 = vmatpush3.bf16.msra.mxu1 %v13055_v22  ;;  %11965 = vmatprep.subr.bf16.mxu0 %v13206_v1  ;;  %v6794_v22 = vshrl.u32 %v15609_v14, 16 }
 0x39a   : > { %12145 = vmatprep.subr.bf16.mxu1 %v13206_v1 }
 0x39c   : > { %11966 = vmatpush3.bf16.msra.mxu0 %v13056_v23  ;;  %v6798_v23 = vrot.slane %v6796_v18, 1 }
 0x39d   : > { %12146 = vmatpush3.bf16.msra.mxu1 %v13057_v24  ;;  %11967 = vmatprep.subr.bf16.mxu0 %v13206_v1  ;;  %v7798_v24 = vshrl.u32 %v15611_v15, 16 }
 0x39e   : > { %12147 = vmatprep.subr.bf16.mxu1 %v13206_v1 }
 0x3a0   : > { %11968 = vmatpush3.bf16.msra.mxu0 %v13058_v25  ;;  %v13110_v25 = vld [vmem:[%s15961_s1 + $0x138] sm:$0xff]  }
 0x3a1   : > { %12148 = vmatpush3.bf16.msra.mxu1 %v13059_v26  ;;  %11969 = vmatprep.subr.bf16.mxu0 %v13206_v1  ;;  %v7802_v26 = vrot.slane %v7800_v19, 1  ;;  %v9918_v19 = vld [vmem:[%s13293_s12 + $0x40] sm:$0xf] }
 0x3a2   : > { %12149 = vmatprep.subr.bf16.mxu1 %v13206_v1 }
 0x3a4   : > { %11970 = vmatpush3.bf16.msra.mxu0 %v13060_v27  ;;  %v13111_v27 = vld [vmem:[%s15961_s1 + $0x138] sm:$0xff]  }
 0x3a5   : > { %12150 = vmatpush3.bf16.msra.mxu1 %v13061_v28  ;;  %11975 = vmatprep.subr.bf16.mxu0 %v13206_v1  ;;  %v6799_v28 = vor.u32 %v6798_v23, %v6794_v22  ;;  %v13147_v22 = vld [vmem:[%s15961_s1 + $0x1c0] sm:$0xff]   ;;  %v13148_v23 = vld [vmem:[%s15961_s1 + $0x1c8] sm:$0xff]  }
 0x3a6   : > { %12155 = vmatprep.subr.bf16.mxu1 %v13206_v1 }
 0x3a7   : > { %11972 = vmatmul.mubr.bf16.vlgmr.msra.gmra.mrb[12].mxu0 %v15307_v55  ;;  %v13086_v55 = vld [vmem:[%s15961_s1 + $0xe0] sm:$0xff]  }
 0x3a8   : > { %11976 = vmatpush3.bf16.msra.mxu0 %v13062_v29  ;;  %12152 = vmatmul.mubr.bf16.vlgmr.msra.gmra.mrb[12].mxu1 %v15315_v58  ;;  %v13089_v58 = vld [vmem:[%s15961_s1 + $0xe8] sm:$0xff]   ;;  %v13112_v29 = vld [vmem:[%s15961_s1 + $0x140] sm:$0xff]  }
 0x3a9   : > { %12156 = vmatpush3.bf16.msra.mxu1 %v13063_v30  ;;  %11977 = vmatprep.subr.bf16.mxu0 %v13206_v1  ;;  %v7803_v30 = vor.u32 %v7802_v26, %v7798_v24  ;;  %v13149_v24 = vld [vmem:[%s15961_s1 + $0x1c8] sm:$0xff]   ;;  %v13151_v26 = vld [vmem:[%s15961_s1 + $0x1d0] sm:$0xff]  }
 0x3aa   : > { %12157 = vmatprep.subr.bf16.mxu1 %v13206_v1  ;;  %11991 = vmatprep.mubr.msk.bf16.mxu0 %vm13207_vm0, %v13206_v1 }
 0x3ab   : > { %12171 = vmatprep.mubr.msk.bf16.mxu1 %vm13207_vm0, %v13206_v1 }
 0x3ac   : > { %11978 = vmatpush3.bf16.msra.mxu0 %v13064_v31  ;;  %v13113_v31 = vld [vmem:[%s15961_s1 + $0x140] sm:$0xff]  }
 0x3ad   : > { %12158 = vmatpush3.bf16.msra.mxu1 %v13065_v32  ;;  %11979 = vmatprep.subr.bf16.mxu0 %v13206_v1  ;;  %v13114_v32 = vld [vmem:[%s15961_s1 + $0x148] sm:$0xff]  }
 0x3ae   : > { %12159 = vmatprep.subr.bf16.mxu1 %v13206_v1 }
 0x3b0   : > { %11980 = vmatpush3.bf16.msra.mxu0 %v13066_v33  ;;  %v13115_v33 = vld [vmem:[%s15961_s1 + $0x148] sm:$0xff]  }
 0x3b1   : > { %12160 = vmatpush3.bf16.msra.mxu1 %v13067_v34  ;;  %11981 = vmatprep.subr.bf16.mxu0 %v13206_v1  ;;  %v13116_v34 = vld [vmem:[%s15961_s1 + $0x150] sm:$0xff]  }
 0x3b2   : > { %12161 = vmatprep.subr.bf16.mxu1 %v13206_v1 }
 0x3b4   : > { %11982 = vmatpush3.bf16.msra.mxu0 %v13068_v35  ;;  %v13117_v35 = vld [vmem:[%s15961_s1 + $0x150] sm:$0xff]  }
 0x3b5   : > { %12162 = vmatpush3.bf16.msra.mxu1 %v13069_v36  ;;  %11983 = vmatprep.subr.bf16.mxu0 %v13206_v1  ;;  %v13118_v36 = vld [vmem:[%s15961_s1 + $0x158] sm:$0xff]  }
 0x3b6   : > { %12163 = vmatprep.subr.bf16.mxu1 %v13206_v1 }
 0x3b8   : > { %11984 = vmatpush3.bf16.msra.mxu0 %v13070_v37  ;;  %v13119_v37 = vld [vmem:[%s15961_s1 + $0x158] sm:$0xff]  }
 0x3b9   : > { %12164 = vmatpush3.bf16.msra.mxu1 %v13071_v38  ;;  %11985 = vmatprep.subr.bf16.mxu0 %v13206_v1  ;;  %v13120_v38 = vld [vmem:[%s15961_s1 + $0x160] sm:$0xff]  }
 0x3ba   : > { %12165 = vmatprep.subr.bf16.mxu1 %v13206_v1 }
 0x3bc   : > { %11986 = vmatpush3.bf16.msra.mxu0 %v13072_v39  ;;  %v13121_v39 = vld [vmem:[%s15961_s1 + $0x160] sm:$0xff]  }
 0x3bd   : > { %12166 = vmatpush3.bf16.msra.mxu1 %v13073_v40  ;;  %11987 = vmatprep.subr.bf16.mxu0 %v13206_v1  ;;  %v13122_v40 = vld [vmem:[%s15961_s1 + $0x168] sm:$0xff]  }
 0x3be   : > { %12167 = vmatprep.subr.bf16.mxu1 %v13206_v1 }
 0x3c0   : > { %11988 = vmatpush3.bf16.msra.mxu0 %v13074_v41  ;;  %v13123_v41 = vld [vmem:[%s15961_s1 + $0x168] sm:$0xff]  }
 0x3c1   : > { %12168 = vmatpush3.bf16.msra.mxu1 %v13075_v42  ;;  %11989 = vmatprep.subr.bf16.mxu0 %v13206_v1  ;;  %v13124_v42 = vld [vmem:[%s15961_s1 + $0x170] sm:$0xff]  }
 0x3c2   : > { %12169 = vmatprep.subr.bf16.mxu1 %v13206_v1 }
 0x3c4   : > { %11990 = vmatpush3.bf16.msra.mxu0 %v13076_v43  ;;  %v13125_v43 = vld [vmem:[%s15961_s1 + $0x170] sm:$0xff]  }
 0x3c5   : > { %12170 = vmatpush3.bf16.msra.mxu1 %v13077_v44  ;;  %11995 = vmatprep.subr.bf16.mxu0 %v13206_v1  ;;  %v13126_v44 = vld [vmem:[%s15961_s1 + $0x178] sm:$0xff]  }
 0x3c6   : > { %12175 = vmatprep.subr.bf16.mxu1 %v13206_v1 }
 0x3c7   : > { %11992 = vmatmul.mubr.bf16.vlgmr.msra.gmra.mrb[12].mxu0 %v6574_v45  ;;  %v13127_v45 = vld [vmem:[%s15961_s1 + $0x178] sm:$0xff]  }
 0x3c8   : > { %11996 = vmatpush3.bf16.msra.mxu0 %v13078_v46  ;;  %12172 = vmatmul.mubr.bf16.vlgmr.msra.gmra.mrb[12].mxu1 %v7578_v47  ;;  %v6906_v46 = vrot.slane %v15609_v14, 1  ;;  %v13128_v47 = vld [vmem:[%s15961_s1 + $0x180] sm:$0xff]  }
 0x3c9   : > { %12176 = vmatpush3.bf16.msra.mxu1 %v13079_v48  ;;  %11997 = vmatprep.subr.bf16.mxu0 %v13206_v1  ;;  %v7910_v48 = vrot.slane %v15611_v15, 1  ;;  %v13142_v15 = vld [vmem:[%s15961_s1 + $0x1b8] sm:$0xff]  }
 0x3ca   : > { %12177 = vmatprep.subr.bf16.mxu1 %v13206_v1  ;;  %12011 = vmatprep.mubr.msk.bf16.mxu0 %vm13207_vm0, %v13206_v1 }
 0x3cb   : > { %12191 = vmatprep.mubr.msk.bf16.mxu1 %vm13207_vm0, %v13206_v1 }
 0x3cc   : > { %11998 = vmatpush3.bf16.msra.mxu0 %v13080_v49  ;;  %v13129_v49 = vld [vmem:[%s15961_s1 + $0x180] sm:$0xff]  }
 0x3cd   : > { %12178 = vmatpush3.bf16.msra.mxu1 %v13081_v50  ;;  %11999 = vmatprep.subr.bf16.mxu0 %v13206_v1  ;;  %v13130_v50 = vld [vmem:[%s15961_s1 + $0x188] sm:$0xff]  }
 0x3ce   : > { %12179 = vmatprep.subr.bf16.mxu1 %v13206_v1 }
 0x3d0   : > { %12000 = vmatpush3.bf16.msra.mxu0 %v13082_v51  ;;  %v13131_v51 = vld [vmem:[%s15961_s1 + $0x188] sm:$0xff]  }
 0x3d1   : > { %12180 = vmatpush3.bf16.msra.mxu1 %v13083_v52  ;;  %12001 = vmatprep.subr.bf16.mxu0 %v13206_v1  ;;  %v13132_v52 = vld [vmem:[%s15961_s1 + $0x190] sm:$0xff]  }
 0x3d2   : > { %12181 = vmatprep.subr.bf16.mxu1 %v13206_v1 }
 0x3d4   : > { %12002 = vmatpush3.bf16.msra.mxu0 %v13084_v53  ;;  %v13133_v53 = vld [vmem:[%s15961_s1 + $0x190] sm:$0xff]  }
 0x3d5   : > { %12182 = vmatpush3.bf16.msra.mxu1 %v13085_v54  ;;  %12003 = vmatprep.subr.bf16.mxu0 %v13206_v1  ;;  %v13134_v54 = vld [vmem:[%s15961_s1 + $0x198] sm:$0xff]  }
 0x3d6   : > { %12183 = vmatprep.subr.bf16.mxu1 %v13206_v1 }
 0x3d8   : > { %12004 = vmatpush3.bf16.msra.mxu0 %v13086_v55  ;;  %v13135_v55 = vld [vmem:[%s15961_s1 + $0x198] sm:$0xff]  }
 0x3d9   : > { %12184 = vmatpush3.bf16.msra.mxu1 %v13087_v56  ;;  %12005 = vmatprep.subr.bf16.mxu0 %v13206_v1  ;;  %v13136_v56 = vld [vmem:[%s15961_s1 + $0x1a0] sm:$0xff]  }
 0x3da   : > { %12185 = vmatprep.subr.bf16.mxu1 %v13206_v1 }
 0x3dc   : > { %12006 = vmatpush3.bf16.msra.mxu0 %v13088_v57  ;;  %v13137_v57 = vld [vmem:[%s15961_s1 + $0x1a0] sm:$0xff]  }
 0x3dd   : > { %12186 = vmatpush3.bf16.msra.mxu1 %v13089_v58  ;;  %12007 = vmatprep.subr.bf16.mxu0 %v13206_v1  ;;  %v13138_v58 = vld [vmem:[%s15961_s1 + $0x1a8] sm:$0xff]  }
 0x3de   : > { %12187 = vmatprep.subr.bf16.mxu1 %v13206_v1 }
 0x3e0   : > { %12008 = vmatpush3.bf16.msra.mxu0 %v13090_v59  ;;  %v13139_v59 = vld [vmem:[%s15961_s1 + $0x1a8] sm:$0xff]  }
 0x3e1   : > { %12188 = vmatpush3.bf16.msra.mxu1 %v13091_v60  ;;  %12009 = vmatprep.subr.bf16.mxu0 %v13206_v1 }
 0x3e2   : > { %12189 = vmatprep.subr.bf16.mxu1 %v13206_v1 }
 0x3e4   : > { %12010 = vmatpush3.bf16.msra.mxu0 %v13092_v61  ;;  %v15766_v61 = vld [vmem:[%s15962_s2] ss:$0 sm:$0xff] }
 0x3e5   : > { %12190 = vmatpush3.bf16.msra.mxu1 %v13093_v62  ;;  %12015 = vmatprep.subr.bf16.mxu0 %v13206_v1 }
 0x3e6   : > { %12195 = vmatprep.subr.bf16.mxu1 %v13206_v1 }
 0x3e7   : > { %12012 = vmatmul.mubr.bf16.vlgmr.msra.gmra.mrb[12].mxu0 %v9843_v63 }
 0x3e8   : > { %12016 = vmatpush3.bf16.msra.mxu0 %v13095_v0  ;;  %12192 = vmatmul.mubr.bf16.vlgmr.msra.gmra.mrb[12].mxu1 %v10053_v2 }
 0x3e9   : > { %12196 = vmatpush3.bf16.msra.mxu1 %v13097_v3  ;;  %12017 = vmatprep.subr.bf16.mxu0 %v13206_v1 }
 0x3ea   : > { %12197 = vmatprep.subr.bf16.mxu1 %v13206_v1  ;;  %12031 = vmatprep.mubr.msk.bf16.mxu0 %vm13207_vm0, %v13206_v1 }
 0x3eb   : > { %12211 = vmatprep.mubr.msk.bf16.mxu1 %vm13207_vm0, %v13206_v1 }
 0x3ec   : > { %12018 = vmatpush3.bf16.msra.mxu0 %v13098_v4 }
 0x3ed   : > { %12198 = vmatpush3.bf16.msra.mxu1 %v13099_v5  ;;  %12019 = vmatprep.subr.bf16.mxu0 %v13206_v1  ;;  %v13140_v5 = vld [vmem:[%s15961_s1 + $0x1b0] sm:$0xff]  }
 0x3ee   : > { %12199 = vmatprep.subr.bf16.mxu1 %v13206_v1 }
 0x3f0   : > { %12020 = vmatpush3.bf16.msra.mxu0 %v13100_v6  ;;  %v15776_v6 = vld [vmem:[%s15963_s3] ss:$0 sm:$0xff] }
 0x3f1   : > { %12200 = vmatpush3.bf16.msra.mxu1 %v13101_v7  ;;  %12021 = vmatprep.subr.bf16.mxu0 %v13206_v1 }
 0x3f2   : > { %12201 = vmatprep.subr.bf16.mxu1 %v13206_v1 }
 0x3f4   : > { %12022 = vmatpush3.bf16.msra.mxu0 %v13102_v8 }
 0x3f5   : > { %12202 = vmatpush3.bf16.msra.mxu1 %v13103_v9  ;;  %12023 = vmatprep.subr.bf16.mxu0 %v13206_v1 }
 0x3f6   : > { %12203 = vmatprep.subr.bf16.mxu1 %v13206_v1 }
 0x3f8   : > { %12024 = vmatpush3.bf16.msra.mxu0 %v13104_v11 }
 0x3f9   : > { %12204 = vmatpush3.bf16.msra.mxu1 %v13105_v13  ;;  %12025 = vmatprep.subr.bf16.mxu0 %v13206_v1 }
 0x3fa   : > { %12205 = vmatprep.subr.bf16.mxu1 %v13206_v1 }
 0x3fc   : > { %12026 = vmatpush3.bf16.msra.mxu0 %v13106_v16 }
 0x3fd   : > { %12206 = vmatpush3.bf16.msra.mxu1 %v13107_v17  ;;  %12027 = vmatprep.subr.bf16.mxu0 %v13206_v1  ;;  %v13143_v17 = vld [vmem:[%s15961_s1 + $0x1b8] sm:$0xff]  }
 0x3fe   : > { %12207 = vmatprep.subr.bf16.mxu1 %v13206_v1 }
 0x400   : > { %12028 = vmatpush3.bf16.msra.mxu0 %v13108_v20  ;;  %v13145_v20 = vld [vmem:[%s15961_s1 + $0x1c0] sm:$0xff]  }
 0x401   : > { %12208 = vmatpush3.bf16.msra.mxu1 %v13109_v21  ;;  %12029 = vmatprep.subr.bf16.mxu0 %v13206_v1  ;;  %v10128_v21 = vld [vmem:[%s13293_s12 + $0x48] sm:$0xf] }
 0x402   : > { %12209 = vmatprep.subr.bf16.mxu1 %v13206_v1 }
 0x404   : > { %12030 = vmatpush3.bf16.msra.mxu0 %v13110_v25  ;;  %v13150_v25 = vld [vmem:[%s15961_s1 + $0x1d0] sm:$0xff]  }
 0x405   : > { %12210 = vmatpush3.bf16.msra.mxu1 %v13111_v27  ;;  %12035 = vmatprep.subr.bf16.mxu0 %v13206_v1  ;;  %v13152_v27 = vld [vmem:[%s15961_s1 + $0x1d8] sm:$0xff]  }
 0x406   : > { %12215 = vmatprep.subr.bf16.mxu1 %v13206_v1 }
 0x407   : > { %12032 = vmatmul.mubr.bf16.vlgmr.msra.gmra.mrb[12].mxu0 %v6799_v28  ;;  %v13153_v28 = vld [vmem:[%s15961_s1 + $0x1d8] sm:$0xff]  }
 0x408   : > { %12036 = vmatpush3.bf16.msra.mxu0 %v13112_v29  ;;  %12212 = vmatmul.mubr.bf16.vlgmr.msra.gmra.mrb[12].mxu1 %v7803_v30  ;;  %v9919_v29 = vld [vmem:[%s13293_s12 + $0x44] sm:$0x1] }
 0x409   : > { %12216 = vmatpush3.bf16.msra.mxu1 %v13113_v31  ;;  %12037 = vmatprep.subr.bf16.mxu0 %v13206_v1  ;;  %v13154_v30 = vld [vmem:[%s15961_s1 + $0x1e0] sm:$0xff]   ;;  %v10129_v31 = vld [vmem:[%s13293_s12 + $0x4c] sm:$0x1] }
 0x40a   : > { %12217 = vmatprep.subr.bf16.mxu1 %v13206_v1  ;;  %12051 = vmatprep.mubr.msk.bf16.mxu0 %vm13207_vm0, %v13206_v1 }
 0x40b   : > { %12231 = vmatprep.mubr.msk.bf16.mxu1 %vm13207_vm0, %v13206_v1 }
 0x40c   : > { %12038 = vmatpush3.bf16.msra.mxu0 %v13114_v32  ;;  %v13155_v32 = vld [vmem:[%s15961_s1 + $0x1e0] sm:$0xff]  }
 0x40d   : > { %12218 = vmatpush3.bf16.msra.mxu1 %v13115_v33  ;;  %12039 = vmatprep.subr.bf16.mxu0 %v13206_v1  ;;  %v15843_v33 = vcombine.low %v9918_v19, %v9919_v29 }
 0x40e   : > { %12219 = vmatprep.subr.bf16.mxu1 %v13206_v1 }
 0x410   : > { %12040 = vmatpush3.bf16.msra.mxu0 %v13116_v34  ;;  %v15845_v34 = vcombine.low %v10128_v21, %v10129_v31 }
 0x411   : > { %12220 = vmatpush3.bf16.msra.mxu1 %v13117_v35  ;;  %12041 = vmatprep.subr.bf16.mxu0 %v13206_v1  ;;  %v13156_v35 = vld [vmem:[%s15961_s1 + $0x1e8] sm:$0xff]  }
 0x412   : > { %12221 = vmatprep.subr.bf16.mxu1 %v13206_v1 }
 0x414   : > { %12042 = vmatpush3.bf16.msra.mxu0 %v13118_v36  ;;  %v13157_v36 = vld [vmem:[%s15961_s1 + $0x1e8] sm:$0xff]  }
 0x415   : > { %12222 = vmatpush3.bf16.msra.mxu1 %v13119_v37  ;;  %12043 = vmatprep.subr.bf16.mxu0 %v13206_v1  ;;  %v7132_v37 = vshll.u32 %v15843_v33, 16 }
 0x416   : > { %12223 = vmatprep.subr.bf16.mxu1 %v13206_v1 }
 0x418   : > { %12044 = vmatpush3.bf16.msra.mxu0 %v13120_v38  ;;  %v8136_v38 = vshll.u32 %v15845_v34, 16 }
 0x419   : > { %12224 = vmatpush3.bf16.msra.mxu1 %v13121_v39  ;;  %12045 = vmatprep.subr.bf16.mxu0 %v13206_v1  ;;  %v13158_v39 = vld [vmem:[%s15961_s1 + $0x1f0] sm:$0xff]  }
 0x41a   : > { %12225 = vmatprep.subr.bf16.mxu1 %v13206_v1 }
 0x41c   : > { %12046 = vmatpush3.bf16.msra.mxu0 %v13122_v40  ;;  %v13159_v40 = vld [vmem:[%s15961_s1 + $0x1f0] sm:$0xff]  }
 0x41d   : > { %12226 = vmatpush3.bf16.msra.mxu1 %v13123_v41  ;;  %12047 = vmatprep.subr.bf16.mxu0 %v13206_v1  ;;  %v7130_v41 = vshrl.u32 %v15843_v33, 16 }
 0x41e   : > { %12227 = vmatprep.subr.bf16.mxu1 %v13206_v1 }
 0x420   : > { %12048 = vmatpush3.bf16.msra.mxu0 %v13124_v42  ;;  %v7134_v42 = vrot.slane %v7132_v37, 1 }
 0x421   : > { %12228 = vmatpush3.bf16.msra.mxu1 %v13125_v43  ;;  %12049 = vmatprep.subr.bf16.mxu0 %v13206_v1  ;;  %v8134_v43 = vshrl.u32 %v15845_v34, 16 }
 0x422   : > { %12229 = vmatprep.subr.bf16.mxu1 %v13206_v1 }
 0x424   : > { %12050 = vmatpush3.bf16.msra.mxu0 %v13126_v44  ;;  %v13160_v44 = vld [vmem:[%s15961_s1 + $0x1f8] sm:$0xff]  }
 0x425   : > { %12230 = vmatpush3.bf16.msra.mxu1 %v13127_v45  ;;  %12055 = vmatprep.subr.bf16.mxu0 %v13206_v1  ;;  %v8138_v45 = vrot.slane %v8136_v38, 1 }
 0x426   : > { %12235 = vmatprep.subr.bf16.mxu1 %v13206_v1 }
 0x427   : > { %12052 = vmatmul.mubr.bf16.vlgmr.msra.gmra.mrb[12].mxu0 %v6906_v46  ;;  %v13161_v46 = vld [vmem:[%s15961_s1 + $0x1f8] sm:$0xff]  }
 0x428   : > { %12056 = vmatpush3.bf16.msra.mxu0 %v13128_v47  ;;  %12232 = vmatmul.mubr.bf16.vlgmr.msra.gmra.mrb[12].mxu1 %v7910_v48  ;;  %v7135_v47 = vor.u32 %v7134_v42, %v7130_v41  ;;  %v13162_v48 = vld [vmem:[%s15961_s1 + $0x200] sm:$0xff]  }
 0x429   : > { %12236 = vmatpush3.bf16.msra.mxu1 %v13129_v49  ;;  %12057 = vmatprep.subr.bf16.mxu0 %v13206_v1  ;;  %v8139_v49 = vor.u32 %v8138_v45, %v8134_v43 }
 0x42a   : > { %12237 = vmatprep.subr.bf16.mxu1 %v13206_v1  ;;  %12071 = vmatprep.mubr.msk.bf16.mxu0 %vm13207_vm0, %v13206_v1 }
 0x42b   : > { %12251 = vmatprep.mubr.msk.bf16.mxu1 %vm13207_vm0, %v13206_v1 }
 0x42c   : > { %12058 = vmatpush3.bf16.msra.mxu0 %v13130_v50  ;;  %v13163_v50 = vld [vmem:[%s15961_s1 + $0x200] sm:$0xff]  }
 0x42d   : > { %12238 = vmatpush3.bf16.msra.mxu1 %v13131_v51  ;;  %12059 = vmatprep.subr.bf16.mxu0 %v13206_v1  ;;  %v13164_v51 = vld [vmem:[%s15961_s1 + $0x208] sm:$0xff]  }
 0x42e   : > { %12239 = vmatprep.subr.bf16.mxu1 %v13206_v1 }
 0x430   : > { %12060 = vmatpush3.bf16.msra.mxu0 %v13132_v52  ;;  %v13165_v52 = vld [vmem:[%s15961_s1 + $0x208] sm:$0xff]  }
 0x431   : > { %12240 = vmatpush3.bf16.msra.mxu1 %v13133_v53  ;;  %12061 = vmatprep.subr.bf16.mxu0 %v13206_v1  ;;  %v13166_v53 = vld [vmem:[%s15961_s1 + $0x210] sm:$0xff]  }
 0x432   : > { %12241 = vmatprep.subr.bf16.mxu1 %v13206_v1 }
 0x434   : > { %12062 = vmatpush3.bf16.msra.mxu0 %v13134_v54  ;;  %v13167_v54 = vld [vmem:[%s15961_s1 + $0x210] sm:$0xff]  }
 0x435   : > { %12242 = vmatpush3.bf16.msra.mxu1 %v13135_v55  ;;  %12063 = vmatprep.subr.bf16.mxu0 %v13206_v1  ;;  %v13168_v55 = vld [vmem:[%s15961_s1 + $0x218] sm:$0xff]  }
 0x436   : > { %12243 = vmatprep.subr.bf16.mxu1 %v13206_v1 }
 0x438   : > { %12064 = vmatpush3.bf16.msra.mxu0 %v13136_v56  ;;  %v13169_v56 = vld [vmem:[%s15961_s1 + $0x218] sm:$0xff]  }
 0x439   : > { %12244 = vmatpush3.bf16.msra.mxu1 %v13137_v57  ;;  %12065 = vmatprep.subr.bf16.mxu0 %v13206_v1  ;;  %v13170_v57 = vld [vmem:[%s15961_s1 + $0x220] sm:$0xff]  }
 0x43a   : > { %v5318_v60 = vpop.f32.mrb[8].mxu0  ;;  %12245 = vmatprep.subr.bf16.mxu1 %v13206_v1 }
 0x43b   : > { %v5325_v62 = vmul.f32 %v15766_v61, %v5318_v60  ;;  %v6322_v63 = vpop.f32.mrb[8].mxu1  ;;  %v11753_v0 = vpop.f32.mrb[9].mxu0  ;;  %v13173_v60 = vld [vmem:[%s15961_s1 + $0x228] sm:$0xff]  }
 0x43c   : > { %v6329_v2 = vmul.f32 %v15766_v61, %v6322_v63  ;;  %v11933_v3 = vpop.f32.mrb[9].mxu1  ;;  %v5321_v4 = vpop.f32.mrb[10].mxu0  ;;  %12066 = vmatpush3.bf16.msra.mxu0 %v13138_v58  ;;  %v13171_v58 = vld [vmem:[%s15961_s1 + $0x220] sm:$0xff]   ;;  %v13175_v63 = vld [vmem:[%s15961_s1 + $0x230] sm:$0xff]   ;;  %v13176_v0 = vld [vmem:[%s15961_s1 + $0x238] sm:$0xff]  }
 0x43d   : > { %v5326_v7 = vadd.f32 %v15776_v6, %v5325_v62  ;;  %v6325_v8 = vpop.f32.mrb[10].mxu1  ;;  %12246 = vmatpush3.bf16.msra.mxu1 %v13139_v59  ;;  %v11754_v9 = vpop.f32.mrb[11].mxu0  ;;  %12067 = vmatprep.subr.bf16.mxu0 %v13206_v1  ;;  %v13172_v59 = vld [vmem:[%s15961_s1 + $0x228] sm:$0xff]   ;;  %v13174_v62 = vld [vmem:[%s15961_s1 + $0x230] sm:$0xff]   ;;  %v7242_v3 = vrot.slane %v15843_v33, 1  ;;  %v8246_v4 = vrot.slane %v15845_v34, 1 }
 0x43e   : > { %v6330_v11 = vadd.f32 %v15776_v6, %v6329_v2  ;;  %v11934_v12 = vpop.f32.mrb[11].mxu1  ;;  %12247 = vmatprep.subr.bf16.mxu1 %v13206_v1  ;;  %v13177_v2 = vld [vmem:[%s15961_s1 + $0x238] sm:$0xff]  }
 0x43f   : > { %v5327_v13 = vmax.f32 %v5326_v7, 0.0 }
 0x440   : > { %v6331_v14 = vmax.f32 %v6330_v11, 0.0  ;;  %12068 = vmatpush3.bf16.msra.mxu0 %v13140_v5 }
 0x441   : > { %v5328_v16 = vpack.c.bf16 %v5327_v13, %v5327_v13  ;;  %12248 = vmatpush3.bf16.msra.mxu1 %v13141_v10  ;;  %12069 = vmatprep.subr.bf16.mxu0 %v13206_v1 }
 0x442   : > { %v6332_v18 = vpack.c.bf16 %v6331_v14, %v6331_v14  ;;  %12249 = vmatprep.subr.bf16.mxu1 %v13206_v1 }
 0x443   : > { %9573 = vst [vmem:[%s14438_s8 + $0x10] sm:$0xf] %v5328_v16 }
 0x444   : > { %9783 = vst [vmem:[%s14438_s8 + $0x14] sm:$0xf] %v6332_v18  ;;  %12070 = vmatpush3.bf16.msra.mxu0 %v13142_v15 }
 0x445   : > { %12250 = vmatpush3.bf16.msra.mxu1 %v13143_v17  ;;  %12075 = vmatprep.subr.bf16.mxu0 %v13206_v1 }
 0x446   : > { %12255 = vmatprep.subr.bf16.mxu1 %v13206_v1 }
 0x447   : > { %12072 = vmatmul.mubr.bf16.vlgmr.msra.gmra.mrb[12].mxu0 %v9918_v19 }
 0x448   : > { %12076 = vmatpush3.bf16.msra.mxu0 %v13145_v20  ;;  %12252 = vmatmul.mubr.bf16.vlgmr.msra.gmra.mrb[12].mxu1 %v10128_v21 }
 0x449   : > { %12256 = vmatpush3.bf16.msra.mxu1 %v13147_v22  ;;  %12077 = vmatprep.subr.bf16.mxu0 %v13206_v1 }
 0x44a   : > { %12257 = vmatprep.subr.bf16.mxu1 %v13206_v1  ;;  %12091 = vmatprep.mubr.msk.bf16.mxu0 %vm13207_vm0, %v13206_v1 }
 0x44b   : > { %12271 = vmatprep.mubr.msk.bf16.mxu1 %vm13207_vm0, %v13206_v1 }
 0x44c   : > { %12078 = vmatpush3.bf16.msra.mxu0 %v13148_v23 }
 0x44d   : > { %12258 = vmatpush3.bf16.msra.mxu1 %v13149_v24  ;;  %12079 = vmatprep.subr.bf16.mxu0 %v13206_v1 }
 0x44e   : > { %12259 = vmatprep.subr.bf16.mxu1 %v13206_v1 }
 0x450   : > { %12080 = vmatpush3.bf16.msra.mxu0 %v13150_v25 }
 0x451   : > { %12260 = vmatpush3.bf16.msra.mxu1 %v13151_v26  ;;  %12081 = vmatprep.subr.bf16.mxu0 %v13206_v1 }
 0x452   : > { %12261 = vmatprep.subr.bf16.mxu1 %v13206_v1 }
 0x454   : > { %12082 = vmatpush3.bf16.msra.mxu0 %v13152_v27 }
 0x455   : > { %12262 = vmatpush3.bf16.msra.mxu1 %v13153_v28  ;;  %12083 = vmatprep.subr.bf16.mxu0 %v13206_v1 }
 0x456   : > { %12263 = vmatprep.subr.bf16.mxu1 %v13206_v1 }
 0x458   : > { %12084 = vmatpush3.bf16.msra.mxu0 %v13154_v30 }
 0x459   : > { %12264 = vmatpush3.bf16.msra.mxu1 %v13155_v32  ;;  %12085 = vmatprep.subr.bf16.mxu0 %v13206_v1 }
 0x45a   : > { %12265 = vmatprep.subr.bf16.mxu1 %v13206_v1 }
 0x45c   : > { %12086 = vmatpush3.bf16.msra.mxu0 %v13156_v35 }
 0x45d   : > { %12266 = vmatpush3.bf16.msra.mxu1 %v13157_v36  ;;  %12087 = vmatprep.subr.bf16.mxu0 %v13206_v1 }
 0x45e   : > { %12267 = vmatprep.subr.bf16.mxu1 %v13206_v1 }
 0x460   : > { %12088 = vmatpush3.bf16.msra.mxu0 %v13158_v39 }
 0x461   : > { %12268 = vmatpush3.bf16.msra.mxu1 %v13159_v40  ;;  %12089 = vmatprep.subr.bf16.mxu0 %v13206_v1 }
 0x462   : > { %12269 = vmatprep.subr.bf16.mxu1 %v13206_v1 }
 0x464   : > { %12090 = vmatpush3.bf16.msra.mxu0 %v13160_v44 }
 0x465   : > { %12270 = vmatpush3.bf16.msra.mxu1 %v13161_v46  ;;  %12095 = vmatprep.subr.bf16.mxu0 %v13206_v1 }
 0x466   : > { %12275 = vmatprep.subr.bf16.mxu1 %v13206_v1 }
 0x467   : > { %12092 = vmatmul.mubr.bf16.vlgmr.msra.gmra.mrb[12].mxu0 %v7135_v47 }
 0x468   : > { %12096 = vmatpush3.bf16.msra.mxu0 %v13162_v48  ;;  %12272 = vmatmul.mubr.bf16.vlgmr.msra.gmra.mrb[12].mxu1 %v8139_v49 }
 0x469   : > { %12276 = vmatpush3.bf16.msra.mxu1 %v13163_v50  ;;  %12097 = vmatprep.subr.bf16.mxu0 %v13206_v1 }
 0x46a   : > { %12277 = vmatprep.subr.bf16.mxu1 %v13206_v1  ;;  %12111 = vmatprep.mubr.msk.bf16.mxu0 %vm13207_vm0, %v13206_v1 }
 0x46b   : > { %12291 = vmatprep.mubr.msk.bf16.mxu1 %vm13207_vm0, %v13206_v1 }
 0x46c   : > { %12098 = vmatpush3.bf16.msra.mxu0 %v13164_v51 }
 0x46d   : > { %12278 = vmatpush3.bf16.msra.mxu1 %v13165_v52  ;;  %12099 = vmatprep.subr.bf16.mxu0 %v13206_v1 }
 0x46e   : > { %12279 = vmatprep.subr.bf16.mxu1 %v13206_v1 }
 0x470   : > { %12100 = vmatpush3.bf16.msra.mxu0 %v13166_v53 }
 0x471   : > { %12280 = vmatpush3.bf16.msra.mxu1 %v13167_v54  ;;  %12101 = vmatprep.subr.bf16.mxu0 %v13206_v1 }
 0x472   : > { %12281 = vmatprep.subr.bf16.mxu1 %v13206_v1 }
 0x474   : > { %12102 = vmatpush3.bf16.msra.mxu0 %v13168_v55 }
 0x475   : > { %12282 = vmatpush3.bf16.msra.mxu1 %v13169_v56  ;;  %12103 = vmatprep.subr.bf16.mxu0 %v13206_v1 }
 0x476   : > { %12283 = vmatprep.subr.bf16.mxu1 %v13206_v1 }
 0x478   : > { %12104 = vmatpush3.bf16.msra.mxu0 %v13170_v57 }
 0x479   : > { %12284 = vmatpush3.bf16.msra.mxu1 %v13171_v58  ;;  %12105 = vmatprep.subr.bf16.mxu0 %v13206_v1 }
 0x47a   : > { %12285 = vmatprep.subr.bf16.mxu1 %v13206_v1 }
 0x47c   : > { %12106 = vmatpush3.bf16.msra.mxu0 %v13172_v59 }
 0x47d   : > { %12286 = vmatpush3.bf16.msra.mxu1 %v13173_v60  ;;  %12107 = vmatprep.subr.bf16.mxu0 %v13206_v1 }
 0x47e   : > { %12287 = vmatprep.subr.bf16.mxu1 %v13206_v1 }
 0x480   : > { %12108 = vmatpush3.bf16.msra.mxu0 %v13174_v62 }
 0x481   : > { %12288 = vmatpush3.bf16.msra.mxu1 %v13175_v63  ;;  %12109 = vmatprep.subr.bf16.mxu0 %v13206_v1 }
 0x482   : > { %12289 = vmatprep.subr.bf16.mxu1 %v13206_v1 }
 0x484   : > { %12110 = vmatpush3.bf16.msra.mxu0 %v13176_v0 }
 0x485   : > { %12290 = vmatpush3.bf16.msra.mxu1 %v13177_v2 }
 0x487   : > { %12112 = vmatmul.mubr.bf16.vlgmr.msra.gmra.mrb[12].mxu0 %v7242_v3 }
 0x488   : > { %12292 = vmatmul.mubr.bf16.vlgmr.msra.gmra.mrb[12].mxu1 %v8246_v4 }
 0x55a   : > { %v7326_v5 = vpop.f32.mrb[12].mxu0 }
 0x55b   : > { %v7333_v7 = vmul.f32 %v15766_v61, %v7326_v5  ;;  %v8330_v8 = vpop.f32.mrb[12].mxu1  ;;  %v12113_v9 = vpop.f32.mrb[13].mxu0 }
 0x55c   : > { %v8337_v10 = vmul.f32 %v15766_v61, %v8330_v8  ;;  %v12293_v11 = vpop.f32.mrb[13].mxu1  ;;  %v7329_v12 = vpop.f32.mrb[14].mxu0 }
 0x55d   : > { %v7334_v1 = vadd.f32 %v15776_v6, %v7333_v7  ;;  %v8333_v13 = vpop.f32.mrb[14].mxu1  ;;  %v12114_v14 = vpop.f32.mrb[15].mxu0 }
 0x55e   : > { %v8338_v15 = vadd.f32 %v15776_v6, %v8337_v10  ;;  %v12294_v16 = vpop.f32.mrb[15].mxu1 }
 0x55f   : > { %v7335_v17 = vmax.f32 %v7334_v1, 0.0 }
 0x560   : > { %v8339_v18 = vmax.f32 %v8338_v15, 0.0 }
 0x561   : > { %v7336_v19 = vpack.c.bf16 %v7335_v17, %v7335_v17 }
 0x562   : > { %v8340_v20 = vpack.c.bf16 %v8339_v18, %v8339_v18 }
 0x563   : > { %9993 = vst [vmem:[%s14438_s8 + $0x18] sm:$0xf] %v7336_v19 }
 0x564   : > { %10203 = vst [vmem:[%s14438_s8 + $0x1c] sm:$0xf] %v8340_v20 }
 0x565 PF: > { %s14_s17 = sadd.s32 1, %s13204_s17   ;;  %s15965_s15 = smov %s13200_s16 }
 0x566   : > { %p11_p5 = scmp.ge.s32.totalorder %s14_s17, 4   ;;  %s15966_s16 = smov %s15968_s18 }
 0x568   :  { %13 = sbr.rel (!%p11_p5) target bundleno = 2 (0x2), region = 100 }

</bundles_post_ra>
